<compile_context>
chip_gen: v7x
topology: tpu7x:2x2x1
jax: 0.10.0
libtpu: 0.0.40
codegen_flags: <defaults>
</compile_context>

<pallas_src>
import functools

import jax
import jax.numpy as jnp
from jax import lax
from jax.experimental import pallas as pl
from jax.experimental.pallas import tpu as pltpu


# ---------------------------------------------------------------------------------
# Geometry: MNIST 28x28, two valid 3x3 convs, 2x2 maxpool.  Images are kept flattened
# row-major on the lane axis with a per-image stride of 800 lanes (784 px + 16 pad),
# so a 3x3 tap at (dy, dx) is a constant lane offset dy*28 + dx (max 58).
# ---------------------------------------------------------------------------------
_W = 28
_TAP_OFFS = tuple(dy * _W + dx for dy in range(3) for dx in range(3))
_IMG_STRIDE = 800      # per-image lane stride (784 pixels + 16 pad; max index used = 793)
_N1 = 736              # conv1 positions kept per image (26*28 = 728 valid, padded to 736)
_N2 = 672              # conv2 positions per image (24*28); cols 0..23 of each row valid
_NV = _N2 - _W - 1     # 643: length of the fully-shifted 2x2-max map
_NPOOL = 144           # 12*12 pooled positions per channel
_K2 = 32 * 9           # conv2 matmul contraction (9 taps x 32 input channels)
_NROWSEL = 12 * 24     # 288: 12 pool-rows x 24 contiguous columns kept before col-decim.


def _pick_conv_tile(batch):
    # Largest TB in {8,4,2,1} that divides the batch while keeping >= 2 grid steps
    # (so the "parallel" batch axis can actually shard across both v7x TensorCores).
    for t in (8, 4, 2, 1):
        if batch % t == 0 and batch // t >= 2:
            return t
    return batch  # batch == 1


# ---------------------------------------------------------------------------------
# Kernel 1: fused conv1 + ReLU + conv2 + ReLU + 2x2 maxpool, TB images per grid step.
# Layout: channels on sublanes, flattened spatial (packed images) on the lane axis.
# ---------------------------------------------------------------------------------
def conv_tower_kernel(img_ref, w1_ref, b1_ref, w2_ref, b2_ref, sel_ref, o_ref, *, tb):
    # img_ref: (1, 1, tb*800) f32   tb flattened zero-padded images packed on lanes
    # w1_ref : (32, 9)        f32   conv1 weights (Cout, dy*3+dx)    -- VPU operand
    # b1_ref : (32, 1)        f32
    # w2_ref : (64, 288)      bf16  conv2 weights (Cout, 32*tap+ci)  -- MXU operand
    # b2_ref : (64, 1)        f32
    # sel_ref: (288, 144)     bf16  block-diagonal 0/1 column-decimation matrix
    # o_ref  : (tb, 64, 144)  bf16  pooled features, torch (C,H,W) flatten order
    span = _IMG_STRIDE * (tb - 1) + _N1

    # conv1 + ReLU for all tb images at once: 9 broadcast FMAs on the VPU.
    # Per-image lane stride 800 > max tap reach (58 + 735 = 793), so shifted slices
    # never read the next image's pixels; garbage positions are excluded downstream.
    x = img_ref[0]                                   # (1, tb*800) f32
    w1 = w1_ref[...]                                 # (32, 9)     f32
    h1 = w1[:, 0:1] * x[:, _TAP_OFFS[0]:_TAP_OFFS[0] + span]
    for t in range(1, 9):
        off = _TAP_OFFS[t]
        h1 = h1 + w1[:, t:t + 1] * x[:, off:off + span]       # (32, span) f32
    h1 = jnp.maximum(h1 + b1_ref[...], 0.0)
    h1 = h1.astype(jnp.bfloat16)                     # conv2 MXU operand (f32 accumulation)

    for b in range(tb):                              # statically unrolled per-image work
        base = b * _IMG_STRIDE
        # conv2 im2col: 9 sublane-aligned shifted copies -> ONE lane-dense K=288 matmul.
        p2 = jnp.concatenate(
            [h1[:, base + off:base + off + _N2] for off in _TAP_OFFS], axis=0)  # (288,672)
        h2 = jnp.dot(w2_ref[...], p2, preferred_element_type=jnp.float32)       # (64,672)
        h2 = jnp.maximum(h2 + b2_ref[...], 0.0)

        # 2x2 max pool: lane-shifted horizontal + vertical pair maxima (f32), then
        # 12 contiguous row slices + a small 0/1 matmul for the stride-2 column pick.
        hm = jnp.maximum(h2[:, :-1], h2[:, 1:])                 # (64, 671)
        vm = jnp.maximum(hm[:, :-_W], hm[:, _W:])               # (64, 643)
        rows = jnp.concatenate(
            [vm[:, 56 * r:56 * r + 24] for r in range(12)], axis=1)             # (64,288)
        pooled = jnp.dot(rows.astype(jnp.bfloat16), sel_ref[...],
                         preferred_element_type=jnp.float32)                    # (64,144)
        o_ref[b, :, :] = pooled.astype(o_ref.dtype)


def conv_tower(img, w1, b1, w2, b2, sel, *, tb):
    groups = img.shape[0]                    # == batch // tb
    batch = groups * tb
    return pl.pallas_call(
        functools.partial(conv_tower_kernel, tb=tb),
        out_shape=jax.ShapeDtypeStruct((batch, 64, _NPOOL), jnp.bfloat16),
        grid=(groups,),
        in_specs=[
            pl.BlockSpec((1, 1, tb * _IMG_STRIDE), lambda g: (g, 0, 0)),
            pl.BlockSpec((32, 9), lambda g: (0, 0)),
            pl.BlockSpec((32, 1), lambda g: (0, 0)),
            pl.BlockSpec((64, _K2), lambda g: (0, 0)),
            pl.BlockSpec((64, 1), lambda g: (0, 0)),
            pl.BlockSpec((_NROWSEL, _NPOOL), lambda g: (0, 0)),
        ],
        out_specs=pl.BlockSpec((tb, 64, _NPOOL), lambda g: (g, 0, 0)),
        compiler_params=pltpu.CompilerParams(dimension_semantics=("parallel",)),
    )(img, w1, b1, w2, b2, sel)


# ---------------------------------------------------------------------------------
# Kernel 2: fused head  fc1 (9216->128) + ReLU + [dropout2 = identity] + fc2 + log_softmax.
# Batch-tiled grid; output padded to 128 lanes (lane-dense store), real classes 0..9.
# bf16 MXU operands, f32 bias/ReLU/softmax.
# ---------------------------------------------------------------------------------
def mlp_head_kernel(x_ref, w1_ref, b1_ref, w2_ref, b2_ref, o_ref):
    h = jnp.dot(x_ref[...], w1_ref[...], preferred_element_type=jnp.float32) + b1_ref[...]
    h = jnp.maximum(h, 0.0)                                            # fc1 + ReLU (f32)
    logits = jnp.dot(h.astype(w2_ref.dtype), w2_ref[...],
                     preferred_element_type=jnp.float32) + b2_ref[...]
    m = jnp.max(logits, axis=-1, keepdims=True)                        # stable log_softmax
    lse = m + jnp.log(jnp.sum(jnp.exp(logits - m), axis=-1, keepdims=True))
    o_ref[...] = logits - lse


def mlp_head(x, w1, b1, w2, b2):
    B, K = x.shape
    n_out = w2.shape[-1]                       # 128 (classes padded 10 -> 128)
    tb = B if B <= 128 else 128                # bf16 operands: ~9.6 MiB resident at tb=128
    # NOTE: on v7x, single-buffering the constant-index weight blocks
    #       (pipeline_mode=pl.Buffered(1)) would free a further ~2.4 MiB if needed.
    return pl.pallas_call(
        mlp_head_kernel,
        out_shape=jax.ShapeDtypeStruct((B, n_out), jnp.float32),
        grid=(pl.cdiv(B, tb),),
        in_specs=[
            pl.BlockSpec((tb, K), lambda i: (i, 0)),
            pl.BlockSpec((K, 128), lambda i: (0, 0)),
            pl.BlockSpec((1, 128), lambda i: (0, 0)),
            pl.BlockSpec((128, n_out), lambda i: (0, 0)),
            pl.BlockSpec((1, n_out), lambda i: (0, 0)),
        ],
        out_specs=pl.BlockSpec((tb, n_out), lambda i: (i, 0)),
        compiler_params=pltpu.CompilerParams(dimension_semantics=("parallel",)),
    )(x, w1, b1, w2, b2)


# ---------------------------------------------------------------------------------
# Parameters (deterministic, PyTorch-style U(-1/sqrt(fan_in), 1/sqrt(fan_in)) init)
# ---------------------------------------------------------------------------------
def init_params(key):
    ks = jax.random.split(key, 8)

    def u(k, shape, fan_in):
        bound = 1.0 / (fan_in ** 0.5)
        return jax.random.uniform(k, shape, jnp.float32, -bound, bound)

    return {
        "conv1_w": u(ks[0], (32, 1, 3, 3), 1 * 9),     # OIHW
        "conv1_b": u(ks[1], (32,), 1 * 9),
        "conv2_w": u(ks[2], (64, 32, 3, 3), 32 * 9),   # OIHW
        "conv2_b": u(ks[3], (64,), 32 * 9),
        "fc1_w":   u(ks[4], (128, 9216), 9216),        # torch Linear (out, in)
        "fc1_b":   u(ks[5], (128,), 9216),
        "fc2_w":   u(ks[6], (10, 128), 128),
        "fc2_b":   u(ks[7], (10,), 128),
    }


# ---------------------------------------------------------------------------------
# Forward pass (2 pallas_calls; wrapper does only layout plumbing on inputs/weights)
# ---------------------------------------------------------------------------------
def mnist_net_forward(x_nchw, p):
    B = x_nchw.shape[0]
    tb = _pick_conv_tile(B)

    # ---- wrapper-side layout plumbing (pure XLA, no compute hoisted) ----
    # Flatten each single-channel image row-major, zero-pad to 800 lanes (so every 3x3
    # tap of every kept position reads in-bounds), pack tb images per grid row on lanes.
    img = x_nchw.reshape(B, _W * _W)
    img = jnp.pad(img, ((0, 0), (0, _IMG_STRIDE - _W * _W)))
    img = img.reshape(B // tb, 1, tb * _IMG_STRIDE)                     # f32

    w1 = p["conv1_w"].reshape(32, 9)                                    # VPU operand, f32
    b1 = p["conv1_b"].reshape(32, 1)
    w2 = jnp.transpose(p["conv2_w"], (0, 2, 3, 1)).reshape(64, _K2).astype(jnp.bfloat16)
    b2 = p["conv2_b"].reshape(64, 1)

    # Block-diagonal 0/1 decimation: pooled j = 12*ph + pw  <-  rowsel index 24*ph + 2*pw.
    j = jnp.arange(_NPOOL)
    src = 24 * (j // 12) + 2 * (j % 12)
    sel = (jnp.arange(_NROWSEL)[:, None] == src[None, :]).astype(jnp.bfloat16)  # (288,144)

    pooled = conv_tower(img, w1, b1, w2, b2, sel, tb=tb)                # (B, 64, 144) bf16
    # dropout1 == identity (inference). (C, H, W) order already matches torch.flatten.
    flat = pooled.reshape(B, 64 * _NPOOL)                               # (B, 9216) bf16

    w_fc1 = p["fc1_w"].T.astype(jnp.bfloat16)                           # (9216, 128)
    b_fc1 = p["fc1_b"].reshape(1, 128)                                  # f32
    # Pad fc2 to 128 output lanes (lane-dense store); padded logits get a -1e30 bias,
    # applied post-matmul in f32, so they vanish from the log_softmax exactly.
    w_fc2 = jnp.pad(p["fc2_w"].T, ((0, 0), (0, 118))).astype(jnp.bfloat16)   # (128, 128)
    b_fc2 = jnp.pad(p["fc2_b"], (0, 118), constant_values=-1e30).reshape(1, 128)

    out = mlp_head(flat, w_fc1, b_fc1, w_fc2, b_fc2)                    # (B, 128) f32
    return out[:, :10]


# ---------------------------------------------------------------------------------
# Pure-JAX reference (same math, f32 XLA ops) for validation
# ---------------------------------------------------------------------------------
def reference_forward(x_nchw, p):
    dn = ("NCHW", "OIHW", "NCHW")
    y = lax.conv_general_dilated(x_nchw, p["conv1_w"], (1, 1), "VALID",
                                 dimension_numbers=dn)
    y = jnp.maximum(y + p["conv1_b"].reshape(1, -1, 1, 1), 0.0)
    y = lax.conv_general_dilated(y, p["conv2_w"], (1, 1), "VALID",
                                 dimension_numbers=dn)
    y = jnp.maximum(y + p["conv2_b"].reshape(1, -1, 1, 1), 0.0)
    B, C, H, W = y.shape
    y = jnp.max(y.reshape(B, C, H // 2, 2, W // 2, 2), axis=(3, 5))
    y = y.reshape(B, -1)
    y = jnp.maximum(y @ p["fc1_w"].T + p["fc1_b"], 0.0)
    y = y @ p["fc2_w"].T + p["fc2_b"]
    return jax.nn.log_softmax(y, axis=1)


if __name__ == "__main__":
    root = jax.random.PRNGKey(0)
    k_x, k_p = jax.random.split(root)
    x = jax.random.normal(k_x, (2, 1, 28, 28), jnp.float32)   # MNIST-shaped batch of 2
    params = init_params(k_p)

    out = jax.jit(mnist_net_forward)(x, params)
    out = jax.block_until_ready(out)

    assert out.shape == (2, 10) and out.dtype == jnp.float32
    # log_softmax rows must exponentiate-sum to 1
    assert bool(jnp.allclose(jnp.exp(out).sum(axis=1), 1.0, atol=1e-3))
    # match the pure-f32 reference (tolerance allows bf16 MXU operands / f32 accumulation)
    ref = reference_forward(x, params)
    assert bool(jnp.allclose(out, ref, atol=3e-2, rtol=3e-2))

    print("KERNEL_OK")
</pallas_src>

<mosaic_0001>
module attributes {stable_mosaic.version = 11 : i64} {
  func.func @conv_tower_kernel(%arg0: i32, %arg1: memref<1x1x800xf32, #tpu.memory_space<vmem>>, %arg2: memref<32x9xf32, #tpu.memory_space<vmem>>, %arg3: memref<32x1xf32, #tpu.memory_space<vmem>>, %arg4: memref<64x288xbf16, #tpu.memory_space<vmem>>, %arg5: memref<64x1xf32, #tpu.memory_space<vmem>>, %arg6: memref<288x144xbf16, #tpu.memory_space<vmem>>, %arg7: memref<1x64x144xbf16, #tpu.memory_space<vmem>>) attributes {dimension_semantics = [#tpu.dimension_semantics<parallel>], iteration_bounds = array<i64: 2>, scalar_prefetch = 0 : i64, scratch_operands = 0 : i64, tpu.core_type = #tpu.core_type<tc>, window_params = [{transform_indices = @transform_0, window_bounds = array<i64: 1, 1, 800>}, {pipeline_mode = #tpu.pipeline_mode<synchronous>, transform_indices = @transform_1, window_bounds = array<i64: 32, 9>}, {pipeline_mode = #tpu.pipeline_mode<synchronous>, transform_indices = @transform_2, window_bounds = array<i64: 32, 1>}, {pipeline_mode = #tpu.pipeline_mode<synchronous>, transform_indices = @transform_3, window_bounds = array<i64: 64, 288>}, {pipeline_mode = #tpu.pipeline_mode<synchronous>, transform_indices = @transform_4, window_bounds = array<i64: 64, 1>}, {pipeline_mode = #tpu.pipeline_mode<synchronous>, transform_indices = @transform_5, window_bounds = array<i64: 288, 144>}, {transform_indices = @transform_6, window_bounds = array<i64: 1, 64, 144>}]} {
    %c0 = arith.constant 0 : index
    %c0_0 = arith.constant 0 : index
    %c0_1 = arith.constant 0 : index
    %0 = vector.load %arg1[%c0, %c0_0, %c0_1] : memref<1x1x800xf32, #tpu.memory_space<vmem>>, vector<1x1x800xf32>
    %1 = vector.shape_cast %0 : vector<1x1x800xf32> to vector<1x800xf32>
    %c0_2 = arith.constant 0 : index
    %c0_3 = arith.constant 0 : index
    %2 = vector.load %arg2[%c0_2, %c0_3] : memref<32x9xf32, #tpu.memory_space<vmem>>, vector<32x9xf32>
    %3 = vector.extract_strided_slice %2 {offsets = [0, 0], sizes = [32, 1], strides = [1, 1]} : vector<32x9xf32> to vector<32x1xf32>
    %4 = vector.extract_strided_slice %1 {offsets = [0, 0], sizes = [1, 736], strides = [1, 1]} : vector<1x800xf32> to vector<1x736xf32>
    %5 = vector.broadcast %3 : vector<32x1xf32> to vector<32x736xf32>
    %6 = vector.broadcast %4 : vector<1x736xf32> to vector<32x736xf32>
    %7 = arith.mulf %5, %6 : vector<32x736xf32>
    %8 = vector.extract_strided_slice %2 {offsets = [0, 1], sizes = [32, 1], strides = [1, 1]} : vector<32x9xf32> to vector<32x1xf32>
    %9 = vector.extract_strided_slice %1 {offsets = [0, 1], sizes = [1, 736], strides = [1, 1]} : vector<1x800xf32> to vector<1x736xf32>
    %10 = vector.broadcast %8 : vector<32x1xf32> to vector<32x736xf32>
    %11 = vector.broadcast %9 : vector<1x736xf32> to vector<32x736xf32>
    %12 = arith.mulf %10, %11 : vector<32x736xf32>
    %13 = arith.addf %7, %12 : vector<32x736xf32>
    %14 = vector.extract_strided_slice %2 {offsets = [0, 2], sizes = [32, 1], strides = [1, 1]} : vector<32x9xf32> to vector<32x1xf32>
    %15 = vector.extract_strided_slice %1 {offsets = [0, 2], sizes = [1, 736], strides = [1, 1]} : vector<1x800xf32> to vector<1x736xf32>
    %16 = vector.broadcast %14 : vector<32x1xf32> to vector<32x736xf32>
    %17 = vector.broadcast %15 : vector<1x736xf32> to vector<32x736xf32>
    %18 = arith.mulf %16, %17 : vector<32x736xf32>
    %19 = arith.addf %13, %18 : vector<32x736xf32>
    %20 = vector.extract_strided_slice %2 {offsets = [0, 3], sizes = [32, 1], strides = [1, 1]} : vector<32x9xf32> to vector<32x1xf32>
    %21 = vector.extract_strided_slice %1 {offsets = [0, 28], sizes = [1, 736], strides = [1, 1]} : vector<1x800xf32> to vector<1x736xf32>
    %22 = vector.broadcast %20 : vector<32x1xf32> to vector<32x736xf32>
    %23 = vector.broadcast %21 : vector<1x736xf32> to vector<32x736xf32>
    %24 = arith.mulf %22, %23 : vector<32x736xf32>
    %25 = arith.addf %19, %24 : vector<32x736xf32>
    %26 = vector.extract_strided_slice %2 {offsets = [0, 4], sizes = [32, 1], strides = [1, 1]} : vector<32x9xf32> to vector<32x1xf32>
    %27 = vector.extract_strided_slice %1 {offsets = [0, 29], sizes = [1, 736], strides = [1, 1]} : vector<1x800xf32> to vector<1x736xf32>
    %28 = vector.broadcast %26 : vector<32x1xf32> to vector<32x736xf32>
    %29 = vector.broadcast %27 : vector<1x736xf32> to vector<32x736xf32>
    %30 = arith.mulf %28, %29 : vector<32x736xf32>
    %31 = arith.addf %25, %30 : vector<32x736xf32>
    %32 = vector.extract_strided_slice %2 {offsets = [0, 5], sizes = [32, 1], strides = [1, 1]} : vector<32x9xf32> to vector<32x1xf32>
    %33 = vector.extract_strided_slice %1 {offsets = [0, 30], sizes = [1, 736], strides = [1, 1]} : vector<1x800xf32> to vector<1x736xf32>
    %34 = vector.broadcast %32 : vector<32x1xf32> to vector<32x736xf32>
    %35 = vector.broadcast %33 : vector<1x736xf32> to vector<32x736xf32>
    %36 = arith.mulf %34, %35 : vector<32x736xf32>
    %37 = arith.addf %31, %36 : vector<32x736xf32>
    %38 = vector.extract_strided_slice %2 {offsets = [0, 6], sizes = [32, 1], strides = [1, 1]} : vector<32x9xf32> to vector<32x1xf32>
    %39 = vector.extract_strided_slice %1 {offsets = [0, 56], sizes = [1, 736], strides = [1, 1]} : vector<1x800xf32> to vector<1x736xf32>
    %40 = vector.broadcast %38 : vector<32x1xf32> to vector<32x736xf32>
    %41 = vector.broadcast %39 : vector<1x736xf32> to vector<32x736xf32>
    %42 = arith.mulf %40, %41 : vector<32x736xf32>
    %43 = arith.addf %37, %42 : vector<32x736xf32>
    %44 = vector.extract_strided_slice %2 {offsets = [0, 7], sizes = [32, 1], strides = [1, 1]} : vector<32x9xf32> to vector<32x1xf32>
    %45 = vector.extract_strided_slice %1 {offsets = [0, 57], sizes = [1, 736], strides = [1, 1]} : vector<1x800xf32> to vector<1x736xf32>
    %46 = vector.broadcast %44 : vector<32x1xf32> to vector<32x736xf32>
    %47 = vector.broadcast %45 : vector<1x736xf32> to vector<32x736xf32>
    %48 = arith.mulf %46, %47 : vector<32x736xf32>
    %49 = arith.addf %43, %48 : vector<32x736xf32>
    %50 = vector.extract_strided_slice %2 {offsets = [0, 8], sizes = [32, 1], strides = [1, 1]} : vector<32x9xf32> to vector<32x1xf32>
    %51 = vector.extract_strided_slice %1 {offsets = [0, 58], sizes = [1, 736], strides = [1, 1]} : vector<1x800xf32> to vector<1x736xf32>
    %52 = vector.broadcast %50 : vector<32x1xf32> to vector<32x736xf32>
    %53 = vector.broadcast %51 : vector<1x736xf32> to vector<32x736xf32>
    %54 = arith.mulf %52, %53 : vector<32x736xf32>
    %55 = arith.addf %49, %54 : vector<32x736xf32>
    %c0_4 = arith.constant 0 : index
    %c0_5 = arith.constant 0 : index
    %56 = vector.load %arg3[%c0_4, %c0_5] : memref<32x1xf32, #tpu.memory_space<vmem>>, vector<32x1xf32>
    %57 = vector.broadcast %56 : vector<32x1xf32> to vector<32x736xf32>
    %58 = arith.addf %55, %57 : vector<32x736xf32>
    %cst = arith.constant 0.000000e+00 : f32
    %59 = vector.broadcast %cst : f32 to vector<32x736xf32>
    %60 = arith.maximumf %58, %59 : vector<32x736xf32>
    %61 = arith.truncf %60 : vector<32x736xf32> to vector<32x736xbf16>
    %62 = vector.extract_strided_slice %61 {offsets = [0, 0], sizes = [32, 672], strides = [1, 1]} : vector<32x736xbf16> to vector<32x672xbf16>
    %63 = vector.extract_strided_slice %61 {offsets = [0, 1], sizes = [32, 672], strides = [1, 1]} : vector<32x736xbf16> to vector<32x672xbf16>
    %64 = vector.extract_strided_slice %61 {offsets = [0, 2], sizes = [32, 672], strides = [1, 1]} : vector<32x736xbf16> to vector<32x672xbf16>
    %65 = vector.extract_strided_slice %61 {offsets = [0, 28], sizes = [32, 672], strides = [1, 1]} : vector<32x736xbf16> to vector<32x672xbf16>
    %66 = vector.extract_strided_slice %61 {offsets = [0, 29], sizes = [32, 672], strides = [1, 1]} : vector<32x736xbf16> to vector<32x672xbf16>
    %67 = vector.extract_strided_slice %61 {offsets = [0, 30], sizes = [32, 672], strides = [1, 1]} : vector<32x736xbf16> to vector<32x672xbf16>
    %68 = vector.extract_strided_slice %61 {offsets = [0, 56], sizes = [32, 672], strides = [1, 1]} : vector<32x736xbf16> to vector<32x672xbf16>
    %69 = vector.extract_strided_slice %61 {offsets = [0, 57], sizes = [32, 672], strides = [1, 1]} : vector<32x736xbf16> to vector<32x672xbf16>
    %70 = vector.extract_strided_slice %61 {offsets = [0, 58], sizes = [32, 672], strides = [1, 1]} : vector<32x736xbf16> to vector<32x672xbf16>
    %71 = tpu.concatenate %62, %63, %64, %65, %66, %67, %68, %69, %70 in 0 : vector<32x672xbf16>, vector<32x672xbf16>, vector<32x672xbf16>, vector<32x672xbf16>, vector<32x672xbf16>, vector<32x672xbf16>, vector<32x672xbf16>, vector<32x672xbf16>, vector<32x672xbf16> -> vector<288x672xbf16>
    %c0_6 = arith.constant 0 : index
    %c0_7 = arith.constant 0 : index
    %72 = vector.load %arg4[%c0_6, %c0_7] : memref<64x288xbf16, #tpu.memory_space<vmem>>, vector<64x288xbf16>
    %cst_8 = arith.constant dense<0.000000e+00> : vector<64x672xf32>
    %73 = tpu.matmul %72, %71, %cst_8 {dimension_numbers = #tpu.dot_dimension_numbers<[1], [0], [0], [1], [0, 0, 1, 1], [], []>} : vector<64x288xbf16>, vector<288x672xbf16>, vector<64x672xf32> -> vector<64x672xf32>
    %c0_9 = arith.constant 0 : index
    %c0_10 = arith.constant 0 : index
    %74 = vector.load %arg5[%c0_9, %c0_10] : memref<64x1xf32, #tpu.memory_space<vmem>>, vector<64x1xf32>
    %75 = vector.broadcast %74 : vector<64x1xf32> to vector<64x672xf32>
    %76 = arith.addf %73, %75 : vector<64x672xf32>
    %cst_11 = arith.constant 0.000000e+00 : f32
    %77 = vector.broadcast %cst_11 : f32 to vector<64x672xf32>
    %78 = arith.maximumf %76, %77 : vector<64x672xf32>
    %79 = vector.extract_strided_slice %78 {offsets = [0, 0], sizes = [64, 671], strides = [1, 1]} : vector<64x672xf32> to vector<64x671xf32>
    %80 = vector.extract_strided_slice %78 {offsets = [0, 1], sizes = [64, 671], strides = [1, 1]} : vector<64x672xf32> to vector<64x671xf32>
    %81 = arith.maximumf %79, %80 : vector<64x671xf32>
    %82 = vector.extract_strided_slice %81 {offsets = [0, 0], sizes = [64, 643], strides = [1, 1]} : vector<64x671xf32> to vector<64x643xf32>
    %83 = vector.extract_strided_slice %81 {offsets = [0, 28], sizes = [64, 643], strides = [1, 1]} : vector<64x671xf32> to vector<64x643xf32>
    %84 = arith.maximumf %82, %83 : vector<64x643xf32>
    %85 = vector.extract_strided_slice %84 {offsets = [0, 0], sizes = [64, 24], strides = [1, 1]} : vector<64x643xf32> to vector<64x24xf32>
    %86 = vector.extract_strided_slice %84 {offsets = [0, 56], sizes = [64, 24], strides = [1, 1]} : vector<64x643xf32> to vector<64x24xf32>
    %87 = vector.extract_strided_slice %84 {offsets = [0, 112], sizes = [64, 24], strides = [1, 1]} : vector<64x643xf32> to vector<64x24xf32>
    %88 = vector.extract_strided_slice %84 {offsets = [0, 168], sizes = [64, 24], strides = [1, 1]} : vector<64x643xf32> to vector<64x24xf32>
    %89 = vector.extract_strided_slice %84 {offsets = [0, 224], sizes = [64, 24], strides = [1, 1]} : vector<64x643xf32> to vector<64x24xf32>
    %90 = vector.extract_strided_slice %84 {offsets = [0, 280], sizes = [64, 24], strides = [1, 1]} : vector<64x643xf32> to vector<64x24xf32>
    %91 = vector.extract_strided_slice %84 {offsets = [0, 336], sizes = [64, 24], strides = [1, 1]} : vector<64x643xf32> to vector<64x24xf32>
    %92 = vector.extract_strided_slice %84 {offsets = [0, 392], sizes = [64, 24], strides = [1, 1]} : vector<64x643xf32> to vector<64x24xf32>
    %93 = vector.extract_strided_slice %84 {offsets = [0, 448], sizes = [64, 24], strides = [1, 1]} : vector<64x643xf32> to vector<64x24xf32>
    %94 = vector.extract_strided_slice %84 {offsets = [0, 504], sizes = [64, 24], strides = [1, 1]} : vector<64x643xf32> to vector<64x24xf32>
    %95 = vector.extract_strided_slice %84 {offsets = [0, 560], sizes = [64, 24], strides = [1, 1]} : vector<64x643xf32> to vector<64x24xf32>
    %96 = vector.extract_strided_slice %84 {offsets = [0, 616], sizes = [64, 24], strides = [1, 1]} : vector<64x643xf32> to vector<64x24xf32>
    %97 = tpu.concatenate %85, %86, %87, %88, %89, %90, %91, %92, %93, %94, %95, %96 in 1 : vector<64x24xf32>, vector<64x24xf32>, vector<64x24xf32>, vector<64x24xf32>, vector<64x24xf32>, vector<64x24xf32>, vector<64x24xf32>, vector<64x24xf32>, vector<64x24xf32>, vector<64x24xf32>, vector<64x24xf32>, vector<64x24xf32> -> vector<64x288xf32>
    %98 = arith.truncf %97 : vector<64x288xf32> to vector<64x288xbf16>
    %c0_12 = arith.constant 0 : index
    %c0_13 = arith.constant 0 : index
    %99 = vector.load %arg6[%c0_12, %c0_13] : memref<288x144xbf16, #tpu.memory_space<vmem>>, vector<288x144xbf16>
    %cst_14 = arith.constant dense<0.000000e+00> : vector<64x144xf32>
    %100 = tpu.matmul %98, %99, %cst_14 {dimension_numbers = #tpu.dot_dimension_numbers<[1], [0], [0], [1], [0, 0, 1, 1], [], []>} : vector<64x288xbf16>, vector<288x144xbf16>, vector<64x144xf32> -> vector<64x144xf32>
    %101 = arith.truncf %100 : vector<64x144xf32> to vector<64x144xbf16>
    %c0_15 = arith.constant 0 : index
    %c0_16 = arith.constant 0 : index
    %c0_17 = arith.constant 0 : index
    %102 = vector.load %arg7[%c0_15, %c0_16, %c0_17] : memref<1x64x144xbf16, #tpu.memory_space<vmem>>, vector<1x64x144xbf16>
    %103 = vector.shape_cast %102 : vector<1x64x144xbf16> to vector<64x144xbf16>
    %104 = vector.shape_cast %101 : vector<64x144xbf16> to vector<1x64x144xbf16>
    tpu.vector_store %arg7[%c0_15, %c0_16, %c0_17], %104 {strides = array<i32>} : memref<1x64x144xbf16, #tpu.memory_space<vmem>>, vector<1x64x144xbf16>,
    return
  }
  func.func @transform_0(%arg0: i32) -> (i32, i32, i32) {
    %c0_i32 = arith.constant 0 : i32
    %c0_i32_0 = arith.constant 0 : i32
    %c0_i32_1 = arith.constant 0 : i32
    return %arg0, %c0_i32, %c0_i32_0 : i32, i32, i32
  }
  func.func @transform_1(%arg0: i32) -> (i32, i32) {
    %c0_i32 = arith.constant 0 : i32
    %c0_i32_0 = arith.constant 0 : i32
    %c0_i32_1 = arith.constant 0 : i32
    return %c0_i32, %c0_i32_0 : i32, i32
  }
  func.func @transform_2(%arg0: i32) -> (i32, i32) {
    %c0_i32 = arith.constant 0 : i32
    %c0_i32_0 = arith.constant 0 : i32
    %c0_i32_1 = arith.constant 0 : i32
    return %c0_i32, %c0_i32_0 : i32, i32
  }
  func.func @transform_3(%arg0: i32) -> (i32, i32) {
    %c0_i32 = arith.constant 0 : i32
    %c0_i32_0 = arith.constant 0 : i32
    %c0_i32_1 = arith.constant 0 : i32
    return %c0_i32, %c0_i32_0 : i32, i32
  }
  func.func @transform_4(%arg0: i32) -> (i32, i32) {
    %c0_i32 = arith.constant 0 : i32
    %c0_i32_0 = arith.constant 0 : i32
    %c0_i32_1 = arith.constant 0 : i32
    return %c0_i32, %c0_i32_0 : i32, i32
  }
  func.func @transform_5(%arg0: i32) -> (i32, i32) {
    %c0_i32 = arith.constant 0 : i32
    %c0_i32_0 = arith.constant 0 : i32
    %c0_i32_1 = arith.constant 0 : i32
    return %c0_i32, %c0_i32_0 : i32, i32
  }
  func.func @transform_6(%arg0: i32) -> (i32, i32, i32) {
    %c0_i32 = arith.constant 0 : i32
    %c0_i32_0 = arith.constant 0 : i32
    %c0_i32_1 = arith.constant 0 : i32
    return %arg0, %c0_i32, %c0_i32_0 : i32, i32, i32
  }
}

module attributes {stable_mosaic.version = 11 : i64} {
  func.func @mlp_head_kernel(%arg0: i32, %arg1: memref<2x9216xbf16, #tpu.memory_space<vmem>>, %arg2: memref<9216x128xbf16, #tpu.memory_space<vmem>>, %arg3: memref<1x128xf32, #tpu.memory_space<vmem>>, %arg4: memref<128x128xbf16, #tpu.memory_space<vmem>>, %arg5: memref<1x128xf32, #tpu.memory_space<vmem>>, %arg6: memref<2x128xf32, #tpu.memory_space<vmem>>) attributes {dimension_semantics = [#tpu.dimension_semantics<parallel>], iteration_bounds = array<i64: 1>, scalar_prefetch = 0 : i64, scratch_operands = 0 : i64, tpu.core_type = #tpu.core_type<tc>, window_params = [{transform_indices = @transform_0, window_bounds = array<i64: 2, 9216>}, {pipeline_mode = #tpu.pipeline_mode<synchronous>, transform_indices = @transform_1, window_bounds = array<i64: 9216, 128>}, {pipeline_mode = #tpu.pipeline_mode<synchronous>, transform_indices = @transform_2, window_bounds = array<i64: 1, 128>}, {pipeline_mode = #tpu.pipeline_mode<synchronous>, transform_indices = @transform_3, window_bounds = array<i64: 128, 128>}, {pipeline_mode = #tpu.pipeline_mode<synchronous>, transform_indices = @transform_4, window_bounds = array<i64: 1, 128>}, {transform_indices = @transform_5, window_bounds = array<i64: 2, 128>}]} {
    %c0 = arith.constant 0 : index
    %c0_0 = arith.constant 0 : index
    %0 = vector.load %arg1[%c0, %c0_0] : memref<2x9216xbf16, #tpu.memory_space<vmem>>, vector<2x9216xbf16>
    %c0_1 = arith.constant 0 : index
    %c0_2 = arith.constant 0 : index
    %1 = vector.load %arg2[%c0_1, %c0_2] : memref<9216x128xbf16, #tpu.memory_space<vmem>>, vector<9216x128xbf16>
    %cst = arith.constant dense<0.000000e+00> : vector<2x128xf32>
    %2 = tpu.matmul %0, %1, %cst {dimension_numbers = #tpu.dot_dimension_numbers<[1], [0], [0], [1], [0, 0, 1, 1], [], []>} : vector<2x9216xbf16>, vector<9216x128xbf16>, vector<2x128xf32> -> vector<2x128xf32>
    %c0_3 = arith.constant 0 : index
    %c0_4 = arith.constant 0 : index
    %3 = vector.load %arg3[%c0_3, %c0_4] : memref<1x128xf32, #tpu.memory_space<vmem>>, vector<1x128xf32>
    %4 = vector.broadcast %3 : vector<1x128xf32> to vector<2x128xf32>
    %5 = arith.addf %2, %4 : vector<2x128xf32>
    %cst_5 = arith.constant 0.000000e+00 : f32
    %6 = vector.broadcast %cst_5 : f32 to vector<2x128xf32>
    %7 = arith.maximumf %5, %6 : vector<2x128xf32>
    %8 = arith.truncf %7 : vector<2x128xf32> to vector<2x128xbf16>
    %c0_6 = arith.constant 0 : index
    %c0_7 = arith.constant 0 : index
    %9 = vector.load %arg4[%c0_6, %c0_7] : memref<128x128xbf16, #tpu.memory_space<vmem>>, vector<128x128xbf16>
    %cst_8 = arith.constant dense<0.000000e+00> : vector<2x128xf32>
    %10 = tpu.matmul %8, %9, %cst_8 {dimension_numbers = #tpu.dot_dimension_numbers<[1], [0], [0], [1], [0, 0, 1, 1], [], []>} : vector<2x128xbf16>, vector<128x128xbf16>, vector<2x128xf32> -> vector<2x128xf32>
    %c0_9 = arith.constant 0 : index
    %c0_10 = arith.constant 0 : index
    %11 = vector.load %arg5[%c0_9, %c0_10] : memref<1x128xf32, #tpu.memory_space<vmem>>, vector<1x128xf32>
    %12 = vector.broadcast %11 : vector<1x128xf32> to vector<2x128xf32>
    %13 = arith.addf %10, %12 : vector<2x128xf32>
    %cst_11 = arith.constant dense<0xFF800000> : vector<2xf32>
    %14 = vector.multi_reduction <maximumf>, %13, %cst_11 [1] : vector<2x128xf32> to vector<2xf32>
    %15 = vector.shape_cast %14 : vector<2xf32> to vector<2x1xf32>
    %16 = vector.broadcast %15 : vector<2x1xf32> to vector<2x128xf32>
    %17 = arith.subf %13, %16 : vector<2x128xf32>
    %18 = math.exp %17 : vector<2x128xf32>
    %cst_12 = arith.constant dense<0.000000e+00> : vector<2xf32>
    %19 = vector.multi_reduction <add>, %18, %cst_12 [1] : vector<2x128xf32> to vector<2xf32>
    %20 = vector.shape_cast %19 : vector<2xf32> to vector<2x1xf32>
    %21 = math.log %20 : vector<2x1xf32>
    %22 = arith.addf %15, %21 : vector<2x1xf32>
    %23 = vector.broadcast %22 : vector<2x1xf32> to vector<2x128xf32>
    %24 = arith.subf %13, %23 : vector<2x128xf32>
    %c0_13 = arith.constant 0 : index
    %c0_14 = arith.constant 0 : index
    %25 = vector.load %arg6[%c0_13, %c0_14] : memref<2x128xf32, #tpu.memory_space<vmem>>, vector<2x128xf32>
    tpu.vector_store %arg6[%c0_13, %c0_14], %24 {strides = array<i32>} : memref<2x128xf32, #tpu.memory_space<vmem>>, vector<2x128xf32>,
    return
  }
  func.func @transform_0(%arg0: i32) -> (i32, i32) {
    %c0_i32 = arith.constant 0 : i32
    %c0_i32_0 = arith.constant 0 : i32
    return %arg0, %c0_i32 : i32, i32
  }
  func.func @transform_1(%arg0: i32) -> (i32, i32) {
    %c0_i32 = arith.constant 0 : i32
    %c0_i32_0 = arith.constant 0 : i32
    %c0_i32_1 = arith.constant 0 : i32
    return %c0_i32, %c0_i32_0 : i32, i32
  }
  func.func @transform_2(%arg0: i32) -> (i32, i32) {
    %c0_i32 = arith.constant 0 : i32
    %c0_i32_0 = arith.constant 0 : i32
    %c0_i32_1 = arith.constant 0 : i32
    return %c0_i32, %c0_i32_0 : i32, i32
  }
  func.func @transform_3(%arg0: i32) -> (i32, i32) {
    %c0_i32 = arith.constant 0 : i32
    %c0_i32_0 = arith.constant 0 : i32
    %c0_i32_1 = arith.constant 0 : i32
    return %c0_i32, %c0_i32_0 : i32, i32
  }
  func.func @transform_4(%arg0: i32) -> (i32, i32) {
    %c0_i32 = arith.constant 0 : i32
    %c0_i32_0 = arith.constant 0 : i32
    %c0_i32_1 = arith.constant 0 : i32
    return %c0_i32, %c0_i32_0 : i32, i32
  }
  func.func @transform_5(%arg0: i32) -> (i32, i32) {
    %c0_i32 = arith.constant 0 : i32
    %c0_i32_0 = arith.constant 0 : i32
    return %arg0, %c0_i32 : i32, i32
  }
}

</mosaic_0001>

<bundles_post_ra>
// kernel: mnist_net_forward.2
= control target key start
LH: loop header
LB: loop body
LE: loop exit
PB: predicated region body
PF: predicated region fallthrough
CT: control target
= control target key end

     0   :  { %s5233_s21 = smov 0   ;;  %s8919_s0 = inlined_call_operand.vmem [shape: f32[2,1,800], index: 0, kind: input, shape index: {}]   ;;  %s8920_s1 = inlined_call_operand.vmem [shape: f32[32,9], index: 1, kind: input, shape index: {}]   ;;  %s8921_s2 = inlined_call_operand.vmem [shape: f32[32,1], index: 2, kind: input, shape index: {}]   ;;  %s8922_s3 = inlined_call_operand.vmem [shape: bf16[64,288], index: 3, kind: input, shape index: {}]   ;;  %s8923_s4 = inlined_call_operand.vmem [shape: f32[64,1], index: 4, kind: input, shape index: {}]   ;;  %s8924_s5 = inlined_call_operand.vmem [shape: bf16[288,144], index: 5, kind: input, shape index: {}]   ;;  %s8925_s6 = inlined_call_operand.vmem [shape: bf16[2,64,144], index: 6, kind: output, shape index: {}]  }
   0x1 LB: > { %s4384_s22 = sadd.s32 4294967295, %s5176_s21   ;;  %p4388_p0 = scmp.ge.s32.totalorder %s5176_s21, 1  ;;  %s5176_s21 = sphi %s5233_s21, %s16_s21  }
   0x2   : > { %p211_p1 = scmp.lt.s32.totalorder %s5176_s21, 3 }
   0x4   : > { %p212_p2 = pnand %p4388_p0, %p211_p1 }
   0x6   : > { %215 = sbr.rel (%p212_p2) target bundleno = 2128 (0x850), region = 44 }
   0xd   : > { %v5244_v0 = vld [vmem:[%s8920_s1 + $0x10] sm:$0xff]  ;;  %v251_v1 = vld [vmem:[%s8920_s1] sm:$0xff]  ;;  %v5178_v2 = vmov 1   ;;  %v8926_v3 = vmov 0   ;;  %v5254_v4 = vld [vmem:[%s8920_s1 + $0x18] sm:$0xff]  ;;  %v5180_v6 = vmov 2   ;;  %v276_v13 = vlaneseq }
   0xe   : > { %4616 = vset.pattern.permute.xlu0 %v5178_v2  ;;  %4615 = vset.pattern.permute.xlu1 %v8926_v3  ;;  %v5261_v5 = vld [vmem:[%s8920_s1 + $0x8] sm:$0xff]  ;;  %v5181_v7 = vmov 3   ;;  %v5182_v8 = vmov 4   ;;  %v5183_v9 = vmov 5   ;;  %v5184_v10 = vmov 8   ;;  %p240_p3 = scmp.lt.s32.totalorder %s4384_s22, 1 }
   0xf   : > { %267 = vperm.xlu1 %4615, %v5244_v0   ;;  %331 = vperm.xlu0 %4616, %v251_v1   ;;  %v5185_v11 = vmov 7   ;;  %v5186_v12 = vmov 6   ;;  %v5292_v14 = vshrl.u32 %v276_v13, 7  ;;  %s5187_s11 = smov 127   ;;  %s5188_s12 = smov 126   ;;  %vm442_vm0 = vcmask 1039360  }
  0x10   : > { %s9537_s22 = smov (!%p240_p3, %s4384_s22), 1  ;;  %s5189_s13 = smov 100   ;;  %vm623_vm1 = vcmask 1031168   ;;  %vm804_vm2 = vcmask 818176   ;;  %vm985_vm3 = vcmask 809984   ;;  %vm1166_vm4 = vcmask 801792  }
  0x11   : > { %s4586_s7 = smul.u32 7, %s9537_s22  ;;  %9153 = vst [vmem:[#allocation2_spill] sm:$0xff] %v5292_v14  ;;  %v282_v15 = vsub.s32 1, %v5292_v14  ;;  %v278_v16 = vsub.s32 0, %v5292_v14  ;;  %v290_v20 = vsub.s32 3, %v5292_v14  ;;  %v286_v21 = vsub.s32 2, %v5292_v14 }
  0x12   : > { %v298_v24 = vsub.s32 5, %v5292_v14  ;;  %v294_v25 = vsub.s32 4, %v5292_v14  ;;  %s5190_s14 = smov 99   ;;  %s5191_s15 = smov 98   ;;  %vm1368_vm5 = vcmask 588800   ;;  %vm1569_vm6 = vcmask 580608  }
  0x13   : > { %272 = vperm.xlu1 %4615, %v5254_v4   ;;  %343 = vperm.xlu0 %4616, %v5254_v4   ;;  %s5297_s10 = scalar_lea.vmem %s8919_s0, %s4586_s7  ;;  %s5192_s16 = smov 72   ;;  %vm1770_vm7 = vcmask 572416   ;;  %vm2439_vm8 = vcmask 261120   ;;  %vm3554_vm9 = vcmask 523264   ;;  %vm3788_vm10 = vcmask 195584  }
  0x14   : > { %v250_v17 = vld [vmem:[%s5297_s10] sm:$0x7f]  ;;  %s5193_s23 = smov 71   ;;  %s5194_s24 = smov 70   ;;  %vm3797_vm11 = vcmask 392192   ;;  %vm3723_vm12 = vcmask 785408  }
  0x15   : > { %v5302_v18 = vrot.slane %v250_v17, %v282_v15  ;;  %v5304_v19 = vrot.slane %v250_v17, %v278_v16  ;;  %v5314_v28 = vrot.slane %v250_v17, %v290_v20  ;;  %v5316_v29 = vrot.slane %v250_v17, %v286_v21  ;;  %s5197_s8 = smov 32  }
  0x16   : > { %v5324_v33 = vrot.slane %v250_v17, %v298_v24  ;;  %v5326_v34 = vrot.slane %v250_v17, %v294_v25  ;;  %vm3822_vm13 = vcmask 982016   ;;  %vm3831_vm14 = vcmask 130048  }
  0x17   : > { %4617 = vset.pattern.permute.xlu1 %v5178_v2  ;;  %4619 = vset.pattern.permute.xlu0 %v5180_v6  ;;  %9155 = vst [vmem:[#allocation4_spill] sm:$0xff] %v5314_v28  ;;  %vm3840_vm15 = vcmask 326656  }
  0x18   : > { %335 = vperm.xlu1 %4617, %v5261_v5   ;;  %516 = vperm.xlu0 %4619, %v5261_v5   ;;  %9157 = vst [vmem:[#allocation6_spill] sm:$0xff] %v5324_v33  ;;  %9158 = vst [vmem:[#allocation7_spill] sm:$0xff] %v5326_v34 }
  0x1c   : > { %339 = vperm.xlu1 %4617, %v5244_v0   ;;  %4620 = vset.pattern.permute.xlu0 %v5181_v7 }
  0x1d   : > { %693 = vperm.xlu0 %4620, %v251_v1  }
  0x20   : > { %4618 = vset.pattern.permute.xlu1 %v5180_v6 }
  0x21   : > { %512 = vperm.xlu1 %4618, %v251_v1   ;;  %4623 = vset.pattern.permute.xlu0 %v5182_v8 }
  0x22   : > { %878 = vperm.xlu0 %4623, %v5261_v5  }
  0x25   : > { %520 = vperm.xlu1 %4618, %v5244_v0  }
  0x26   : > { %886 = vperm.xlu0 %4623, %v5254_v4  }
  0x29   : > { %524 = vperm.xlu1 %4618, %v5254_v4  }
  0x2a   : > { %4627 = vset.pattern.permute.xlu0 %v5183_v9 }
  0x2b   : > { %1055 = vperm.xlu0 %4627, %v251_v1  }
  0x2d   : > { %4621 = vset.pattern.permute.xlu1 %v5181_v7 }
  0x2e   : > { %697 = vperm.xlu1 %4621, %v5261_v5  }
  0x2f   : > { %1063 = vperm.xlu0 %4627, %v5244_v0  }
  0x32   : > { %4622 = vset.pattern.permute.xlu1 %v5182_v8 }
  0x33   : > { %874 = vperm.xlu1 %4622, %v251_v1   ;;  %4632 = vset.pattern.permute.xlu0 %v5184_v10 }
  0x34   : > { %1643 = vperm.xlu0 %4632, %v251_v1  }
  0x37   : > { %4624 = vset.pattern.permute.xlu1 %v5181_v7 }
  0x38   : > { %701 = vperm.xlu1 %4624, %v5244_v0   ;;  %4633 = vset.pattern.permute.xlu0 %v5185_v11 }
  0x39   : > { %1446 = vperm.xlu0 %4633, %v5261_v5  }
  0x3c   : > { %705 = vperm.xlu1 %4624, %v5254_v4  }
  0x3d   : > { %1454 = vperm.xlu0 %4633, %v5254_v4  }
  0x40   : > { %4625 = vset.pattern.permute.xlu1 %v5183_v9 }
  0x41   : > { %1059 = vperm.xlu1 %4625, %v5261_v5   ;;  %4636 = vset.pattern.permute.xlu0 %v8926_v3 }
  0x42   : > { %257 = vperm.xlu0 %4636, %v251_v1  }
  0x45   : > { %4626 = vset.pattern.permute.xlu1 %v5182_v8 }
  0x46   : > { %882 = vperm.xlu1 %4626, %v5244_v0  }
  0x4a   : > { %4628 = vset.pattern.permute.xlu1 %v5186_v12 }
  0x4b   : > { %1236 = vperm.xlu1 %4628, %v251_v1  }
  0x4f   : > { %1240 = vperm.xlu1 %4628, %v5261_v5  }
  0x53   : > { %4629 = vset.pattern.permute.xlu1 %v5183_v9 }
  0x54   : > { %1067 = vperm.xlu1 %4629, %v5254_v4  }
  0x58   : > { %4630 = vset.pattern.permute.xlu1 %v5185_v11 }
  0x59   : > { %1442 = vperm.xlu1 %4630, %v251_v1  }
  0x5d   : > { %4631 = vset.pattern.permute.xlu1 %v5186_v12 }
  0x5e   : > { %1244 = vperm.xlu1 %4631, %v5244_v0  }
  0x62   : > { %1248 = vperm.xlu1 %4631, %v5254_v4  }
  0x66   : > { %4634 = vset.pattern.permute.xlu1 %v5184_v10 }
  0x67   : > { %1647 = vperm.xlu1 %4634, %v5261_v5  }
  0x6b   : > { %4635 = vset.pattern.permute.xlu1 %v5185_v11 }
  0x6c   : > { %1450 = vperm.xlu1 %4635, %v5244_v0  }
  0x70   : > { %4637 = vset.pattern.permute.xlu1 %v5184_v10 }
  0x8e   : > { %v5308_v22 = vpop.permute.xlu1 %267  ;;  %v332_v23 = vpop.permute.xlu0 %331 }
  0x8f   : > { %9154 = vst [vmem:[#allocation3_spill] sm:$0xff] %v5308_v22  ;;  %v347_v26 = vmul.f32 %v332_v23, %v5302_v18  ;;  %v346_v27 = vmul.f32 %v332_v23, %v5304_v19  ;;  %v349_v31 = vmul.f32 %v332_v23, %v5314_v28  ;;  %v348_v32 = vmul.f32 %v332_v23, %v5316_v29 }
  0x90   : > { %v351_v36 = vmul.f32 %v332_v23, %v5324_v33  ;;  %v350_v37 = vmul.f32 %v332_v23, %v5326_v34 }
  0x91   : > { %396 = vrot.lane.b32.xlu0 %v347_v26, %s5187_s11  ;;  %394 = vrot.lane.b32.xlu1 %v346_v27, %s5187_s11 }
  0x92   : > { %v5320_v30 = vpop.permute.xlu1 %272  ;;  %v344_v55 = vpop.permute.xlu0 %343 }
  0x93   : > { %9156 = vst [vmem:[#allocation5_spill] sm:$0xff] %v5320_v30  ;;  %v365_v56 = vmul.f32 %v344_v55, %v5302_v18  ;;  %v364_v57 = vmul.f32 %v344_v55, %v5304_v19  ;;  %v367_v59 = vmul.f32 %v344_v55, %v5314_v28  ;;  %v366_v60 = vmul.f32 %v344_v55, %v5316_v29 }
  0x94   : > { %v369_v61 = vmul.f32 %v344_v55, %v5324_v33  ;;  %v368_v62 = vmul.f32 %v344_v55, %v5326_v34 }
  0x95   : > { %400 = vrot.lane.b32.xlu0 %v349_v31, %s5187_s11  ;;  %398 = vrot.lane.b32.xlu1 %v348_v32, %s5187_s11 }
  0x97   : > { %v336_v35 = vpop.permute.xlu1 %335  ;;  %v5390_v6 = vpop.permute.xlu0 %516 }
  0x98   : > { %v353_v38 = vmul.f32 %v336_v35, %v5302_v18  ;;  %v352_v39 = vmul.f32 %v336_v35, %v5304_v19  ;;  %v355_v41 = vmul.f32 %v336_v35, %v5314_v28  ;;  %v354_v42 = vmul.f32 %v336_v35, %v5316_v29  ;;  %9166 = vst [vmem:[#allocation15_spill] sm:$0xff] %v5390_v6 }
  0x99   : > { %404 = vrot.lane.b32.xlu0 %v351_v36, %s5187_s11  ;;  %402 = vrot.lane.b32.xlu1 %v350_v37, %s5187_s11  ;;  %v357_v44 = vmul.f32 %v336_v35, %v5324_v33  ;;  %v356_v45 = vmul.f32 %v336_v35, %v5326_v34  ;;  %v536_v12 = vmul.f32 %v5390_v6, %v5314_v28 }
  0x9a   : > { %v533_v15 = vmul.f32 %v5390_v6, %v5304_v19 }
  0x9b   : > { %v340_v40 = vpop.permute.xlu1 %339 }
  0x9c   : > { %v359_v47 = vmul.f32 %v340_v40, %v5302_v18  ;;  %v358_v48 = vmul.f32 %v340_v40, %v5304_v19  ;;  %v361_v49 = vmul.f32 %v340_v40, %v5314_v28  ;;  %v360_v50 = vmul.f32 %v340_v40, %v5316_v29  ;;  %v5409_v10 = vpop.permute.xlu0 %693 }
  0x9d   : > { %408 = vrot.lane.b32.xlu0 %v353_v38, %s5187_s11  ;;  %406 = vrot.lane.b32.xlu1 %v352_v39, %s5187_s11  ;;  %v363_v52 = vmul.f32 %v340_v40, %v5324_v33  ;;  %v362_v53 = vmul.f32 %v340_v40, %v5326_v34  ;;  %9169 = vst [vmem:[#allocation18_spill] sm:$0xff] %v5409_v10 }
  0x9e   : > { %v709_v13 = vmul.f32 %v5409_v10, %v5302_v18  ;;  %v711_v20 = vmul.f32 %v5409_v10, %v5314_v28  ;;  %v710_v21 = vmul.f32 %v5409_v10, %v5316_v29  ;;  %v708_v27 = vmul.f32 %v5409_v10, %v5304_v19 }
  0xa0   : > { %v5340_v43 = vpop.permute.xlu1 %512 }
  0xa1   : > { %9159 = vst [vmem:[#allocation8_spill] sm:$0xff] %v5340_v43  ;;  %412 = vrot.lane.b32.xlu0 %v355_v41, %s5187_s11  ;;  %410 = vrot.lane.b32.xlu1 %v354_v42, %s5187_s11  ;;  %v528_v1 = vmul.f32 %v5340_v43, %v5302_v18  ;;  %v530_v7 = vmul.f32 %v5340_v43, %v5314_v28  ;;  %v5423_v17 = vpop.permute.xlu0 %878 }
  0xa2   : > { %v527_v11 = vmul.f32 %v5340_v43, %v5304_v19  ;;  %9171 = vst [vmem:[#allocation20_spill] sm:$0xff] %v5423_v17 }
  0xa4   : > { %v5348_v46 = vpop.permute.xlu1 %520 }
  0xa5   : > { %416 = vrot.lane.b32.xlu0 %v357_v44, %s5187_s11  ;;  %414 = vrot.lane.b32.xlu1 %v356_v45, %s5187_s11  ;;  %9160 = vst [vmem:[#allocation9_spill] sm:$0xff] %v5348_v46  ;;  %v5435_v24 = vpop.permute.xlu0 %886  ;;  %v540_v36 = vmul.f32 %v5348_v46, %v5302_v18  ;;  %v542_v40 = vmul.f32 %v5348_v46, %v5314_v28 }
  0xa6   : > { %9173 = vst [vmem:[#allocation22_spill] sm:$0xff] %v5435_v24  ;;  %v541_v41 = vmul.f32 %v5348_v46, %v5316_v29 }
  0xa8   : > { %v5356_v51 = vpop.permute.xlu1 %524 }
  0xa9   : > { %420 = vrot.lane.b32.xlu0 %v359_v47, %s5187_s11  ;;  %418 = vrot.lane.b32.xlu1 %v358_v48, %s5187_s11  ;;  %9161 = vst [vmem:[#allocation10_spill] sm:$0xff] %v5356_v51  ;;  %v547_v42 = vmul.f32 %v5356_v51, %v5316_v29  ;;  %v546_v44 = vmul.f32 %v5356_v51, %v5302_v18 }
  0xaa   : > { %v5449_v35 = vpop.permute.xlu0 %1055 }
  0xab   : > { %9175 = vst [vmem:[#allocation24_spill] sm:$0xff] %v5449_v35 }
  0xad   : > { %424 = vrot.lane.b32.xlu0 %v361_v49, %s5187_s11  ;;  %422 = vrot.lane.b32.xlu1 %v360_v50, %s5187_s11  ;;  %v5362_v54 = vpop.permute.xlu1 %697  ;;  %v548_v49 = vmul.f32 %v5356_v51, %v5314_v28 }
  0xae   : > { %9162 = vst [vmem:[#allocation11_spill] sm:$0xff] %v5362_v54  ;;  %v716_v25 = vmul.f32 %v5362_v54, %v5316_v29  ;;  %v715_v26 = vmul.f32 %v5362_v54, %v5302_v18  ;;  %v717_v31 = vmul.f32 %v5362_v54, %v5314_v28  ;;  %v714_v37 = vmul.f32 %v5362_v54, %v5304_v19  ;;  %v5461_v39 = vpop.permute.xlu0 %1063 }
  0xaf   : > { %9177 = vst [vmem:[#allocation26_spill] sm:$0xff] %v5461_v39 }
  0xb1   : > { %428 = vrot.lane.b32.xlu0 %v363_v52, %s5187_s11  ;;  %426 = vrot.lane.b32.xlu1 %v362_v53, %s5187_s11 }
  0xb2   : > { %v5370_v58 = vpop.permute.xlu1 %874 }
  0xb3   : > { %9163 = vst [vmem:[#allocation12_spill] sm:$0xff] %v5370_v58  ;;  %v5475_v47 = vpop.permute.xlu0 %1643  ;;  %v890_v48 = vmul.f32 %v5370_v58, %v5302_v18  ;;  %v892_v53 = vmul.f32 %v5370_v58, %v5314_v28  ;;  %v891_v55 = vmul.f32 %v5370_v58, %v5316_v29 }
  0xb4   : > { %9179 = vst [vmem:[#allocation28_spill] sm:$0xff] %v5475_v47  ;;  %v1660_v10 = vmul.f32 %v5475_v47, %v5316_v29 }
  0xb5   : > { %432 = vrot.lane.b32.xlu0 %v365_v56, %s5187_s11  ;;  %430 = vrot.lane.b32.xlu1 %v364_v57, %s5187_s11  ;;  %v897_v56 = vmul.f32 %v5423_v17, %v5316_v29  ;;  %v896_v57 = vmul.f32 %v5423_v17, %v5302_v18 }
  0xb7   : > { %v5378_v63 = vpop.permute.xlu1 %701 }
  0xb8   : > { %9164 = vst [vmem:[#allocation13_spill] sm:$0xff] %v5378_v63  ;;  %v5487_v52 = vpop.permute.xlu0 %1446 }
  0xb9   : > { %436 = vrot.lane.b32.xlu0 %v367_v59, %s5187_s11  ;;  %434 = vrot.lane.b32.xlu1 %v366_v60, %s5187_s11  ;;  %9181 = vst [vmem:[#allocation30_spill] sm:$0xff] %v5487_v52 }
  0xbb   : > { %v5386_v2 = vpop.permute.xlu1 %705 }
  0xbc   : > { %9165 = vst [vmem:[#allocation14_spill] sm:$0xff] %v5386_v2  ;;  %v5501_v60 = vpop.permute.xlu0 %1454 }
  0xbd   : > { %440 = vrot.lane.b32.xlu0 %v369_v61, %s5187_s11  ;;  %438 = vrot.lane.b32.xlu1 %v368_v62, %s5187_s11  ;;  %9183 = vst [vmem:[#allocation32_spill] sm:$0xff] %v5501_v60  ;;  %v539_v61 = vmul.f32 %v5348_v46, %v5304_v19  ;;  %v898_v62 = vmul.f32 %v5423_v17, %v5314_v28 }
  0xc0   : > { %v5396_v8 = vpop.permute.xlu1 %1059 }
  0xc1   : > { %262 = vperm.xlu0 %4636, %v5261_v5   ;;  %1651 = vperm.xlu1 %4637, %v5244_v0   ;;  %v529_v5 = vmul.f32 %v5340_v43, %v5316_v29  ;;  %9167 = vst [vmem:[#allocation16_spill] sm:$0xff] %v5396_v8  ;;  %v535_v0 = vmul.f32 %v5390_v6, %v5316_v29 }
  0xc5   : > { %577 = vrot.lane.b32.xlu0 %v528_v1, %s5188_s12  ;;  %1655 = vperm.xlu1 %4637, %v5254_v4   ;;  %v534_v4 = vmul.f32 %v5390_v6, %v5302_v18  ;;  %v5407_v9 = vpop.permute.xlu1 %882 }
  0xc6   : > { %9168 = vst [vmem:[#allocation17_spill] sm:$0xff] %v5407_v9 }
  0xc9   : > { %581 = vrot.lane.b32.xlu0 %v530_v7, %s5188_s12  ;;  %579 = vrot.lane.b32.xlu1 %v529_v5, %s5188_s12  ;;  %v5513_v7 = vpop.permute.xlu0 %257  ;;  %v889_v5 = vmul.f32 %v5370_v58, %v5304_v19  ;;  %v1464_v58 = vmul.f32 %v5487_v52, %v5304_v19 }
  0xca   : > { %4638 = vset.pattern.permute.xlu1 %v8926_v3  ;;  %v5421_v16 = vpop.permute.xlu1 %1236  ;;  %9185 = vst [vmem:[#allocation34_spill] sm:$0xff] %v5513_v7 }
  0xcb   : > { %9170 = vst [vmem:[#allocation19_spill] sm:$0xff] %v5421_v16 }
  0xcd   : > { %591 = vrot.lane.b32.xlu0 %v535_v0, %s5188_s12  ;;  %589 = vrot.lane.b32.xlu1 %v534_v4, %s5188_s12  ;;  %v545_v0 = vmul.f32 %v5356_v51, %v5304_v19 }
  0xce   : > { %v5433_v23 = vpop.permute.xlu1 %1240 }
  0xcf   : > { %9172 = vst [vmem:[#allocation21_spill] sm:$0xff] %v5433_v23 }
  0xd1   : > { %575 = vrot.lane.b32.xlu0 %v527_v11, %s5188_s12  ;;  %593 = vrot.lane.b32.xlu1 %v536_v12, %s5188_s12  ;;  %v721_v12 = vmul.f32 %v5378_v63, %v5302_v18 }
  0xd3   : > { %v5447_v32 = vpop.permute.xlu1 %1067 }
  0xd4   : > { %9174 = vst [vmem:[#allocation23_spill] sm:$0xff] %v5447_v32  ;;  %v1091_v14 = vmul.f32 %v5447_v32, %v5314_v28 }
  0xd5   : > { %758 = vrot.lane.b32.xlu0 %v709_v13, %s5189_s13  ;;  %587 = vrot.lane.b32.xlu1 %v533_v15, %s5188_s12  ;;  %v895_v13 = vmul.f32 %v5423_v17, %v5304_v19 }
  0xd8   : > { %v5459_v38 = vpop.permute.xlu1 %1442 }
  0xd9   : > { %762 = vrot.lane.b32.xlu0 %v711_v20, %s5189_s13  ;;  %760 = vrot.lane.b32.xlu1 %v710_v21, %s5189_s13  ;;  %9176 = vst [vmem:[#allocation25_spill] sm:$0xff] %v5459_v38  ;;  %v723_v21 = vmul.f32 %v5378_v63, %v5314_v28 }
  0xdd   : > { %772 = vrot.lane.b32.xlu0 %v716_v25, %s5189_s13  ;;  %770 = vrot.lane.b32.xlu1 %v715_v26, %s5189_s13  ;;  %v5473_v45 = vpop.permute.xlu1 %1244  ;;  %v722_v25 = vmul.f32 %v5378_v63, %v5316_v29 }
  0xde   : > { %9178 = vst [vmem:[#allocation27_spill] sm:$0xff] %v5473_v45  ;;  %v1272_v51 = vmul.f32 %v5473_v45, %v5316_v29 }
  0xe1   : > { %756 = vrot.lane.b32.xlu0 %v708_v27, %s5189_s13  ;;  %774 = vrot.lane.b32.xlu1 %v717_v31, %s5189_s13  ;;  %v5485_v50 = vpop.permute.xlu1 %1248  ;;  %v728_v31 = vmul.f32 %v5386_v2, %v5316_v29 }
  0xe2   : > { %9180 = vst [vmem:[#allocation29_spill] sm:$0xff] %v5485_v50 }
  0xe5   : > { %601 = vrot.lane.b32.xlu0 %v540_v36, %s5188_s12  ;;  %768 = vrot.lane.b32.xlu1 %v714_v37, %s5189_s13  ;;  %v727_v36 = vmul.f32 %v5386_v2, %v5302_v18 }
  0xe6   : > { %v5499_v59 = vpop.permute.xlu1 %1647 }
  0xe7   : > { %9182 = vst [vmem:[#allocation31_spill] sm:$0xff] %v5499_v59  ;;  %v1668_v34 = vmul.f32 %v5499_v59, %v5314_v28 }
  0xe9   : > { %605 = vrot.lane.b32.xlu0 %v542_v40, %s5188_s12  ;;  %603 = vrot.lane.b32.xlu1 %v541_v41, %s5188_s12  ;;  %v1071_v41 = vmul.f32 %v5449_v35, %v5302_v18 }
  0xeb   : > { %v5511_v1 = vpop.permute.xlu1 %1450 }
  0xec   : > { %9184 = vst [vmem:[#allocation33_spill] sm:$0xff] %v5511_v1 }
  0xed   : > { %615 = vrot.lane.b32.xlu0 %v547_v42, %s5188_s12  ;;  %613 = vrot.lane.b32.xlu1 %v546_v44, %s5188_s12  ;;  %v729_v42 = vmul.f32 %v5386_v2, %v5314_v28 }
  0xf1   : > { %939 = vrot.lane.b32.xlu0 %v890_v48, %s5190_s14  ;;  %617 = vrot.lane.b32.xlu1 %v548_v49, %s5188_s12  ;;  %v1073_v49 = vmul.f32 %v5449_v35, %v5314_v28 }
  0xf5   : > { %943 = vrot.lane.b32.xlu0 %v892_v53, %s5190_s14  ;;  %941 = vrot.lane.b32.xlu1 %v891_v55, %s5190_s14  ;;  %v1072_v53 = vmul.f32 %v5449_v35, %v5316_v29  ;;  %v1078_v55 = vmul.f32 %v5396_v8, %v5316_v29 }
  0xf9   : > { %953 = vrot.lane.b32.xlu0 %v897_v56, %s5190_s14  ;;  %951 = vrot.lane.b32.xlu1 %v896_v57, %s5190_s14  ;;  %v1077_v56 = vmul.f32 %v5396_v8, %v5302_v18 }
  0xfd   : > { %599 = vrot.lane.b32.xlu0 %v539_v61, %s5188_s12  ;;  %955 = vrot.lane.b32.xlu1 %v898_v62, %s5190_s14  ;;  %v720_v62 = vmul.f32 %v5378_v63, %v5304_v19  ;;  %v1088_v63 = vmul.f32 %v5447_v32, %v5304_v19 }
 0x101   : > { %937 = vrot.lane.b32.xlu0 %v889_v5, %s5190_s14  ;;  %611 = vrot.lane.b32.xlu1 %v545_v0, %s5188_s12  ;;  %v1079_v5 = vmul.f32 %v5396_v8, %v5314_v28 }
 0x103   : > { %v5521_v4 = vpop.permute.xlu0 %396  ;;  %v5523_v11 = vpop.permute.xlu1 %394 }
 0x105   : > { %782 = vrot.lane.b32.xlu0 %v721_v12, %s5189_s13  ;;  %949 = vrot.lane.b32.xlu1 %v895_v13, %s5190_s14  ;;  %v1070_v13 = vmul.f32 %v5449_v35, %v5304_v19  ;;  %v1467_v35 = vmul.f32 %v5487_v52, %v5314_v28 }
 0x107   : > { %v5531_v15 = vpop.permute.xlu0 %400  ;;  %v5533_v20 = vpop.permute.xlu1 %398 }
 0x108   : > { %9186 = vst [vmem:[#allocation35_spill] sm:$0xff] %v5531_v15 }
 0x109   : > { %786 = vrot.lane.b32.xlu0 %v723_v21, %s5189_s13  ;;  %784 = vrot.lane.b32.xlu1 %v722_v25, %s5189_s13  ;;  %v726_v21 = vmul.f32 %v5386_v2, %v5304_v19  ;;  %v902_v25 = vmul.f32 %v5407_v9, %v5302_v18 }
 0x10b   : > { %v5541_v26 = vpop.permute.xlu0 %404  ;;  %v5543_v27 = vpop.permute.xlu1 %402 }
 0x10c   : > { %9187 = vst [vmem:[#allocation36_spill] sm:$0xff] %v5541_v26  ;;  %9188 = vst [vmem:[#allocation37_spill] sm:$0xff] %v5543_v27  ;;  %v1089_v26 = vmul.f32 %v5447_v32, %v5302_v18 }
 0x10d   : > { %796 = vrot.lane.b32.xlu0 %v728_v31, %s5189_s13  ;;  %794 = vrot.lane.b32.xlu1 %v727_v36, %s5189_s13  ;;  %v1076_v31 = vmul.f32 %v5396_v8, %v5304_v19 }
 0x10f   : > { %v5551_v37 = vpop.permute.xlu0 %408  ;;  %v5553_v40 = vpop.permute.xlu1 %406 }
 0x111   : > { %1120 = vrot.lane.b32.xlu0 %v1071_v41, %s5191_s15  ;;  %798 = vrot.lane.b32.xlu1 %v729_v42, %s5189_s13  ;;  %v904_v42 = vmul.f32 %v5407_v9, %v5314_v28 }
 0x113   : > { %v5561_v44 = vpop.permute.xlu0 %412  ;;  %v5563_v48 = vpop.permute.xlu1 %410 }
 0x114   : > { %9189 = vst [vmem:[#allocation38_spill] sm:$0xff] %v5561_v44 }
 0x115   : > { %1124 = vrot.lane.b32.xlu0 %v1073_v49, %s5191_s15  ;;  %1122 = vrot.lane.b32.xlu1 %v1072_v53, %s5191_s15  ;;  %v903_v49 = vmul.f32 %v5407_v9, %v5316_v29 }
 0x117   : > { %v5575_v57 = vpop.permute.xlu0 %416  ;;  %v5577_v61 = vpop.permute.xlu1 %414 }
 0x118   : > { %9190 = vst [vmem:[#allocation39_spill] sm:$0xff] %v5575_v57  ;;  %9191 = vst [vmem:[#allocation40_spill] sm:$0xff] %v5577_v61  ;;  %v1084_v57 = vmul.f32 %v5461_v39, %v5316_v29 }
 0x119   : > { %1134 = vrot.lane.b32.xlu0 %v1078_v55, %s5191_s15  ;;  %1132 = vrot.lane.b32.xlu1 %v1077_v56, %s5191_s15  ;;  %v909_v56 = vmul.f32 %v5435_v24, %v5316_v29 }
 0x11b   : > { %v5587_v0 = vpop.permute.xlu0 %420  ;;  %v5589_v12 = vpop.permute.xlu1 %418 }
 0x11c   : > { %9192 = vst [vmem:[#allocation41_spill] sm:$0xff] %v5587_v0  ;;  %9193 = vst [vmem:[#allocation42_spill] sm:$0xff] %v5589_v12 }
 0x11d   : > { %780 = vrot.lane.b32.xlu0 %v720_v62, %s5189_s13  ;;  %1136 = vrot.lane.b32.xlu1 %v1079_v5, %s5191_s15  ;;  %v908_v62 = vmul.f32 %v5435_v24, %v5302_v18  ;;  %v1257_v5 = vmul.f32 %v5421_v16, %v5302_v18 }
 0x11f   : > { %v5601_v36 = vpop.permute.xlu0 %424  ;;  %v5603_v41 = vpop.permute.xlu1 %422 }
 0x120   : > { %9194 = vst [vmem:[#allocation43_spill] sm:$0xff] %v5601_v36  ;;  %9195 = vst [vmem:[#allocation44_spill] sm:$0xff] %v5603_v41 }
 0x121   : > { %1118 = vrot.lane.b32.xlu0 %v1070_v13, %s5191_s15  ;;  %792 = vrot.lane.b32.xlu1 %v726_v21, %s5189_s13  ;;  %v910_v13 = vmul.f32 %v5435_v24, %v5314_v28 }
 0x123   : > { %v5613_v53 = vpop.permute.xlu0 %428  ;;  %v5615_v55 = vpop.permute.xlu1 %426 }
 0x124   : > { %9196 = vst [vmem:[#allocation45_spill] sm:$0xff] %v5613_v53  ;;  %9197 = vst [vmem:[#allocation46_spill] sm:$0xff] %v5615_v55 }
 0x125   : > { %963 = vrot.lane.b32.xlu0 %v902_v25, %s5190_s14  ;;  %1130 = vrot.lane.b32.xlu1 %v1076_v31, %s5191_s15  ;;  %v1259_v31 = vmul.f32 %v5421_v16, %v5314_v28 }
 0x127   : > { %v5627_v21 = vpop.permute.xlu0 %432  ;;  %v5629_v25 = vpop.permute.xlu1 %430 }
 0x128   : > { %9198 = vst [vmem:[#allocation47_spill] sm:$0xff] %v5627_v21  ;;  %9199 = vst [vmem:[#allocation48_spill] sm:$0xff] %v5629_v25 }
 0x129   : > { %967 = vrot.lane.b32.xlu0 %v904_v42, %s5190_s14  ;;  %965 = vrot.lane.b32.xlu1 %v903_v49, %s5190_s14  ;;  %v1258_v42 = vmul.f32 %v5421_v16, %v5316_v29 }
 0x12b   : > { %v5639_v49 = vpop.permute.xlu0 %436 }
 0x12c   : > { %9200 = vst [vmem:[#allocation49_spill] sm:$0xff] %v5639_v49 }
 0x12d   : > { %977 = vrot.lane.b32.xlu0 %v909_v56, %s5190_s14  ;;  %975 = vrot.lane.b32.xlu1 %v908_v62, %s5190_s14  ;;  %v5641_v56 = vpop.permute.xlu1 %434  ;;  %v1265_v62 = vmul.f32 %v5433_v23, %v5316_v29 }
 0x12e   : > { %9201 = vst [vmem:[#allocation50_spill] sm:$0xff] %v5641_v56 }
 0x131   : > { %1314 = vrot.lane.b32.xlu0 %v1257_v5, %s5192_s16  ;;  %979 = vrot.lane.b32.xlu1 %v910_v13, %s5190_s14  ;;  %v1264_v5 = vmul.f32 %v5433_v23, %v5302_v18  ;;  %v1843_v13 = vld [vmem:[%s8921_s2] sm:$0xff]  ;;  %v5656_v3 = vpop.permute.xlu1 %438 }
 0x132   : > { %9203 = vst [vmem:[#allocation52_spill] sm:$0xff] %v5656_v3 }
 0x135   : > { %1318 = vrot.lane.b32.xlu0 %v1259_v31, %s5192_s16  ;;  %1316 = vrot.lane.b32.xlu1 %v1258_v42, %s5192_s16  ;;  %v1266_v31 = vmul.f32 %v5433_v23, %v5314_v28  ;;  %v5654_v42 = vpop.permute.xlu0 %440 }
 0x136   : > { %9202 = vst [vmem:[#allocation51_spill] sm:$0xff] %v5654_v42  ;;  %v1263_v42 = vmul.f32 %v5433_v23, %v5304_v19 }
 0x139   : > { %1330 = vrot.lane.b32.xlu0 %v1265_v62, %s5192_s16  ;;  %1328 = vrot.lane.b32.xlu1 %v1264_v5, %s5192_s16  ;;  %v1844_v62 = vld [vmem:[%s8921_s2 + $0x8] sm:$0xff]  ;;  %v907_v5 = vmul.f32 %v5435_v24, %v5304_v19 }
 0x13d   : > { %1849 = vperm.xlu0 %4636, %v1843_v13   ;;  %1332 = vrot.lane.b32.xlu1 %v1266_v31, %s5192_s16  ;;  %v901_v13 = vmul.f32 %v5407_v9, %v5304_v19 }
 0x140   : > { %v5664_v53 = vpop.permute.xlu0 %262  ;;  %v5666_v55 = vpop.permute.xlu1 %1651 }
 0x141   : > { %9204 = vst [vmem:[#allocation53_spill] sm:$0xff] %v5664_v53  ;;  %9205 = vst [vmem:[#allocation54_spill] sm:$0xff] %v5666_v55  ;;  %973 = vrot.lane.b32.xlu0 %v907_v5, %s5190_s14  ;;  %1854 = vperm.xlu1 %4638, %v1844_v62   ;;  %v1256_v62 = vmul.f32 %v5421_v16, %v5304_v19  ;;  %v1459_v16 = vmul.f32 %v5459_v38, %v5316_v29 }
 0x144   : > { %v5673_v31 = vpop.permute.xlu0 %577  ;;  %v5675_v3 = vpop.permute.xlu1 %1655 }
 0x145   : > { %9206 = vst [vmem:[#allocation55_spill] sm:$0xff] %v5675_v3  ;;  %1326 = vrot.lane.b32.xlu0 %v1263_v42, %s5192_s16  ;;  %961 = vrot.lane.b32.xlu1 %v901_v13, %s5190_s14  ;;  %v1083_v42 = vmul.f32 %v5461_v39, %v5302_v18 }
 0x148   : > { %v5683_v5 = vpop.permute.xlu0 %581  ;;  %v5685_v61 = vpop.permute.xlu1 %579 }
 0x149   : > { %9207 = vst [vmem:[#allocation56_spill] sm:$0xff] %v5683_v5  ;;  %1146 = vrot.lane.b32.xlu0 %v1084_v57, %s5191_s15  ;;  %1312 = vrot.lane.b32.xlu1 %v1256_v62, %s5192_s16  ;;  %v1085_v57 = vmul.f32 %v5461_v39, %v5314_v28 }
 0x14c   : > { %v5693_v13 = vpop.permute.xlu0 %591  ;;  %v5695_v27 = vpop.permute.xlu1 %589 }
 0x14d   : > { %1156 = vrot.lane.b32.xlu0 %v1089_v26, %s5191_s15  ;;  %1144 = vrot.lane.b32.xlu1 %v1083_v42, %s5191_s15  ;;  %v1090_v26 = vmul.f32 %v5447_v32, %v5316_v29 }
 0x150   : > { %v5703_v62 = vpop.permute.xlu0 %575  ;;  %v5705_v23 = vpop.permute.xlu1 %593 }
 0x151   : > { %1160 = vrot.lane.b32.xlu0 %v1091_v14, %s5191_s15  ;;  %1148 = vrot.lane.b32.xlu1 %v1085_v57, %s5191_s15  ;;  %v1465_v14 = vmul.f32 %v5487_v52, %v5302_v18  ;;  %v1458_v57 = vmul.f32 %v5459_v38, %v5302_v18 }
 0x154   : > { %v5713_v42 = vpop.permute.xlu0 %758  ;;  %v5715_v24 = vpop.permute.xlu1 %587 }
 0x155   : > { %1517 = vrot.lane.b32.xlu0 %v1459_v16, %s5193_s23  ;;  %1158 = vrot.lane.b32.xlu1 %v1090_v26, %s5191_s15  ;;  %v1460_v16 = vmul.f32 %v5459_v38, %v5314_v28 }
 0x158   : > { %v5723_v9 = vpop.permute.xlu0 %762  ;;  %v5725_v8 = vpop.permute.xlu1 %760 }
 0x159   : > { %1529 = vrot.lane.b32.xlu0 %v1465_v14, %s5193_s23  ;;  %1515 = vrot.lane.b32.xlu1 %v1458_v57, %s5193_s23  ;;  %v1466_v14 = vmul.f32 %v5487_v52, %v5316_v29 }
 0x15c   : > { %v5733_v26 = vpop.permute.xlu0 %772  ;;  %v5735_v2 = vpop.permute.xlu1 %770 }
 0x15d   : > { %1533 = vrot.lane.b32.xlu0 %v1467_v35, %s5193_s23  ;;  %1519 = vrot.lane.b32.xlu1 %v1460_v16, %s5193_s23  ;;  %v1082_v35 = vmul.f32 %v5461_v39, %v5304_v19  ;;  %v1278_v39 = vmul.f32 %v5485_v50, %v5302_v18 }
 0x160   : > { %v5743_v57 = vpop.permute.xlu0 %756  ;;  %v5745_v17 = vpop.permute.xlu1 %774 }
 0x161   : > { %1154 = vrot.lane.b32.xlu0 %v1088_v63, %s5191_s15  ;;  %1531 = vrot.lane.b32.xlu1 %v1466_v14, %s5193_s23  ;;  %v1457_v63 = vmul.f32 %v5459_v38, %v5304_v19  ;;  %v1280_v38 = vmul.f32 %v5485_v50, %v5314_v28 }
 0x164   : > { %v5753_v16 = vpop.permute.xlu0 %601  ;;  %v5755_v32 = vpop.permute.xlu1 %768 }
 0x165   : > { %9208 = vst [vmem:[#allocation57_spill] sm:$0xff] %v5753_v16  ;;  %1527 = vrot.lane.b32.xlu0 %v1464_v58, %s5193_s23  ;;  %1142 = vrot.lane.b32.xlu1 %v1082_v35, %s5191_s15  ;;  %v1271_v58 = vmul.f32 %v5473_v45, %v5302_v18 }
 0x168   : > { %v5763_v14 = vpop.permute.xlu0 %605  ;;  %v5765_v52 = vpop.permute.xlu1 %603 }
 0x169   : > { %9209 = vst [vmem:[#allocation58_spill] sm:$0xff] %v5763_v14  ;;  %9210 = vst [vmem:[#allocation59_spill] sm:$0xff] %v5765_v52  ;;  %1344 = vrot.lane.b32.xlu0 %v1272_v51, %s5192_s16  ;;  %1513 = vrot.lane.b32.xlu1 %v1457_v63, %s5193_s23  ;;  %v1273_v51 = vmul.f32 %v5473_v45, %v5314_v28 }
 0x16c   : > { %v5773_v35 = vpop.permute.xlu0 %615  ;;  %v5775_v46 = vpop.permute.xlu1 %613 }
 0x16d   : > { %9211 = vst [vmem:[#allocation60_spill] sm:$0xff] %v5773_v35  ;;  %9212 = vst [vmem:[#allocation61_spill] sm:$0xff] %v5775_v46  ;;  %1356 = vrot.lane.b32.xlu0 %v1278_v39, %s5192_s16  ;;  %1342 = vrot.lane.b32.xlu1 %v1271_v58, %s5192_s16  ;;  %v1279_v39 = vmul.f32 %v5485_v50, %v5316_v29 }
 0x170   : > { %v5783_v63 = vpop.permute.xlu0 %939  ;;  %v5785_v54 = vpop.permute.xlu1 %617 }
 0x171   : > { %9213 = vst [vmem:[#allocation62_spill] sm:$0xff] %v5785_v54  ;;  %1360 = vrot.lane.b32.xlu0 %v1280_v38, %s5192_s16  ;;  %1346 = vrot.lane.b32.xlu1 %v1273_v51, %s5192_s16  ;;  %v1666_v38 = vmul.f32 %v5499_v59, %v5302_v18  ;;  %v1659_v51 = vmul.f32 %v5475_v47, %v5302_v18 }
 0x174   : > { %v5793_v58 = vpop.permute.xlu0 %943  ;;  %v5795_v6 = vpop.permute.xlu1 %941 }
 0x175   : > { %1718 = vrot.lane.b32.xlu0 %v1660_v10, %s5194_s24  ;;  %1358 = vrot.lane.b32.xlu1 %v1279_v39, %s5192_s16  ;;  %v1661_v10 = vmul.f32 %v5475_v47, %v5314_v28 }
 0x178   : > { %v5803_v33 = vpop.permute.xlu0 %953  ;;  %v5805_v43 = vpop.permute.xlu1 %951 }
 0x179   : > { %1730 = vrot.lane.b32.xlu0 %v1666_v38, %s5194_s24  ;;  %1716 = vrot.lane.b32.xlu1 %v1659_v51, %s5194_s24  ;;  %v1846_v38 = vld [vmem:[%s8921_s2 + $0x18] sm:$0xff]  ;;  %v1667_v51 = vmul.f32 %v5499_v59, %v5316_v29 }
 0x17c   : > { %v5813_v39 = vpop.permute.xlu0 %599  ;;  %v5815_v54 = vpop.permute.xlu1 %955 }
 0x17d   : > { %9214 = vst [vmem:[#allocation63_spill] sm:$0xff] %v5813_v39  ;;  %1734 = vrot.lane.b32.xlu0 %v1668_v34, %s5194_s24  ;;  %1720 = vrot.lane.b32.xlu1 %v1661_v10, %s5194_s24  ;;  %v1845_v34 = vld [vmem:[%s8921_s2 + $0x10] sm:$0xff]  ;;  %v1277_v10 = vmul.f32 %v5485_v50, %v5304_v19  ;;  %v1473_v50 = vmul.f32 %v5511_v1, %v5316_v29 }
 0x180   : > { %v5824_v46 = vpop.permute.xlu0 %937  ;;  %v5826_v35 = vpop.permute.xlu1 %611 }
 0x181   : > { %9215 = vst [vmem:[#allocation64_spill] sm:$0xff] %v5824_v46  ;;  %9216 = vst [vmem:[#allocation65_spill] sm:$0xff] %v5826_v35  ;;  %1864 = vperm.xlu0 %4636, %v1846_v38   ;;  %1732 = vrot.lane.b32.xlu1 %v1667_v51, %s5194_s24  ;;  %v1665_v35 = vmul.f32 %v5499_v59, %v5304_v19  ;;  %v1270_v38 = vmul.f32 %v5473_v45, %v5304_v19 }
 0x182   : > { %v1479_v45 = vmul.f32 %v5501_v60, %v5302_v18 }
 0x184   : > { %v5834_v39 = vpop.permute.xlu0 %782  ;;  %v5836_v14 = vpop.permute.xlu1 %949 }
 0x185   : > { %9217 = vst [vmem:[#allocation66_spill] sm:$0xff] %v5834_v39  ;;  %1354 = vrot.lane.b32.xlu0 %v1277_v10, %s5192_s16  ;;  %1859 = vperm.xlu1 %4638, %v1845_v34   ;;  %v1658_v34 = vmul.f32 %v5475_v47, %v5304_v19  ;;  %v1481_v47 = vmul.f32 %v5501_v60, %v5314_v28 }
 0x186   : > { %v1674_v39 = vmul.f32 %v5666_v55, %v5316_v29 }
 0x188   : > { %v5843_v51 = vpop.permute.xlu0 %786  ;;  %v5845_v16 = vpop.permute.xlu1 %784 }
 0x189   : > { %9218 = vst [vmem:[#allocation67_spill] sm:$0xff] %v5843_v51  ;;  %9219 = vst [vmem:[#allocation68_spill] sm:$0xff] %v5845_v16  ;;  %1728 = vrot.lane.b32.xlu0 %v1665_v35, %s5194_s24  ;;  %1340 = vrot.lane.b32.xlu1 %v1270_v38, %s5192_s16  ;;  %v1472_v35 = vmul.f32 %v5511_v1, %v5302_v18 }
 0x18c   : > { %v5853_v10 = vpop.permute.xlu0 %796  ;;  %v5855_v59 = vpop.permute.xlu1 %794 }
 0x18d   : > { %9220 = vst [vmem:[#allocation69_spill] sm:$0xff] %v5853_v10  ;;  %9221 = vst [vmem:[#allocation70_spill] sm:$0xff] %v5855_v59  ;;  %1545 = vrot.lane.b32.xlu0 %v1473_v50, %s5193_s23  ;;  %1714 = vrot.lane.b32.xlu1 %v1658_v34, %s5194_s24  ;;  %v1474_v50 = vmul.f32 %v5511_v1, %v5314_v28 }
 0x190   : > { %v5863_v38 = vpop.permute.xlu0 %1120  ;;  %v5865_v51 = vpop.permute.xlu1 %798 }
 0x191   : > { %9222 = vst [vmem:[#allocation71_spill] sm:$0xff] %v5865_v51  ;;  %1557 = vrot.lane.b32.xlu0 %v1479_v45, %s5193_s23  ;;  %1543 = vrot.lane.b32.xlu1 %v1472_v35, %s5193_s23  ;;  %v1478_v51 = vmul.f32 %v5501_v60, %v5304_v19  ;;  %v1480_v45 = vmul.f32 %v5501_v60, %v5316_v29 }
 0x192   : > { %v1680_v60 = vmul.f32 %v5675_v3, %v5302_v18 }
 0x194   : > { %v5873_v34 = vpop.permute.xlu0 %1124  ;;  %v5875_v59 = vpop.permute.xlu1 %1122 }
 0x195   : > { %1561 = vrot.lane.b32.xlu0 %v1481_v47, %s5193_s23  ;;  %1547 = vrot.lane.b32.xlu1 %v1474_v50, %s5193_s23  ;;  %v1471_v47 = vmul.f32 %v5511_v1, %v5304_v19  ;;  %v1682_v1 = vmul.f32 %v5675_v3, %v5314_v28 }
 0x198   : > { %v5883_v35 = vpop.permute.xlu0 %1134  ;;  %v5885_v10 = vpop.permute.xlu1 %1132 }
 0x199   : > { %1555 = vrot.lane.b32.xlu0 %v1478_v51, %s5193_s23  ;;  %1559 = vrot.lane.b32.xlu1 %v1480_v45, %s5193_s23  ;;  %v1673_v51 = vmul.f32 %v5666_v55, %v5302_v18 }
 0x19c   : > { %v5893_v50 = vpop.permute.xlu0 %780  ;;  %v5895_v16 = vpop.permute.xlu1 %1136 }
 0x19d   : > { %9223 = vst [vmem:[#allocation72_spill] sm:$0xff] %v5893_v50  ;;  %1746 = vrot.lane.b32.xlu0 %v1674_v39, %s5194_s24  ;;  %1541 = vrot.lane.b32.xlu1 %v1471_v47, %s5193_s23  ;;  %v1675_v39 = vmul.f32 %v5666_v55, %v5314_v28  ;;  %v1672_v28 = vmul.f32 %v5666_v55, %v5304_v19 }
 0x1a0   : > { %v5903_v45 = vpop.permute.xlu0 %1118  ;;  %v5905_v52 = vpop.permute.xlu1 %792 }
 0x1a1   : > { %9224 = vst [vmem:[#allocation73_spill] sm:$0xff] %v5903_v45  ;;  %9225 = vst [vmem:[#allocation74_spill] sm:$0xff] %v5905_v52  ;;  %1758 = vrot.lane.b32.xlu0 %v1680_v60, %s5194_s24  ;;  %1744 = vrot.lane.b32.xlu1 %v1673_v51, %s5194_s24  ;;  %v1679_v52 = vmul.f32 %v5675_v3, %v5304_v19  ;;  %v1681_v60 = vmul.f32 %v5675_v3, %v5316_v29 }
 0x1a4   : > { %v5913_v47 = vpop.permute.xlu0 %963  ;;  %v5915_v50 = vpop.permute.xlu1 %1130 }
 0x1a5   : > { %9226 = vst [vmem:[#allocation75_spill] sm:$0xff] %v5913_v47  ;;  %9227 = vst [vmem:[#allocation76_spill] sm:$0xff] %v5915_v50  ;;  %1762 = vrot.lane.b32.xlu0 %v1682_v1, %s5194_s24  ;;  %1748 = vrot.lane.b32.xlu1 %v1675_v39, %s5194_s24 }
 0x1a8   : > { %v5923_v51 = vpop.permute.xlu0 %967  ;;  %v5925_v49 = vpop.permute.xlu1 %965 }
 0x1a9   : > { %9228 = vst [vmem:[#allocation77_spill] sm:$0xff] %v5923_v51  ;;  %9229 = vst [vmem:[#allocation78_spill] sm:$0xff] %v5925_v49  ;;  %1756 = vrot.lane.b32.xlu0 %v1679_v52, %s5194_s24  ;;  %1760 = vrot.lane.b32.xlu1 %v1681_v60, %s5194_s24 }
 0x1ac   : > { %v5931_v1 = vpop.permute.xlu0 %977  ;;  %v5933_v39 = vpop.permute.xlu1 %975 }
 0x1ad   : > { %9230 = vst [vmem:[#allocation79_spill] sm:$0xff] %v5931_v1  ;;  %9231 = vst [vmem:[#allocation80_spill] sm:$0xff] %v5933_v39  ;;  %1742 = vrot.lane.b32.xlu1 %v1672_v28, %s5194_s24 }
 0x1b0   : > { %v5936_v47 = vpop.permute.xlu0 %1314  ;;  %v5938_v3 = vpop.permute.xlu1 %979 }
 0x1b1   : > { %9232 = vst [vmem:[#allocation81_spill] sm:$0xff] %v5938_v3 }
 0x1b4   : > { %v5940_v51 = vpop.permute.xlu0 %1318  ;;  %v5942_v49 = vpop.permute.xlu1 %1316 }
 0x1b8   : > { %v5944_v52 = vpop.permute.xlu0 %1330  ;;  %v5946_v60 = vpop.permute.xlu1 %1328 }
 0x1bc   : > { %v5948_v56 = vpop.permute.xlu0 %1849  ;;  %v5950_v55 = vpop.permute.xlu1 %1332 }
 0x1bd   : > { %9233 = vst [vmem:[#allocation82_spill] sm:$0xff] %v5948_v56  ;;  %v443_v56 = vsel %vm442_vm0, %v5523_v11, %v5521_v4 }
 0x1c0   : > { %v5952_v1 = vpop.permute.xlu0 %973  ;;  %v5954_v39 = vpop.permute.xlu1 %1854 }
 0x1c1   : > { %9234 = vst [vmem:[#allocation83_spill] sm:$0xff] %v5952_v1  ;;  %9235 = vst [vmem:[#allocation84_spill] sm:$0xff] %v5954_v39  ;;  %v306_v39 = vmul.f32 %v5304_v19, %v5513_v7 }
 0x1c3   : > { %v6017_v50 = vadd.f32 %v443_v56, %v306_v39  ;;  %v450_v56 = vsel %vm442_vm0, %v5563_v48, %v5561_v44  ;;  %v631_v39 = vsel %vm623_vm1, %v5693_v13, %v5705_v23 }
 0x1c4   : > { %v5956_v28 = vpop.permute.xlu0 %1326  ;;  %v5958_v25 = vpop.permute.xlu1 %961 }
 0x1c5   : > { %9236 = vst [vmem:[#allocation85_spill] sm:$0xff] %v5956_v28  ;;  %9237 = vst [vmem:[#allocation86_spill] sm:$0xff] %v5958_v25 }
 0x1c8   : > { %v5960_v3 = vpop.permute.xlu0 %1146  ;;  %v5962_v21 = vpop.permute.xlu1 %1312 }
 0x1c9   : > { %9238 = vst [vmem:[#allocation87_spill] sm:$0xff] %v5960_v3  ;;  %9239 = vst [vmem:[#allocation88_spill] sm:$0xff] %v5962_v21 }
 0x1cc   : > { %v5964_v36 = vpop.permute.xlu0 %1156  ;;  %v5966_v30 = vpop.permute.xlu1 %1144 }
 0x1cd   : > { %9240 = vst [vmem:[#allocation89_spill] sm:$0xff] %v5964_v36  ;;  %9241 = vst [vmem:[#allocation90_spill] sm:$0xff] %v5966_v30 }
 0x1d0   : > { %v5968_v41 = vpop.permute.xlu0 %1160  ;;  %v5970_v12 = vpop.permute.xlu1 %1148 }
 0x1d1   : > { %9242 = vst [vmem:[#allocation91_spill] sm:$0xff] %v5968_v41  ;;  %9243 = vst [vmem:[#allocation92_spill] sm:$0xff] %v5970_v12 }
 0x1d4   : > { %v5972_v0 = vpop.permute.xlu0 %1517  ;;  %v5974_v1 = vpop.permute.xlu1 %1158 }
 0x1d5   : > { %9244 = vst [vmem:[#allocation93_spill] sm:$0xff] %v5974_v1 }
 0x1d8   : > { %v5976_v22 = vpop.permute.xlu0 %1529  ;;  %v5978_v45 = vpop.permute.xlu1 %1515 }
 0x1dc   : > { %v5980_v25 = vpop.permute.xlu0 %1533  ;;  %v5982_v3 = vpop.permute.xlu1 %1519 }
 0x1e0   : > { %v5984_v21 = vpop.permute.xlu0 %1154  ;;  %v5986_v36 = vpop.permute.xlu1 %1531 }
 0x1e1   : > { %9245 = vst [vmem:[#allocation94_spill] sm:$0xff] %v5984_v21  ;;  %v307_v21 = vmul.f32 %v5302_v18, %v5513_v7 }
 0x1e4   : > { %v5988_v30 = vpop.permute.xlu0 %1527  ;;  %v5990_v41 = vpop.permute.xlu1 %1142 }
 0x1e5   : > { %9246 = vst [vmem:[#allocation95_spill] sm:$0xff] %v5988_v30  ;;  %9247 = vst [vmem:[#allocation96_spill] sm:$0xff] %v5990_v41  ;;  %v308_v30 = vmul.f32 %v5316_v29, %v5513_v7  ;;  %v444_v41 = vsel %vm442_vm0, %v5521_v4, %v5533_v20  ;;  %v314_v7 = vmul.f32 %v5316_v29, %v5664_v53 }
 0x1e6   : > { %v488_v4 = vadd.f32 %v444_v41, %v307_v21  ;;  %v625_v41 = vsel %vm623_vm1, %v5673_v31, %v5685_v61 }
 0x1e8   : > { %v5992_v12 = vpop.permute.xlu0 %1344  ;;  %v5994_v1 = vpop.permute.xlu1 %1513 }
 0x1e9   : > { %9248 = vst [vmem:[#allocation97_spill] sm:$0xff] %v5992_v12  ;;  %9249 = vst [vmem:[#allocation98_spill] sm:$0xff] %v5994_v1  ;;  %v445_v12 = vsel %vm442_vm0, %v5533_v20, %v5531_v15  ;;  %v313_v1 = vmul.f32 %v5302_v18, %v5664_v53  ;;  %v448_v20 = vsel %vm442_vm0, %v5553_v40, %v5551_v37 }
 0x1ea   : > { %v489_v46 = vadd.f32 %v445_v12, %v308_v30  ;;  %v312_v15 = vmul.f32 %v5304_v19, %v5664_v53  ;;  %v626_v30 = vsel %vm623_vm1, %v5685_v61, %v5683_v5  ;;  %v630_v12 = vsel %vm623_vm1, %v5695_v27, %v5693_v13 }
 0x1eb   : > { %v806_v61 = vsel %vm804_vm2, %v5713_v42, %v5725_v8  ;;  %v629_v5 = vsel %vm623_vm1, %v5715_v24, %v5695_v27  ;;  %v811_v13 = vsel %vm804_vm2, %v5735_v2, %v5733_v26 }
 0x1ec   : > { %v6013_v28 = vpop.permute.xlu0 %1356  ;;  %v6015_v11 = vpop.permute.xlu1 %1342  ;;  %v670_v44 = vadd.f32 %v626_v30, %v489_v46  ;;  %v493_v53 = vadd.f32 %v448_v20, %v312_v15  ;;  %v624_v46 = vsel %vm623_vm1, %v5703_v62, %v5673_v31  ;;  %v812_v30 = vsel %vm804_vm2, %v5733_v26, %v5745_v17 }
 0x1ed   : > { %9250 = vst [vmem:[#allocation99_spill] sm:$0xff] %v6013_v28  ;;  %v449_v28 = vsel %vm442_vm0, %v5551_v37, %v5563_v48  ;;  %v495_v48 = vadd.f32 %v450_v56, %v314_v7  ;;  %v987_v56 = vsel %vm985_vm3, %v5783_v63, %v5795_v6 }
 0x1ee   : > { %v494_v40 = vadd.f32 %v449_v28, %v313_v1  ;;  %v807_v1 = vsel %vm804_vm2, %v5725_v8, %v5723_v9  ;;  %v669_v28 = vadd.f32 %v625_v41, %v488_v4  ;;  %v988_v8 = vsel %vm985_vm3, %v5795_v6, %v5793_v58 }
 0x1ef   : > { %v676_v15 = vadd.f32 %v631_v39, %v495_v48  ;;  %v851_v24 = vadd.f32 %v807_v1, %v670_v44  ;;  %v674_v41 = vadd.f32 %v629_v5, %v493_v53  ;;  %v1169_v6 = vsel %vm1166_vm4, %v5875_v59, %v5873_v34 }
 0x1f0   : > { %v6041_v37 = vpop.permute.xlu0 %1360  ;;  %v6043_v21 = vpop.permute.xlu1 %1346  ;;  %v675_v7 = vadd.f32 %v630_v12, %v494_v40  ;;  %v850_v4 = vadd.f32 %v806_v61, %v669_v28  ;;  %v1168_v40 = vsel %vm1166_vm4, %v5863_v38, %v5875_v59  ;;  %v992_v44 = vsel %vm985_vm3, %v5805_v43, %v5803_v33 }
 0x1f1   : > { %9251 = vst [vmem:[#allocation100_spill] sm:$0xff] %v6041_v37  ;;  %9252 = vst [vmem:[#allocation101_spill] sm:$0xff] %v6043_v21  ;;  %v1032_v12 = vadd.f32 %v988_v8, %v851_v24  ;;  %v993_v53 = vsel %vm985_vm3, %v5803_v33, %v5815_v54  ;;  %v1370_v5 = vsel %vm1368_vm5, %v5936_v47, %v5942_v49 }
 0x1f2   : > { %v856_v31 = vadd.f32 %v811_v13, %v675_v7  ;;  %v1031_v62 = vadd.f32 %v987_v56, %v850_v4  ;;  %v1371_v59 = vsel %vm1368_vm5, %v5942_v49, %v5940_v51  ;;  %v857_v26 = vadd.f32 %v812_v30, %v676_v15 }
 0x1f3   : > { %v1213_v39 = vadd.f32 %v1169_v6, %v1032_v12  ;;  %v1173_v33 = vsel %vm1166_vm4, %v5885_v10, %v5883_v35  ;;  %v1174_v28 = vsel %vm1166_vm4, %v5883_v35, %v5895_v16  ;;  %v1571_v49 = vsel %vm1569_vm6, %v5978_v45, %v5972_v0 }
 0x1f4   : > { %v1719_v27 = vpop.permute.xlu0 %1718  ;;  %v6069_v20 = vpop.permute.xlu1 %1358  ;;  %v1212_v48 = vadd.f32 %v1168_v40, %v1031_v62  ;;  %v1572_v7 = vsel %vm1569_vm6, %v5972_v0, %v5982_v3  ;;  %v1037_v13 = vadd.f32 %v992_v44, %v856_v31  ;;  %v1038_v56 = vadd.f32 %v993_v53, %v857_v26 }
 0x1f5   : > { %v1419_v15 = vadd.f32 %v1371_v59, %v1213_v39  ;;  %v810_v4 = vsel %vm804_vm2, %v5755_v32, %v5735_v2  ;;  %v1376_v35 = vsel %vm1368_vm5, %v5946_v60, %v5944_v52  ;;  %v1377_v24 = vsel %vm1368_vm5, %v5944_v52, %v5950_v55  ;;  %v9253_v39 = vld [vmem:[#allocation64_spill] sm:$0xff] }
 0x1f6   : > { %v1418_v8 = vadd.f32 %v1370_v5, %v1212_v48  ;;  %v1218_v0 = vadd.f32 %v1173_v33, %v1037_v13  ;;  %v1219_v40 = vadd.f32 %v1174_v28, %v1038_v56  ;;  %v991_v2 = vsel %vm985_vm3, %v5836_v14, %v5805_v43 }
 0x1f7   : > { %v1620_v31 = vadd.f32 %v1572_v7, %v1419_v15  ;;  %v1577_v32 = vsel %vm1569_vm6, %v5976_v22, %v5986_v36  ;;  %v1578_v52 = vsel %vm1569_vm6, %v5986_v36, %v5980_v25  ;;  %v668_v48 = vadd.f32 %v624_v46, %v6017_v50  ;;  %v9254_v36 = vld [vmem:[#allocation76_spill] sm:$0xff]  ;;  %v9256_v50 = vld [vmem:[#allocation85_spill] sm:$0xff] }
 0x1f8   : > { %v6092_v61 = vpop.permute.xlu0 %1730  ;;  %v6094_v1 = vpop.permute.xlu1 %1716  ;;  %v1619_v6 = vadd.f32 %v1571_v49, %v1418_v8  ;;  %v1424_v53 = vadd.f32 %v1376_v35, %v1218_v0  ;;  %v1425_v5 = vadd.f32 %v1377_v24, %v1219_v40  ;;  %v805_v43 = vsel %vm804_vm2, %v5743_v57, %v5713_v42  ;;  %v9258_v24 = vld [vmem:[#allocation84_spill] sm:$0xff] }
 0x1f9   : > { %v1772_v30 = vsel %vm1770_vm7, %v6094_v1, %v1719_v27  ;;  %v855_v14 = vadd.f32 %v810_v4, %v674_v41  ;;  %v986_v33 = vsel %vm985_vm3, %v9253_v39, %v5783_v63  ;;  %v1172_v28 = vsel %vm1166_vm4, %v9254_v36, %v5885_v10  ;;  %v9257_v63 = vld [vmem:[#allocation82_spill] sm:$0xff] }
 0x1fa   : > { %v1820_v59 = vadd.f32 %v1772_v30, %v1619_v6  ;;  %v1626_v49 = vadd.f32 %v1578_v52, %v1425_v5  ;;  %v1375_v46 = vsel %vm1368_vm5, %v9256_v50, %v5946_v60  ;;  %v849_v4 = vadd.f32 %v805_v43, %v668_v48  ;;  %v9261_v52 = vld [vmem:[#allocation95_spill] sm:$0xff]  ;;  %v9262_v48 = vld [vmem:[#allocation88_spill] sm:$0xff] }
 0x1fb   : > { %v1036_v56 = vadd.f32 %v991_v2, %v855_v14  ;;  %v1369_v43 = vsel %vm1368_vm5, %v9262_v48, %v5936_v47 }
 0x1fc   : > { %v6119_v62 = vpop.permute.xlu0 %1734  ;;  %v6121_v12 = vpop.permute.xlu1 %1720  ;;  %v1868_v41 = vadd.f32 %v9257_v63, %v1820_v59  ;;  %v1030_v6 = vadd.f32 %v986_v33, %v849_v4 }
 0x1fd   : > { %v1773_v44 = vsel %vm1770_vm7, %v1719_v27, %v6121_v12  ;;  %v1625_v27 = vadd.f32 %v1577_v32, %v1424_v53  ;;  %v1217_v35 = vadd.f32 %v1172_v28, %v1036_v56 }
 0x1fe   : > { %v1821_v26 = vadd.f32 %v1773_v44, %v1620_v31  ;;  %v9260_v31 = vld [vmem:[#allocation73_spill] sm:$0xff]  ;;  %v1576_v44 = vsel %vm1569_vm6, %v9261_v52, %v5976_v22  ;;  %v1892_v53 = vmax.f32 %v1868_v41, 0.0 }
 0x1ff   : > { %v1167_v2 = vsel %vm1166_vm4, %v9260_v31, %v5863_v38  ;;  %v1423_v32 = vadd.f32 %v1375_v46, %v1217_v35 }
 0x200   : > { %v6144_v7 = vpop.permute.xlu0 %1864  ;;  %v1733_v13 = vpop.permute.xlu1 %1732  ;;  %v1869_v10 = vadd.f32 %v9257_v63, %v1821_v26  ;;  %v1211_v14 = vadd.f32 %v1167_v2, %v1030_v6  ;;  %v9267_v6 = vld [vmem:[#allocation44_spill] sm:$0xff]  ;;  %v9268_v2 = vld [vmem:[#allocation5_spill] sm:$0xff] }
 0x201   : > { %9255 = vst [vmem:[#allocation64_spill] sm:$0xff] %v6144_v7  ;;  %v1778_v42 = vsel %vm1770_vm7, %v6092_v61, %v1733_v13  ;;  %v1779_v57 = vsel %vm1770_vm7, %v1733_v13, %v6119_v62  ;;  %v1624_v39 = vadd.f32 %v1576_v44, %v1423_v32  ;;  %v324_v32 = vmul.f32 %v5304_v19, %v9268_v2  ;;  %v9269_v44 = vld [vmem:[#allocation43_spill] sm:$0xff] }
 0x202   : > { %v1826_v8 = vadd.f32 %v1778_v42, %v1625_v27  ;;  %v1827_v15 = vadd.f32 %v1779_v57, %v1626_v49  ;;  %v1893_v5 = vmax.f32 %v1869_v10, 0.0  ;;  %v9263_v27 = vld [vmem:[#allocation98_spill] sm:$0xff]  ;;  %v1417_v13 = vadd.f32 %v1369_v43, %v1211_v14  ;;  %v9264_v57 = vld [vmem:[#allocation3_spill] sm:$0xff]  ;;  %v9265_v10 = vld [vmem:[#allocation41_spill] sm:$0xff] }
 0x203   : > { %v1570_v22 = vsel %vm1569_vm6, %v9263_v27, %v5978_v45  ;;  %v318_v41 = vmul.f32 %v5304_v19, %v9264_v57  ;;  %v319_v4 = vmul.f32 %v5302_v18, %v9264_v57  ;;  %v454_v31 = vsel %vm442_vm0, %v9265_v10, %v9267_v6  ;;  %v9273_v27 = vld [vmem:[#allocation49_spill] sm:$0xff] }
 0x204   : > { %v1874_v30 = vadd.f32 %v9258_v24, %v1826_v8  ;;  %v1875_v0 = vadd.f32 %v9258_v24, %v1827_v15  ;;  %v6157_v40 = vpop.permute.xlu0 %1354  ;;  %v6159_v60 = vpop.permute.xlu1 %1859  ;;  %v1618_v47 = vadd.f32 %v1570_v22, %v1417_v13  ;;  %v9266_v8 = vld [vmem:[#allocation42_spill] sm:$0xff]  ;;  %v325_v52 = vmul.f32 %v5302_v18, %v9268_v2  ;;  %v9275_v13 = vld [vmem:[#allocation57_spill] sm:$0xff] }
 0x205   : > { %9259 = vst [vmem:[#allocation76_spill] sm:$0xff] %v6159_v60  ;;  %v453_v15 = vsel %vm442_vm0, %v9266_v8, %v9265_v10  ;;  %v500_v22 = vadd.f32 %v454_v31, %v319_v4  ;;  %v9279_v10 = vld [vmem:[#allocation60_spill] sm:$0xff]  ;;  %v9280_v8 = vld [vmem:[#allocation61_spill] sm:$0xff]  ;;  %v9281_v4 = vld [vmem:[#allocation62_spill] sm:$0xff] }
 0x206   : > { %v1898_v59 = vmax.f32 %v1874_v30, 0.0  ;;  %v1899_v26 = vmax.f32 %v1875_v0, 0.0  ;;  %v499_v14 = vadd.f32 %v453_v15, %v318_v41  ;;  %v640_v15 = vsel %vm623_vm1, %v9280_v8, %v9279_v10 }
 0x208   : > { %v6170_v33 = vpack.c.bf16 %v1898_v59, %v1892_v53  ;;  %v6172_v36 = vpack.c.bf16 %v1899_v26, %v1893_v5  ;;  %v1729_v38 = vpop.permute.xlu0 %1728  ;;  %v6174_v28 = vpop.permute.xlu1 %1340  ;;  %v455_v53 = vsel %vm442_vm0, %v9267_v6, %v9269_v44  ;;  %v9270_v5 = vld [vmem:[#allocation47_spill] sm:$0xff]  ;;  %v9271_v59 = vld [vmem:[#allocation48_spill] sm:$0xff] }
 0x209   : > { %v1777_v49 = vsel %vm1770_vm7, %v1729_v38, %v6092_v61  ;;  %v458_v26 = vsel %vm442_vm0, %v9271_v59, %v9270_v5  ;;  %v9272_v38 = vld [vmem:[#allocation50_spill] sm:$0xff] }
 0x20a   : > { %v1825_v56 = vadd.f32 %v1777_v49, %v1624_v39  ;;  %1943 = vrot.lane.b32.xlu0 %v6172_v36, %s5187_s11  ;;  %1941 = vrot.lane.b32.xlu1 %v6170_v33, %s5187_s11  ;;  %v326_v39 = vmul.f32 %v5316_v29, %v9268_v2  ;;  %v459_v19 = vsel %vm442_vm0, %v9270_v5, %v9272_v38  ;;  %v9274_v49 = vld [vmem:[#allocation59_spill] sm:$0xff]  ;;  %v9296_v2 = vld [vmem:[#allocation80_spill] sm:$0xff] }
 0x20b   : > { %2452 = vmatprep.subr.bf16.mxu0 %v6170_v33  ;;  %v460_v18 = vsel %vm442_vm0, %v9272_v38, %v9273_v27  ;;  %v505_v41 = vadd.f32 %v458_v26, %v324_v32  ;;  %v506_v6 = vadd.f32 %v459_v19, %v325_v52  ;;  %v9282_v5 = vld [vmem:[#allocation63_spill] sm:$0xff]  ;;  %v9298_v27 = vld [vmem:[#allocation90_spill] sm:$0xff] }
 0x20c   : > { %v6186_v50 = vpop.permute.xlu0 %1545  ;;  %v1715_v46 = vpop.permute.xlu1 %1714  ;;  %v1873_v42 = vadd.f32 %v9258_v24, %v1825_v56  ;;  %v635_v56 = vsel %vm623_vm1, %v9275_v13, %v9274_v49  ;;  %v507_v31 = vadd.f32 %v460_v18, %v326_v39  ;;  %v634_v59 = vsel %vm623_vm1, %v9282_v5, %v9275_v13  ;;  %v9286_v19 = vld [vmem:[#allocation67_spill] sm:$0xff]  ;;  %v9288_v13 = vld [vmem:[#allocation70_spill] sm:$0xff]  ;;  %v9290_v5 = vld [vmem:[#allocation72_spill] sm:$0xff] }
 0x20d   : > { %v1771_v45 = vsel %vm1770_vm7, %v1715_v46, %v6094_v1  ;;  %v320_v1 = vmul.f32 %v5316_v29, %v9264_v57  ;;  %v687_v39 = vadd.f32 %v640_v15, %v506_v6  ;;  %v9292_v6 = vld [vmem:[#allocation75_spill] sm:$0xff] }
 0x20e   : > { %v1819_v61 = vadd.f32 %v1771_v45, %v1618_v47  ;;  %v1897_v48 = vmax.f32 %v1873_v42, 0.0  ;;  %v9276_v47 = vld [vmem:[#allocation58_spill] sm:$0xff] }
 0x20f   : > { %v636_v46 = vsel %vm623_vm1, %v9274_v49, %v9276_v47  ;;  %v9287_v49 = vld [vmem:[#allocation69_spill] sm:$0xff] }
 0x210   : > { %v1867_v35 = vadd.f32 %v9257_v63, %v1819_v61  ;;  %v6199_v30 = vpop.permute.xlu0 %1557  ;;  %v6201_v0 = vpop.permute.xlu1 %1543  ;;  %v501_v61 = vadd.f32 %v455_v53, %v320_v1  ;;  %v681_v1 = vadd.f32 %v635_v56, %v500_v22  ;;  %v9283_v53 = vld [vmem:[#allocation65_spill] sm:$0xff] }
 0x211   : > { %v639_v26 = vsel %vm623_vm1, %v9283_v53, %v9280_v8  ;;  %v9294_v47 = vld [vmem:[#allocation77_spill] sm:$0xff] }
 0x212   : > { %v1891_v43 = vmax.f32 %v1867_v35, 0.0  ;;  %v641_v35 = vsel %vm623_vm1, %v9279_v10, %v9281_v4  ;;  %v682_v32 = vadd.f32 %v636_v46, %v501_v61  ;;  %v821_v10 = vsel %vm804_vm2, %v9288_v13, %v9287_v49  ;;  %v9289_v61 = vld [vmem:[#allocation71_spill] sm:$0xff] }
 0x213   : > { %v688_v38 = vadd.f32 %v641_v35, %v507_v31  ;;  %v680_v46 = vadd.f32 %v634_v59, %v499_v14  ;;  %v822_v8 = vsel %vm804_vm2, %v9287_v49, %v9289_v61  ;;  %v9291_v35 = vld [vmem:[#allocation78_spill] sm:$0xff]  ;;  %v686_v53 = vadd.f32 %v639_v26, %v505_v41  ;;  %v9295_v61 = vld [vmem:[#allocation79_spill] sm:$0xff] }
 0x214   : > { %v6232_v45 = vpack.c.bf16 %v1897_v48, %v1891_v43  ;;  %v6234_v29 = vpop.permute.xlu0 %1561  ;;  %v6236_v42 = vpop.permute.xlu1 %1547  ;;  %v9284_v48 = vld [vmem:[#allocation68_spill] sm:$0xff]  ;;  %v9285_v43 = vld [vmem:[#allocation66_spill] sm:$0xff]  ;;  %v997_v31 = vsel %vm985_vm3, %v9292_v6, %v9291_v35  ;;  %v998_v14 = vsel %vm985_vm3, %v9291_v35, %v9294_v47  ;;  %v868_v49 = vadd.f32 %v821_v10, %v687_v39  ;;  %v9301_v10 = vld [vmem:[#allocation97_spill] sm:$0xff] }
 0x215   : > { %9277 = vst [vmem:[#allocation85_spill] sm:$0xff] %v6234_v29  ;;  %9278 = vst [vmem:[#allocation82_spill] sm:$0xff] %v6236_v42  ;;  %v816_v52 = vsel %vm804_vm2, %v9285_v43, %v9284_v48  ;;  %v817_v18 = vsel %vm804_vm2, %v9284_v48, %v9286_v19  ;;  %v815_v15 = vsel %vm804_vm2, %v9290_v5, %v9285_v43  ;;  %v9293_v19 = vld [vmem:[#allocation74_spill] sm:$0xff]  ;;  %v9297_v5 = vld [vmem:[#allocation87_spill] sm:$0xff] }
 0x216   : > { %1939 = vrot.lane.b32.xlu1 %v6232_v45, %s5187_s11  ;;  %2453 = vmatpush1.bf16.msra.mxu0 %v6232_v45  ;;  %v862_v48 = vadd.f32 %v816_v52, %v681_v1  ;;  %v820_v4 = vsel %vm804_vm2, %v9293_v19, %v9288_v13  ;;  %v863_v59 = vadd.f32 %v817_v18, %v682_v32  ;;  %v9299_v52 = vld [vmem:[#allocation81_spill] sm:$0xff]  ;;  %v9300_v39 = vld [vmem:[#allocation92_spill] sm:$0xff] }
 0x217   : > { %v1002_v43 = vsel %vm985_vm3, %v9296_v2, %v9295_v61  ;;  %v1178_v44 = vsel %vm1166_vm4, %v9298_v27, %v9297_v5  ;;  %v869_v41 = vadd.f32 %v822_v8, %v688_v38  ;;  %v861_v1 = vadd.f32 %v815_v15, %v680_v46  ;;  %v9302_v38 = vld [vmem:[#allocation83_spill] sm:$0xff]  ;;  %v9303_v8 = vld [vmem:[#allocation86_spill] sm:$0xff] }
 0x218   : > { %v1556_v22 = vpop.permute.xlu0 %1555  ;;  %v1560_v56 = vpop.permute.xlu1 %1559  ;;  %v1043_v26 = vadd.f32 %v997_v31, %v862_v48  ;;  %v1003_v19 = vsel %vm985_vm3, %v9295_v61, %v9299_v52  ;;  %v867_v35 = vadd.f32 %v820_v4, %v686_v53  ;;  %v1044_v32 = vadd.f32 %v998_v14, %v863_v59  ;;  %v9304_v31 = vld [vmem:[#allocation93_spill] sm:$0xff] }
 0x219   : > { %v1179_v18 = vsel %vm1166_vm4, %v9297_v5, %v9300_v39  ;;  %v1382_v47 = vsel %vm1368_vm5, %v6015_v11, %v9301_v10  ;;  %v1049_v24 = vadd.f32 %v1002_v43, %v868_v49  ;;  %v1001_v46 = vsel %vm985_vm3, %v9302_v38, %v9296_v2  ;;  %v9305_v53 = vld [vmem:[#allocation89_spill] sm:$0xff]  ;;  %v9306_v2 = vld [vmem:[#allocation91_spill] sm:$0xff]  ;;  %v9371_v39 = vld [vmem:[#allocation36_spill] sm:$0xff] }
 0x21a   : > { %v996_v61 = vsel %vm985_vm3, %v9303_v8, %v9292_v6  ;;  %v1224_v15 = vadd.f32 %v1178_v44, %v1043_v26  ;;  %v1050_v4 = vadd.f32 %v1003_v19, %v869_v41  ;;  %v1183_v48 = vsel %vm1166_vm4, %v9305_v53, %v9304_v31  ;;  %v9307_v44 = vld [vmem:[#allocation94_spill] sm:$0xff] }
 0x21b   : > { %v1383_v14 = vsel %vm1368_vm5, %v9301_v10, %v6043_v21  ;;  %v1583_v59 = vsel %vm1569_vm6, %v6201_v0, %v6186_v50  ;;  %v1225_v49 = vadd.f32 %v1179_v18, %v1044_v32  ;;  %v1184_v43 = vsel %vm1166_vm4, %v9304_v31, %v9306_v2  ;;  %v9308_v21 = vld [vmem:[#allocation99_spill] sm:$0xff] }
 0x21c   : > { %v1747_v13 = vpop.permute.xlu0 %1746  ;;  %v1542_v57 = vpop.permute.xlu1 %1541  ;;  %v1182_v6 = vsel %vm1166_vm4, %v9307_v44, %v9305_v53  ;;  %v1430_v5 = vadd.f32 %v1382_v47, %v1224_v15  ;;  %v1048_v19 = vadd.f32 %v1001_v46, %v867_v35  ;;  %v1042_v38 = vadd.f32 %v996_v61, %v861_v1 }
 0x21d   : > { %v1584_v10 = vsel %vm1569_vm6, %v6186_v50, %v6236_v42  ;;  %v1230_v32 = vadd.f32 %v1183_v48, %v1049_v24  ;;  %v1431_v18 = vadd.f32 %v1383_v14, %v1225_v49  ;;  %v1387_v31 = vsel %vm1368_vm5, %v6157_v40, %v9308_v21  ;;  %v9309_v50 = vld [vmem:[#allocation96_spill] sm:$0xff] }
 0x21e   : > { %v1631_v2 = vadd.f32 %v1583_v59, %v1430_v5  ;;  %v1231_v52 = vadd.f32 %v1184_v43, %v1050_v4  ;;  %v1229_v53 = vadd.f32 %v1182_v6, %v1048_v19  ;;  %v1388_v47 = vsel %vm1368_vm5, %v9308_v21, %v6069_v20 }
 0x21f   : > { %v1389_v1 = vsel %vm1368_vm5, %v6069_v20, %v6041_v37  ;;  %v1177_v24 = vsel %vm1166_vm4, %v9309_v50, %v9298_v27  ;;  %v1632_v35 = vadd.f32 %v1584_v10, %v1431_v18  ;;  %v1588_v46 = vsel %vm1569_vm6, %v1556_v22, %v6199_v30 }
 0x220   : > { %v1759_v41 = vpop.permute.xlu0 %1758  ;;  %v1745_v26 = vpop.permute.xlu1 %1744  ;;  %v1435_v4 = vadd.f32 %v1387_v31, %v1229_v53  ;;  %v1589_v21 = vsel %vm1569_vm6, %v6199_v30, %v1560_v56  ;;  %v1590_v20 = vsel %vm1569_vm6, %v1560_v56, %v6234_v29  ;;  %v1436_v27 = vadd.f32 %v1388_v47, %v1230_v32 }
 0x221   : > { %v1784_v8 = vsel %vm1770_vm7, %v1745_v26, %v1747_v13  ;;  %v1437_v14 = vadd.f32 %v1389_v1, %v1231_v52  ;;  %v1223_v49 = vadd.f32 %v1177_v24, %v1042_v38  ;;  %v1381_v22 = vsel %vm1368_vm5, %v6174_v28, %v6015_v11 }
 0x222   : > { %v1832_v40 = vadd.f32 %v1784_v8, %v1631_v2  ;;  %v1636_v2 = vadd.f32 %v1588_v46, %v1435_v4  ;;  %v1637_v43 = vadd.f32 %v1589_v21, %v1436_v27  ;;  %v1582_v30 = vsel %vm1569_vm6, %v1542_v57, %v6201_v0 }
 0x223   : > { %v1638_v44 = vadd.f32 %v1590_v20, %v1437_v14  ;;  %v1429_v11 = vadd.f32 %v1381_v22, %v1223_v49  ;;  %v9313_v20 = vld [vmem:[#allocation7_spill] sm:$0xff]  ;;  %v9315_v14 = vld [vmem:[#allocation6_spill] sm:$0xff] }
 0x224   : > { %v6331_v61 = vpop.permute.xlu0 %1762  ;;  %v6333_v15 = vpop.permute.xlu1 %1748  ;;  %v1880_v6 = vadd.f32 %v6159_v60, %v1832_v40  ;;  %v9316_v49 = vld [vmem:[#allocation15_spill] sm:$0xff] }
 0x225   : > { %9310 = vst [vmem:[#allocation73_spill] sm:$0xff] %v6331_v61  ;;  %9311 = vst [vmem:[#allocation95_spill] sm:$0xff] %v6333_v15  ;;  %v1785_v48 = vsel %vm1770_vm7, %v1747_v13, %v6333_v15  ;;  %v1630_v32 = vadd.f32 %v1582_v30, %v1429_v11  ;;  %v537_v22 = vmul.f32 %v9316_v49, %v9313_v20 }
 0x226   : > { %v1833_v59 = vadd.f32 %v1785_v48, %v1632_v35  ;;  %v1904_v31 = vmax.f32 %v1880_v6, 0.0  ;;  %v9314_v48 = vld [vmem:[#allocation8_spill] sm:$0xff]  ;;  %v9318_v6 = vld [vmem:[#allocation11_spill] sm:$0xff] }
 0x227   : > { %v531_v27 = vmul.f32 %v9314_v48, %v9313_v20 }
 0x228   : > { %v1757_v56 = vpop.permute.xlu0 %1756  ;;  %v1761_v5 = vpop.permute.xlu1 %1760  ;;  %v1881_v13 = vadd.f32 %v6159_v60, %v1833_v59  ;;  %v532_v59 = vmul.f32 %v9314_v48, %v9315_v14 }
 0x229   : > { %v1789_v52 = vsel %vm1770_vm7, %v1757_v56, %v1759_v41  ;;  %v1790_v19 = vsel %vm1770_vm7, %v1759_v41, %v1761_v5  ;;  %v1791_v38 = vsel %vm1770_vm7, %v1761_v5, %v6331_v61  ;;  %v718_v56 = vmul.f32 %v9318_v6, %v9313_v20 }
 0x22a   : > { %v1837_v28 = vadd.f32 %v1789_v52, %v1636_v2  ;;  %v1838_v10 = vadd.f32 %v1790_v19, %v1637_v43  ;;  %v1839_v8 = vadd.f32 %v1791_v38, %v1638_v44  ;;  %v1905_v53 = vmax.f32 %v1881_v13, 0.0  ;;  %v9317_v43 = vld [vmem:[#allocation18_spill] sm:$0xff]  ;;  %v9319_v13 = vld [vmem:[#allocation9_spill] sm:$0xff] }
 0x22b   : > { %v538_v2 = vmul.f32 %v9316_v49, %v9315_v14  ;;  %v712_v44 = vmul.f32 %v9317_v43, %v9313_v20  ;;  %v713_v30 = vmul.f32 %v9317_v43, %v9315_v14  ;;  %v719_v5 = vmul.f32 %v9318_v6, %v9315_v14  ;;  %v9320_v38 = vld [vmem:[#allocation10_spill] sm:$0xff] }
 0x22c   : > { %v1886_v57 = vadd.f32 %v6144_v7, %v1838_v10  ;;  %v1887_v0 = vadd.f32 %v6144_v7, %v1839_v8  ;;  %v1743_v18 = vpop.permute.xlu1 %1742  ;;  %v1885_v1 = vadd.f32 %v6144_v7, %v1837_v28  ;;  %v543_v52 = vmul.f32 %v9319_v13, %v9313_v20  ;;  %v9321_v10 = vld [vmem:[#allocation12_spill] sm:$0xff] }
 0x22d   : > { %v1783_v47 = vsel %vm1770_vm7, %v1743_v18, %v1745_v26  ;;  %v544_v19 = vmul.f32 %v9319_v13, %v9315_v14  ;;  %v549_v11 = vmul.f32 %v9320_v38, %v9313_v20  ;;  %v550_v28 = vmul.f32 %v9320_v38, %v9315_v14  ;;  %v9331_v38 = vld [vmem:[#allocation21_spill] sm:$0xff] }
 0x22e   : > { %v1910_v41 = vmax.f32 %v1886_v57, 0.0  ;;  %v1911_v50 = vmax.f32 %v1887_v0, 0.0  ;;  %v1831_v24 = vadd.f32 %v1783_v47, %v1630_v32  ;;  %v1909_v4 = vmax.f32 %v1885_v1, 0.0  ;;  %v9322_v57 = vld [vmem:[#allocation20_spill] sm:$0xff]  ;;  %v9324_v1 = vld [vmem:[#allocation14_spill] sm:$0xff] }
 0x22f   : > { %v893_v8 = vmul.f32 %v9321_v10, %v9313_v20  ;;  %v894_v32 = vmul.f32 %v9321_v10, %v9315_v14  ;;  %v899_v0 = vmul.f32 %v9322_v57, %v9313_v20  ;;  %v900_v18 = vmul.f32 %v9322_v57, %v9315_v14  ;;  %v9333_v57 = vld [vmem:[#allocation2_spill] sm:$0xff] }
 0x230   : > { %v6356_v35 = vpack.c.bf16 %v1910_v41, %v1904_v31  ;;  %v6358_v46 = vpack.c.bf16 %v1911_v50, %v1905_v53  ;;  %v1879_v40 = vadd.f32 %v6159_v60, %v1831_v24  ;;  %v9323_v31 = vld [vmem:[#allocation13_spill] sm:$0xff]  ;;  %v730_v41 = vmul.f32 %v9324_v1, %v9313_v20  ;;  %v9325_v24 = vld [vmem:[#allocation24_spill] sm:$0xff] }
 0x231   : > { %v724_v53 = vmul.f32 %v9323_v31, %v9313_v20  ;;  %v725_v47 = vmul.f32 %v9323_v31, %v9315_v14  ;;  %v731_v50 = vmul.f32 %v9324_v1, %v9315_v14  ;;  %v1268_v10 = vmul.f32 %v9331_v38, %v9315_v14  ;;  %v9334_v31 = vld [vmem:[#allocation23_spill] sm:$0xff] }
 0x232   : > { %9312 = vst [vmem:[#allocation88_spill] sm:$0xff] %v6358_v46  ;;  %v1903_v21 = vmax.f32 %v1879_v40, 0.0  ;;  %1953 = vrot.lane.b32.xlu0 %v6356_v35, %s5187_s11  ;;  %1955 = vrot.lane.b32.xlu1 %v6358_v46, %s5187_s11  ;;  %v1074_v40 = vmul.f32 %v9325_v24, %v9313_v20 }
 0x233   : > { %2454 = vmatprep.subr.bf16.mxu0 %v6356_v35 }
 0x234   : > { %v6366_v26 = vpack.c.bf16 %v1909_v4, %v1903_v21  ;;  %v1075_v4 = vmul.f32 %v9325_v24, %v9315_v14  ;;  %v9326_v21 = vld [vmem:[#allocation16_spill] sm:$0xff] }
 0x235   : > { %v1080_v48 = vmul.f32 %v9326_v21, %v9313_v20 }
 0x236   : > { %1951 = vrot.lane.b32.xlu0 %v6366_v26, %s5187_s11  ;;  %1988 = vrot.lane.b32.xlu1 %v6170_v33, %s5188_s12 }
 0x237   : > { %2455 = vmatpush1.bf16.msra.mxu0 %v6366_v26 }
 0x23a   : > { %1990 = vrot.lane.b32.xlu0 %v6172_v36, %s5188_s12  ;;  %1986 = vrot.lane.b32.xlu1 %v6232_v45, %s5188_s12 }
 0x23e   : > { %2000 = vrot.lane.b32.xlu0 %v6356_v35, %s5188_s12  ;;  %2002 = vrot.lane.b32.xlu1 %v6358_v46, %s5188_s12 }
 0x242   : > { %1998 = vrot.lane.b32.xlu0 %v6366_v26, %s5188_s12  ;;  %583 = vrot.lane.b32.xlu1 %v531_v27, %s5188_s12  ;;  %v1081_v27 = vmul.f32 %v9326_v21, %v9315_v14 }
 0x246   : > { %585 = vrot.lane.b32.xlu0 %v532_v59, %s5188_s12  ;;  %595 = vrot.lane.b32.xlu1 %v537_v22, %s5188_s12  ;;  %v9328_v22 = vld [vmem:[#allocation17_spill] sm:$0xff] }
 0x24a   : > { %597 = vrot.lane.b32.xlu0 %v538_v2, %s5188_s12  ;;  %2035 = vrot.lane.b32.xlu1 %v6170_v33, %s5189_s13  ;;  %v905_v2 = vmul.f32 %v9328_v22, %v9313_v20 }
 0x24e   : > { %2037 = vrot.lane.b32.xlu0 %v6172_v36, %s5189_s13  ;;  %764 = vrot.lane.b32.xlu1 %v712_v44, %s5189_s13  ;;  %v906_v44 = vmul.f32 %v9328_v22, %v9315_v14 }
 0x252   : > { %766 = vrot.lane.b32.xlu0 %v713_v30, %s5189_s13  ;;  %776 = vrot.lane.b32.xlu1 %v718_v56, %s5189_s13  ;;  %v9329_v30 = vld [vmem:[#allocation22_spill] sm:$0xff] }
 0x253   : > { %v911_v6 = vmul.f32 %v9329_v30, %v9313_v20  ;;  %v912_v56 = vmul.f32 %v9329_v30, %v9315_v14 }
 0x256   : > { %778 = vrot.lane.b32.xlu0 %v719_v5, %s5189_s13  ;;  %2033 = vrot.lane.b32.xlu1 %v6232_v45, %s5189_s13  ;;  %v9330_v5 = vld [vmem:[#allocation19_spill] sm:$0xff] }
 0x257   : > { %v1260_v13 = vmul.f32 %v9330_v5, %v9313_v20 }
 0x25a   : > { %607 = vrot.lane.b32.xlu0 %v543_v52, %s5188_s12  ;;  %609 = vrot.lane.b32.xlu1 %v544_v19, %s5188_s12  ;;  %v1261_v19 = vmul.f32 %v9330_v5, %v9315_v14 }
 0x25e   : > { %619 = vrot.lane.b32.xlu0 %v549_v11, %s5188_s12  ;;  %621 = vrot.lane.b32.xlu1 %v550_v28, %s5188_s12  ;;  %v1267_v11 = vmul.f32 %v9331_v38, %v9313_v20 }
 0x262   : > { %945 = vrot.lane.b32.xlu0 %v893_v8, %s5190_s14  ;;  %947 = vrot.lane.b32.xlu1 %v894_v32, %s5190_s14  ;;  %v9332_v8 = vld [vmem:[#allocation26_spill] sm:$0xff] }
 0x263   : > { %v1086_v32 = vmul.f32 %v9332_v8, %v9313_v20 }
 0x266   : > { %957 = vrot.lane.b32.xlu0 %v899_v0, %s5190_s14  ;;  %959 = vrot.lane.b32.xlu1 %v900_v18, %s5190_s14  ;;  %v1253_v0 = vsub.s32 6, %v9333_v57  ;;  %v1087_v18 = vmul.f32 %v9332_v8, %v9315_v14 }
 0x26a   : > { %2047 = vrot.lane.b32.xlu0 %v6356_v35, %s5189_s13  ;;  %2049 = vrot.lane.b32.xlu1 %v6358_v46, %s5189_s13 }
 0x26e   : > { %788 = vrot.lane.b32.xlu0 %v724_v53, %s5189_s13  ;;  %790 = vrot.lane.b32.xlu1 %v725_v47, %s5189_s13  ;;  %v1092_v53 = vmul.f32 %v9334_v31, %v9313_v20  ;;  %v5169_v47 = vld [vmem:[%s5297_s10] sm:$0x7f] }
 0x26f   : > { %v6509_v1 = vrot.slane %v5169_v47, %v1253_v0 }
 0x271   : > { %v1269_v24 = vmul.f32 %v6509_v1, %v9331_v38  ;;  %v9340_v38 = vld [vmem:[#allocation29_spill] sm:$0xff] }
 0x272   : > { %800 = vrot.lane.b32.xlu0 %v730_v41, %s5189_s13  ;;  %802 = vrot.lane.b32.xlu1 %v731_v50, %s5189_s13  ;;  %v1093_v41 = vmul.f32 %v9334_v31, %v9315_v14  ;;  %v1262_v50 = vmul.f32 %v6509_v1, %v9330_v5 }
 0x276   : > { %1126 = vrot.lane.b32.xlu0 %v1074_v40, %s5191_s15  ;;  %1128 = vrot.lane.b32.xlu1 %v1075_v4, %s5191_s15  ;;  %v9335_v40 = vld [vmem:[#allocation25_spill] sm:$0xff] }
 0x277   : > { %v1461_v4 = vmul.f32 %v9335_v40, %v9313_v20  ;;  %v1462_v21 = vmul.f32 %v9335_v40, %v9315_v14  ;;  %v1463_v0 = vmul.f32 %v9335_v40, %v6509_v1 }
 0x27a   : > { %1138 = vrot.lane.b32.xlu0 %v1080_v48, %s5191_s15  ;;  %1140 = vrot.lane.b32.xlu1 %v1081_v27, %s5191_s15  ;;  %v9336_v48 = vld [vmem:[#allocation30_spill] sm:$0xff] }
 0x27b   : > { %v1468_v27 = vmul.f32 %v9336_v48, %v9313_v20 }
 0x27c   : > { %v6465_v59 = vpop.permute.xlu0 %1943  ;;  %v1942_v49 = vpop.permute.xlu1 %1941 }
 0x27d   : > { %9327 = vst [vmem:[#allocation98_spill] sm:$0xff] %v6465_v59  ;;  %v1965_v43 = vsel %vm442_vm0, %v1942_v49, %v6465_v59 }
 0x27e   : > { %2045 = vrot.lane.b32.xlu0 %v6366_v26, %s5189_s13  ;;  %969 = vrot.lane.b32.xlu1 %v905_v2, %s5190_s14  ;;  %v1469_v2 = vmul.f32 %v9336_v48, %v9315_v14 }
 0x27f   : > { %2456 = vmatprep.subr.bf16.mxu0 %v1965_v43 }
 0x282   : > { %971 = vrot.lane.b32.xlu0 %v906_v44, %s5190_s14  ;;  %981 = vrot.lane.b32.xlu1 %v911_v6, %s5190_s14  ;;  %v9338_v6 = vld [vmem:[#allocation27_spill] sm:$0xff] }
 0x283   : > { %v1275_v5 = vmul.f32 %v9338_v6, %v9315_v14 }
 0x286   : > { %983 = vrot.lane.b32.xlu0 %v912_v56, %s5190_s14  ;;  %1320 = vrot.lane.b32.xlu1 %v1260_v13, %s5192_s16  ;;  %v1274_v56 = vmul.f32 %v9338_v6, %v9313_v20 }
 0x288   : > { %v1940_v52 = vpop.permute.xlu1 %1939 }
 0x289   : > { %v1964_v28 = vsel %vm442_vm0, %v1940_v52, %v1942_v49 }
 0x28a   : > { %1322 = vrot.lane.b32.xlu0 %v1261_v19, %s5192_s16  ;;  %1334 = vrot.lane.b32.xlu1 %v1267_v11, %s5192_s16  ;;  %v1281_v11 = vmul.f32 %v9340_v38, %v9313_v20 }
 0x28b   : > { %2457 = vmatpush1.bf16.msra.mxu0 %v1964_v28  ;;  %v1282_v28 = vmul.f32 %v9340_v38, %v9315_v14 }
 0x28e   : > { %1336 = vrot.lane.b32.xlu0 %v1268_v10, %s5192_s16  ;;  %2082 = vrot.lane.b32.xlu1 %v6170_v33, %s5190_s14 }
 0x292   : > { %2084 = vrot.lane.b32.xlu0 %v6172_v36, %s5190_s14  ;;  %1150 = vrot.lane.b32.xlu1 %v1086_v32, %s5191_s15 }
 0x296   : > { %1152 = vrot.lane.b32.xlu0 %v1087_v18, %s5191_s15  ;;  %1162 = vrot.lane.b32.xlu1 %v1092_v53, %s5191_s15  ;;  %v1470_v18 = vmul.f32 %v9336_v48, %v6509_v1  ;;  %v9343_v48 = vld [vmem:[#allocation31_spill] sm:$0xff] }
 0x29a   : > { %1164 = vrot.lane.b32.xlu0 %v1093_v41, %s5191_s15  ;;  %1324 = vrot.lane.b32.xlu1 %v1262_v50, %s5192_s16  ;;  %v9342_v41 = vld [vmem:[#allocation28_spill] sm:$0xff] }
 0x29b   : > { %v1662_v50 = vmul.f32 %v9342_v41, %v9313_v20 }
 0x29e   : > { %1338 = vrot.lane.b32.xlu0 %v1269_v24, %s5192_s16  ;;  %1521 = vrot.lane.b32.xlu1 %v1461_v4, %s5193_s23  ;;  %v1663_v24 = vmul.f32 %v9342_v41, %v9315_v14 }
 0x2a2   : > { %1523 = vrot.lane.b32.xlu0 %v1462_v21, %s5193_s23  ;;  %1535 = vrot.lane.b32.xlu1 %v1468_v27, %s5193_s23  ;;  %v1669_v27 = vmul.f32 %v9343_v48, %v9313_v20 }
 0x2a4   : > { %v1954_v49 = vpop.permute.xlu0 %1953  ;;  %v6531_v22 = vpop.permute.xlu1 %1955 }
 0x2a5   : > { %9337 = vst [vmem:[#allocation41_spill] sm:$0xff] %v6531_v22  ;;  %v1970_v43 = vsel %vm442_vm0, %v1954_v49, %v6531_v22 }
 0x2a6   : > { %1537 = vrot.lane.b32.xlu0 %v1469_v2, %s5193_s23  ;;  %2080 = vrot.lane.b32.xlu1 %v6232_v45, %s5190_s14 }
 0x2a7   : > { %2458 = vmatprep.subr.bf16.mxu0 %v1970_v43 }
 0x2a8   : > { %v1952_v44 = vpop.permute.xlu0 %1951  ;;  %v1989_v30 = vpop.permute.xlu1 %1988 }
 0x2a9   : > { %v1969_v13 = vsel %vm442_vm0, %v1952_v44, %v1954_v49  ;;  %v1670_v49 = vmul.f32 %v9343_v48, %v9315_v14 }
 0x2aa   : > { %1348 = vrot.lane.b32.xlu0 %v1274_v56, %s5192_s16  ;;  %1350 = vrot.lane.b32.xlu1 %v1275_v5, %s5192_s16  ;;  %v1276_v56 = vmul.f32 %v6509_v1, %v9338_v6  ;;  %v1283_v5 = vmul.f32 %v6509_v1, %v9340_v38 }
 0x2ab   : > { %2459 = vmatpush1.bf16.msra.mxu0 %v1969_v13 }
 0x2ac   : > { %v6547_v52 = vpop.permute.xlu0 %1990  ;;  %v1987_v19 = vpop.permute.xlu1 %1986 }
 0x2ad   : > { %9339 = vst [vmem:[#allocation42_spill] sm:$0xff] %v6547_v52  ;;  %v2012_v10 = vsel %vm623_vm1, %v1989_v30, %v6547_v52  ;;  %v2011_v8 = vsel %vm623_vm1, %v1987_v19, %v1989_v30 }
 0x2ae   : > { %1362 = vrot.lane.b32.xlu0 %v1281_v11, %s5192_s16  ;;  %1364 = vrot.lane.b32.xlu1 %v1282_v28, %s5192_s16  ;;  %v9345_v28 = vld [vmem:[#allocation33_spill] sm:$0xff] }
 0x2af   : > { %2460 = vmatprep.subr.bf16.mxu0 %v2012_v10  ;;  %v1475_v10 = vmul.f32 %v9345_v28, %v9313_v20  ;;  %v1476_v6 = vmul.f32 %v9345_v28, %v9315_v14 }
 0x2b0   : > { %2461 = vmatpush1.bf16.msra.mxu0 %v2011_v8  ;;  %v2001_v32 = vpop.permute.xlu0 %2000  ;;  %v6558_v57 = vpop.permute.xlu1 %2002 }
 0x2b1   : > { %9341 = vst [vmem:[#allocation44_spill] sm:$0xff] %v6558_v57  ;;  %v2017_v31 = vsel %vm623_vm1, %v2001_v32, %v6558_v57 }
 0x2b2   : > { %1525 = vrot.lane.b32.xlu0 %v1463_v0, %s5193_s23  ;;  %1539 = vrot.lane.b32.xlu1 %v1470_v18, %s5193_s23 }
 0x2b3   : > { %2462 = vmatprep.subr.bf16.mxu0 %v2017_v31 }
 0x2b4   : > { %v1999_v53 = vpop.permute.xlu0 %1998  ;;  %v6568_v47 = vpop.permute.xlu1 %583 }
 0x2b5   : > { %v2016_v40 = vsel %vm623_vm1, %v1999_v53, %v2001_v32  ;;  %v9346_v32 = vld [vmem:[#allocation32_spill] sm:$0xff] }
 0x2b6   : > { %1722 = vrot.lane.b32.xlu0 %v1662_v50, %s5194_s24  ;;  %1724 = vrot.lane.b32.xlu1 %v1663_v24, %s5194_s24  ;;  %v1482_v0 = vmul.f32 %v9346_v32, %v9313_v20  ;;  %v1483_v18 = vmul.f32 %v9346_v32, %v9315_v14  ;;  %v1664_v24 = vmul.f32 %v9342_v41, %v6509_v1 }
 0x2b7   : > { %2463 = vmatpush1.bf16.msra.mxu0 %v2016_v40  ;;  %v1671_v40 = vmul.f32 %v9343_v48, %v6509_v1  ;;  %v1484_v48 = vmul.f32 %v9346_v32, %v6509_v1 }
 0x2b8   : > { %v6577_v4 = vpop.permute.xlu0 %585  ;;  %v6579_v21 = vpop.permute.xlu1 %595 }
 0x2ba   : > { %1736 = vrot.lane.b32.xlu0 %v1669_v27, %s5194_s24  ;;  %1738 = vrot.lane.b32.xlu1 %v1670_v49, %s5194_s24 }
 0x2bc   : > { %v6587_v2 = vpop.permute.xlu0 %597  ;;  %v2036_v43 = vpop.permute.xlu1 %2035 }
 0x2be   : > { %2094 = vrot.lane.b32.xlu0 %v6356_v35, %s5190_s14  ;;  %2096 = vrot.lane.b32.xlu1 %v6358_v46, %s5190_s14 }
 0x2c0   : > { %v6593_v44 = vpop.permute.xlu0 %2037  ;;  %v6595_v30 = vpop.permute.xlu1 %764 }
 0x2c1   : > { %9344 = vst [vmem:[#allocation47_spill] sm:$0xff] %v6593_v44  ;;  %v2059_v13 = vsel %vm804_vm2, %v2036_v43, %v6593_v44 }
 0x2c2   : > { %1352 = vrot.lane.b32.xlu0 %v1276_v56, %s5192_s16  ;;  %1366 = vrot.lane.b32.xlu1 %v1283_v5, %s5192_s16  ;;  %v9348_v5 = vld [vmem:[#allocation54_spill] sm:$0xff] }
 0x2c3   : > { %2464 = vmatprep.subr.bf16.mxu0 %v2059_v13  ;;  %v1676_v13 = vmul.f32 %v9348_v5, %v9313_v20 }
 0x2c4   : > { %v6605_v19 = vpop.permute.xlu0 %766  ;;  %v6607_v11 = vpop.permute.xlu1 %776 }
 0x2c6   : > { %1549 = vrot.lane.b32.xlu0 %v1475_v10, %s5193_s23  ;;  %1551 = vrot.lane.b32.xlu1 %v1476_v6, %s5193_s23  ;;  %v1677_v6 = vmul.f32 %v9348_v5, %v9315_v14 }
 0x2c8   : > { %v6615_v38 = vpop.permute.xlu0 %778  ;;  %v2034_v8 = vpop.permute.xlu1 %2033 }
 0x2c9   : > { %v2058_v31 = vsel %vm804_vm2, %v2034_v8, %v2036_v43  ;;  %v1477_v43 = vmul.f32 %v9345_v28, %v6509_v1  ;;  %v9349_v8 = vld [vmem:[#allocation55_spill] sm:$0xff] }
 0x2ca   : > { %1563 = vrot.lane.b32.xlu0 %v1482_v0, %s5193_s23  ;;  %1565 = vrot.lane.b32.xlu1 %v1483_v18, %s5193_s23  ;;  %v1683_v0 = vmul.f32 %v9349_v8, %v9313_v20 }
 0x2cb   : > { %2465 = vmatpush1.bf16.msra.mxu0 %v2058_v31  ;;  %v1684_v31 = vmul.f32 %v9349_v8, %v9315_v14 }
 0x2cc   : > { %v6624_v53 = vpop.permute.xlu0 %607  ;;  %v6626_v50 = vpop.permute.xlu1 %609 }
 0x2ce   : > { %1726 = vrot.lane.b32.xlu0 %v1664_v24, %s5194_s24  ;;  %1740 = vrot.lane.b32.xlu1 %v1671_v40, %s5194_s24 }
 0x2d0   : > { %v6634_v27 = vpop.permute.xlu0 %619  ;;  %v6636_v49 = vpop.permute.xlu1 %621 }
 0x2d1   : > { %9347 = vst [vmem:[#allocation48_spill] sm:$0xff] %v6636_v49  ;;  %v9373_v49 = vld [vmem:[#allocation53_spill] sm:$0xff] }
 0x2d2   : > { %2092 = vrot.lane.b32.xlu0 %v6366_v26, %s5190_s14  ;;  %1553 = vrot.lane.b32.xlu1 %v1477_v43, %s5193_s23 }
 0x2d4   : > { %v6643_v41 = vpop.permute.xlu0 %945  ;;  %v6645_v56 = vpop.permute.xlu1 %947 }
 0x2d6   : > { %1567 = vrot.lane.b32.xlu0 %v1484_v48, %s5193_s23  ;;  %1750 = vrot.lane.b32.xlu1 %v1676_v13, %s5194_s24  ;;  %v1678_v48 = vmul.f32 %v9348_v5, %v6509_v1 }
 0x2d8   : > { %v6653_v28 = vpop.permute.xlu0 %957  ;;  %v6655_v10 = vpop.permute.xlu1 %959 }
 0x2da   : > { %1752 = vrot.lane.b32.xlu0 %v1677_v6, %s5194_s24  ;;  %1764 = vrot.lane.b32.xlu1 %v1683_v0, %s5194_s24  ;;  %v1685_v0 = vmul.f32 %v9349_v8, %v6509_v1 }
 0x2dc   : > { %v2048_v32 = vpop.permute.xlu0 %2047  ;;  %v6663_v18 = vpop.permute.xlu1 %2049 }
 0x2dd   : > { %9350 = vst [vmem:[#allocation50_spill] sm:$0xff] %v6663_v18  ;;  %v2064_v24 = vsel %vm804_vm2, %v2048_v32, %v6663_v18 }
 0x2de   : > { %1766 = vrot.lane.b32.xlu0 %v1684_v31, %s5194_s24  ;;  %2129 = vrot.lane.b32.xlu1 %v6170_v33, %s5191_s15 }
 0x2df   : > { %2466 = vmatprep.subr.bf16.mxu0 %v2064_v24 }
 0x2e0   : > { %v6672_v40 = vpop.permute.xlu0 %788  ;;  %v6674_v43 = vpop.permute.xlu1 %790 }
 0x2e1   : > { %9351 = vst [vmem:[#allocation59_spill] sm:$0xff] %v6672_v40  ;;  %9352 = vst [vmem:[#allocation57_spill] sm:$0xff] %v6674_v43 }
 0x2e2   : > { %2131 = vrot.lane.b32.xlu0 %v6172_v36, %s5191_s15  ;;  %1754 = vrot.lane.b32.xlu1 %v1678_v48, %s5194_s24 }
 0x2e4   : > { %v6681_v13 = vpop.permute.xlu0 %800  ;;  %v6683_v6 = vpop.permute.xlu1 %802 }
 0x2e5   : > { %9353 = vst [vmem:[#allocation60_spill] sm:$0xff] %v6681_v13  ;;  %9354 = vst [vmem:[#allocation61_spill] sm:$0xff] %v6683_v6  ;;  %v9370_v6 = vld [vmem:[#allocation35_spill] sm:$0xff] }
 0x2e6   : > { %1768 = vrot.lane.b32.xlu0 %v1685_v0, %s5194_s24  ;;  %2127 = vrot.lane.b32.xlu1 %v6232_v45, %s5191_s15 }
 0x2e8   : > { %v6690_v31 = vpop.permute.xlu0 %1126  ;;  %v6692_v5 = vpop.permute.xlu1 %1128 }
 0x2ea   : > { %2141 = vrot.lane.b32.xlu0 %v6356_v35, %s5191_s15  ;;  %2143 = vrot.lane.b32.xlu1 %v6358_v46, %s5191_s15 }
 0x2ec   : > { %v6698_v24 = vpop.permute.xlu0 %1138  ;;  %v6700_v48 = vpop.permute.xlu1 %1140 }
 0x2ee   : > { %2139 = vrot.lane.b32.xlu0 %v6366_v26, %s5191_s15  ;;  %2176 = vrot.lane.b32.xlu1 %v6170_v33, %s5192_s16 }
 0x2f0   : > { %v2046_v1 = vpop.permute.xlu0 %2045  ;;  %v6706_v8 = vpop.permute.xlu1 %969 }
 0x2f1   : > { %9355 = vst [vmem:[#allocation63_spill] sm:$0xff] %v6706_v8  ;;  %v2063_v0 = vsel %vm804_vm2, %v2046_v1, %v2048_v32  ;;  %v6732_v1 = vld [vmem:[%s8922_s3 + $0x4] ss:$12 sps:$4 sm:$0xff]   ;;  %v628_v8 = vsel %vm623_vm1, %v6568_v47, %v6577_v4 }
 0x2f2   : > { %2178 = vrot.lane.b32.xlu0 %v6172_v36, %s5192_s16  ;;  %2174 = vrot.lane.b32.xlu1 %v6232_v45, %s5192_s16  ;;  %9359 = vst [vmem:[#allocation69_spill] sm:$0xff] %v6732_v1 }
 0x2f3   : > { %2467 = vmatpush1.bf16.msra.mxu0 %v2063_v0  ;;  %2484 = vmatprep.mubr.bf16.mxu0 %v6732_v1 }
 0x2f4   : > { %v6713_v18 = vpop.permute.xlu0 %971  ;;  %v6715_v44 = vpop.permute.xlu1 %981  ;;  %2630 = vmatprep.mubr.bf16.mxu1 %v6732_v1 }
 0x2f5   : > { %9356 = vst [vmem:[#allocation65_spill] sm:$0xff] %v6713_v18  ;;  %9357 = vst [vmem:[#allocation68_spill] sm:$0xff] %v6715_v44  ;;  %v9372_v18 = vld [vmem:[#allocation56_spill] sm:$0xff] }
 0x2f6   : > { %2188 = vrot.lane.b32.xlu0 %v6356_v35, %s5192_s16  ;;  %2190 = vrot.lane.b32.xlu1 %v6358_v46, %s5192_s16  ;;  %v627_v13 = vsel %vm623_vm1, %v9372_v18, %v6568_v47 }
 0x2f8   : > { %v6721_v57 = vpop.permute.xlu0 %983  ;;  %v6723_v32 = vpop.permute.xlu1 %1320 }
 0x2f9   : > { %9358 = vst [vmem:[#allocation66_spill] sm:$0xff] %v6721_v57 }
 0x2fa   : > { %2186 = vrot.lane.b32.xlu0 %v6366_v26, %s5192_s16  ;;  %2223 = vrot.lane.b32.xlu1 %v6170_v33, %s5193_s23 }
 0x2fc   : > { %v6734_v0 = vpop.permute.xlu0 %1322  ;;  %v6736_v52 = vpop.permute.xlu1 %1334 }
 0x2fe   : > { %2225 = vrot.lane.b32.xlu0 %v6172_v36, %s5193_s23  ;;  %2221 = vrot.lane.b32.xlu1 %v6232_v45, %s5193_s23 }
 0x300   : > { %v6744_v22 = vpop.permute.xlu0 %1336  ;;  %v2083_v59 = vpop.permute.xlu1 %2082 }
 0x302   : > { %2235 = vrot.lane.b32.xlu0 %v6356_v35, %s5193_s23  ;;  %2237 = vrot.lane.b32.xlu1 %v6358_v46, %s5193_s23 }
 0x304   : > { %v6750_v7 = vpop.permute.xlu0 %2084  ;;  %v6752_v60 = vpop.permute.xlu1 %1150 }
 0x305   : > { %9360 = vst [vmem:[#allocation70_spill] sm:$0xff] %v6750_v7  ;;  %9361 = vst [vmem:[#allocation72_spill] sm:$0xff] %v6752_v60  ;;  %v2106_v1 = vsel %vm985_vm3, %v2083_v59, %v6750_v7 }
 0x306   : > { %2233 = vrot.lane.b32.xlu0 %v6366_v26, %s5193_s23  ;;  %2270 = vrot.lane.b32.xlu1 %v6170_v33, %s5194_s24 }
 0x307   : > { %2468 = vmatprep.subr.bf16.mxu0 %v2106_v1 }
 0x308   : > { %v6760_v61 = vpop.permute.xlu0 %1152  ;;  %v6762_v15 = vpop.permute.xlu1 %1162 }
 0x309   : > { %9362 = vst [vmem:[#allocation78_spill] sm:$0xff] %v6760_v61  ;;  %9363 = vst [vmem:[#allocation75_spill] sm:$0xff] %v6762_v15 }
 0x30a   : > { %2272 = vrot.lane.b32.xlu0 %v6172_v36, %s5194_s24  ;;  %2268 = vrot.lane.b32.xlu1 %v6232_v45, %s5194_s24  ;;  %v9367_v45 = vld [vmem:[#allocation34_spill] sm:$0xff] }
 0x30b   : > { %v310_v15 = vmul.f32 %v9313_v20, %v9367_v45 }
 0x30c   : > { %v6768_v29 = vpop.permute.xlu0 %1164  ;;  %v6770_v7 = vpop.permute.xlu1 %1324 }
 0x30d   : > { %9364 = vst [vmem:[#allocation74_spill] sm:$0xff] %v6768_v29  ;;  %9365 = vst [vmem:[#allocation79_spill] sm:$0xff] %v6770_v7  ;;  %v9368_v29 = vld [vmem:[#allocation4_spill] sm:$0xff] }
 0x30e   : > { %2282 = vrot.lane.b32.xlu0 %v6356_v35, %s5194_s24  ;;  %2284 = vrot.lane.b32.xlu1 %v6358_v46, %s5194_s24  ;;  %v309_v42 = vmul.f32 %v9368_v29, %v9367_v45  ;;  %v9369_v46 = vld [vmem:[#allocation37_spill] sm:$0xff] }
 0x30f   : > { %v446_v44 = vsel %vm442_vm0, %v9370_v6, %v9369_v46  ;;  %v315_v6 = vmul.f32 %v9368_v29, %v9373_v49 }
 0x310   : > { %v6776_v33 = vpop.permute.xlu0 %1338  ;;  %v1522_v1 = vpop.permute.xlu1 %1521  ;;  %v490_v43 = vadd.f32 %v446_v44, %v309_v42  ;;  %v9376_v42 = vld [vmem:[#allocation40_spill] sm:$0xff]  ;;  %v9378_v44 = vld [vmem:[#allocation39_spill] sm:$0xff] }
 0x311   : > { %9366 = vst [vmem:[#allocation80_spill] sm:$0xff] %v6776_v33  ;;  %v316_v33 = vmul.f32 %v9313_v20, %v9373_v49  ;;  %v452_v18 = vsel %vm442_vm0, %v9376_v42, %v9378_v44 }
 0x312   : > { %2280 = vrot.lane.b32.xlu0 %v6366_v26, %s5194_s24  ;;  %v447_v26 = vsel %vm442_vm0, %v9369_v46, %v9371_v39 }
 0x313   : > { %v491_v40 = vadd.f32 %v447_v26, %v310_v15  ;;  %v9377_v15 = vld [vmem:[#allocation38_spill] sm:$0xff]  ;;  %v671_v26 = vadd.f32 %v627_v13, %v490_v43 }
 0x314   : > { %v6780_v37 = vpop.permute.xlu0 %1523  ;;  %v6782_v57 = vpop.permute.xlu1 %1535  ;;  %v451_v47 = vsel %vm442_vm0, %v9377_v15, %v9376_v42  ;;  %v990_v15 = vsel %vm985_vm3, %v6643_v41, %v6645_v56  ;;  %v497_v42 = vadd.f32 %v452_v18, %v316_v33 }
 0x315   : > { %v496_v7 = vadd.f32 %v451_v47, %v315_v6 }
 0x318   : > { %v6788_v35 = vpop.permute.xlu0 %1537  ;;  %v2081_v61 = vpop.permute.xlu1 %2080 }
 0x319   : > { %v2105_v60 = vsel %vm985_vm3, %v2081_v61, %v2083_v59  ;;  %v809_v59 = vsel %vm804_vm2, %v6595_v30, %v6605_v19 }
 0x31a   : > { %2469 = vmatpush1.bf16.msra.mxu0 %v2105_v60  ;;  %v808_v60 = vsel %vm804_vm2, %v5723_v9, %v6595_v30  ;;  %v633_v9 = vsel %vm623_vm1, %v6579_v21, %v6587_v2  ;;  %v989_v30 = vsel %vm985_vm3, %v5793_v58, %v6643_v41  ;;  %v814_v58 = vsel %vm804_vm2, %v6607_v11, %v6615_v38 }
 0x31b   : > { %v852_v43 = vadd.f32 %v808_v60, %v671_v26  ;;  %v1171_v41 = vsel %vm1166_vm4, %v6690_v31, %v6692_v5  ;;  %v678_v6 = vadd.f32 %v633_v9, %v497_v42 }
 0x31c   : > { %v6807_v46 = vpop.permute.xlu0 %1348  ;;  %v6809_v61 = vpop.permute.xlu1 %1350 }
 0x31d   : > { %9374 = vst [vmem:[#allocation87_spill] sm:$0xff] %v6807_v46  ;;  %9375 = vst [vmem:[#allocation90_spill] sm:$0xff] %v6809_v61  ;;  %v672_v46 = vadd.f32 %v628_v8, %v491_v40  ;;  %v632_v61 = vsel %vm623_vm1, %v5705_v23, %v6579_v21  ;;  %v813_v23 = vsel %vm804_vm2, %v5745_v17, %v6607_v11 }
 0x31e   : > { %v1170_v21 = vsel %vm1166_vm4, %v5873_v34, %v6690_v31  ;;  %v677_v33 = vadd.f32 %v632_v61, %v496_v7  ;;  %v994_v17 = vsel %vm985_vm3, %v5815_v54, %v6653_v28  ;;  %v995_v11 = vsel %vm985_vm3, %v6653_v28, %v6655_v10 }
 0x31f   : > { %v853_v40 = vadd.f32 %v809_v59, %v672_v46  ;;  %v1033_v46 = vadd.f32 %v989_v30, %v852_v43  ;;  %v1372_v34 = vsel %vm1368_vm5, %v5940_v51, %v6723_v32  ;;  %v1373_v31 = vsel %vm1368_vm5, %v6723_v32, %v6734_v0 }
 0x320   : > { %v6835_v13 = vpop.permute.xlu0 %1362  ;;  %v6837_v8 = vpop.permute.xlu1 %1364  ;;  %v858_v7 = vadd.f32 %v813_v23, %v677_v33  ;;  %v859_v61 = vadd.f32 %v814_v58, %v678_v6  ;;  %v1175_v54 = vsel %vm1166_vm4, %v5895_v16, %v6698_v24  ;;  %v1176_v51 = vsel %vm1166_vm4, %v6698_v24, %v6700_v48 }
 0x321   : > { %v1034_v60 = vadd.f32 %v990_v15, %v853_v40  ;;  %v1214_v59 = vadd.f32 %v1170_v21, %v1033_v46  ;;  %v1573_v28 = vsel %vm1569_vm6, %v5982_v3, %v1522_v1  ;;  %v1574_v32 = vsel %vm1569_vm6, %v1522_v1, %v6780_v37 }
 0x322   : > { %v1039_v9 = vadd.f32 %v994_v17, %v858_v7  ;;  %v1040_v30 = vadd.f32 %v995_v11, %v859_v61  ;;  %v1378_v43 = vsel %vm1368_vm5, %v5950_v55, %v6736_v52  ;;  %v1379_v16 = vsel %vm1368_vm5, %v6736_v52, %v6744_v22 }
 0x323   : > { %v1215_v47 = vadd.f32 %v1171_v41, %v1034_v60  ;;  %v1420_v15 = vadd.f32 %v1372_v34, %v1214_v59  ;;  %v1579_v1 = vsel %vm1569_vm6, %v5980_v25, %v6782_v57  ;;  %v1580_v41 = vsel %vm1569_vm6, %v6782_v57, %v6788_v35 }
 0x324   : > { %v6863_v18 = vpop.permute.xlu0 %1525  ;;  %v6865_v26 = vpop.permute.xlu1 %1539  ;;  %v1220_v40 = vadd.f32 %v1175_v54, %v1039_v9  ;;  %v1221_v24 = vadd.f32 %v1176_v51, %v1040_v30  ;;  %v317_v54 = vmul.f32 %v9315_v14, %v9373_v49  ;;  %v9379_v51 = vld [vmem:[#allocation84_spill] sm:$0xff] }
 0x325   : > { %v1421_v42 = vadd.f32 %v1373_v31, %v1215_v47  ;;  %v1621_v23 = vadd.f32 %v1573_v28, %v1420_v15  ;;  %v311_v47 = vmul.f32 %v9315_v14, %v9367_v45  ;;  %v9380_v45 = vld [vmem:[#allocation3_spill] sm:$0xff] }
 0x326   : > { %v1426_v33 = vadd.f32 %v1378_v43, %v1220_v40  ;;  %v1427_v6 = vadd.f32 %v1379_v16, %v1221_v24  ;;  %v323_v49 = vmul.f32 %v9315_v14, %v9380_v45  ;;  %v321_v40 = vmul.f32 %v9368_v29, %v9380_v45 }
 0x327   : > { %v1622_v58 = vadd.f32 %v1574_v32, %v1421_v42  ;;  %v492_v24 = vadd.f32 %v9371_v39, %v311_v47 }
 0x328   : > { %v1723_v3 = vpop.permute.xlu0 %1722  ;;  %v6883_v21 = vpop.permute.xlu1 %1724  ;;  %v1627_v17 = vadd.f32 %v1579_v1, %v1426_v33  ;;  %v1628_v11 = vadd.f32 %v1580_v41, %v1427_v6  ;;  %v9382_v33 = vld [vmem:[#allocation43_spill] sm:$0xff] }
 0x329   : > { %v1774_v55 = vsel %vm1770_vm7, %v6121_v12, %v1723_v3  ;;  %v1775_v52 = vsel %vm1770_vm7, %v1723_v3, %v6883_v21 }
 0x32a   : > { %v1822_v46 = vadd.f32 %v1774_v55, %v1621_v23  ;;  %v1823_v60 = vadd.f32 %v1775_v52, %v1622_v58  ;;  %v498_v23 = vadd.f32 %v9378_v44, %v317_v54  ;;  %v322_v55 = vmul.f32 %v9313_v20, %v9380_v45  ;;  %v9381_v52 = vld [vmem:[#allocation46_spill] sm:$0xff]  ;;  %v9384_v44 = vld [vmem:[#allocation52_spill] sm:$0xff] }
 0x32b   : > { %v456_v6 = vsel %vm442_vm0, %v9382_v33, %v9381_v52 }
 0x32c   : > { %v1737_v34 = vpop.permute.xlu0 %1736  ;;  %v6895_v31 = vpop.permute.xlu1 %1738  ;;  %v1870_v12 = vadd.f32 %v9257_v63, %v1822_v46  ;;  %v1871_v7 = vadd.f32 %v9257_v63, %v1823_v60  ;;  %v9383_v46 = vld [vmem:[#allocation45_spill] sm:$0xff] }
 0x32d   : > { %v1780_v25 = vsel %vm1770_vm7, %v6119_v62, %v1737_v34  ;;  %v1781_v57 = vsel %vm1770_vm7, %v1737_v34, %v6895_v31  ;;  %v457_v39 = vsel %vm442_vm0, %v9381_v52, %v9383_v46  ;;  %v9385_v60 = vld [vmem:[#allocation49_spill] sm:$0xff] }
 0x32e   : > { %v1828_v61 = vadd.f32 %v1780_v25, %v1627_v17  ;;  %v1829_v59 = vadd.f32 %v1781_v57, %v1628_v11  ;;  %v1894_v15 = vmax.f32 %v1870_v12, 0.0  ;;  %v1895_v42 = vmax.f32 %v1871_v7, 0.0  ;;  %v9386_v11 = vld [vmem:[#allocation51_spill] sm:$0xff]  ;;  %v9387_v12 = vld [vmem:[#allocation5_spill] sm:$0xff] }
 0x32f   : > { %v461_v17 = vsel %vm442_vm0, %v9385_v60, %v9384_v44  ;;  %v462_v34 = vsel %vm442_vm0, %v9384_v44, %v9386_v11  ;;  %v673_v25 = vadd.f32 %v6577_v4, %v492_v24  ;;  %v679_v57 = vadd.f32 %v6587_v2, %v498_v23  ;;  %v9391_v24 = vld [vmem:[#allocation80_spill] sm:$0xff]  ;;  %v9395_v60 = vld [vmem:[#allocation57_spill] sm:$0xff] }
 0x330   : > { %v1876_v28 = vadd.f32 %v9379_v51, %v1828_v61  ;;  %v1877_v32 = vadd.f32 %v9379_v51, %v1829_v59  ;;  %v6909_v62 = vpop.permute.xlu0 %2094  ;;  %v6911_v9 = vpop.permute.xlu1 %2096  ;;  %v329_v7 = vmul.f32 %v9315_v14, %v9387_v12  ;;  %v327_v61 = vmul.f32 %v9368_v29, %v9387_v12 }
 0x331   : > { %v2111_v30 = vsel %vm985_vm3, %v6909_v62, %v6911_v9  ;;  %v328_v59 = vmul.f32 %v9313_v20, %v9387_v12  ;;  %v504_v4 = vadd.f32 %v9383_v46, %v323_v49  ;;  %v502_v2 = vadd.f32 %v456_v6, %v321_v40  ;;  %v9390_v49 = vld [vmem:[#allocation79_spill] sm:$0xff]  ;;  %v9397_v12 = vld [vmem:[#allocation77_spill] sm:$0xff] }
 0x332   : > { %v1900_v43 = vmax.f32 %v1876_v28, 0.0  ;;  %v1901_v16 = vmax.f32 %v1877_v32, 0.0  ;;  %2470 = vmatprep.subr.bf16.mxu0 %v2111_v30  ;;  %v854_v47 = vadd.f32 %v6605_v19, %v673_v25  ;;  %v860_v54 = vadd.f32 %v6615_v38, %v679_v57  ;;  %v9396_v57 = vld [vmem:[#allocation63_spill] sm:$0xff] }
 0x333   : > { %v503_v29 = vadd.f32 %v457_v39, %v322_v55  ;;  %v6966_v32 = vadd.f32 %v9386_v11, %v329_v7  ;;  %v508_v20 = vadd.f32 %v461_v17, %v327_v61  ;;  %v509_v30 = vadd.f32 %v462_v34, %v328_v59  ;;  %v9392_v55 = vld [vmem:[#allocation48_spill] sm:$0xff] }
 0x334   : > { %v6922_v58 = vpack.c.bf16 %v1900_v43, %v1894_v15  ;;  %v6924_v3 = vpack.c.bf16 %v1901_v16, %v1895_v42  ;;  %v6926_v1 = vpop.permute.xlu0 %1352  ;;  %v6928_v41 = vpop.permute.xlu1 %1366  ;;  %v9388_v15 = vld [vmem:[#allocation58_spill] sm:$0xff]  ;;  %v638_v19 = vsel %vm623_vm1, %v6624_v53, %v6626_v50  ;;  %v1035_v38 = vadd.f32 %v6645_v56, %v854_v47  ;;  %v9393_v56 = vld [vmem:[#allocation59_spill] sm:$0xff] }
 0x335   : > { %v1041_v42 = vadd.f32 %v6655_v10, %v860_v54  ;;  %v685_v43 = vadd.f32 %v6626_v50, %v504_v4  ;;  %v9389_v16 = vld [vmem:[#allocation62_spill] sm:$0xff]  ;;  %v1374_v40 = vsel %vm1368_vm5, %v6734_v0, %v9390_v49  ;;  %v1380_v23 = vsel %vm1368_vm5, %v6744_v22, %v9391_v24  ;;  %v9394_v10 = vld [vmem:[#allocation67_spill] sm:$0xff] }
 0x336   : > { %1945 = vrot.lane.b32.xlu1 %v6922_v58, %s5187_s11  ;;  %2598 = vmatprep.subr.bf16.mxu1 %v6922_v58  ;;  %v642_v45 = vsel %vm623_vm1, %v9389_v16, %v6634_v27  ;;  %v818_v50 = vsel %vm804_vm2, %v9394_v10, %v9393_v56  ;;  %v1216_v52 = vadd.f32 %v6692_v5, %v1035_v38  ;;  %v9403_v38 = vld [vmem:[#allocation68_spill] sm:$0xff] }
 0x337   : > { %1947 = vrot.lane.b32.xlu0 %v6924_v3, %s5187_s11  ;;  %2599 = vmatpush1.bf16.msra.mxu1 %v6172_v36  ;;  %v637_v36 = vsel %vm623_vm1, %v9388_v15, %v6624_v53  ;;  %v643_v53 = vsel %vm623_vm1, %v6634_v27, %v9392_v55  ;;  %v1222_v33 = vadd.f32 %v6700_v48, %v1041_v42  ;;  %v9404_v42 = vld [vmem:[#allocation81_spill] sm:$0xff] }
 0x338   : > { %v6961_v28 = vpop.permute.xlu0 %1549  ;;  %v6963_v14 = vpop.permute.xlu1 %1551  ;;  %v683_v0 = vadd.f32 %v637_v36, %v502_v2  ;;  %v684_v39 = vadd.f32 %v638_v19, %v503_v29  ;;  %v1575_v22 = vsel %vm1569_vm6, %v6780_v37, %v6863_v18  ;;  %v1581_v27 = vsel %vm1569_vm6, %v6788_v35, %v6865_v26  ;;  %v9398_v37 = vld [vmem:[#allocation60_spill] sm:$0xff]  ;;  %v9399_v18 = vld [vmem:[#allocation71_spill] sm:$0xff]  ;;  %v9400_v35 = vld [vmem:[#allocation65_spill] sm:$0xff] }
 0x339   : > { %v689_v44 = vadd.f32 %v642_v45, %v508_v20  ;;  %v819_v5 = vsel %vm804_vm2, %v9393_v56, %v9395_v60  ;;  %v1422_v48 = vadd.f32 %v1374_v40, %v1216_v52  ;;  %v1428_v17 = vadd.f32 %v1380_v23, %v1222_v33  ;;  %v9401_v29 = vld [vmem:[#allocation72_spill] sm:$0xff]  ;;  %v9405_v40 = vld [vmem:[#allocation61_spill] sm:$0xff] }
 0x33a   : > { %v690_v11 = vadd.f32 %v643_v53, %v509_v30  ;;  %v864_v34 = vadd.f32 %v818_v50, %v683_v0  ;;  %v866_v25 = vadd.f32 %v9395_v60, %v685_v43  ;;  %v999_v7 = vsel %vm985_vm3, %v9397_v12, %v9396_v57  ;;  %v9402_v20 = vld [vmem:[#allocation92_spill] sm:$0xff]  ;;  %v9406_v53 = vld [vmem:[#allocation87_spill] sm:$0xff]  ;;  %v9407_v56 = vld [vmem:[#allocation101_spill] sm:$0xff] }
 0x33b   : > { %v823_v61 = vsel %vm804_vm2, %v9399_v18, %v9398_v37  ;;  %v1000_v26 = vsel %vm985_vm3, %v9396_v57, %v9400_v35  ;;  %v1623_v59 = vadd.f32 %v1575_v22, %v1422_v48  ;;  %v1629_v4 = vadd.f32 %v1581_v27, %v1428_v17  ;;  %v9408_v50 = vld [vmem:[#allocation78_spill] sm:$0xff]  ;;  %v9409_v27 = vld [vmem:[#allocation75_spill] sm:$0xff] }
 0x33c   : > { %v6994_v6 = vpop.permute.xlu0 %1563  ;;  %v6996_v46 = vpop.permute.xlu1 %1565  ;;  %v865_v54 = vadd.f32 %v819_v5, %v684_v39  ;;  %v1180_v30 = vsel %vm1166_vm4, %v9402_v20, %v9401_v29  ;;  %v1045_v19 = vadd.f32 %v999_v7, %v864_v34  ;;  %v1004_v43 = vsel %vm985_vm3, %v9404_v42, %v9403_v38  ;;  %v9411_v5 = vld [vmem:[#allocation82_spill] sm:$0xff] }
 0x33d   : > { %v870_v49 = vadd.f32 %v823_v61, %v689_v44  ;;  %v824_v24 = vsel %vm804_vm2, %v9398_v37, %v9405_v40  ;;  %v9410_v44 = vld [vmem:[#allocation91_spill] sm:$0xff]  ;;  %v1585_v48 = vsel %vm1569_vm6, %v9411_v5, %v6961_v28  ;;  %v9412_v34 = vld [vmem:[#allocation66_spill] sm:$0xff] }
 0x33e   : > { %v1046_v23 = vadd.f32 %v1000_v26, %v865_v54  ;;  %v1226_v10 = vadd.f32 %v1180_v30, %v1045_v19  ;;  %v1185_v60 = vsel %vm1166_vm4, %v9410_v44, %v9409_v27  ;;  %v871_v7 = vadd.f32 %v824_v24, %v690_v11  ;;  %v9413_v18 = vld [vmem:[#allocation90_spill] sm:$0xff]  ;;  %v9414_v26 = vld [vmem:[#allocation100_spill] sm:$0xff]  ;;  %v9417_v19 = vld [vmem:[#allocation95_spill] sm:$0xff] }
 0x33f   : > { %v1051_v22 = vadd.f32 %v1004_v43, %v870_v49  ;;  %v1385_v61 = vsel %vm1368_vm5, %v9406_v53, %v9413_v18  ;;  %v1586_v30 = vsel %vm1569_vm6, %v6961_v28, %v6963_v14  ;;  %v691_v28 = vadd.f32 %v9392_v55, %v6966_v32  ;;  %v9419_v55 = vld [vmem:[#allocation76_spill] sm:$0xff] }
 0x340   : > { %v1727_v2 = vpop.permute.xlu0 %1726  ;;  %v1741_v47 = vpop.permute.xlu1 %1740  ;;  %v1047_v24 = vadd.f32 %v9400_v35, %v866_v25  ;;  %v1386_v32 = vsel %vm1368_vm5, %v9413_v18, %v6926_v1 }
 0x341   : > { %v1776_v15 = vsel %vm1770_vm7, %v6883_v21, %v1727_v2  ;;  %v1782_v36 = vsel %vm1770_vm7, %v6895_v31, %v1741_v47  ;;  %v1384_v21 = vsel %vm1368_vm5, %v9407_v56, %v9406_v53  ;;  %v1181_v31 = vsel %vm1166_vm4, %v9401_v29, %v9408_v50 }
 0x342   : > { %v1824_v16 = vadd.f32 %v1776_v15, %v1623_v59  ;;  %v1830_v45 = vadd.f32 %v1782_v36, %v1629_v4  ;;  %v1432_v57 = vadd.f32 %v1384_v21, %v1226_v10  ;;  %v1227_v37 = vadd.f32 %v1181_v31, %v1046_v23  ;;  %v9416_v15 = vld [vmem:[#allocation85_spill] sm:$0xff] }
 0x343   : > { %v1390_v59 = vsel %vm1368_vm5, %v9414_v26, %v6835_v13  ;;  %v1232_v4 = vadd.f32 %v1185_v60, %v1051_v22  ;;  %v1591_v36 = vsel %vm1569_vm6, %v9416_v15, %v6994_v6  ;;  %v1592_v31 = vsel %vm1569_vm6, %v6994_v6, %v6996_v46  ;;  %v9420_v60 = vld [vmem:[#allocation64_spill] sm:$0xff] }
 0x344   : > { %v1872_v52 = vadd.f32 %v9257_v63, %v1824_v16  ;;  %v1878_v33 = vadd.f32 %v9379_v51, %v1830_v45  ;;  %v2093_v0 = vpop.permute.xlu0 %2092  ;;  %v1554_v39 = vpop.permute.xlu1 %1553  ;;  %v1005_v63 = vsel %vm985_vm3, %v9403_v38, %v9412_v34  ;;  %v1633_v47 = vadd.f32 %v1585_v48, %v1432_v57 }
 0x345   : > { %v2110_v17 = vsel %vm985_vm3, %v2093_v0, %v6909_v62  ;;  %v9415_v62 = vld [vmem:[#allocation74_spill] sm:$0xff]  ;;  %v1052_v11 = vadd.f32 %v1005_v63, %v871_v7  ;;  %v1433_v42 = vadd.f32 %v1385_v61, %v1227_v37  ;;  %v1438_v43 = vadd.f32 %v1390_v59, %v1232_v4 }
 0x346   : > { %v1896_v51 = vmax.f32 %v1872_v52, 0.0  ;;  %v1902_v12 = vmax.f32 %v1878_v33, 0.0  ;;  %2471 = vmatpush1.bf16.msra.mxu0 %v2110_v17  ;;  %v1186_v2 = vsel %vm1166_vm4, %v9409_v27, %v9415_v62  ;;  %v1391_v16 = vsel %vm1368_vm5, %v6835_v13, %v6837_v8  ;;  %v9418_v52 = vld [vmem:[#allocation73_spill] sm:$0xff] }
 0x347   : > { %v1233_v49 = vadd.f32 %v1186_v2, %v1052_v11  ;;  %v1634_v23 = vadd.f32 %v1586_v30, %v1433_v42  ;;  %v1639_v53 = vadd.f32 %v1591_v36, %v1438_v43  ;;  %v872_v22 = vadd.f32 %v9405_v40, %v691_v28  ;;  %v9421_v11 = vld [vmem:[#allocation88_spill] sm:$0xff] }
 0x348   : > { %v7058_v54 = vpack.c.bf16 %v1902_v12, %v1896_v51  ;;  %v1568_v29 = vpop.permute.xlu0 %1567  ;;  %v1751_v20 = vpop.permute.xlu1 %1750  ;;  %v1228_v27 = vadd.f32 %v9408_v50, %v1047_v24  ;;  %v1587_v57 = vsel %vm1569_vm6, %v6963_v14, %v1554_v39  ;;  %v1392_v50 = vsel %vm1368_vm5, %v6837_v8, %v6928_v41 }
 0x349   : > { %v1786_v38 = vsel %vm1770_vm7, %v9417_v19, %v1751_v20  ;;  %v1439_v10 = vadd.f32 %v1391_v16, %v1233_v49  ;;  %v1053_v17 = vadd.f32 %v9412_v34, %v872_v22  ;;  %v1593_v39 = vsel %vm1569_vm6, %v6996_v46, %v1568_v29 }
 0x34a   : > { %v1834_v45 = vadd.f32 %v1786_v38, %v1633_v47  ;;  %1949 = vrot.lane.b32.xlu1 %v7058_v54, %s5187_s11  ;;  %v1434_v63 = vadd.f32 %v1386_v32, %v1228_v27 }
 0x34b   : > { %v1640_v44 = vadd.f32 %v1592_v31, %v1439_v10  ;;  %v1234_v37 = vadd.f32 %v9415_v62, %v1053_v17 }
 0x34c   : > { %v1753_v56 = vpop.permute.xlu0 %1752  ;;  %v1765_v21 = vpop.permute.xlu1 %1764  ;;  %v1882_v25 = vadd.f32 %v9419_v55, %v1834_v45  ;;  %v1635_v18 = vadd.f32 %v1587_v57, %v1434_v63  ;;  %v7180_v63 = vld [vmem:[%s8922_s3] ss:$12 sps:$4 sm:$0xff]  }
 0x34d   : > { %v1787_v13 = vsel %vm1770_vm7, %v1751_v20, %v1753_v56  ;;  %v1792_v33 = vsel %vm1770_vm7, %v9418_v52, %v1765_v21  ;;  %v1440_v2 = vadd.f32 %v1392_v50, %v1234_v37 }
 0x34e   : > { %v1835_v35 = vadd.f32 %v1787_v13, %v1634_v23  ;;  %v1840_v0 = vadd.f32 %v1792_v33, %v1639_v53  ;;  %v1906_v51 = vmax.f32 %v1882_v25, 0.0 }
 0x34f   : > { %v1641_v47 = vadd.f32 %v1593_v39, %v1440_v2  ;;  %v7249_v2 = vld [vmem:[%s8922_s3 + $0x48] ss:$12 sps:$4 sm:$0xff]  }
 0x350   : > { %v1888_v6 = vadd.f32 %v9420_v60, %v1840_v0  ;;  %v1767_v5 = vpop.permute.xlu0 %1766  ;;  %v2130_v48 = vpop.permute.xlu1 %2129  ;;  %v1883_v12 = vadd.f32 %v9419_v55, %v1835_v35 }
 0x351   : > { %v1793_v1 = vsel %vm1770_vm7, %v1765_v21, %v1767_v5 }
 0x352   : > { %v1912_v7 = vmax.f32 %v1888_v6, 0.0  ;;  %v1841_v40 = vadd.f32 %v1793_v1, %v1640_v44  ;;  %v1907_v8 = vmax.f32 %v1883_v12, 0.0 }
 0x354   : > { %v7098_v61 = vpack.c.bf16 %v1912_v7, %v1906_v51  ;;  %v1889_v34 = vadd.f32 %v9420_v60, %v1841_v40  ;;  %v7101_v26 = vpop.permute.xlu0 %2131  ;;  %v1755_v14 = vpop.permute.xlu1 %1754  ;;  %v7187_v51 = vld [vmem:[%s8922_s3 + $0x1c] ss:$12 sps:$4 sm:$0xff]  }
 0x355   : > { %v1788_v59 = vsel %vm1770_vm7, %v1753_v56, %v1755_v14  ;;  %v2153_v4 = vsel %vm1166_vm4, %v2130_v48, %v7101_v26  ;;  %v7214_v14 = vld [vmem:[%s8922_s3 + $0x34] ss:$12 sps:$4 sm:$0xff]  }
 0x356   : > { %v1913_v41 = vmax.f32 %v1889_v34, 0.0  ;;  %v1836_v62 = vadd.f32 %v1788_v59, %v1635_v18  ;;  %1957 = vrot.lane.b32.xlu0 %v7098_v61, %s5187_s11  ;;  %2472 = vmatprep.subr.bf16.mxu0 %v2153_v4  ;;  %v7207_v18 = vld [vmem:[%s8922_s3 + $0x18] ss:$12 sps:$4 sm:$0xff]   ;;  %v7229_v59 = vld [vmem:[%s8922_s3 + $0x30] ss:$12 sps:$4 sm:$0xff]  }
 0x357   : > { %2600 = vmatprep.subr.bf16.mxu1 %v7098_v61  ;;  %v7236_v4 = vld [vmem:[%s8922_s3 + $0x4c] ss:$12 sps:$4 sm:$0xff]  }
 0x358   : > { %v7111_v20 = vpack.c.bf16 %v1913_v41, %v1907_v8  ;;  %2601 = vmatpush1.bf16.msra.mxu1 %v9421_v11  ;;  %v1769_v46 = vpop.permute.xlu0 %1768  ;;  %v2128_v29 = vpop.permute.xlu1 %2127  ;;  %v1884_v36 = vadd.f32 %v9419_v55, %v1836_v62  ;;  %v9422_v8 = vmov 0   ;;  %v7264_v41 = vld [vmem:[%s8922_s3 + $0x8] ss:$12 sps:$4 sm:$0xff]   ;;  %v7282_v62 = vld [vmem:[%s8922_s3 + $0x20] ss:$12 sps:$4 sm:$0xff]  }
 0x359   : > { %v1794_v30 = vsel %vm1770_vm7, %v1767_v5, %v1769_v46  ;;  %v2152_v15 = vsel %vm1166_vm4, %v2128_v29, %v2130_v48  ;;  %v9423_v46 = vld [vmem:[#allocation98_spill] sm:$0xff] }
 0x35a   : > { %v1842_v19 = vadd.f32 %v1794_v30, %v1641_v47  ;;  %1959 = vrot.lane.b32.xlu1 %v7111_v20, %s5187_s11  ;;  %2473 = vmatpush1.bf16.msra.mxu0 %v2152_v15  ;;  %v1908_v45 = vmax.f32 %v1884_v36, 0.0  ;;  %v7302_v15 = vld [vmem:[%s8922_s3 + $0x38] ss:$12 sps:$4 sm:$0xff]  }
 0x35b   : > { %v9424_v36 = vld [vmem:[#allocation69_spill] sm:$0xff] }
 0x35c   : > { %v1890_v38 = vadd.f32 %v9420_v60, %v1842_v19  ;;  %v2142_v42 = vpop.permute.xlu0 %2141  ;;  %v7120_v43 = vpop.permute.xlu1 %2143  ;;  %v2337_v19 = vld [vmem:[%s8923_s4 + $0x30] sm:$0xff] }
 0x35d   : > { %v2158_v16 = vsel %vm1166_vm4, %v2142_v42, %v7120_v43 }
 0x35e   : > { %v1914_v49 = vmax.f32 %v1890_v38, 0.0  ;;  %1992 = vrot.lane.b32.xlu1 %v6922_v58, %s5188_s12  ;;  %2474 = vmatprep.subr.bf16.mxu0 %v2158_v16 }
 0x360   : > { %v7126_v28 = vpack.c.bf16 %v1914_v49, %v1908_v45  ;;  %v2140_v24 = vpop.permute.xlu0 %2139  ;;  %v2177_v23 = vpop.permute.xlu1 %2176  ;;  %v2336_v45 = vld [vmem:[%s8923_s4 + $0x28] sm:$0xff]  ;;  %v2338_v49 = vld [vmem:[%s8923_s4 + $0x38] sm:$0xff] }
 0x361   : > { %v2157_v53 = vsel %vm1166_vm4, %v2140_v24, %v2142_v42  ;;  %v2334_v42 = vld [vmem:[%s8923_s4 + $0x18] sm:$0xff] }
 0x362   : > { %1996 = vrot.lane.b32.xlu1 %v7058_v54, %s5188_s12  ;;  %1961 = vrot.lane.b32.xlu0 %v7126_v28, %s5187_s11 }
 0x363   : > { %2475 = vmatpush1.bf16.msra.mxu0 %v2157_v53  ;;  %v9425_v53 = vld [vmem:[#allocation41_spill] sm:$0xff] }
 0x364   : > { %v7133_v56 = vpop.permute.xlu0 %2178  ;;  %v2175_v21 = vpop.permute.xlu1 %2174 }
 0x365   : > { %v2200_v10 = vsel %vm1368_vm5, %v2177_v23, %v7133_v56  ;;  %v2199_v31 = vsel %vm1368_vm5, %v2175_v21, %v2177_v23 }
 0x366   : > { %2006 = vrot.lane.b32.xlu1 %v7111_v20, %s5188_s12  ;;  %1994 = vrot.lane.b32.xlu0 %v6924_v3, %s5188_s12 }
 0x367   : > { %2476 = vmatprep.subr.bf16.mxu0 %v2200_v10 }
 0x368   : > { %2477 = vmatpush1.bf16.msra.mxu0 %v2199_v31  ;;  %v2189_v13 = vpop.permute.xlu0 %2188  ;;  %v7142_v52 = vpop.permute.xlu1 %2190 }
 0x369   : > { %v2205_v33 = vsel %vm1368_vm5, %v2189_v13, %v7142_v52 }
 0x36a   : > { %2039 = vrot.lane.b32.xlu1 %v6922_v58, %s5189_s13  ;;  %2004 = vrot.lane.b32.xlu0 %v7098_v61, %s5188_s12 }
 0x36b   : > { %2478 = vmatprep.subr.bf16.mxu0 %v2205_v33 }
 0x36c   : > { %v2187_v32 = vpop.permute.xlu0 %2186  ;;  %v2224_v55 = vpop.permute.xlu1 %2223 }
 0x36d   : > { %v2204_v25 = vsel %vm1368_vm5, %v2187_v32, %v2189_v13 }
 0x36e   : > { %2043 = vrot.lane.b32.xlu1 %v7058_v54, %s5189_s13  ;;  %2008 = vrot.lane.b32.xlu0 %v7126_v28, %s5188_s12 }
 0x36f   : > { %2479 = vmatpush1.bf16.msra.mxu0 %v2204_v25 }
 0x370   : > { %v7155_v35 = vpop.permute.xlu0 %2225  ;;  %v2222_v0 = vpop.permute.xlu1 %2221 }
 0x371   : > { %v2247_v22 = vsel %vm1569_vm6, %v2224_v55, %v7155_v35  ;;  %v2246_v27 = vsel %vm1569_vm6, %v2222_v0, %v2224_v55 }
 0x372   : > { %2053 = vrot.lane.b32.xlu1 %v7111_v20, %s5189_s13  ;;  %2041 = vrot.lane.b32.xlu0 %v6924_v3, %s5189_s13 }
 0x373   : > { %2480 = vmatprep.subr.bf16.mxu0 %v2247_v22  ;;  %v9426_v22 = vld [vmem:[#allocation42_spill] sm:$0xff] }
 0x374   : > { %2481 = vmatpush1.bf16.msra.mxu0 %v2246_v27  ;;  %v2236_v44 = vpop.permute.xlu0 %2235  ;;  %v7164_v60 = vpop.permute.xlu1 %2237 }
 0x375   : > { %v2252_v6 = vsel %vm1569_vm6, %v2236_v44, %v7164_v60 }
 0x376   : > { %2086 = vrot.lane.b32.xlu1 %v6922_v58, %s5190_s14  ;;  %2051 = vrot.lane.b32.xlu0 %v7098_v61, %s5189_s13 }
 0x377   : > { %2482 = vmatprep.subr.bf16.mxu0 %v2252_v6 }
 0x378   : > { %v2234_v5 = vpop.permute.xlu0 %2233  ;;  %v2271_v48 = vpop.permute.xlu1 %2270 }
 0x379   : > { %v2251_v17 = vsel %vm1569_vm6, %v2234_v5, %v2236_v44 }
 0x37a   : > { %2090 = vrot.lane.b32.xlu1 %v7058_v54, %s5190_s14  ;;  %2055 = vrot.lane.b32.xlu0 %v7126_v28, %s5189_s13 }
 0x37b   : > { %2483 = vmatpush1.bf16.msra.mxu0 %v2251_v17 }
 0x37c   : > { %v7182_v57 = vpop.permute.xlu0 %2272  ;;  %v2269_v1 = vpop.permute.xlu1 %2268 }
 0x37d   : > { %v2293_v12 = vsel %vm1770_vm7, %v2269_v1, %v2271_v48  ;;  %v2294_v7 = vsel %vm1770_vm7, %v2271_v48, %v7182_v57  ;;  %v9427_v48 = vld [vmem:[#allocation44_spill] sm:$0xff] }
 0x37e   : > { %2485 = vmatmul.mubr.bf16.vlgmr.msra.gmra.mrb[0].mxu0 %v7180_v63  ;;  %2100 = vrot.lane.b32.xlu1 %v7111_v20, %s5190_s14 }
 0x37f   : > { %2088 = vrot.lane.b32.xlu0 %v6924_v3, %s5190_s14  ;;  %2525 = vmatprep.subr.bf16.mxu0 %v2294_v7 }
 0x380   : > { %2526 = vmatpush1.bf16.msra.mxu0 %v2293_v12  ;;  %v2283_v40 = vpop.permute.xlu0 %2282  ;;  %v7197_v50 = vpop.permute.xlu1 %2284  ;;  %2494 = vmatprep.mubr.bf16.mxu0 %v7187_v51 }
 0x381   : > { %v2299_v37 = vsel %vm1770_vm7, %v2283_v40, %v7197_v50 }
 0x382   : > { %2133 = vrot.lane.b32.xlu1 %v6922_v58, %s5191_s15  ;;  %2527 = vmatprep.subr.bf16.mxu0 %v2299_v37 }
 0x383   : > { %2098 = vrot.lane.b32.xlu0 %v7098_v61, %s5190_s14 }
 0x384   : > { %v2281_v34 = vpop.permute.xlu0 %2280 }
 0x385   : > { %v2298_v39 = vsel %vm1770_vm7, %v2281_v34, %v2283_v40 }
 0x386   : > { %2495 = vmatmul.mubr.bf16.gmra.mrb[4].mxu0 %v7207_v18  ;;  %2137 = vrot.lane.b32.xlu1 %v7058_v54, %s5191_s15 }
 0x387   : > { %2102 = vrot.lane.b32.xlu0 %v7126_v28, %s5190_s14  ;;  %2528 = vmatpush1.bf16.msra.mxu0 %v2298_v39  ;;  %s4465_s14 = sshll.u32 %s9537_s22, 6 }
 0x388   : > { %2744 = vmatprep.subr.bf16.mxu0 %v7058_v54  ;;  %2504 = vmatprep.mubr.bf16.mxu0 %v7214_v14 }
 0x38a   : > { %2147 = vrot.lane.b32.xlu1 %v7111_v20, %s5191_s15 }
 0x38b   : > { %2135 = vrot.lane.b32.xlu0 %v6924_v3, %s5191_s15 }
 0x38e   : > { %2505 = vmatmul.mubr.bf16.gmra.mrb[8].mxu0 %v7229_v59  ;;  %2180 = vrot.lane.b32.xlu1 %v6922_v58, %s5192_s16 }
 0x38f   : > { %2145 = vrot.lane.b32.xlu0 %v7098_v61, %s5191_s15  ;;  %2514 = vmatprep.mubr.bf16.mxu0 %v7236_v4 }
 0x392   : > { %2184 = vrot.lane.b32.xlu1 %v7058_v54, %s5192_s16 }
 0x393   : > { %2149 = vrot.lane.b32.xlu0 %v7126_v28, %s5191_s15 }
 0x396   : > { %2515 = vmatmul.mubr.bf16.gmra.mrb[12].mxu0 %v7249_v2  ;;  %2194 = vrot.lane.b32.xlu1 %v7111_v20, %s5192_s16 }
 0x397   : > { %2182 = vrot.lane.b32.xlu0 %v6924_v3, %s5192_s16  ;;  %2557 = vmatprep.mubr.bf16.mxu0 %v9422_v8 }
 0x39a   : > { %2227 = vrot.lane.b32.xlu1 %v6922_v58, %s5193_s23 }
 0x39b   : > { %2192 = vrot.lane.b32.xlu0 %v7098_v61, %s5192_s16 }
 0x39e   : > { %4403 = vmatmul.mubr.msk.bf16.vlgmr.msra.gmra.mrb[0].mxu0 %vm2439_vm8, %v7264_v41  ;;  %2231 = vrot.lane.b32.xlu1 %v7058_v54, %s5193_s23 }
 0x39f   : > { %2745 = vmatpush1.bf16.msra.mxu0 %v6924_v3  ;;  %2196 = vrot.lane.b32.xlu0 %v7126_v28, %s5192_s16  ;;  %s5196_s16 = smov 96  }
 0x3a0   : > { %2746 = vmatprep.subr.bf16.mxu0 %v7126_v28  ;;  %2567 = vmatprep.mubr.bf16.mxu0 %v9422_v8 }
 0x3a2   : > { %2241 = vrot.lane.b32.xlu1 %v7111_v20, %s5193_s23 }
 0x3a3   : > { %2747 = vmatpush1.bf16.msra.mxu0 %v7111_v20  ;;  %2229 = vrot.lane.b32.xlu0 %v6924_v3, %s5193_s23 }
 0x3a6   : > { %4404 = vmatmul.mubr.msk.bf16.gmra.mrb[4].mxu0 %vm2439_vm8, %v7282_v62  ;;  %2274 = vrot.lane.b32.xlu1 %v6922_v58, %s5194_s24  ;;  %v2331_v58 = vld [vmem:[%s8923_s4] sm:$0xff] }
 0x3a7   : > { %2239 = vrot.lane.b32.xlu0 %v7098_v61, %s5193_s23  ;;  %2577 = vmatprep.mubr.bf16.mxu0 %v9422_v8 }
 0x3a8   : > { %v1946_v47 = vpop.permute.xlu1 %1945 }
 0x3a9   : > { %v1948_v11 = vpop.permute.xlu0 %1947  ;;  %v1966_v29 = vsel %vm442_vm0, %v9423_v46, %v1946_v47 }
 0x3aa   : > { %2278 = vrot.lane.b32.xlu1 %v7058_v54, %s5194_s24  ;;  %v1967_v30 = vsel %vm442_vm0, %v1946_v47, %v1948_v11  ;;  %v7319_v54 = vld [vmem:[%s8922_s3 + $0x50] ss:$12 sps:$4 sm:$0xff]   ;;  %v9428_v47 = vld [vmem:[#allocation47_spill] sm:$0xff] }
 0x3ab   : > { %2243 = vrot.lane.b32.xlu0 %v7126_v28, %s5193_s23  ;;  %2602 = vmatprep.subr.bf16.mxu1 %v1967_v30 }
 0x3ac   : > { %2603 = vmatpush1.bf16.msra.mxu1 %v1966_v29 }
 0x3ae   : > { %4405 = vmatmul.mubr.msk.bf16.gmra.mrb[8].mxu0 %vm2439_vm8, %v7302_v15  ;;  %2288 = vrot.lane.b32.xlu1 %v7111_v20, %s5194_s24  ;;  %v2333_v20 = vld [vmem:[%s8923_s4 + $0x10] sm:$0xff] }
 0x3af   : > { %2276 = vrot.lane.b32.xlu0 %v6924_v3, %s5194_s24  ;;  %2587 = vmatprep.mubr.bf16.mxu0 %v9422_v8  ;;  %v2335_v3 = vld [vmem:[%s8923_s4 + $0x20] sm:$0xff] }
 0x3b2   : > { %2341 = vperm.xlu1 %4638, %v2331_v58   ;;  %v9429_v58 = vld [vmem:[#allocation50_spill] sm:$0xff] }
 0x3b3   : > { %2286 = vrot.lane.b32.xlu0 %v7098_v61, %s5194_s24  ;;  %v2332_v61 = vld [vmem:[%s8923_s4 + $0x8] sm:$0xff] }
 0x3b6   : > { %4406 = vmatmul.mubr.msk.bf16.gmra.mrb[12].mxu0 %vm2439_vm8, %v7319_v54  ;;  %2351 = vperm.xlu1 %4638, %v2333_v20  }
 0x3b7   : > { %2290 = vrot.lane.b32.xlu0 %v7126_v28, %s5194_s24  ;;  %2776 = vmatprep.mubr.bf16.mxu0 %v9424_v36  ;;  %s8886_s24 = scalar_lea.vmem %s8925_s6, %s4465_s14 }
 0x3ba   : > { %2361 = vperm.xlu1 %4638, %v2335_v3  }
 0x3bb   : > { %2346 = vperm.xlu0 %4636, %v2332_v61  }
 0x3bc   : > { %v1950_v38 = vpop.permute.xlu1 %1949 }
 0x3bd   : > { %2748 = vmatprep.subr.bf16.mxu0 %v1950_v38  ;;  %v1968_v16 = vsel %vm442_vm0, %v1948_v11, %v1950_v38 }
 0x3be   : > { %2371 = vperm.xlu1 %4638, %v2337_v19   ;;  %2749 = vmatpush1.bf16.msra.mxu0 %v1968_v16 }
 0x3bf   : > { %2356 = vperm.xlu0 %4636, %v2334_v42  }
 0x3c3   : > { %2366 = vperm.xlu0 %4636, %v2336_v45   ;;  %v9430_v45 = vld [vmem:[#allocation70_spill] sm:$0xff] }
 0x3c7   : > { %2376 = vperm.xlu0 %4636, %v2338_v49  }
 0x3c8   : > { %v1958_v28 = vpop.permute.xlu0 %1957 }
 0x3c9   : > { %v1971_v21 = vsel %vm442_vm0, %v9425_v53, %v1958_v28 }
 0x3cc   : > { %v1960_v24 = vpop.permute.xlu1 %1959 }
 0x3cd   : > { %v1972_v23 = vsel %vm442_vm0, %v1958_v28, %v1960_v24 }
 0x3ce   : > { %2604 = vmatprep.subr.bf16.mxu1 %v1972_v23 }
 0x3cf   : > { %2605 = vmatpush1.bf16.msra.mxu1 %v1971_v21 }
 0x3d0   : > { %v1993_v10 = vpop.permute.xlu1 %1992 }
 0x3d1   : > { %v2013_v27 = vsel %vm623_vm1, %v9426_v22, %v1993_v10 }
 0x3d4   : > { %v1962_v31 = vpop.permute.xlu0 %1961  ;;  %v1997_v13 = vpop.permute.xlu1 %1996 }
 0x3d5   : > { %2750 = vmatprep.subr.bf16.mxu0 %v1962_v31  ;;  %v1973_v33 = vsel %vm442_vm0, %v1960_v24, %v1962_v31 }
 0x3d6   : > { %2751 = vmatpush1.bf16.msra.mxu0 %v1973_v33 }
 0x3d7   : > { %2752 = vmatprep.subr.bf16.mxu0 %v1997_v13 }
 0x3d8   : > { %v1995_v32 = vpop.permute.xlu0 %1994  ;;  %v2007_v55 = vpop.permute.xlu1 %2006 }
 0x3d9   : > { %v2014_v25 = vsel %vm623_vm1, %v1993_v10, %v1995_v32  ;;  %v2015_v0 = vsel %vm623_vm1, %v1995_v32, %v1997_v13 }
 0x3da   : > { %2606 = vmatprep.subr.bf16.mxu1 %v2014_v25  ;;  %2753 = vmatpush1.bf16.msra.mxu0 %v2015_v0 }
 0x3db   : > { %2607 = vmatpush1.bf16.msra.mxu1 %v2013_v27 }
 0x3dc   : > { %v2005_v44 = vpop.permute.xlu0 %2004  ;;  %v2040_v6 = vpop.permute.xlu1 %2039 }
 0x3dd   : > { %v2019_v5 = vsel %vm623_vm1, %v2005_v44, %v2007_v55  ;;  %v2018_v17 = vsel %vm623_vm1, %v9427_v48, %v2005_v44  ;;  %v2060_v11 = vsel %vm804_vm2, %v9428_v47, %v2040_v6 }
 0x3de   : > { %2608 = vmatprep.subr.bf16.mxu1 %v2019_v5 }
 0x3df   : > { %2609 = vmatpush1.bf16.msra.mxu1 %v2018_v17 }
 0x3e0   : > { %v2009_v1 = vpop.permute.xlu0 %2008  ;;  %v2044_v12 = vpop.permute.xlu1 %2043 }
 0x3e1   : > { %2754 = vmatprep.subr.bf16.mxu0 %v2009_v1  ;;  %v2020_v7 = vsel %vm623_vm1, %v2007_v55, %v2009_v1  ;;  %vm3866_vm1 = vcmask 916480  }
 0x3e2   : > { %2755 = vmatpush1.bf16.msra.mxu0 %v2020_v7 }
 0x3e3   : > { %2756 = vmatprep.subr.bf16.mxu0 %v2044_v12 }
 0x3e4   : > { %v2042_v40 = vpop.permute.xlu0 %2041  ;;  %v2054_v37 = vpop.permute.xlu1 %2053 }
 0x3e5   : > { %v2061_v34 = vsel %vm804_vm2, %v2040_v6, %v2042_v40  ;;  %v2062_v39 = vsel %vm804_vm2, %v2042_v40, %v2044_v12 }
 0x3e6   : > { %2610 = vmatprep.subr.bf16.mxu1 %v2061_v34  ;;  %2757 = vmatpush1.bf16.msra.mxu0 %v2062_v39 }
 0x3e7   : > { %2611 = vmatpush1.bf16.msra.mxu1 %v2060_v11 }
 0x3e8   : > { %v2052_v46 = vpop.permute.xlu0 %2051  ;;  %v2087_v29 = vpop.permute.xlu1 %2086 }
 0x3e9   : > { %v2066_v30 = vsel %vm804_vm2, %v2052_v46, %v2054_v37  ;;  %v2065_v20 = vsel %vm804_vm2, %v9429_v58, %v2052_v46  ;;  %v2107_v49 = vsel %vm985_vm3, %v9430_v45, %v2087_v29 }
 0x3ea   : > { %2612 = vmatprep.subr.bf16.mxu1 %v2066_v30 }
 0x3eb   : > { %2613 = vmatpush1.bf16.msra.mxu1 %v2065_v20 }
 0x3ec   : > { %v2056_v3 = vpop.permute.xlu0 %2055  ;;  %v2091_v36 = vpop.permute.xlu1 %2090 }
 0x3ed   : > { %2758 = vmatprep.subr.bf16.mxu0 %v2056_v3  ;;  %v2067_v61 = vsel %vm804_vm2, %v2054_v37, %v2056_v3 }
 0x3ee   : > { %2759 = vmatpush1.bf16.msra.mxu0 %v2067_v61 }
 0x3ef   : > { %2760 = vmatprep.subr.bf16.mxu0 %v2091_v36 }
 0x3f0   : > { %v2101_v19 = vpop.permute.xlu1 %2100 }
 0x3f1   : > { %v2089_v38 = vpop.permute.xlu0 %2088 }
 0x3f2   : > { %v2108_v42 = vsel %vm985_vm3, %v2087_v29, %v2089_v38  ;;  %v2109_v16 = vsel %vm985_vm3, %v2089_v38, %v2091_v36 }
 0x3f3   : > { %2614 = vmatprep.subr.bf16.mxu1 %v2108_v42  ;;  %2761 = vmatpush1.bf16.msra.mxu0 %v2109_v16 }
 0x3f4   : > { %2615 = vmatpush1.bf16.msra.mxu1 %v2107_v49  ;;  %v2134_v28 = vpop.permute.xlu1 %2133 }
 0x3f5   : > { %v2099_v24 = vpop.permute.xlu0 %2098 }
 0x3f6   : > { %v2113_v23 = vsel %vm985_vm3, %v2099_v24, %v2101_v19  ;;  %v2112_v53 = vsel %vm985_vm3, %v6911_v9, %v2099_v24  ;;  %v2154_v9 = vsel %vm1166_vm4, %v7101_v26, %v2134_v28 }
 0x3f7   : > { %2616 = vmatprep.subr.bf16.mxu1 %v2113_v23 }
 0x3f8   : > { %2617 = vmatpush1.bf16.msra.mxu1 %v2112_v53  ;;  %v2138_v21 = vpop.permute.xlu1 %2137 }
 0x3f9   : > { %v2103_v10 = vpop.permute.xlu0 %2102 }
 0x3fa   : > { %2762 = vmatprep.subr.bf16.mxu0 %v2103_v10  ;;  %v2114_v31 = vsel %vm985_vm3, %v2101_v19, %v2103_v10  ;;  %vm4318_vm3 = vcmask 1043456  }
 0x3fb   : > { %2763 = vmatpush1.bf16.msra.mxu0 %v2114_v31 }
 0x3fc   : > { %2764 = vmatprep.subr.bf16.mxu0 %v2138_v21  ;;  %v2148_v13 = vpop.permute.xlu1 %2147 }
 0x3fd   : > { %v2136_v33 = vpop.permute.xlu0 %2135 }
 0x3fe   : > { %v2155_v32 = vsel %vm1166_vm4, %v2134_v28, %v2136_v33  ;;  %v2156_v55 = vsel %vm1166_vm4, %v2136_v33, %v2138_v21 }
 0x3ff   : > { %2618 = vmatprep.subr.bf16.mxu1 %v2155_v32  ;;  %2765 = vmatpush1.bf16.msra.mxu0 %v2156_v55 }
 0x400   : > { %2619 = vmatpush1.bf16.msra.mxu1 %v2154_v9  ;;  %v2181_v25 = vpop.permute.xlu1 %2180 }
 0x401   : > { %v2146_v0 = vpop.permute.xlu0 %2145 }
 0x402   : > { %v2160_v22 = vsel %vm1166_vm4, %v2146_v0, %v2148_v13  ;;  %v2159_v27 = vsel %vm1166_vm4, %v7120_v43, %v2146_v0  ;;  %v2201_v43 = vsel %vm1368_vm5, %v7133_v56, %v2181_v25 }
 0x403   : > { %2620 = vmatprep.subr.bf16.mxu1 %v2160_v22 }
 0x404   : > { %2621 = vmatpush1.bf16.msra.mxu1 %v2159_v27  ;;  %v2185_v44 = vpop.permute.xlu1 %2184 }
 0x405   : > { %v2150_v6 = vpop.permute.xlu0 %2149 }
 0x406   : > { %2766 = vmatprep.subr.bf16.mxu0 %v2150_v6  ;;  %v2161_v5 = vsel %vm1166_vm4, %v2148_v13, %v2150_v6  ;;  %vm4319_vm4 = vcmask 130052  }
 0x407   : > { %2767 = vmatpush1.bf16.msra.mxu0 %v2161_v5 }
 0x408   : > { %2768 = vmatprep.subr.bf16.mxu0 %v2185_v44  ;;  %v2195_v48 = vpop.permute.xlu1 %2194 }
 0x409   : > { %v2183_v17 = vpop.permute.xlu0 %2182 }
 0x40a   : > { %v2202_v26 = vsel %vm1368_vm5, %v2181_v25, %v2183_v17  ;;  %v2203_v1 = vsel %vm1368_vm5, %v2183_v17, %v2185_v44 }
 0x40b   : > { %2622 = vmatprep.subr.bf16.mxu1 %v2202_v26  ;;  %2769 = vmatpush1.bf16.msra.mxu0 %v2203_v1 }
 0x40c   : > { %2623 = vmatpush1.bf16.msra.mxu1 %v2201_v43  ;;  %v2228_v12 = vpop.permute.xlu1 %2227 }
 0x40d   : > { %v2193_v7 = vpop.permute.xlu0 %2192 }
 0x40e   : > { %v2207_v40 = vsel %vm1368_vm5, %v2193_v7, %v2195_v48  ;;  %v2206_v37 = vsel %vm1368_vm5, %v7142_v52, %v2193_v7  ;;  %v2248_v52 = vsel %vm1569_vm6, %v7155_v35, %v2228_v12 }
 0x40f   : > { %2624 = vmatprep.subr.bf16.mxu1 %v2207_v40 }
 0x410   : > { %2625 = vmatpush1.bf16.msra.mxu1 %v2206_v37  ;;  %v2232_v34 = vpop.permute.xlu1 %2231 }
 0x411   : > { %v2197_v39 = vpop.permute.xlu0 %2196 }
 0x412   : > { %2770 = vmatprep.subr.bf16.mxu0 %v2197_v39  ;;  %v2208_v47 = vsel %vm1368_vm5, %v2195_v48, %v2197_v39 }
 0x413   : > { %2771 = vmatpush1.bf16.msra.mxu0 %v2208_v47 }
 0x414   : > { %2772 = vmatprep.subr.bf16.mxu0 %v2232_v34  ;;  %v2242_v11 = vpop.permute.xlu1 %2241 }
 0x415   : > { %v2230_v46 = vpop.permute.xlu0 %2229 }
 0x416   : > { %v2249_v56 = vsel %vm1569_vm6, %v2228_v12, %v2230_v46  ;;  %v2250_v29 = vsel %vm1569_vm6, %v2230_v46, %v2232_v34 }
 0x417   : > { %2626 = vmatprep.subr.bf16.mxu1 %v2249_v56  ;;  %2773 = vmatpush1.bf16.msra.mxu0 %v2250_v29 }
 0x418   : > { %2627 = vmatpush1.bf16.msra.mxu1 %v2248_v52  ;;  %v2275_v58 = vpop.permute.xlu1 %2274 }
 0x419   : > { %v2240_v30 = vpop.permute.xlu0 %2239  ;;  %v2295_v42 = vsel %vm1770_vm7, %v7182_v57, %v2275_v58 }
 0x41a   : > { %v2254_v20 = vsel %vm1569_vm6, %v2240_v30, %v2242_v11  ;;  %v2253_v3 = vsel %vm1569_vm6, %v7164_v60, %v2240_v30 }
 0x41b   : > { %2628 = vmatprep.subr.bf16.mxu1 %v2254_v20 }
 0x41c   : > { %2629 = vmatpush1.bf16.msra.mxu1 %v2253_v3  ;;  %v2279_v19 = vpop.permute.xlu1 %2278 }
 0x41d   : > { %v2244_v36 = vpop.permute.xlu0 %2243 }
 0x41e   : > { %2774 = vmatprep.subr.bf16.mxu0 %v2244_v36  ;;  %v2255_v61 = vsel %vm1569_vm6, %v2242_v11, %v2244_v36 }
 0x41f   : > { %2631 = vmatmul.mubr.bf16.vlgmr.msra.gmra.mrb[0].mxu1 %v7180_v63  ;;  %2775 = vmatpush1.bf16.msra.mxu0 %v2255_v61 }
 0x420   : > { %2817 = vmatprep.subr.bf16.mxu0 %v2279_v19  ;;  %2640 = vmatprep.mubr.bf16.mxu1 %v7187_v51  ;;  %v2289_v16 = vpop.permute.xlu1 %2288 }
 0x421   : > { %v2277_v35 = vpop.permute.xlu0 %2276 }
 0x422   : > { %2777 = vmatmul.mubr.bf16.vlgmr.msra.gmra.mrb[16].mxu0 %v7180_v63  ;;  %v2296_v38 = vsel %vm1770_vm7, %v2275_v58, %v2277_v35  ;;  %v2297_v60 = vsel %vm1770_vm7, %v2277_v35, %v2279_v19 }
 0x423   : > { %2671 = vmatprep.subr.bf16.mxu1 %v2296_v38  ;;  %2818 = vmatpush1.bf16.msra.mxu0 %v2297_v60 }
 0x424   : > { %2672 = vmatpush1.bf16.msra.mxu1 %v2295_v42  ;;  %2786 = vmatprep.mubr.bf16.mxu0 %v7187_v51 }
 0x425   : > { %v2287_v45 = vpop.permute.xlu0 %2286 }
 0x426   : > { %v2301_v49 = vsel %vm1770_vm7, %v2287_v45, %v2289_v16  ;;  %v2300_v28 = vsel %vm1770_vm7, %v7197_v50, %v2287_v45 }
 0x427   : > { %2641 = vmatmul.mubr.bf16.gmra.mrb[4].mxu1 %v7207_v18  ;;  %2673 = vmatprep.subr.bf16.mxu1 %v2301_v49 }
 0x428   : > { %2674 = vmatpush1.bf16.msra.mxu1 %v2300_v28  ;;  %2650 = vmatprep.mubr.bf16.mxu1 %v7214_v14 }
 0x429   : > { %v2291_v63 = vpop.permute.xlu0 %2290 }
 0x42a   : > { %2787 = vmatmul.mubr.bf16.gmra.mrb[20].mxu0 %v7207_v18  ;;  %2819 = vmatprep.subr.bf16.mxu0 %v2291_v63  ;;  %v2302_v57 = vsel %vm1770_vm7, %v2289_v16, %v2291_v63 }
 0x42b   : > { %2820 = vmatpush1.bf16.msra.mxu0 %v2302_v57  ;;  %2796 = vmatprep.mubr.bf16.mxu0 %v7214_v14 }
 0x42f   : > { %2651 = vmatmul.mubr.bf16.gmra.mrb[8].mxu1 %v7229_v59 }
 0x430   : > { %2660 = vmatprep.mubr.bf16.mxu1 %v7236_v4 }
 0x431   : > { %v7448_v51 = vpop.permute.xlu1 %2341 }
 0x432   : > { %2797 = vmatmul.mubr.bf16.gmra.mrb[24].mxu0 %v7229_v59 }
 0x433   : > { %2806 = vmatprep.mubr.bf16.mxu0 %v7236_v4 }
 0x437   : > { %2661 = vmatmul.mubr.bf16.gmra.mrb[12].mxu1 %v7249_v2 }
 0x438   : > { %2703 = vmatprep.mubr.bf16.mxu1 %v9422_v8 }
 0x43a   : > { %2807 = vmatmul.mubr.bf16.gmra.mrb[28].mxu0 %v7249_v2  ;;  %v7525_v56 = vpop.permute.xlu0 %2346 }
 0x43b   : > { %2849 = vmatprep.mubr.bf16.mxu0 %v9422_v8 }
 0x43f   : > { %4407 = vmatmul.mubr.msk.bf16.vlgmr.msra.gmra.mrb[0].mxu1 %vm2439_vm8, %v7264_v41 }
 0x440   : > { %2713 = vmatprep.mubr.bf16.mxu1 %v9422_v8 }
 0x442   : > { %4411 = vmatmul.mubr.msk.bf16.vlgmr.msra.gmra.mrb[16].mxu0 %vm2439_vm8, %v7264_v41 }
 0x443   : > { %2859 = vmatprep.mubr.bf16.mxu0 %v9422_v8 }
 0x447   : > { %4408 = vmatmul.mubr.msk.bf16.gmra.mrb[4].mxu1 %vm2439_vm8, %v7282_v62 }
 0x448   : > { %2723 = vmatprep.mubr.bf16.mxu1 %v9422_v8 }
 0x44a   : > { %4412 = vmatmul.mubr.msk.bf16.gmra.mrb[20].mxu0 %vm2439_vm8, %v7282_v62 }
 0x44b   : > { %2869 = vmatprep.mubr.bf16.mxu0 %v9422_v8 }
 0x44f   : > { %4409 = vmatmul.mubr.msk.bf16.gmra.mrb[8].mxu1 %vm2439_vm8, %v7302_v15 }
 0x450   : > { %2733 = vmatprep.mubr.bf16.mxu1 %v9422_v8 }
 0x452   : > { %4413 = vmatmul.mubr.msk.bf16.gmra.mrb[24].mxu0 %vm2439_vm8, %v7302_v15 }
 0x453   : > { %2879 = vmatprep.mubr.bf16.mxu0 %v9422_v8 }
 0x457   : > { %4410 = vmatmul.mubr.msk.bf16.gmra.mrb[12].mxu1 %vm2439_vm8, %v7319_v54 }
 0x45a   : > { %4414 = vmatmul.mubr.msk.bf16.gmra.mrb[28].mxu0 %vm2439_vm8, %v7319_v54  ;;  %v7464_v54 = vpop.permute.xlu1 %2351 }
 0x45e   : > { %v7483_v55 = vpop.permute.xlu1 %2361 }
 0x462   : > { %v7502_v17 = vpop.permute.xlu1 %2371 }
 0x471   : > { %v2559_v50 = vpop.f32.mrb[0].mxu0 }
 0x472   : > { %v7451_v18 = vadd.f32 %v2559_v50, %v7448_v51  ;;  %v2561_v14 = vpop.f32.mrb[1].mxu0 }
 0x473   : > { %v7454_v59 = vadd.f32 %v2561_v14, %v7448_v51  ;;  %v7456_v4 = vpop.f32.mrb[2].mxu0 }
 0x474   : > { %v9104_v2 = vmax.f32 %v7451_v18, 0.0  ;;  %v2565_v41 = vpop.f32.mrb[3].mxu0 }
 0x475   : > { %v9103_v62 = vmax.f32 %v7454_v59, 0.0  ;;  %v7543_v35 = vadd.f32 %v2565_v41, %v7525_v56 }
 0x477   : > { %v4644_v15 = vpack.i.bf16 %v9103_v62, %v9104_v2  ;;  %v9085_v57 = vmax.f32 %v7543_v35, 0.0 }
 0x479   : > { %v2569_v24 = vpop.f32.mrb[4].mxu0  ;;  %4645 = vrot.lane.b32.xlu0 %v4644_v15, %s5187_s11  ;;  %v7566_v15 = vpop.permute.xlu0 %2356 }
 0x47a   : > { %v7468_v23 = vadd.f32 %v2569_v24, %v7464_v54  ;;  %v2571_v53 = vpop.f32.mrb[5].mxu0 }
 0x47b   : > { %v7471_v21 = vadd.f32 %v2571_v53, %v7464_v54  ;;  %v7473_v10 = vpop.f32.mrb[6].mxu0 }
 0x47c   : > { %v9100_v31 = vmax.f32 %v7468_v23, 0.0  ;;  %v7476_v13 = vpop.f32.mrb[7].mxu0 }
 0x47d   : > { %v9099_v33 = vmax.f32 %v7471_v21, 0.0 }
 0x47f   : > { %v4654_v32 = vpack.i.bf16 %v9099_v33, %v9100_v31 }
 0x481   : > { %v2579_v9 = vpop.f32.mrb[8].mxu0  ;;  %4655 = vrot.lane.b32.xlu0 %v4654_v32, %s5187_s11 }
 0x482   : > { %v7487_v25 = vadd.f32 %v2579_v9, %v7483_v55  ;;  %v2581_v0 = vpop.f32.mrb[9].mxu0 }
 0x483   : > { %v7490_v22 = vadd.f32 %v2581_v0, %v7483_v55  ;;  %v7492_v27 = vpop.f32.mrb[10].mxu0 }
 0x484   : > { %v9096_v44 = vmax.f32 %v7487_v25, 0.0  ;;  %v7495_v6 = vpop.f32.mrb[11].mxu0 }
 0x485   : > { %v9095_v5 = vmax.f32 %v7490_v22, 0.0 }
 0x487   : > { %v4664_v48 = vpack.i.bf16 %v9095_v5, %v9096_v44 }
 0x489   : > { %v2589_v26 = vpop.f32.mrb[12].mxu0  ;;  %4665 = vrot.lane.b32.xlu0 %v4664_v48, %s5187_s11 }
 0x48a   : > { %v7506_v1 = vadd.f32 %v2589_v26, %v7502_v17  ;;  %v2591_v43 = vpop.f32.mrb[13].mxu0 }
 0x48b   : > { %v7509_v12 = vadd.f32 %v2591_v43, %v7502_v17  ;;  %v7511_v7 = vpop.f32.mrb[14].mxu0 }
 0x48c   : > { %v9092_v40 = vmax.f32 %v7506_v1, 0.0  ;;  %v7514_v37 = vpop.f32.mrb[15].mxu0 }
 0x48d   : > { %v9091_v34 = vmax.f32 %v7509_v12, 0.0 }
 0x48f   : > { %v4674_v39 = vpack.i.bf16 %v9091_v34, %v9092_v40 }
 0x491   : > { %4675 = vrot.lane.b32.xlu0 %v4674_v39, %s5187_s11 }
 0x512   : > { %v2705_v47 = vpop.f32.mrb[0].mxu1 }
 0x513   : > { %v7523_v11 = vadd.f32 %v2705_v47, %v7448_v51  ;;  %v2707_v46 = vpop.f32.mrb[1].mxu1 }
 0x514   : > { %v7528_v29 = vadd.f32 %v2707_v46, %v7448_v51  ;;  %v2709_v52 = vpop.f32.mrb[2].mxu1  ;;  %v7590_v46 = vadd.f32 %v7476_v13, %v7566_v15 }
 0x515   : > { %v9089_v30 = vmax.f32 %v7523_v11, 0.0  ;;  %v7532_v58 = vadd.f32 %v2709_v52, %v7525_v56  ;;  %v7534_v20 = vpop.f32.mrb[3].mxu1  ;;  %v2851_v3 = vpop.f32.mrb[16].mxu0 }
 0x516   : > { %v9090_v36 = vmax.f32 %v7528_v29, 0.0  ;;  %v7538_v61 = vadd.f32 %v2851_v3, %v7448_v51  ;;  %v7540_v19 = vpop.f32.mrb[17].mxu0  ;;  %v7710_v62 = vadd.f32 %v7534_v20, %v7525_v56 }
 0x517   : > { %v9084_v38 = vmax.f32 %v7532_v58, 0.0  ;;  %v7546_v60 = vpop.f32.mrb[18].mxu0 }
 0x518   : > { %v4639_v42 = vpack.i.bf16 %v9090_v36, %v9089_v30  ;;  %v9086_v16 = vmax.f32 %v7538_v61, 0.0  ;;  %v2857_v45 = vpop.f32.mrb[19].mxu0  ;;  %v7696_v2 = vadd.f32 %v7546_v60, %v7525_v56 }
 0x519   : > { %v7554_v49 = vadd.f32 %v2857_v45, %v7525_v56 }
 0x51a   : > { %v4679_v28 = vpack.i.bf16 %v9084_v38, %v9086_v16  ;;  %v2715_v63 = vpop.f32.mrb[4].mxu1  ;;  %4640 = vrot.lane.b32.xlu1 %v4639_v42, %s5187_s11 }
 0x51b   : > { %v9079_v50 = vmax.f32 %v7554_v49, 0.0  ;;  %v7564_v14 = vadd.f32 %v2715_v63, %v7464_v54  ;;  %v2717_v41 = vpop.f32.mrb[5].mxu1 }
 0x51c   : > { %v7569_v24 = vadd.f32 %v2717_v41, %v7464_v54  ;;  %v2719_v53 = vpop.f32.mrb[6].mxu1  ;;  %4680 = vrot.lane.b32.xlu0 %v4679_v28, %s5187_s11 }
 0x51d   : > { %v4694_v32 = vpack.i.bf16 %v9079_v50, %v9085_v57  ;;  %v9080_v9 = vmax.f32 %v7564_v14, 0.0  ;;  %v7578_v0 = vadd.f32 %v2719_v53, %v7566_v15  ;;  %v7580_v48 = vpop.f32.mrb[7].mxu1  ;;  %v2861_v26 = vpop.f32.mrb[20].mxu0  ;;  %v9088_v53 = vmax.f32 %v7590_v46, 0.0 }
 0x51e   : > { %v9081_v43 = vmax.f32 %v7569_v24, 0.0  ;;  %v7584_v39 = vadd.f32 %v2861_v26, %v7464_v54  ;;  %v7586_v47 = vpop.f32.mrb[21].mxu0 }
 0x51f   : > { %v9082_v52 = vmax.f32 %v7578_v0, 0.0  ;;  %v7593_v3 = vpop.f32.mrb[22].mxu0 }
 0x520   : > { %v4649_v42 = vpack.i.bf16 %v9081_v43, %v9080_v9  ;;  %v9083_v45 = vmax.f32 %v7584_v39, 0.0  ;;  %v2867_v28 = vpop.f32.mrb[23].mxu0  ;;  %4695 = vrot.lane.b32.xlu0 %v4694_v32, %s5187_s11  ;;  %v7614_v32 = vpop.permute.xlu0 %2366 }
 0x521   : > { %v7602_v63 = vadd.f32 %v2867_v28, %v7566_v15 }
 0x522   : > { %v4699_v13 = vpack.i.bf16 %v9082_v52, %v9083_v45  ;;  %v2725_v41 = vpop.f32.mrb[8].mxu1  ;;  %4650 = vrot.lane.b32.xlu1 %v4649_v42, %s5187_s11 }
 0x523   : > { %v9087_v26 = vmax.f32 %v7602_v63, 0.0  ;;  %v7612_v50 = vadd.f32 %v2725_v41, %v7483_v55  ;;  %v2727_v9 = vpop.f32.mrb[9].mxu1 }
 0x524   : > { %v7617_v28 = vadd.f32 %v2727_v9, %v7483_v55  ;;  %v2729_v43 = vpop.f32.mrb[10].mxu1  ;;  %4700 = vrot.lane.b32.xlu0 %v4699_v13, %s5187_s11  ;;  %v7638_v13 = vadd.f32 %v7495_v6, %v7614_v32 }
 0x525   : > { %v4714_v42 = vpack.i.bf16 %v9087_v26, %v9088_v53  ;;  %v9093_v52 = vmax.f32 %v7612_v50, 0.0  ;;  %v7626_v45 = vadd.f32 %v2729_v43, %v7614_v32  ;;  %v7628_v41 = vpop.f32.mrb[11].mxu1  ;;  %v2871_v38 = vpop.f32.mrb[24].mxu0 }
 0x526   : > { %v9094_v57 = vmax.f32 %v7617_v28, 0.0  ;;  %v7632_v9 = vadd.f32 %v2871_v38, %v7483_v55  ;;  %v7634_v16 = vpop.f32.mrb[25].mxu0  ;;  %v9102_v40 = vmax.f32 %v7638_v13, 0.0 }
 0x527   : > { %9431 = vst [vmem:[#allocation97_spill] sm:$0xff] %v7626_v45  ;;  %v9097_v26 = vmax.f32 %v7626_v45, 0.0  ;;  %v7641_v53 = vpop.f32.mrb[26].mxu0  ;;  %v9125_v45 = vmax.f32 %v7696_v2, 0.0 }
 0x528   : > { %v4659_v43 = vpack.i.bf16 %v9094_v57, %v9093_v52  ;;  %v9098_v30 = vmax.f32 %v7632_v9, 0.0  ;;  %v2877_v36 = vpop.f32.mrb[27].mxu0  ;;  %4715 = vrot.lane.b32.xlu0 %v4714_v42, %s5187_s11  ;;  %v7662_v42 = vpop.permute.xlu0 %2376 }
 0x529   : > { %v7650_v38 = vadd.f32 %v2877_v36, %v7614_v32  ;;  %v7666_v36 = vadd.f32 %v7540_v19, %v7448_v51  ;;  %v7682_v51 = vadd.f32 %v7456_v4, %v7525_v56  ;;  %v7726_v56 = vadd.f32 %v7586_v47, %v7464_v54 }
 0x52a   : > { %v4719_v6 = vpack.i.bf16 %v9097_v26, %v9098_v30  ;;  %v2735_v34 = vpop.f32.mrb[12].mxu1  ;;  %4660 = vrot.lane.b32.xlu1 %v4659_v43, %s5187_s11 }
 0x52b   : > { %9432 = vst [vmem:[#allocation83_spill] sm:$0xff] %v7650_v38  ;;  %v9101_v52 = vmax.f32 %v7650_v38, 0.0  ;;  %v7660_v57 = vadd.f32 %v2735_v34, %v7502_v17  ;;  %v2737_v5 = vpop.f32.mrb[13].mxu1  ;;  %v9113_v47 = vmax.f32 %v7726_v56, 0.0 }
 0x52c   : > { %v7669_v44 = vadd.f32 %v2737_v5, %v7502_v17  ;;  %v2739_v26 = vpop.f32.mrb[14].mxu1  ;;  %4720 = vrot.lane.b32.xlu0 %v4719_v6, %s5187_s11 }
 0x52d   : > { %v4734_v43 = vpack.i.bf16 %v9101_v52, %v9102_v40  ;;  %v9107_v34 = vmax.f32 %v7660_v57, 0.0  ;;  %v7678_v30 = vadd.f32 %v2739_v26, %v7662_v42  ;;  %v2741_v33 = vpop.f32.mrb[15].mxu1  ;;  %v2881_v31 = vpop.f32.mrb[28].mxu0  ;;  %v7690_v52 = vadd.f32 %v7514_v37, %v7662_v42 }
 0x52e   : > { %v9108_v5 = vmax.f32 %v7669_v44, 0.0  ;;  %v7686_v19 = vadd.f32 %v2881_v31, %v7502_v17  ;;  %v2883_v6 = vpop.f32.mrb[29].mxu0  ;;  %v9127_v40 = vmax.f32 %v7682_v51, 0.0 }
 0x52f   : > { %9433 = vst [vmem:[#allocation86_spill] sm:$0xff] %v7678_v30  ;;  %9434 = vst [vmem:[#allocation93_spill] sm:$0xff] %v7690_v52  ;;  %v2885_v26 = vpop.f32.mrb[30].mxu0  ;;  %v9436_v60 = vmax.f32 %v7678_v30, 0.0  ;;  %v9453_v30 = vmax.f32 %v7528_v29, 0.0  ;;  %v9455_v29 = vmax.f32 %v7538_v61, 0.0 }
 0x530   : > { %v4669_v4 = vpack.i.bf16 %v9108_v5, %v9107_v34  ;;  %v9112_v31 = vmax.f32 %v7686_v19, 0.0  ;;  %v2887_v8 = vpop.f32.mrb[31].mxu0  ;;  %4735 = vrot.lane.b32.xlu0 %v4734_v43, %s5187_s11  ;;  %v9110_v34 = vmax.f32 %v7690_v52, 0.0 }
 0x531   : > { %v7705_v37 = vadd.f32 %v2887_v8, %v7662_v42  ;;  %v9437_v8 = vmax.f32 %v7666_v36, 0.0 }
 0x532   : > { %v4739_v38 = vpack.i.bf16 %v9436_v60, %v9112_v31  ;;  %4670 = vrot.lane.b32.xlu1 %v4669_v4, %s5187_s11  ;;  %v7735_v4 = vadd.f32 %v7473_v10, %v7566_v15  ;;  %v9126_v60 = vmax.f32 %v7710_v62, 0.0  ;;  %v7791_v31 = vadd.f32 %v2883_v6, %v7502_v17 }
 0x533   : > { %9435 = vst [vmem:[#allocation89_spill] sm:$0xff] %v7705_v37  ;;  %v9111_v43 = vmax.f32 %v7705_v37, 0.0  ;;  %v4684_v5 = vpack.i.bf16 %v9127_v40, %v9437_v8  ;;  %v7752_v8 = vadd.f32 %v7580_v48, %v7566_v15  ;;  %v7809_v6 = vadd.f32 %v2741_v33, %v7662_v42  ;;  %v4646_v33 = vpop.permute.xlu0 %4645 }
 0x534   : > { %4740 = vrot.lane.b32.xlu0 %v4739_v38, %s5187_s11  ;;  %v4689_v54 = vpack.i.bf16 %v9125_v45, %v9126_v60  ;;  %v7746_v38 = vadd.f32 %v7593_v3, %v7566_v15  ;;  %v9122_v10 = vmax.f32 %v7735_v4, 0.0  ;;  %v7762_v3 = vadd.f32 %v7634_v16, %v7483_v55  ;;  %9438 = vst [vmem:[#allocation94_spill] sm:$0xff] %v7791_v31 }
 0x535   : > { %v4759_v20 = vpack.i.bf16 %v9111_v43, %v9110_v34  ;;  %v9120_v15 = vmax.f32 %v7752_v8, 0.0  ;;  %v7777_v43 = vadd.f32 %v7641_v53, %v7614_v32  ;;  %v7795_v53 = vadd.f32 %v7511_v7, %v7662_v42  ;;  %9440 = vst [vmem:[#allocation96_spill] sm:$0xff] %v7809_v6 }
 0x536   : > { %4685 = vrot.lane.b32.xlu1 %v4684_v5, %s5187_s11  ;;  %v4704_v5 = vpack.i.bf16 %v9122_v10, %v9113_v47  ;;  %v9121_v34 = vmax.f32 %v7746_v38, 0.0 }
 0x537   : > { %v9119_v17 = vmax.f32 %v7795_v53, 0.0 }
 0x538   : > { %4760 = vrot.lane.b32.xlu0 %v4759_v20, %s5187_s11  ;;  %v7766_v20 = vadd.f32 %v7492_v27, %v7614_v32  ;;  %v4709_v48 = vpack.i.bf16 %v9121_v34, %v9120_v15  ;;  %v7782_v27 = vadd.f32 %v7628_v41, %v7614_v32  ;;  %v9118_v41 = vmax.f32 %v7791_v31, 0.0 }
 0x53a   : > { %4690 = vrot.lane.b32.xlu1 %v4689_v54, %s5187_s11  ;;  %v9114_v54 = vmax.f32 %v7762_v3, 0.0  ;;  %v9116_v55 = vmax.f32 %v7766_v20, 0.0  ;;  %v9115_v47 = vmax.f32 %v7782_v27, 0.0  ;;  %v4744_v7 = vpack.i.bf16 %v9119_v17, %v9118_v41 }
 0x53c   : > { %v4724_v16 = vpack.i.bf16 %v9116_v55, %v9114_v54  ;;  %v9124_v54 = vmax.f32 %v7809_v6, 0.0 }
 0x53e   : > { %4705 = vrot.lane.b32.xlu1 %v4704_v5, %s5187_s11  ;;  %v9117_v5 = vmax.f32 %v7777_v43, 0.0 }
 0x540   : > { %v4729_v32 = vpack.i.bf16 %v9117_v5, %v9115_v47  ;;  %v4647_v47 = vunpack.i.l.bf16 %v4646_v33 }
 0x542   : > { %4710 = vrot.lane.b32.xlu1 %v4709_v48, %s5187_s11  ;;  %v7805_v48 = vadd.f32 %v2885_v26, %v7662_v42  ;;  %v4656_v42 = vpop.permute.xlu0 %4655 }
 0x543   : > { %v4657_v45 = vunpack.i.l.bf16 %v4656_v42 }
 0x544   : > { %9439 = vst [vmem:[#allocation99_spill] sm:$0xff] %v7805_v48 }
 0x546   : > { %4725 = vrot.lane.b32.xlu1 %v4724_v16, %s5187_s11  ;;  %v9123_v16 = vmax.f32 %v7805_v48, 0.0  ;;  %v4666_v55 = vpop.permute.xlu0 %4665 }
 0x547   : > { %v4667_v52 = vunpack.i.l.bf16 %v4666_v55 }
 0x548   : > { %v4749_v26 = vpack.i.bf16 %v9123_v16, %v9124_v54  ;;  %v9442_v16 = vmax.f32 %v7454_v59, 0.0 }
 0x54a   : > { %4730 = vrot.lane.b32.xlu1 %v4729_v32, %s5187_s11  ;;  %v4648_v32 = vunpack.i.h.bf16 %v4646_v33  ;;  %v4676_v15 = vpop.permute.xlu0 %4675 }
 0x54c   : > { %v3082_v41 = vsel %vm442_vm0, %v4647_v47, %v4648_v32 }
 0x54e   : > { %4745 = vrot.lane.b32.xlu1 %v4744_v7, %s5187_s11  ;;  %v9441_v7 = vmax.f32 %v7451_v18, 0.0 }
 0x550   : > { %v7828_v10 = vmax.f32 %v9441_v7, %v3082_v41  ;;  %v9443_v41 = vmax.f32 %v7468_v23, 0.0  ;;  %v4668_v7 = vunpack.i.h.bf16 %v4666_v55 }
 0x552   : > { %4750 = vrot.lane.b32.xlu1 %v4749_v26, %s5187_s11  ;;  %v4658_v26 = vunpack.i.h.bf16 %v4656_v42  ;;  %s5195_s11 = smov 64  }
 0x58c   : > { %v4641_v5 = vpop.permute.xlu1 %4640 }
 0x58d   : > { %v4642_v17 = vunpack.i.l.bf16 %v4641_v5 }
 0x58e   : > { %v7834_v60 = vpop.permute.xlu0 %4680 }
 0x58f   : > { %v3083_v34 = vsel %vm442_vm0, %v4648_v32, %v4642_v17  ;;  %v3092_v32 = vsel %vm442_vm0, %v4657_v45, %v4658_v26  ;;  %v3102_v45 = vsel %vm442_vm0, %v4667_v52, %v4668_v7 }
 0x590   : > { %v7832_v54 = vmax.f32 %v9442_v16, %v3083_v34  ;;  %v7843_v59 = vmax.f32 %v9443_v41, %v3092_v32  ;;  %v9445_v16 = vmax.f32 %v7471_v21, 0.0  ;;  %v9447_v32 = vmax.f32 %v7487_v25, 0.0 }
 0x592   : > { %v4754_v33 = vpack.i.bf16 %v7832_v54, %v7828_v10  ;;  %9444 = vst [vmem:[#allocation7_spill] sm:$0xff] %v7843_v59  ;;  %v7845_v34 = vpop.permute.xlu0 %4695  ;;  %v7865_v55 = vmax.f32 %v9447_v32, %v3102_v45  ;;  %v9451_v32 = vmax.f32 %v7506_v1, 0.0 }
 0x594   : > { %v4651_v47 = vpop.permute.xlu1 %4650  ;;  %4755 = vrot.lane.b32.xlu1 %v4754_v33, %s5189_s13  ;;  %9448 = vst [vmem:[#allocation6_spill] sm:$0xff] %v7865_v55 }
 0x595   : > { %v4652_v40 = vunpack.i.l.bf16 %v4651_v47 }
 0x597   : > { %v3093_v18 = vsel %vm442_vm0, %v4658_v26, %v4652_v40  ;;  %v7858_v26 = vpop.permute.xlu0 %4700 }
 0x598   : > { %v7849_v42 = vmax.f32 %v9445_v16, %v3093_v18  ;;  %v9449_v18 = vmax.f32 %v7490_v22, 0.0  ;;  %v4678_v16 = vunpack.i.h.bf16 %v4676_v15 }
 0x59a   : > { %9446 = vst [vmem:[#allocation8_spill] sm:$0xff] %v7849_v42  ;;  %v4764_v33 = vpack.i.bf16 %v7849_v42, %v7843_v59  ;;  %v4682_v59 = vunpack.i.l.bf16 %v7834_v60 }
 0x59b   : > { %v7874_v42 = vpop.permute.xlu0 %4715 }
 0x59c   : > { %v7853_v48 = vpop.permute.xlu1 %4660  ;;  %4765 = vrot.lane.b32.xlu1 %v4764_v33, %s5189_s13  ;;  %v4677_v33 = vunpack.i.l.bf16 %v4676_v15  ;;  %v4697_v15 = vunpack.i.l.bf16 %v7845_v34 }
 0x59d   : > { %v9133_v23 = vunpack.i.l.bf16 %v7853_v48 }
 0x59e   : > { %v3112_v25 = vsel %vm442_vm0, %v4677_v33, %v4678_v16 }
 0x59f   : > { %v3103_v21 = vsel %vm442_vm0, %v4668_v7, %v9133_v23  ;;  %v4643_v7 = vunpack.i.h.bf16 %v4641_v5  ;;  %v9452_v23 = vmax.f32 %v7509_v12, 0.0  ;;  %v7901_v1 = vpop.permute.xlu0 %4720 }
 0x5a0   : > { %v7869_v41 = vmax.f32 %v9449_v18, %v3103_v21  ;;  %v7888_v18 = vmax.f32 %v9451_v32, %v3112_v25  ;;  %v4653_v25 = vunpack.i.h.bf16 %v4651_v47  ;;  %v4698_v47 = vunpack.i.h.bf16 %v7845_v34 }
 0x5a1   : > { %v3085_v45 = vsel %vm442_vm0, %v4643_v7, %v4682_v59  ;;  %v3084_v5 = vsel %vm442_vm0, %v4642_v17, %v4643_v7  ;;  %v9454_v7 = vmax.f32 %v7523_v11, 0.0 }
 0x5a2   : > { %9450 = vst [vmem:[#allocation15_spill] sm:$0xff] %v7869_v41  ;;  %v4769_v52 = vpack.i.bf16 %v7869_v41, %v7865_v55  ;;  %v4683_v55 = vunpack.i.h.bf16 %v7834_v60  ;;  %v7898_v31 = vmax.f32 %v9453_v30, %v3085_v45  ;;  %v9456_v45 = vmax.f32 %v7682_v51, 0.0 }
 0x5a4   : > { %v7876_v37 = vpop.permute.xlu1 %4670  ;;  %4770 = vrot.lane.b32.xlu1 %v4769_v52, %s5189_s13 }
 0x5a5   : > { %v9139_v22 = vunpack.i.l.bf16 %v7876_v37 }
 0x5a7   : > { %v3113_v21 = vsel %vm442_vm0, %v4678_v16, %v9139_v22  ;;  %v4702_v16 = vunpack.i.l.bf16 %v7858_v26 }
 0x5a8   : > { %v7892_v52 = vmax.f32 %v9452_v23, %v3113_v21  ;;  %v4686_v33 = vpop.permute.xlu1 %4685  ;;  %v3088_v23 = vsel %vm442_vm0, %v4697_v15, %v4683_v55  ;;  %v7910_v21 = vmax.f32 %v9454_v7, %v3084_v5  ;;  %v3094_v5 = vsel %vm442_vm0, %v4652_v40, %v4653_v25 }
 0x5a9   : > { %v4688_v41 = vunpack.i.h.bf16 %v4686_v33  ;;  %v4687_v6 = vunpack.i.l.bf16 %v4686_v33  ;;  %v9459_v7 = vmax.f32 %v7710_v62, 0.0  ;;  %v4722_v62 = vunpack.i.l.bf16 %v7901_v1 }
 0x5aa   : > { %v4774_v12 = vpack.i.bf16 %v7892_v52, %v7888_v18  ;;  %v4779_v51 = vpack.i.bf16 %v7898_v31, %v7910_v21 }
 0x5ab   : > { %v3086_v17 = vsel %vm442_vm0, %v4682_v59, %v4687_v6  ;;  %v3087_v60 = vsel %vm442_vm0, %v4688_v41, %v4697_v15  ;;  %v9457_v41 = vmax.f32 %v7543_v35, 0.0  ;;  %v3095_v15 = vsel %vm442_vm0, %v4653_v25, %v4702_v16 }
 0x5ac   : > { %v7914_v30 = vmax.f32 %v9455_v29, %v3086_v17  ;;  %v7918_v32 = vmax.f32 %v9456_v45, %v3087_v60  ;;  %v4691_v33 = vpop.permute.xlu1 %4690  ;;  %4775 = vrot.lane.b32.xlu1 %v4774_v12, %s5189_s13  ;;  %v7935_v60 = vpop.permute.xlu0 %4735  ;;  %v9458_v35 = vmax.f32 %v7532_v58, 0.0  ;;  %v9460_v45 = vmax.f32 %v7696_v2, 0.0 }
 0x5ad   : > { %v4693_v59 = vunpack.i.h.bf16 %v4691_v33  ;;  %v4692_v22 = vunpack.i.l.bf16 %v4691_v33  ;;  %v7924_v11 = vmax.f32 %v9457_v41, %v3088_v23  ;;  %v4717_v58 = vunpack.i.l.bf16 %v7874_v42 }
 0x5ae   : > { %v4784_v61 = vpack.i.bf16 %v7918_v32, %v7914_v30  ;;  %v9462_v41 = vmax.f32 %v7666_v36, 0.0 }
 0x5af   : > { %v3089_v12 = vsel %vm442_vm0, %v4683_v55, %v4692_v22  ;;  %v3090_v34 = vsel %vm442_vm0, %v4692_v22, %v4693_v59  ;;  %v3091_v17 = vsel %vm442_vm0, %v4693_v59, %v4698_v47  ;;  %v9461_v55 = vmax.f32 %v7569_v24, 0.0 }
 0x5b0   : > { %v7939_v23 = vmax.f32 %v9458_v35, %v3089_v12  ;;  %v7943_v29 = vmax.f32 %v9459_v7, %v3090_v34  ;;  %v7947_v33 = vmax.f32 %v9460_v45, %v3091_v17  ;;  %v4706_v40 = vpop.permute.xlu1 %4705  ;;  %4785 = vrot.lane.b32.xlu0 %v4784_v61, %s5189_s13  ;;  %4780 = vrot.lane.b32.xlu1 %v4779_v51, %s5189_s13  ;;  %v9463_v51 = vmax.f32 %v7564_v14, 0.0 }
 0x5b1   : > { %v7953_v22 = vmax.f32 %v9461_v55, %v3095_v15  ;;  %v4708_v25 = vunpack.i.h.bf16 %v4706_v40  ;;  %v4707_v59 = vunpack.i.l.bf16 %v4706_v40  ;;  %v3175_v2 = vmax.f32 %v9462_v41, %v4687_v6 }
 0x5b2   : > { %v4789_v12 = vpack.i.bf16 %v7943_v29, %v7939_v23  ;;  %v4799_v61 = vpack.i.bf16 %v7947_v33, %v7924_v11  ;;  %v7965_v24 = vmax.f32 %v9463_v51, %v3094_v5  ;;  %v4703_v15 = vunpack.i.h.bf16 %v7858_v26 }
 0x5b3   : > { %v3096_v34 = vsel %vm442_vm0, %v4702_v16, %v4707_v59  ;;  %v3097_v17 = vsel %vm442_vm0, %v4708_v25, %v4717_v58  ;;  %v9464_v35 = vmax.f32 %v7554_v49, 0.0  ;;  %v4718_v6 = vunpack.i.h.bf16 %v7874_v42  ;;  %v7980_v49 = vpop.permute.xlu0 %4740 }
 0x5b4   : > { %v4663_v7 = vunpack.i.h.bf16 %v7853_v48  ;;  %v4711_v45 = vpop.permute.xlu1 %4710  ;;  %4790 = vrot.lane.b32.xlu0 %v4789_v12, %s5189_s13  ;;  %4800 = vrot.lane.b32.xlu1 %v4799_v61, %s5189_s13  ;;  %v3098_v14 = vsel %vm442_vm0, %v4717_v58, %v4703_v15  ;;  %v4804_v16 = vpack.i.bf16 %v7953_v22, %v7965_v24  ;;  %v9465_v42 = vmax.f32 %v7584_v39, 0.0 }
 0x5b5   : > { %v3181_v36 = vmax.f32 %v9464_v35, %v4698_v47  ;;  %v4713_v5 = vunpack.i.h.bf16 %v4711_v45  ;;  %v4712_v26 = vunpack.i.l.bf16 %v4711_v45  ;;  %v9466_v25 = vmax.f32 %v7735_v4, 0.0 }
 0x5b6   : > { %v3105_v40 = vsel %vm442_vm0, %v4663_v7, %v4722_v62  ;;  %v7984_v55 = vmax.f32 %v9465_v42, %v3096_v34  ;;  %v9467_v51 = vmax.f32 %v7590_v46, 0.0  ;;  %v9469_v4 = vunpack.i.l.bf16 %v7853_v48 }
 0x5b7   : > { %v4794_v47 = vpack.i.bf16 %v3181_v36, %v3175_v2  ;;  %v7988_v41 = vmax.f32 %v9466_v25, %v3097_v17  ;;  %v3099_v58 = vsel %vm442_vm0, %v4703_v15, %v4712_v26  ;;  %v3100_v12 = vsel %vm442_vm0, %v4712_v26, %v4713_v5 }
 0x5b8   : > { %v3101_v61 = vsel %vm442_vm0, %v4713_v5, %v4718_v6  ;;  %v7995_v35 = vmax.f32 %v9467_v51, %v3098_v14  ;;  %v9468_v2 = vmax.f32 %v7746_v38, 0.0  ;;  %v4726_v39 = vpop.permute.xlu1 %4725  ;;  %4805 = vrot.lane.b32.xlu1 %v4804_v16, %s5189_s13  ;;  %v3104_v15 = vsel %vm442_vm0, %v9469_v4, %v4663_v7 }
 0x5b9   : > { %4795 = vrot.lane.b32.xlu0 %v4794_v47, %s5189_s13  ;;  %v9470_v34 = vmax.f32 %v7617_v28, 0.0  ;;  %v4737_v46 = vunpack.i.l.bf16 %v7935_v60  ;;  %v4742_v45 = vunpack.i.l.bf16 %v7980_v49  ;;  %v9471_v38 = vmax.f32 %v7578_v0, 0.0 }
 0x5ba   : > { %v7999_v36 = vmax.f32 %v9468_v2, %v3101_v61  ;;  %v9472_v5 = vmax.f32 %v7752_v8, 0.0  ;;  %v4809_v48 = vpack.i.bf16 %v7988_v41, %v7984_v55  ;;  %v4723_v7 = vunpack.i.h.bf16 %v7901_v1 }
 0x5bb   : > { %v8008_v17 = vmax.f32 %v9470_v34, %v3105_v40  ;;  %v8014_v14 = vmax.f32 %v9471_v38, %v3099_v58  ;;  %v4728_v16 = vunpack.i.h.bf16 %v4726_v39  ;;  %v4727_v40 = vunpack.i.l.bf16 %v4726_v39 }
 0x5bc   : > { %v8018_v26 = vmax.f32 %v9472_v5, %v3100_v12  ;;  %v4824_v28 = vpack.i.bf16 %v7999_v36, %v7995_v35  ;;  %v9473_v47 = vmax.f32 %v7612_v50, 0.0  ;;  %v4673_v0 = vunpack.i.h.bf16 %v7876_v37  ;;  %v4731_v25 = vpop.permute.xlu1 %4730 }
 0x5bd   : > { %4810 = vrot.lane.b32.xlu0 %v4809_v48, %s5189_s13  ;;  %v4738_v8 = vunpack.i.h.bf16 %v7935_v60  ;;  %v3108_v58 = vsel %vm442_vm0, %v4737_v46, %v4723_v7  ;;  %v4733_v12 = vunpack.i.h.bf16 %v4731_v25  ;;  %v9474_v50 = vmax.f32 %v7726_v56, 0.0 }
 0x5be   : > { %v8027_v42 = vmax.f32 %v9473_v47, %v3104_v15  ;;  %4825 = vrot.lane.b32.xlu1 %v4824_v28, %s5189_s13  ;;  %v3115_v1 = vsel %vm442_vm0, %v4673_v0, %v4742_v45  ;;  %v4814_v51 = vpack.i.bf16 %v8018_v26, %v8014_v14  ;;  %v3106_v39 = vsel %vm442_vm0, %v4722_v62, %v4727_v40 }
 0x5bf   : > { %v3187_v61 = vmax.f32 %v9474_v50, %v4707_v59  ;;  %v3107_v60 = vsel %vm442_vm0, %v4728_v16, %v4737_v46  ;;  %v4732_v4 = vunpack.i.l.bf16 %v4731_v25  ;;  %v3111_v15 = vsel %vm442_vm0, %v4733_v12, %v4738_v8 }
 0x5c0   : > { %v4829_v2 = vpack.i.bf16 %v8008_v17, %v8027_v42  ;;  %v9475_v34 = vmax.f32 %v7602_v63, 0.0  ;;  %v9476_v5 = vmax.f32 %v7638_v13, 0.0  ;;  %v9477_v59 = vmax.f32 %v7777_v43, 0.0 }
 0x5c1   : > { %4815 = vrot.lane.b32.xlu0 %v4814_v51, %s5189_s13  ;;  %v9478_v62 = vunpack.i.l.bf16 %v7876_v37  ;;  %v9479_v28 = vmax.f32 %v7669_v44, 0.0  ;;  %v9480_v13 = vmax.f32 %v7632_v9, 0.0  ;;  %v9481_v43 = vmax.f32 %v7766_v20, 0.0  ;;  %v9483_v9 = vld [vmem:[#allocation97_spill] sm:$0xff] }
 0x5c2   : > { %v3193_v38 = vmax.f32 %v9475_v34, %v4718_v6  ;;  %v8050_v56 = vmax.f32 %v9476_v5, %v3108_v58  ;;  %v8054_v48 = vmax.f32 %v9477_v59, %v3111_v15  ;;  %4830 = vrot.lane.b32.xlu1 %v4829_v2, %s5189_s13  ;;  %v3109_v37 = vsel %vm442_vm0, %v4723_v7, %v4732_v4  ;;  %v4746_v15 = vpop.permute.xlu1 %4745 }
 0x5c3   : > { %v3114_v46 = vsel %vm442_vm0, %v9478_v62, %v4673_v0  ;;  %v8063_v63 = vmax.f32 %v9479_v28, %v3115_v1  ;;  %v8067_v16 = vmax.f32 %v9480_v13, %v3106_v39  ;;  %v8071_v47 = vmax.f32 %v9481_v43, %v3107_v60  ;;  %v9487_v39 = vld [vmem:[#allocation83_spill] sm:$0xff] }
 0x5c4   : > { %v4819_v6 = vpack.i.bf16 %v3193_v38, %v3187_v61  ;;  %v4849_v25 = vpack.i.bf16 %v8054_v48, %v8050_v56  ;;  %v3110_v0 = vsel %vm442_vm0, %v4732_v4, %v4733_v12  ;;  %v9482_v44 = vmax.f32 %v7660_v57, 0.0 }
 0x5c5   : > { %v9484_v1 = vmax.f32 %v9483_v9, 0.0  ;;  %v9485_v50 = vmax.f32 %v7782_v27, 0.0  ;;  %v4834_v7 = vpack.i.bf16 %v8071_v47, %v8067_v16  ;;  %v9486_v12 = vmax.f32 %v7762_v3, 0.0  ;;  %v8109_v3 = vpop.permute.xlu0 %4760 }
 0x5c6   : > { %v8079_v58 = vmax.f32 %v9482_v44, %v3114_v46  ;;  %4820 = vrot.lane.b32.xlu0 %v4819_v6, %s5189_s13  ;;  %4850 = vrot.lane.b32.xlu1 %v4849_v25, %s5189_s13  ;;  %v9488_v27 = vmax.f32 %v9487_v39, 0.0  ;;  %v4751_v34 = vpop.permute.xlu1 %4750  ;;  %v4747_v62 = vunpack.i.l.bf16 %v4746_v15 }
 0x5c7   : > { %v8085_v20 = vmax.f32 %v9484_v1, %v3109_v37  ;;  %v8089_v61 = vmax.f32 %v9485_v50, %v3110_v0  ;;  %v3199_v51 = vmax.f32 %v9486_v12, %v4727_v40  ;;  %v4748_v40 = vunpack.i.h.bf16 %v4746_v15 }
 0x5c8   : > { %v4854_v57 = vpack.i.bf16 %v8063_v63, %v8079_v58  ;;  %v3205_v60 = vmax.f32 %v9488_v27, %v4738_v8  ;;  %v4762_v8 = vunpack.i.l.bf16 %v8109_v3  ;;  %v3116_v13 = vsel %vm442_vm0, %v4742_v45, %v4747_v62 }
 0x5c9   : > { %v4839_v2 = vpack.i.bf16 %v8089_v61, %v8085_v20  ;;  %v4752_v25 = vunpack.i.l.bf16 %v4751_v34  ;;  %v4743_v1 = vunpack.i.h.bf16 %v7980_v49  ;;  %v9489_v50 = vmax.f32 %v7686_v19, 0.0 }
 0x5ca   : > { %4835 = vrot.lane.b32.xlu0 %v4834_v7, %s5189_s13  ;;  %4855 = vrot.lane.b32.xlu1 %v4854_v57, %s5189_s13  ;;  %v4844_v4 = vpack.i.bf16 %v3205_v60, %v3199_v51  ;;  %v3117_v43 = vsel %vm442_vm0, %v4748_v40, %v4762_v8  ;;  %v9491_v57 = vmax.f32 %v7795_v53, 0.0  ;;  %v4753_v12 = vunpack.i.h.bf16 %v4751_v34 }
 0x5cb   : > { %v8127_v7 = vmax.f32 %v9489_v50, %v3116_v13  ;;  %v3119_v39 = vsel %vm442_vm0, %v4743_v1, %v4752_v25 }
 0x5cc   : > { %v8131_v45 = vmax.f32 %v9491_v57, %v3117_v43 }
 0x5cd   : > { %9490 = vst [vmem:[#allocation18_spill] sm:$0xff] %v8127_v7 }
 0x5ce   : > { %4840 = vrot.lane.b32.xlu0 %v4839_v2, %s5189_s13  ;;  %v4763_v2 = vunpack.i.h.bf16 %v8109_v3  ;;  %v9493_v3 = vld [vmem:[#allocation94_spill] sm:$0xff] }
 0x5d2   : > { %4845 = vrot.lane.b32.xlu0 %v4844_v4, %s5189_s13 }
 0x606   : > { %v4756_v38 = vpop.permute.xlu1 %4755 }
 0x607   : > { %v4758_v28 = vunpack.i.h.bf16 %v4756_v38  ;;  %v4757_v6 = vunpack.i.l.bf16 %v4756_v38  ;;  %v3118_v38 = vsel %vm442_vm0, %v4762_v8, %v4743_v1  ;;  %v3121_v8 = vsel %vm442_vm0, %v4753_v12, %v4763_v2  ;;  %v9495_v1 = vld [vmem:[#allocation86_spill] sm:$0xff] }
 0x608   : > { %v9496_v50 = vmax.f32 %v9495_v1, 0.0 }
 0x609   : > { %v3362_v44 = vsel %vm804_vm2, %v4757_v6, %v4758_v28  ;;  %v3120_v6 = vsel %vm442_vm0, %v4752_v25, %v4753_v12  ;;  %vm3857_vm0 = vcmask 719872  }
 0x60a   : > { %v8137_v27 = vmax.f32 %v7828_v10, %v3362_v44  ;;  %v9494_v10 = vmax.f32 %v9493_v3, 0.0 }
 0x60c   : > { %v8153_v40 = vmax.f32 %v9494_v10, %v4747_v62  ;;  %v8166_v62 = vmax.f32 %v9496_v50, %v3119_v39 }
 0x60e   : > { %v8105_v5 = vpop.permute.xlu1 %4765 }
 0x616   : > { %v8107_v59 = vpop.permute.xlu1 %4770 }
 0x61e   : > { %v8111_v46 = vpop.permute.xlu1 %4775 }
 0x622   : > { %v8118_v37 = vpop.permute.xlu0 %4785  ;;  %v8120_v0 = vpop.permute.xlu1 %4780 }
 0x623   : > { %v4782_v9 = vunpack.i.l.bf16 %v8120_v0  ;;  %v4788_v53 = vunpack.i.h.bf16 %v8118_v37  ;;  %v9141_v13 = vunpack.i.h.bf16 %v8120_v0  ;;  %v9142_v57 = vunpack.i.l.bf16 %v8118_v37 }
 0x625   : > { %v3363_v51 = vsel %vm804_vm2, %v4758_v28, %v4782_v9  ;;  %v4864_v28 = vpack.i.bf16 %v8131_v45, %v8127_v7 }
 0x626   : > { %v8140_v49 = vmax.f32 %v7832_v54, %v3363_v51  ;;  %v8142_v19 = vpop.permute.xlu0 %4790  ;;  %v8144_v60 = vpop.permute.xlu1 %4800 }
 0x627   : > { %v9140_v4 = vunpack.i.h.bf16 %v8142_v19  ;;  %v4792_v15 = vunpack.i.l.bf16 %v8142_v19  ;;  %v4802_v34 = vunpack.i.l.bf16 %v8144_v60  ;;  %v9143_v12 = vunpack.i.h.bf16 %v8144_v60 }
 0x628   : > { %9492 = vst [vmem:[#allocation11_spill] sm:$0xff] %v8140_v49  ;;  %v4859_v54 = vpack.i.bf16 %v8140_v49, %v8137_v27 }
 0x629   : > { %v3367_v43 = vsel %vm804_vm2, %v4788_v53, %v4802_v34  ;;  %v3368_v44 = vsel %vm804_vm2, %v4802_v34, %v4792_v15  ;;  %v3369_v25 = vsel %vm804_vm2, %v4792_v15, %v9140_v4  ;;  %v9497_v34 = vld [vmem:[#allocation96_spill] sm:$0xff]  ;;  %v3364_v15 = vsel %vm804_vm2, %v4782_v9, %v9141_v13 }
 0x62a   : > { %v8170_v51 = vmax.f32 %v7918_v32, %v3367_v43  ;;  %v8172_v10 = vpop.permute.xlu1 %4805  ;;  %4860 = vrot.lane.b32.xlu0 %v4859_v54, %s5195_s11  ;;  %v9498_v1 = vmax.f32 %v9497_v34, 0.0  ;;  %v4768_v32 = vunpack.i.h.bf16 %v8105_v5  ;;  %v8185_v43 = vmax.f32 %v7924_v11, %v3368_v44 }
 0x62b   : > { %v4796_v3 = vpop.permute.xlu0 %4795  ;;  %v4807_v34 = vunpack.i.l.bf16 %v8172_v10  ;;  %v4767_v11 = vunpack.i.l.bf16 %v8105_v5  ;;  %v3449_v44 = vmax.f32 %v7939_v23, %v3369_v25  ;;  %v3444_v25 = vmax.f32 %v7910_v21, %v3364_v15 }
 0x62c   : > { %v4798_v53 = vunpack.i.h.bf16 %v4796_v3  ;;  %v4797_v39 = vunpack.i.l.bf16 %v4796_v3  ;;  %v8181_v50 = vmax.f32 %v9498_v1, %v3120_v6  ;;  %9500 = vst [vmem:[#allocation10_spill] sm:$0xff] %v8185_v43  ;;  %v4879_v54 = vpack.i.bf16 %v8170_v51, %v8137_v27 }
 0x62d   : > { %v8239_v15 = vpack.i.bf16 %v3449_v44, %v3444_v25  ;;  %v9510_v44 = vld [vmem:[#allocation8_spill] sm:$0xff]  ;;  %v4889_v25 = vpack.i.bf16 %v8185_v43, %v8140_v49 }
 0x62e   : > { %9499 = vst [vmem:[#allocation9_spill] sm:$0xff] %v8181_v50  ;;  %v3366_v3 = vsel %vm804_vm2, %v9142_v57, %v4797_v39  ;;  %v3371_v6 = vsel %vm804_vm2, %v9143_v12, %v4798_v53  ;;  %4880 = vrot.lane.b32.xlu1 %v4879_v54, %s5196_s16  ;;  %v9502_v53 = vld [vmem:[#allocation89_spill] sm:$0xff]  ;;  %v9504_v12 = vld [vmem:[#allocation99_spill] sm:$0xff]  ;;  %4865 = vrot.lane.b32.xlu0 %v4864_v28, %s5189_s13 }
 0x62f   : > { %v8202_v1 = vmax.f32 %v7914_v30, %v3366_v3  ;;  %v8205_v4 = vmax.f32 %v7947_v33, %v3371_v6  ;;  %v8207_v9 = vpop.permute.xlu0 %4810  ;;  %v9503_v39 = vmax.f32 %v9502_v53, 0.0  ;;  %v9505_v5 = vmax.f32 %v9504_v12, 0.0  ;;  %v9507_v30 = vld [vmem:[#allocation93_spill] sm:$0xff] }
 0x630   : > { %v8209_v13 = vpop.permute.xlu1 %4825  ;;  %v9508_v23 = vmax.f32 %v9507_v30, 0.0  ;;  %v4884_v3 = vpack.i.bf16 %v8185_v43, %v8170_v51  ;;  %v4869_v54 = vpack.i.bf16 %v8181_v50, %v8166_v62  ;;  %v3373_v12 = vsel %vm804_vm2, %v4768_v32, %v4807_v34  ;;  %v9513_v50 = vld [vmem:[#allocation15_spill] sm:$0xff] }
 0x631   : > { %9501 = vst [vmem:[#allocation12_spill] sm:$0xff] %v8202_v1  ;;  %v3217_v57 = vmax.f32 %v9503_v39, %v4763_v2  ;;  %v8216_v7 = vmax.f32 %v9505_v5, %v3121_v8  ;;  %v9149_v2 = vunpack.i.h.bf16 %v8172_v10  ;;  %v4813_v8 = vunpack.i.h.bf16 %v8207_v9 }
 0x632   : > { %v8221_v33 = vmax.f32 %v9508_v23, %v3118_v38  ;;  %v4827_v28 = vunpack.i.l.bf16 %v8209_v13  ;;  %v3372_v38 = vsel %vm804_vm2, %v4767_v11, %v4768_v32  ;;  %4885 = vrot.lane.b32.xlu1 %v4884_v3, %s5195_s11  ;;  %v8243_v39 = vpack.i.bf16 %v8205_v4, %v8202_v1  ;;  %4870 = vrot.lane.b32.xlu0 %v4869_v54, %s5189_s13  ;;  %v9511_v3 = vld [vmem:[#allocation7_spill] sm:$0xff] }
 0x633   : > { %9506 = vst [vmem:[#allocation20_spill] sm:$0xff] %v8216_v7  ;;  %v4874_v6 = vpack.i.bf16 %v3217_v57, %v8153_v40  ;;  %v8234_v53 = vpop.permute.xlu0 %4815  ;;  %v4773_v32 = vunpack.i.h.bf16 %v8107_v59  ;;  %v4772_v11 = vunpack.i.l.bf16 %v8107_v59  ;;  %v8254_v23 = vmax.f32 %v9510_v44, %v3373_v12 }
 0x634   : > { %9509 = vst [vmem:[#allocation13_spill] sm:$0xff] %v8221_v33  ;;  %v8236_v21 = vpop.permute.xlu1 %4830  ;;  %v4817_v30 = vunpack.i.l.bf16 %v8234_v53  ;;  %v4894_v57 = vpack.i.bf16 %v8216_v7, %v8221_v33  ;;  %v8259_v5 = vmax.f32 %v9511_v3, %v3372_v38  ;;  %v3374_v54 = vsel %vm804_vm2, %v4807_v34, %v9149_v2 }
 0x635   : > { %v4832_v40 = vunpack.i.l.bf16 %v8236_v21  ;;  %v3377_v1 = vsel %vm804_vm2, %v4813_v8, %v4827_v28  ;;  %v9512_v7 = vunpack.i.h.bf16 %v8234_v53  ;;  %v4778_v59 = vunpack.i.h.bf16 %v8111_v46 }
 0x636   : > { %v4777_v12 = vunpack.i.l.bf16 %v8111_v46  ;;  %4890 = vrot.lane.b32.xlu1 %v4889_v25, %s5197_s8  ;;  %4875 = vrot.lane.b32.xlu0 %v4874_v6, %s5189_s13  ;;  %v3382_v46 = vsel %vm804_vm2, %v4772_v11, %v4773_v32  ;;  %v4899_v43 = vpack.i.bf16 %v8254_v23, %v8259_v5  ;;  %v3378_v25 = vsel %vm804_vm2, %v4827_v28, %v4817_v30 }
 0x637   : > { %v3379_v33 = vsel %vm804_vm2, %v4817_v30, %v9512_v7  ;;  %v3383_v49 = vsel %vm804_vm2, %v4773_v32, %v4832_v40  ;;  %v9514_v8 = vunpack.i.l.bf16 %v8207_v9  ;;  %v9515_v6 = vunpack.i.h.bf16 %v8209_v13 }
 0x638   : > { %v3459_v44 = vmax.f32 %v8014_v14, %v3379_v33  ;;  %v4821_v38 = vpop.permute.xlu0 %4820  ;;  %v8272_v3 = vpop.permute.xlu1 %4850  ;;  %v3454_v14 = vmax.f32 %v7965_v24, %v3374_v54  ;;  %v8281_v33 = vmax.f32 %v7988_v41, %v3377_v1  ;;  %v8287_v34 = vmax.f32 %v9513_v50, %v3383_v49  ;;  %v9516_v50 = vld [vmem:[#allocation6_spill] sm:$0xff] }
 0x639   : > { %v4823_v2 = vunpack.i.h.bf16 %v4821_v38  ;;  %v4822_v7 = vunpack.i.l.bf16 %v4821_v38  ;;  %v8309_v30 = vmax.f32 %v9516_v50, %v3382_v46  ;;  %v3392_v11 = vsel %vm804_vm2, %v4777_v12, %v4778_v59 }
 0x63a   : > { %4895 = vrot.lane.b32.xlu1 %v4894_v57, %s5189_s13  ;;  %v8306_v49 = vpack.i.bf16 %v3459_v44, %v3454_v14  ;;  %4900 = vrot.lane.b32.xlu0 %v4899_v43, %s5195_s11  ;;  %v4904_v54 = vpack.i.bf16 %v8281_v33, %v8259_v5  ;;  %v8331_v43 = vmax.f32 %v7888_v18, %v3392_v11  ;;  %v4852_v14 = vunpack.i.l.bf16 %v8272_v3 }
 0x63b   : > { %v3376_v38 = vsel %vm804_vm2, %v9514_v8, %v4822_v7  ;;  %v3381_v32 = vsel %vm804_vm2, %v9515_v6, %v4823_v2  ;;  %v4833_v2 = vunpack.i.h.bf16 %v8236_v21  ;;  %v4919_v8 = vpack.i.bf16 %v8287_v34, %v8309_v30  ;;  %v5120_v21 = vld [vmem:[%s8924_s5 + $0x14] ss:$8 sps:$4 sm:$0xff]  }
 0x63c   : > { %v8296_v24 = vmax.f32 %v7984_v55, %v3376_v38  ;;  %v8299_v41 = vmax.f32 %v7999_v36, %v3381_v32  ;;  %v8301_v1 = vpop.permute.xlu0 %4835  ;;  %v8303_v28 = vpop.permute.xlu1 %4855  ;;  %v8316_v36 = vmax.f32 %v7995_v35, %v3378_v25  ;;  %v9517_v38 = vunpack.i.h.bf16 %v8144_v60 }
 0x63d   : > { %v9152_v55 = vunpack.i.l.bf16 %v8303_v28  ;;  %v4838_v44 = vunpack.i.h.bf16 %v8301_v1  ;;  %v3384_v46 = vsel %vm804_vm2, %v4832_v40, %v4833_v2  ;;  %v9518_v6 = vunpack.i.h.bf16 %v8142_v19 }
 0x63e   : > { %v8322_v57 = vpack.i.bf16 %v8299_v41, %v8296_v24  ;;  %4905 = vrot.lane.b32.xlu1 %v4904_v54, %s5196_s16  ;;  %4920 = vrot.lane.b32.xlu0 %v4919_v8, %s5195_s11  ;;  %v4909_v18 = vpack.i.bf16 %v8316_v36, %v8281_v33  ;;  %v9519_v11 = vunpack.i.l.bf16 %v8118_v37  ;;  %v9520_v54 = vunpack.i.h.bf16 %v8120_v0 }
 0x63f   : > { %v3393_v12 = vsel %vm804_vm2, %v4778_v59, %v9152_v55  ;;  %v3370_v32 = vsel %vm804_vm2, %v9518_v6, %v9517_v38  ;;  %v3387_v40 = vsel %vm804_vm2, %v4838_v44, %v4852_v14  ;;  %v3464_v8 = vmax.f32 %v8027_v42, %v3384_v46 }
 0x640   : > { %v8334_v35 = vmax.f32 %v7892_v52, %v3393_v12  ;;  %v4841_v7 = vpop.permute.xlu0 %4840  ;;  %v3365_v12 = vsel %vm804_vm2, %v9520_v54, %v9519_v11  ;;  %v4853_v19 = vunpack.i.h.bf16 %v8272_v3  ;;  %v4837_v60 = vunpack.i.l.bf16 %v8301_v1  ;;  %v5115_v54 = vld [vmem:[%s8924_s5] ss:$8 sps:$4 sm:$0xff]  }
 0x641   : > { %v4843_v25 = vunpack.i.h.bf16 %v4841_v7  ;;  %v4842_v59 = vunpack.i.l.bf16 %v4841_v7  ;;  %v8365_v37 = vmax.f32 %v7943_v29, %v3370_v32  ;;  %v8368_v0 = vmax.f32 %v8071_v47, %v3387_v40 }
 0x642   : > { %v4939_v52 = vpack.i.bf16 %v8334_v35, %v8331_v43  ;;  %4910 = vrot.lane.b32.xlu1 %v4909_v18, %s5195_s11  ;;  %v4914_v42 = vpack.i.bf16 %v8316_v36, %v8254_v23  ;;  %v8383_v47 = vmax.f32 %v7898_v31, %v3365_v12  ;;  %v9522_v6 = vunpack.i.h.bf16 %v8234_v53 }
 0x643   : > { %v3389_v50 = vsel %vm804_vm2, %v4842_v59, %v4843_v25  ;;  %v9524_v40 = vunpack.i.h.bf16 %v8172_v10  ;;  %v3390_v10 = vsel %vm804_vm2, %v4843_v25, %v4853_v19 }
 0x644   : > { %v3469_v7 = vmax.f32 %v8085_v20, %v3389_v50  ;;  %v4846_v55 = vpop.permute.xlu0 %4845  ;;  %4940 = vrot.lane.b32.xlu0 %v4939_v52, %s5195_s11  ;;  %v3388_v20 = vsel %vm804_vm2, %v4852_v14, %v4842_v59  ;;  %v4924_v59 = vpack.i.bf16 %v8368_v0, %v8309_v30  ;;  %v9521_v52 = vunpack.i.h.bf16 %v8209_v13 }
 0x645   : > { %v4848_v44 = vunpack.i.h.bf16 %v4846_v55  ;;  %v4847_v38 = vunpack.i.l.bf16 %v4846_v55  ;;  %v8388_v14 = vmax.f32 %v8050_v56, %v3388_v20  ;;  %v4974_v56 = vpack.i.bf16 %v8205_v4, %v8365_v37  ;;  %v5135_v20 = vld [vmem:[%s8924_s5 + $0x64] ss:$8 sps:$4 sm:$0xff]  }
 0x646   : > { %v8375_v1 = vpack.i.bf16 %v3469_v7, %v3464_v8  ;;  %4915 = vrot.lane.b32.xlu1 %v4914_v42, %s5197_s8  ;;  %v3380_v32 = vsel %vm804_vm2, %v9522_v6, %v9521_v52  ;;  %v9523_v4 = vunpack.i.l.bf16 %v8207_v9  ;;  %v5121_v8 = vld [vmem:[%s8924_s5 + $0x20] ss:$8 sps:$4 sm:$0xff]   ;;  %v5126_v7 = vld [vmem:[%s8924_s5 + $0x34] ss:$8 sps:$4 sm:$0xff]   ;;  %v5130_v42 = vld [vmem:[%s8924_s5 + $0x50] ss:$8 sps:$4 sm:$0xff]  }
 0x647   : > { %v3386_v46 = vsel %vm804_vm2, %v4837_v60, %v4847_v38  ;;  %v3391_v3 = vsel %vm804_vm2, %v4853_v19, %v4848_v44  ;;  %v4929_v31 = vpack.i.bf16 %v8388_v14, %v8368_v0  ;;  %v8421_v11 = vmax.f32 %v8018_v26, %v3380_v32  ;;  %v5124_v19 = vld [vmem:[%s8924_s5 + $0x30] ss:$8 sps:$4 sm:$0xff]   ;;  %v5127_v44 = vld [vmem:[%s8924_s5 + $0x40] ss:$8 sps:$4 sm:$0xff]   ;;  %v5132_v38 = vld [vmem:[%s8924_s5 + $0x54] ss:$8 sps:$4 sm:$0xff]  }
 0x648   : > { %v8378_v55 = vmax.f32 %v8067_v16, %v3386_v46  ;;  %v3471_v29 = vmax.f32 %v8054_v48, %v3391_v3  ;;  %4965 = vrot.lane.b32.xlu0 %v8239_v15, %s5195_s11  ;;  %v4969_v48 = vpack.i.bf16 %v8365_v37, %v8383_v47  ;;  %v4934_v16 = vpack.i.bf16 %v8388_v14, %v8287_v34  ;;  %v5133_v46 = vld [vmem:[%s8924_s5 + $0x60] ss:$8 sps:$4 sm:$0xff]   ;;  %v5138_v3 = vld [vmem:[%s8924_s5 + $0x74] ss:$8 sps:$4 sm:$0xff]   ;;  %v5142_v6 = vld [vmem:[%s8924_s5 + $0x90] ss:$8 sps:$4 sm:$0xff]  }
 0x649   : > { %v3375_v50 = vsel %vm804_vm2, %v9524_v40, %v9523_v4  ;;  %v5004_v9 = vpack.i.bf16 %v8299_v41, %v8421_v11  ;;  %v8441_v26 = vmax.f32 %v8089_v61, %v3390_v10  ;;  %v5117_v41 = vld [vmem:[%s8924_s5 + $0x4] ss:$8 sps:$4 sm:$0xff]   ;;  %v5144_v32 = vld [vmem:[%s8924_s5 + $0x94] ss:$8 sps:$4 sm:$0xff]   ;;  %v4858_v4 = vunpack.i.h.bf16 %v8303_v28 }
 0x64a   : > { %v8393_v18 = vpack.i.bf16 %v3471_v29, %v8378_v55  ;;  %4925 = vrot.lane.b32.xlu1 %v4924_v59, %s5196_s16  ;;  %v8424_v13 = vmax.f32 %v7953_v22, %v3375_v50  ;;  %v3385_v22 = vsel %vm804_vm2, %v4833_v2, %v4837_v60  ;;  %4124 = vmatprep.subr.bf16.mxu1 %v5117_v41  ;;  %v5118_v2 = vld [vmem:[%s8924_s5 + $0x10] ss:$8 sps:$4 sm:$0xff]   ;;  %v5129_v60 = vld [vmem:[%s8924_s5 + $0x44] ss:$8 sps:$4 sm:$0xff]  }
 0x64b   : > { %v8450_v25 = vmax.f32 %v8008_v17, %v3385_v22  ;;  %4125 = vmatpush1.bf16.msra.mxu1 %v5115_v54  ;;  %v5123_v17 = vld [vmem:[%s8924_s5 + $0x24] ss:$8 sps:$4 sm:$0xff]   ;;  %v5034_v12 = vpack.i.bf16 %v3471_v29, %v8441_v26  ;;  %v5136_v29 = vld [vmem:[%s8924_s5 + $0x70] ss:$8 sps:$4 sm:$0xff]   ;;  %v5145_v54 = vld [vmem:[%s8924_s5 + $0xa0] ss:$8 sps:$4 sm:$0xff]  }
 0x64c   : > { %4970 = vrot.lane.b32.xlu0 %v4969_v48, %s5197_s8  ;;  %v4999_v53 = vpack.i.bf16 %v8421_v11, %v8424_v13  ;;  %4126 = vmatprep.subr.bf16.mxu1 %v5120_v21  ;;  %v5141_v59 = vld [vmem:[%s8924_s5 + $0x84] ss:$8 sps:$4 sm:$0xff]   ;;  %v5139_v48 = vld [vmem:[%s8924_s5 + $0x80] ss:$8 sps:$4 sm:$0xff]  }
 0x64d   : > { %v5029_v61 = vpack.i.bf16 %v8441_v26, %v8450_v25 }
 0x64e   : > { %4930 = vrot.lane.b32.xlu1 %v4929_v31, %s5195_s11 }
 0x64f   : > { %4127 = vmatpush1.bf16.msra.mxu1 %v5118_v2 }
 0x650   : > { %4975 = vrot.lane.b32.xlu0 %v4974_v56, %s5196_s16  ;;  %4128 = vmatprep.subr.bf16.mxu1 %v5123_v17 }
 0x652   : > { %4935 = vrot.lane.b32.xlu1 %v4934_v16, %s5197_s8 }
 0x653   : > { %4129 = vmatpush1.bf16.msra.mxu1 %v5121_v8 }
 0x654   : > { %4980 = vrot.lane.b32.xlu0 %v8243_v39, %s5195_s11  ;;  %4130 = vmatprep.subr.bf16.mxu1 %v5126_v7 }
 0x657   : > { %4131 = vmatpush1.bf16.msra.mxu1 %v5124_v19 }
 0x658   : > { %4995 = vrot.lane.b32.xlu0 %v8306_v49, %s5195_s11  ;;  %4132 = vmatprep.subr.bf16.mxu1 %v5129_v60 }
 0x65b   : > { %4133 = vmatpush1.bf16.msra.mxu1 %v5127_v44 }
 0x65c   : > { %5000 = vrot.lane.b32.xlu0 %v4999_v53, %s5197_s8  ;;  %4134 = vmatprep.subr.bf16.mxu1 %v5132_v38  ;;  %v5147_v53 = vld [vmem:[%s8924_s5 + $0xa4] ss:$8 sps:$4 sm:$0xff]  }
 0x65f   : > { %4135 = vmatpush1.bf16.msra.mxu1 %v5130_v42 }
 0x660   : > { %5005 = vrot.lane.b32.xlu0 %v5004_v9, %s5196_s16  ;;  %4136 = vmatprep.subr.bf16.mxu1 %v5135_v20 }
 0x663   : > { %4137 = vmatpush1.bf16.msra.mxu1 %v5133_v46 }
 0x664   : > { %5010 = vrot.lane.b32.xlu0 %v8322_v57, %s5195_s11  ;;  %4138 = vmatprep.subr.bf16.mxu1 %v5138_v3 }
 0x667   : > { %4139 = vmatpush1.bf16.msra.mxu1 %v5136_v29 }
 0x668   : > { %5025 = vrot.lane.b32.xlu0 %v8375_v1, %s5195_s11  ;;  %4140 = vmatprep.subr.bf16.mxu1 %v5141_v59  ;;  %v5150_v59 = vld [vmem:[%s8924_s5 + $0xb4] ss:$8 sps:$4 sm:$0xff]  }
 0x66b   : > { %4141 = vmatpush1.bf16.msra.mxu1 %v5139_v48 }
 0x66c   : > { %5030 = vrot.lane.b32.xlu0 %v5029_v61, %s5197_s8  ;;  %4142 = vmatprep.subr.bf16.mxu1 %v5144_v32  ;;  %v9525_v61 = vunpack.i.l.bf16 %v8303_v28 }
 0x66e   : > { %v3394_v2 = vsel %vm804_vm2, %v9525_v61, %v4858_v4 }
 0x66f   : > { %4143 = vmatpush1.bf16.msra.mxu1 %v5142_v6  ;;  %v3474_v44 = vmax.f32 %v8079_v58, %v3394_v2 }
 0x670   : > { %5035 = vrot.lane.b32.xlu0 %v5034_v12, %s5196_s16  ;;  %4144 = vmatprep.subr.bf16.mxu1 %v5147_v53  ;;  %v5151_v53 = vld [vmem:[%s8924_s5 + $0xc0] ss:$8 sps:$4 sm:$0xff]  }
 0x673   : > { %4145 = vmatpush1.bf16.msra.mxu1 %v5145_v54 }
 0x674   : > { %5040 = vrot.lane.b32.xlu0 %v8393_v18, %s5195_s11  ;;  %4146 = vmatprep.subr.bf16.mxu1 %v5150_v59  ;;  %v5160_v59 = vld [vmem:[%s8924_s5 + $0xf0] ss:$8 sps:$4 sm:$0xff]  }
 0x69c   : > { %v4861_v31 = vpop.permute.xlu0 %4860 }
 0x69d   : > { %v4863_v56 = vunpack.i.h.bf16 %v4861_v31  ;;  %v4862_v16 = vunpack.i.l.bf16 %v4861_v31 }
 0x69f   : > { %v3555_v9 = vsel %vm3554_vm9, %v4862_v16, %v4863_v56 }
 0x6a0   : > { %v4881_v52 = vpop.permute.xlu1 %4880  ;;  %v8516_v50 = vpop.permute.xlu0 %4865 }
 0x6a1   : > { %v4882_v40 = vunpack.i.l.bf16 %v4881_v52  ;;  %v4883_v10 = vunpack.i.h.bf16 %v4881_v52  ;;  %v4867_v20 = vunpack.i.l.bf16 %v8516_v50 }
 0x6a3   : > { %v3789_v22 = vsel %vm3788_vm10, %v8137_v27, %v4882_v40  ;;  %v3790_v27 = vsel %vm3788_vm10, %v8170_v51, %v4883_v10  ;;  %v5148_v51 = vld [vmem:[%s8924_s5 + $0xb0] ss:$8 sps:$4 sm:$0xff]   ;;  %v3395_v52 = vsel %vm804_vm2, %v4858_v4, %v4867_v20 }
 0x6a4   : > { %v4886_v41 = vpop.permute.xlu1 %4885  ;;  %v3798_v21 = vsel %vm3797_vm11, %v3789_v22, %v3555_v9  ;;  %v4871_v8 = vpop.permute.xlu0 %4870  ;;  %4147 = vmatpush1.bf16.msra.mxu1 %v5148_v51  ;;  %v5153_v9 = vld [vmem:[%s8924_s5 + $0xc4] ss:$8 sps:$4 sm:$0xff]   ;;  %v8565_v54 = vmax.f32 %v8063_v63, %v3395_v52  ;;  %v9528_v63 = vld [vmem:[#allocation20_spill] sm:$0xff] }
 0x6a5   : > { %v4888_v17 = vunpack.i.h.bf16 %v4886_v41  ;;  %v4887_v12 = vunpack.i.l.bf16 %v4886_v41  ;;  %v4873_v7 = vunpack.i.h.bf16 %v4871_v8  ;;  %v4872_v19 = vunpack.i.l.bf16 %v4871_v8  ;;  %4148 = vmatprep.subr.bf16.mxu1 %v5153_v9  ;;  %v9527_v8 = vld [vmem:[#allocation13_spill] sm:$0xff] }
 0x6a7   : > { %v3556_v60 = vsel %vm3554_vm9, %v4887_v12, %v4888_v17  ;;  %v3399_v38 = vsel %vm804_vm2, %v4872_v19, %v4873_v7  ;;  %v5154_v17 = vld [vmem:[%s8924_s5 + $0xd0] ss:$8 sps:$4 sm:$0xff]   ;;  %v5156_v12 = vld [vmem:[%s8924_s5 + $0xd4] ss:$8 sps:$4 sm:$0xff]  }
 0x6a8   : > { %v4891_v42 = vpop.permute.xlu1 %4890  ;;  %v3799_v28 = vsel %vm3797_vm11, %v3790_v27, %v3556_v60  ;;  %v3479_v46 = vmax.f32 %v8166_v62, %v3399_v38  ;;  %v4876_v58 = vpop.permute.xlu0 %4875  ;;  %v4868_v62 = vunpack.i.h.bf16 %v8516_v50  ;;  %4149 = vmatpush1.bf16.msra.mxu1 %v5151_v53 }
 0x6a9   : > { %v4893_v3 = vunpack.i.h.bf16 %v4891_v42  ;;  %v4892_v29 = vunpack.i.l.bf16 %v4891_v42  ;;  %v4878_v6 = vunpack.i.h.bf16 %v4876_v58  ;;  %v4877_v2 = vunpack.i.l.bf16 %v4876_v58  ;;  %4150 = vmatprep.subr.bf16.mxu1 %v5156_v12  ;;  %v9529_v42 = vld [vmem:[#allocation18_spill] sm:$0xff]  ;;  %v5162_v58 = vld [vmem:[%s8924_s5 + $0xf4] ss:$8 sps:$4 sm:$0xff]  }
 0x6aa   : > { %v5059_v56 = vpack.i.bf16 %v3479_v46, %v3474_v44  ;;  %v5157_v46 = vld [vmem:[%s8924_s5 + $0xe0] ss:$8 sps:$4 sm:$0xff]  }
 0x6ab   : > { %v8546_v48 = vsel %vm1368_vm5, %v3798_v21, %v4892_v29  ;;  %v8549_v31 = vsel %vm1368_vm5, %v3799_v28, %v4893_v3  ;;  %v9526_v21 = vld [vmem:[#allocation9_spill] sm:$0xff]  ;;  %v3396_v60 = vsel %vm804_vm2, %v4867_v20, %v4877_v2  ;;  %v5159_v20 = vld [vmem:[%s8924_s5 + $0xe4] ss:$8 sps:$4 sm:$0xff]   ;;  %v9530_v3 = vld [vmem:[#allocation12_spill] sm:$0xff] }
 0x6ac   : > { %v4896_v16 = vpop.permute.xlu1 %4895  ;;  %5060 = vrot.lane.b32.xlu0 %v5059_v56, %s5195_s11  ;;  %4151 = vmatpush1.bf16.msra.mxu1 %v5154_v17  ;;  %v3476_v28 = vmax.f32 %v9529_v42, %v3396_v60  ;;  %v4954_v29 = vpack.i.bf16 %v9530_v3, %v8383_v47 }
 0x6ad   : > { %v4898_v32 = vunpack.i.h.bf16 %v4896_v16  ;;  %v4897_v40 = vunpack.i.l.bf16 %v4896_v16  ;;  %4152 = vmatprep.subr.bf16.mxu1 %v5159_v20  ;;  %v4984_v16 = vpack.i.bf16 %v8296_v24, %v8424_v13  ;;  %v9531_v20 = vld [vmem:[#allocation10_spill] sm:$0xff] }
 0x6ae   : > { %v3815_v3 = vsel %vm3723_vm12, %v8549_v31, %v9531_v20 }
 0x6af   : > { %v3397_v10 = vsel %vm804_vm2, %v4868_v62, %v4897_v40  ;;  %v3398_v50 = vsel %vm804_vm2, %v4897_v40, %v4872_v19  ;;  %v3400_v22 = vsel %vm804_vm2, %v4873_v7, %v4898_v32  ;;  %v3401_v4 = vsel %vm804_vm2, %v4898_v32, %v4878_v6  ;;  %v5165_v62 = vld [vmem:[%s8924_s5 + $0x104] ss:$8 sps:$4 sm:$0xff]  }
 0x6b0   : > { %v8568_v41 = vmax.f32 %v8131_v45, %v3397_v10  ;;  %v8571_v61 = vmax.f32 %v9526_v21, %v3400_v22  ;;  %v8580_v7 = vmax.f32 %v9527_v8, %v3398_v50  ;;  %v3481_v19 = vmax.f32 %v9528_v63, %v3401_v4  ;;  %4153 = vmatpush1.bf16.msra.mxu1 %v5157_v46 }
 0x6b1   : > { %4154 = vmatprep.subr.bf16.mxu1 %v5162_v58  ;;  %v9532_v58 = vld [vmem:[#allocation11_spill] sm:$0xff]  ;;  %vm3875_vm2 = vcmask 64512  }
 0x6b2   : > { %v4944_v45 = vpack.i.bf16 %v8568_v41, %v8331_v43  ;;  %v5064_v27 = vpack.i.bf16 %v8571_v61, %v8565_v54  ;;  %v4949_v44 = vpack.i.bf16 %v8580_v7, %v8568_v41  ;;  %v5069_v38 = vpack.i.bf16 %v3481_v19, %v8571_v61 }
 0x6b3   : > { %v5074_v51 = vpack.i.bf16 %v3481_v19, %v3476_v28  ;;  %v5054_v24 = vpack.i.bf16 %v8580_v7, %v8334_v35 }
 0x6b4   : > { %4945 = vrot.lane.b32.xlu1 %v4944_v45, %s5196_s16  ;;  %5065 = vrot.lane.b32.xlu0 %v5064_v27, %s5197_s8 }
 0x6b5   : > { %4155 = vmatpush1.bf16.msra.mxu1 %v5160_v59 }
 0x6b6   : > { %4197 = vmatprep.subr.bf16.mxu1 %v5165_v62  ;;  %v3814_v62 = vsel %vm3723_vm12, %v8546_v48, %v9532_v58 }
 0x6b8   : > { %4950 = vrot.lane.b32.xlu1 %v4949_v44, %s5195_s11  ;;  %5070 = vrot.lane.b32.xlu0 %v5069_v38, %s5196_s16 }
 0x6bc   : > { %4955 = vrot.lane.b32.xlu1 %v4954_v29, %s5196_s16  ;;  %5075 = vrot.lane.b32.xlu0 %v5074_v51, %s5195_s11 }
 0x6c0   : > { %4960 = vrot.lane.b32.xlu1 %v8239_v15, %s5196_s16  ;;  %5085 = vrot.lane.b32.xlu0 %v8322_v57, %s5197_s8  ;;  %v5014_v15 = vpack.i.bf16 %v8378_v55, %v8450_v25  ;;  %v5044_v57 = vpack.i.bf16 %v3476_v28, %v8565_v54 }
 0x6c4   : > { %4985 = vrot.lane.b32.xlu1 %v4984_v16, %s5196_s16  ;;  %5095 = vrot.lane.b32.xlu0 %v5074_v51, %s5197_s8 }
 0x6c8   : > { %4990 = vrot.lane.b32.xlu1 %v8306_v49, %s5196_s16  ;;  %v4901_v49 = vpop.permute.xlu0 %4900 }
 0x6c9   : > { %v4903_v8 = vunpack.i.h.bf16 %v4901_v49  ;;  %v4902_v63 = vunpack.i.l.bf16 %v4901_v49 }
 0x6cb   : > { %v3557_v29 = vsel %vm3554_vm9, %v4902_v63, %v4903_v8 }
 0x6cc   : > { %5015 = vrot.lane.b32.xlu1 %v5014_v15, %s5196_s16  ;;  %v4921_v55 = vpop.permute.xlu0 %4920 }
 0x6cd   : > { %v4923_v45 = vunpack.i.h.bf16 %v4921_v55  ;;  %v4922_v27 = vunpack.i.l.bf16 %v4921_v55 }
 0x6cf   : > { %v3559_v16 = vsel %vm3554_vm9, %v4922_v27, %v4923_v45 }
 0x6d0   : > { %5020 = vrot.lane.b32.xlu1 %v8375_v1, %s5196_s16  ;;  %v4941_v1 = vpop.permute.xlu0 %4940 }
 0x6d1   : > { %v4943_v51 = vunpack.i.h.bf16 %v4941_v1  ;;  %v4942_v59 = vunpack.i.l.bf16 %v4941_v1 }
 0x6d3   : > { %v8682_v48 = vsel %vm3554_vm9, %v4942_v59, %v4943_v51 }
 0x6d4   : > { %5045 = vrot.lane.b32.xlu1 %v5044_v57, %s5196_s16  ;;  %v8640_v52 = vpop.permute.xlu0 %4965 }
 0x6d5   : > { %v4967_v8 = vunpack.i.l.bf16 %v8640_v52 }
 0x6d8   : > { %5050 = vrot.lane.b32.xlu1 %v5059_v56, %s5196_s16  ;;  %v8642_v6 = vpop.permute.xlu0 %4970  ;;  %v4906_v56 = vpop.permute.xlu1 %4905 }
 0x6d9   : > { %v4907_v17 = vunpack.i.l.bf16 %v4906_v56  ;;  %v4908_v19 = vunpack.i.h.bf16 %v4906_v56  ;;  %v4973_v45 = vunpack.i.h.bf16 %v8642_v6 }
 0x6db   : > { %v3791_v38 = vsel %vm3788_vm10, %v8259_v5, %v4907_v17  ;;  %v3792_v5 = vsel %vm3788_vm10, %v8281_v33, %v4908_v19  ;;  %v4968_v17 = vunpack.i.h.bf16 %v8640_v52  ;;  %v4972_v52 = vunpack.i.l.bf16 %v8642_v6 }
 0x6dc   : > { %5055 = vrot.lane.b32.xlu1 %v5054_v24, %s5197_s8  ;;  %v8644_v32 = vpop.permute.xlu0 %4975  ;;  %v4911_v53 = vpop.permute.xlu1 %4910  ;;  %v3800_v24 = vsel %vm3797_vm11, %v3791_v38, %v3557_v29 }
 0x6dd   : > { %v4913_v60 = vunpack.i.h.bf16 %v4911_v53  ;;  %v4912_v44 = vunpack.i.l.bf16 %v4911_v53  ;;  %v4978_v63 = vunpack.i.h.bf16 %v8644_v32  ;;  %v4977_v19 = vunpack.i.l.bf16 %v8644_v32 }
 0x6df   : > { %v3558_v15 = vsel %vm3554_vm9, %v4912_v44, %v4913_v60  ;;  %v3725_v29 = vsel %vm3723_vm12, %v4977_v19, %v4978_v63 }
 0x6e0   : > { %5080 = vrot.lane.b32.xlu1 %v8243_v39, %s5197_s8  ;;  %v8646_v40 = vpop.permute.xlu0 %4980  ;;  %v4916_v10 = vpop.permute.xlu1 %4915  ;;  %v3801_v33 = vsel %vm3797_vm11, %v3792_v5, %v3558_v15 }
 0x6e1   : > { %v4917_v42 = vunpack.i.l.bf16 %v4916_v10  ;;  %v4918_v57 = vunpack.i.h.bf16 %v4916_v10 }
 0x6e3   : > { %v3808_v31 = vsel %vm1368_vm5, %v3800_v24, %v4917_v42  ;;  %v3809_v10 = vsel %vm1368_vm5, %v3801_v33, %v4918_v57 }
 0x6e4   : > { %5090 = vrot.lane.b32.xlu1 %v8393_v18, %s5197_s8  ;;  %v8648_v9 = vpop.permute.xlu0 %4995  ;;  %v4926_v50 = vpop.permute.xlu1 %4925  ;;  %v8697_v27 = vsel %vm3723_vm12, %v3808_v31, %v8254_v23 }
 0x6e5   : > { %v4927_v49 = vunpack.i.l.bf16 %v4926_v50  ;;  %v4928_v55 = vunpack.i.h.bf16 %v4926_v50 }
 0x6e7   : > { %v3794_v60 = vsel %vm3788_vm10, %v8368_v0, %v4928_v55  ;;  %v4983_v55 = vunpack.i.h.bf16 %v8646_v40 }
 0x6e8   : > { %v8650_v39 = vpop.permute.xlu0 %5000  ;;  %v4931_v18 = vpop.permute.xlu1 %4930 }
 0x6e9   : > { %v4933_v1 = vunpack.i.h.bf16 %v4931_v18  ;;  %v4932_v56 = vunpack.i.l.bf16 %v4931_v18  ;;  %v3793_v18 = vsel %vm3788_vm10, %v8309_v30, %v4927_v49 }
 0x6ea   : > { %v3802_v23 = vsel %vm3797_vm11, %v3793_v18, %v3559_v16  ;;  %v4997_v18 = vunpack.i.l.bf16 %v8648_v9 }
 0x6eb   : > { %v3560_v44 = vsel %vm3554_vm9, %v4932_v56, %v4933_v1  ;;  %v4998_v1 = vunpack.i.h.bf16 %v8648_v9  ;;  %v5163_v9 = vld [vmem:[%s8924_s5 + $0x100] ss:$8 sps:$4 sm:$0xff]  }
 0x6ec   : > { %v8652_v22 = vpop.permute.xlu0 %5005  ;;  %v8656_v21 = vpop.permute.xlu1 %4935  ;;  %v3803_v15 = vsel %vm3797_vm11, %v3794_v60, %v3560_v44 }
 0x6ed   : > { %v4938_v38 = vunpack.i.h.bf16 %v8656_v21  ;;  %v4937_v30 = vunpack.i.l.bf16 %v8656_v21 }
 0x6ef   : > { %v3810_v31 = vsel %vm1368_vm5, %v3802_v23, %v4937_v30  ;;  %v5003_v30 = vunpack.i.h.bf16 %v8650_v39  ;;  %v5168_v23 = vld [vmem:[%s8924_s5 + $0x114] ss:$8 sps:$4 sm:$0xff]  }
 0x6f0   : > { %v8654_v4 = vpop.permute.xlu0 %5010 }
 0x6f4   : > { %v8658_v2 = vpop.permute.xlu0 %5025 }
 0x6f8   : > { %v8664_v28 = vpop.permute.xlu0 %5030 }
 0x6fc   : > { %v8690_v50 = vpop.permute.xlu0 %5035 }
 0x700   : > { %v8712_v57 = vpop.permute.xlu0 %5040 }
 0x726   : > { %v8660_v12 = vpop.permute.xlu1 %4945 }
 0x72a   : > { %v8666_v46 = vpop.permute.xlu1 %4950 }
 0x72e   : > { %v4956_v53 = vpop.permute.xlu1 %4955 }
 0x72f   : > { %v4958_v51 = vunpack.i.h.bf16 %v4956_v53  ;;  %v4957_v59 = vunpack.i.l.bf16 %v4956_v53 }
 0x731   : > { %v3724_v56 = vsel %vm3723_vm12, %v4957_v59, %v4958_v51 }
 0x732   : > { %v4961_v32 = vpop.permute.xlu1 %4960 }
 0x733   : > { %v4963_v42 = vunpack.i.h.bf16 %v4961_v32  ;;  %v4962_v20 = vunpack.i.l.bf16 %v4961_v32 }
 0x735   : > { %v3824_v0 = vsel %vm3822_vm13, %v3815_v3, %v4963_v42  ;;  %v3833_v6 = vsel %vm3831_vm14, %v4963_v42, %v4968_v17  ;;  %v3823_v58 = vsel %vm3822_vm13, %v3814_v62, %v4962_v20  ;;  %v3832_v5 = vsel %vm3831_vm14, %v4962_v20, %v4967_v8 }
 0x736   : > { %v3842_v21 = vsel %vm3840_vm15, %v3833_v6, %v4973_v45  ;;  %v3841_v24 = vsel %vm3840_vm15, %v3832_v5, %v4972_v52  ;;  %v3884_v49 = vpack.c.bf16 %v3824_v0, %v3823_v58  ;;  %v4986_v16 = vpop.permute.xlu1 %4985  ;;  %v3811_v3 = vsel %vm1368_vm5, %v3803_v15, %v4938_v38  ;;  %v8731_v45 = vpop.permute.xlu0 %5060 }
 0x737   : > { %v4982_v62 = vunpack.i.l.bf16 %v8646_v40  ;;  %v3849_v53 = vsel %vm3554_vm9, %v3841_v24, %v8383_v47  ;;  %v3850_v33 = vsel %vm3554_vm9, %v3842_v21, %v8365_v37  ;;  %v5008_v17 = vunpack.i.h.bf16 %v8652_v22 }
 0x738   : > { %v5007_v8 = vunpack.i.l.bf16 %v8652_v22  ;;  %v3858_v63 = vsel %vm3857_vm0, %v3849_v53, %v3724_v56  ;;  %v3859_v19 = vsel %vm3857_vm0, %v3850_v33, %v3725_v29  ;;  %v4988_v60 = vunpack.i.h.bf16 %v4986_v16 }
 0x739   : > { %v3867_v47 = vsel %vm3866_vm1, %v3858_v63, %v4982_v62  ;;  %v3868_v37 = vsel %vm3866_vm1, %v3859_v19, %v4983_v55  ;;  %v4987_v44 = vunpack.i.l.bf16 %v4986_v16  ;;  %v5002_v42 = vunpack.i.l.bf16 %v8650_v39  ;;  %v5166_v16 = vld [vmem:[%s8924_s5 + $0x110] ss:$8 sps:$4 sm:$0xff]  }
 0x73a   : > { %v4991_v52 = vpop.permute.xlu1 %4990  ;;  %v3885_v38 = vpack.c.bf16 %v3868_v37, %v3867_v47  ;;  %v3817_v20 = vsel %vm3723_vm12, %v3809_v10, %v8316_v36  ;;  %v8748_v29 = vsel %vm3723_vm12, %v3810_v31, %v8287_v34  ;;  %v3727_v51 = vsel %vm3723_vm12, %v5007_v8, %v5008_v17  ;;  %v8760_v34 = vpop.permute.xlu0 %5065 }
 0x73b   : > { %v4993_v22 = vunpack.i.h.bf16 %v4991_v52  ;;  %v4992_v32 = vunpack.i.l.bf16 %v4991_v52  ;;  %v3819_v39 = vsel %vm3723_vm12, %v3811_v3, %v8388_v14  ;;  %v5013_v36 = vunpack.i.h.bf16 %v8654_v4 }
 0x73c   : > { %4156 = vmatprep.mubr.bf16.mxu1 %v3885_v38  ;;  %v5012_v10 = vunpack.i.l.bf16 %v8654_v4  ;;  %v5028_v15 = vunpack.i.h.bf16 %v8658_v2  ;;  %v3726_v21 = vsel %vm3723_vm12, %v4987_v44, %v4988_v60  ;;  %v5038_v31 = vunpack.i.h.bf16 %v8690_v50 }
 0x73d   : > { %v3835_v59 = vsel %vm3831_vm14, %v4993_v22, %v4998_v1  ;;  %v3834_v0 = vsel %vm3831_vm14, %v4992_v32, %v4997_v18  ;;  %4157 = vmatmul.mubr.bf16.vlgmr.msra.gmra.mrb[16].mxu1 %v3884_v49  ;;  %v5037_v49 = vunpack.i.l.bf16 %v8690_v50  ;;  %v3825_v56 = vsel %vm3822_vm13, %v8697_v27, %v4992_v32 }
 0x73e   : > { %v3844_v6 = vsel %vm3840_vm15, %v3835_v59, %v5003_v30  ;;  %v3843_v58 = vsel %vm3840_vm15, %v3834_v0, %v5002_v42  ;;  %v5016_v5 = vpop.permute.xlu1 %5015  ;;  %4198 = vmatpush1.bf16.msra.mxu1 %v5163_v9  ;;  %v3826_v53 = vsel %vm3822_vm13, %v3817_v20, %v4993_v22  ;;  %v5027_v50 = vunpack.i.l.bf16 %v8658_v2  ;;  %v5071_v44 = vpop.permute.xlu0 %5070 }
 0x73f   : > { %v3851_v14 = vsel %vm3554_vm9, %v3843_v58, %v8424_v13  ;;  %v3852_v24 = vsel %vm3554_vm9, %v3844_v6, %v8421_v11  ;;  %4199 = vmatprep.subr.bf16.mxu1 %v5168_v23  ;;  %v5033_v33 = vunpack.i.h.bf16 %v8664_v28  ;;  %v5032_v17 = vunpack.i.l.bf16 %v8664_v28 }
 0x740   : > { %v3860_v3 = vsel %vm3857_vm0, %v3851_v14, %v3726_v21  ;;  %v3861_v1 = vsel %vm3857_vm0, %v3852_v24, %v3727_v51  ;;  %v5018_v19 = vunpack.i.h.bf16 %v5016_v5  ;;  %v5017_v18 = vunpack.i.l.bf16 %v5016_v5 }
 0x741   : > { %v3869_v13 = vsel %vm3866_vm1, %v3860_v3, %v5012_v10  ;;  %v3870_v11 = vsel %vm3866_vm1, %v3861_v1, %v5013_v36  ;;  %v3729_v47 = vsel %vm3723_vm12, %v5037_v49, %v5038_v31  ;;  %v5043_v37 = vunpack.i.h.bf16 %v8712_v57 }
 0x742   : > { %v5021_v8 = vpop.permute.xlu1 %5020  ;;  %v3888_v63 = vpack.c.bf16 %v3870_v11, %v3869_v13  ;;  %4200 = vmatpush1.bf16.msra.mxu1 %v5166_v16  ;;  %v5042_v27 = vunpack.i.l.bf16 %v8712_v57  ;;  %v3887_v2 = vpack.c.bf16 %v3826_v53, %v3825_v56  ;;  %v5063_v22 = vunpack.i.h.bf16 %v8731_v45  ;;  %v8818_v24 = vpop.permute.xlu0 %5075 }
 0x743   : > { %v5023_v60 = vunpack.i.h.bf16 %v5021_v8  ;;  %v5022_v52 = vunpack.i.l.bf16 %v5021_v8  ;;  %v4948_v28 = vunpack.i.h.bf16 %v8660_v12  ;;  %v4947_v9 = vunpack.i.l.bf16 %v8660_v12 }
 0x744   : > { %4166 = vmatprep.mubr.bf16.mxu1 %v3888_v63  ;;  %v4953_v30 = vunpack.i.h.bf16 %v8666_v46  ;;  %v4952_v51 = vunpack.i.l.bf16 %v8666_v46  ;;  %v3728_v59 = vsel %vm3723_vm12, %v5017_v18, %v5018_v19  ;;  %v5073_v58 = vunpack.i.h.bf16 %v5071_v44 }
 0x745   : > { %v3837_v32 = vsel %vm3831_vm14, %v5023_v60, %v5028_v15  ;;  %v3836_v38 = vsel %vm3831_vm14, %v5022_v52, %v5027_v50  ;;  %4167 = vmatmul.mubr.bf16.gmra.mrb[20].mxu1 %v3887_v2  ;;  %v5072_v12 = vunpack.i.l.bf16 %v5071_v44  ;;  %v3828_v14 = vsel %vm3822_vm13, %v3819_v39, %v5023_v60 }
 0x746   : > { %v3846_v42 = vsel %vm3840_vm15, %v3837_v32, %v5033_v33  ;;  %v3845_v20 = vsel %vm3840_vm15, %v3836_v38, %v5032_v17  ;;  %v5046_v23 = vpop.permute.xlu1 %5045  ;;  %v5068_v1 = vunpack.i.h.bf16 %v8760_v34  ;;  %v5067_v13 = vunpack.i.l.bf16 %v8760_v34 }
 0x747   : > { %v3853_v0 = vsel %vm3554_vm9, %v3845_v20, %v8450_v25  ;;  %v3854_v6 = vsel %vm3554_vm9, %v3846_v42, %v8441_v26  ;;  %v3827_v25 = vsel %vm3822_vm13, %v8748_v29, %v5022_v52  ;;  %v5062_v26 = vunpack.i.l.bf16 %v8731_v45 }
 0x748   : > { %v3862_v5 = vsel %vm3857_vm0, %v3853_v0, %v3728_v59  ;;  %v3863_v15 = vsel %vm3857_vm0, %v3854_v6, %v3729_v47  ;;  %v5048_v16 = vunpack.i.h.bf16 %v5046_v23  ;;  %v5047_v31 = vunpack.i.l.bf16 %v5046_v23 }
 0x749   : > { %v3871_v21 = vsel %vm3866_vm1, %v3862_v5, %v5042_v27  ;;  %v3872_v46 = vsel %vm3866_vm1, %v3863_v15, %v5043_v37  ;;  %v3796_v53 = vsel %vm3788_vm10, %v8568_v41, %v4948_v28  ;;  %v3795_v29 = vsel %vm3788_vm10, %v8331_v43, %v4947_v9 }
 0x74a   : > { %v5051_v49 = vpop.permute.xlu1 %5050  ;;  %v3891_v3 = vpack.c.bf16 %v3872_v46, %v3871_v21  ;;  %v3562_v45 = vsel %vm3554_vm9, %v4952_v51, %v4953_v30  ;;  %v3890_v39 = vpack.c.bf16 %v3828_v14, %v3827_v25  ;;  %v3731_v50 = vsel %vm3723_vm12, %v5072_v12, %v5073_v58 }
 0x74b   : > { %v5053_v11 = vunpack.i.h.bf16 %v5051_v49  ;;  %v5052_v56 = vunpack.i.l.bf16 %v5051_v49  ;;  %v5078_v33 = vunpack.i.h.bf16 %v8818_v24  ;;  %v5077_v8 = vunpack.i.l.bf16 %v8818_v24 }
 0x74c   : > { %4176 = vmatprep.mubr.bf16.mxu1 %v3891_v3  ;;  %v3730_v63 = vsel %vm3723_vm12, %v5047_v31, %v5048_v16  ;;  %v3804_v44 = vsel %vm3797_vm11, %v3795_v29, %v8682_v48  ;;  %v3805_v2 = vsel %vm3797_vm11, %v3796_v53, %v3562_v45  ;;  %v9533_v6 = vmov 0  }
 0x74d   : > { %v3839_v17 = vsel %vm3831_vm14, %v5053_v11, %v5063_v22  ;;  %v3838_v34 = vsel %vm3831_vm14, %v5052_v56, %v5062_v26  ;;  %4177 = vmatmul.mubr.bf16.gmra.mrb[24].mxu1 %v3890_v39 }
 0x74e   : > { %v3848_v41 = vsel %vm3840_vm15, %v3839_v17, %v5068_v1  ;;  %v3847_v43 = vsel %vm3840_vm15, %v3838_v34, %v5067_v13  ;;  %v5056_v19 = vpop.permute.xlu1 %5055 }
 0x74f   : > { %v5058_v18 = vunpack.i.h.bf16 %v5056_v19  ;;  %v5057_v60 = vunpack.i.l.bf16 %v5056_v19  ;;  %v3855_v52 = vsel %vm3554_vm9, %v3847_v43, %v8565_v54  ;;  %v3856_v47 = vsel %vm3554_vm9, %v3848_v41, %v8571_v61 }
 0x750   : > { %v3864_v22 = vsel %vm3857_vm0, %v3855_v52, %v3730_v63  ;;  %v3865_v28 = vsel %vm3857_vm0, %v3856_v47, %v3731_v50 }
 0x751   : > { %v3813_v32 = vsel %vm1368_vm5, %v3805_v2, %v5058_v18  ;;  %v3812_v38 = vsel %vm1368_vm5, %v3804_v44, %v5057_v60  ;;  %v3873_v9 = vsel %vm3866_vm1, %v3864_v22, %v5077_v8  ;;  %v3874_v54 = vsel %vm3866_vm1, %v3865_v28, %v5078_v33  ;;  %vm8888_vm5 = vmor %vm4319_vm4, %vm4318_vm3 }
 0x752   : > { %v5081_v30 = vpop.permute.xlu1 %5080  ;;  %v3894_v42 = vpack.c.bf16 %v3874_v54, %v3873_v9  ;;  %v3820_v61 = vsel %vm3723_vm12, %v3812_v38, %v8334_v35  ;;  %v3821_v48 = vsel %vm3723_vm12, %v3813_v32, %v8580_v7  ;;  %v5086_v7 = vpop.permute.xlu0 %5085 }
 0x753   : > { %v3829_v20 = vsel %vm3822_vm13, %v3820_v61, %v5052_v56  ;;  %v3830_v23 = vsel %vm3822_vm13, %v3821_v48, %v5053_v11  ;;  %v5083_v59 = vunpack.i.h.bf16 %v5081_v30  ;;  %v5082_v0 = vunpack.i.l.bf16 %v5081_v30 }
 0x754   : > { %4186 = vmatprep.mubr.bf16.mxu1 %v3894_v42  ;;  %v3893_v51 = vpack.c.bf16 %v3830_v23, %v3829_v20  ;;  %v5088_v5 = vunpack.i.h.bf16 %v5086_v7  ;;  %v5087_v15 = vunpack.i.l.bf16 %v5086_v7 }
 0x755   : > { %v3877_v58 = vsel %vm3875_vm2, %v4983_v55, %v5083_v59  ;;  %v3876_v35 = vsel %vm3875_vm2, %v4982_v62, %v5082_v0 }
 0x756   : > { %4187 = vmatmul.mubr.bf16.gmra.mrb[28].mxu1 %v3893_v51  ;;  %v3886_v12 = vpack.c.bf16 %v3877_v58, %v3876_v35  ;;  %v3879_v21 = vsel %vm3875_vm2, %v5013_v36, %v5088_v5  ;;  %v3878_v55 = vsel %vm3875_vm2, %v5012_v10, %v5087_v15  ;;  %v5091_v46 = vpop.permute.xlu1 %5090  ;;  %v5096_v4 = vpop.permute.xlu0 %5095 }
 0x757   : > { %4229 = vmatprep.mubr.bf16.mxu1 %v9533_v6  ;;  %v3889_v40 = vpack.c.bf16 %v3879_v21, %v3878_v55  ;;  %v5093_v25 = vunpack.i.h.bf16 %v5091_v46  ;;  %v5092_v62 = vunpack.i.l.bf16 %v5091_v46  ;;  %v5098_v10 = vunpack.i.h.bf16 %v5096_v4 }
 0x758   : > { %v5097_v24 = vunpack.i.l.bf16 %v5096_v4 }
 0x759   : > { %v3881_v14 = vsel %vm3875_vm2, %v5043_v37, %v5093_v25  ;;  %v3880_v36 = vsel %vm3875_vm2, %v5042_v27, %v5092_v62  ;;  %v3883_v31 = vsel %vm3875_vm2, %v5078_v33, %v5098_v10 }
 0x75a   : > { %v3892_v26 = vpack.c.bf16 %v3881_v14, %v3880_v36  ;;  %v3882_v16 = vsel %vm3875_vm2, %v5077_v8, %v5097_v24 }
 0x75b   : > { %v3895_v49 = vpack.c.bf16 %v3883_v31, %v3882_v16 }
 0x75e   : > { %4451 = vmatmul.mubr.msk.bf16.vlgmr.msra.gmra.mrb[16].mxu1 %vm2439_vm8, %v3886_v12 }
 0x75f   : > { %4239 = vmatprep.mubr.bf16.mxu1 %v9533_v6 }
 0x766   : > { %4452 = vmatmul.mubr.msk.bf16.gmra.mrb[20].mxu1 %vm2439_vm8, %v3889_v40 }
 0x767   : > { %4249 = vmatprep.mubr.bf16.mxu1 %v9533_v6 }
 0x76e   : > { %4453 = vmatmul.mubr.msk.bf16.gmra.mrb[24].mxu1 %vm2439_vm8, %v3892_v26 }
 0x76f   : > { %4259 = vmatprep.mubr.bf16.mxu1 %v9533_v6 }
 0x776   : > { %4454 = vmatmul.mubr.msk.bf16.gmra.mrb[28].mxu1 %vm2439_vm8, %v3895_v49 }
 0x831   : > { %v4231_v57 = vpop.f32.mrb[16].mxu1 }
 0x832   : > { %v4233_v37 = vpop.f32.mrb[17].mxu1 }
 0x833   : > { %v4466_v3 = vpack.c.bf16 %v4233_v37, %v4231_v57  ;;  %v4235_v1 = vpop.f32.mrb[18].mxu1 }
 0x834   : > { %v4237_v13 = vpop.f32.mrb[19].mxu1 }
 0x835   : > { %4321 = vst.msk [vmem:[%s8886_s24] sm:$0xff] %vm8888_vm5, %v4466_v3  ;;  %v4467_v11 = vpack.c.bf16 %v4237_v13, %v4235_v1 }
 0x837   : > { %4322 = vst.msk [vmem:[%s8886_s24 + $0x8] sm:$0xff] %vm8888_vm5, %v4467_v11 }
 0x839   : > { %v4241_v56 = vpop.f32.mrb[20].mxu1 }
 0x83a   : > { %v4243_v53 = vpop.f32.mrb[21].mxu1 }
 0x83b   : > { %v4468_v29 = vpack.c.bf16 %v4243_v53, %v4241_v56  ;;  %v4245_v45 = vpop.f32.mrb[22].mxu1 }
 0x83c   : > { %v4247_v39 = vpop.f32.mrb[23].mxu1 }
 0x83d   : > { %4323 = vst.msk [vmem:[%s8886_s24 + $0x10] sm:$0xff] %vm8888_vm5, %v4468_v29  ;;  %v4469_v50 = vpack.c.bf16 %v4247_v39, %v4245_v45 }
 0x83f   : > { %4324 = vst.msk [vmem:[%s8886_s24 + $0x18] sm:$0xff] %vm8888_vm5, %v4469_v50 }
 0x841   : > { %v4251_v33 = vpop.f32.mrb[24].mxu1 }
 0x842   : > { %v4253_v17 = vpop.f32.mrb[25].mxu1 }
 0x843   : > { %v4470_v34 = vpack.c.bf16 %v4253_v17, %v4251_v33  ;;  %v4255_v8 = vpop.f32.mrb[26].mxu1 }
 0x844   : > { %v4257_v63 = vpop.f32.mrb[27].mxu1 }
 0x845   : > { %4325 = vst.msk [vmem:[%s8886_s24 + $0x20] sm:$0xff] %vm8888_vm5, %v4470_v34  ;;  %v4471_v41 = vpack.c.bf16 %v4257_v63, %v4255_v8 }
 0x847   : > { %4326 = vst.msk [vmem:[%s8886_s24 + $0x28] sm:$0xff] %vm8888_vm5, %v4471_v41 }
 0x849   : > { %v4261_v43 = vpop.f32.mrb[28].mxu1 }
 0x84a   : > { %v4263_v19 = vpop.f32.mrb[29].mxu1 }
 0x84b   : > { %v4472_v18 = vpack.c.bf16 %v4263_v19, %v4261_v43  ;;  %v4265_v60 = vpop.f32.mrb[30].mxu1 }
 0x84c   : > { %v4267_v52 = vpop.f32.mrb[31].mxu1 }
 0x84d   : > { %4327 = vst.msk [vmem:[%s8886_s24 + $0x30] sm:$0xff] %vm8888_vm5, %v4472_v18  ;;  %v4473_v47 = vpack.c.bf16 %v4267_v52, %v4265_v60 }
 0x84f   : > { %4328 = vst.msk [vmem:[%s8886_s24 + $0x38] sm:$0xff] %vm8888_vm5, %v4473_v47 }
 0x850 PF: > { %s16_s21 = sadd.s32 1, %s5176_s21  }
 0x851   : > { %p13_p4 = scmp.ge.s32.totalorder %s16_s21, 4  }
 0x853   :  { %15 = sbr.rel (!%p13_p4) target bundleno = 1 (0x1), region = 74 }

// kernel: mnist_net_forward.3
= control target key start
LH: loop header
LB: loop body
LE: loop exit
PB: predicated region body
PF: predicated region fallthrough
CT: control target
= control target key end

     0   :  { %v1203_v28 = vlaneseq  ;;  %v8782_v36 = vmov 1966171168   ;;  %s10744_s0 = inlined_call_operand.vmem [shape: bf16[2,9216], index: 0, kind: input, shape index: {}]   ;;  %s10745_s1 = inlined_call_operand.vmem [shape: bf16[9216,128], index: 1, kind: input, shape index: {}]   ;;  %s10746_s2 = inlined_call_operand.vmem [shape: f32[1,128], index: 2, kind: input, shape index: {}]   ;;  %s10747_s3 = inlined_call_operand.vmem [shape: bf16[128,128], index: 3, kind: input, shape index: {}]   ;;  %s10748_s4 = inlined_call_operand.vmem [shape: f32[1,128], index: 4, kind: input, shape index: {}]   ;;  %s10749_s5 = inlined_call_operand.hbm [shape: f32[2,128], index: 5, kind: output, shape index: {}]  }
   0x1   :  { %v8161_v0 = vld [vmem:[%s10745_s1 + $0x40] sm:$0xff]   ;;  %v8165_v4 = vld [vmem:[%s10745_s1 + $0x48] sm:$0xff]   ;;  %v8169_v8 = vld [vmem:[%s10745_s1 + $0x50] sm:$0xff]   ;;  %v1201_v37 = vunpack.c.l.s4 %v8782_v36 }
   0x2   :  { %v8162_v1 = vld [vmem:[%s10745_s1 + $0xc0] sm:$0xff]   ;;  %7336 = vmatprep.subr.bf16.mxu0 %v8161_v0  ;;  %v8166_v5 = vld [vmem:[%s10745_s1 + $0xc8] sm:$0xff]   ;;  %v8170_v9 = vld [vmem:[%s10745_s1 + $0xd0] sm:$0xff]   ;;  %v1204_v33 = vshrl.u32 %v1203_v28, 7 }
   0x3   :  { %v8163_v2 = vld [vmem:[%s10745_s1] sm:$0xff]   ;;  %7358 = vmatprep.subr.bf16.mxu1 %v8162_v1  ;;  %v8167_v6 = vld [vmem:[%s10745_s1 + $0x8] sm:$0xff]   ;;  %v8171_v10 = vld [vmem:[%s10745_s1 + $0x10] sm:$0xff]   ;;  %v1202_v40 = vunpack.c.0.s8 %v1201_v37 }
   0x4   :  { %v8164_v3 = vld [vmem:[%s10745_s1 + $0x80] sm:$0xff]   ;;  %7337 = vmatpush3.bf16.msra.mxu0 %v8163_v2  ;;  %v8168_v7 = vld [vmem:[%s10745_s1 + $0x88] sm:$0xff]   ;;  %v8172_v11 = vld [vmem:[%s10745_s1 + $0x90] sm:$0xff]  }
   0x5   :  { %7359 = vmatpush3.bf16.msra.mxu1 %v8164_v3  ;;  %7338 = vmatprep.subr.bf16.mxu0 %v8165_v4  ;;  %v8173_v12 = vld [vmem:[%s10745_s1 + $0x58] sm:$0xff]   ;;  %v8177_v16 = vld [vmem:[%s10745_s1 + $0x60] sm:$0xff]   ;;  %v8181_v20 = vld [vmem:[%s10745_s1 + $0x68] sm:$0xff]   ;;  %v8921_v41 = vsub.s32 %v1202_v40, %v1204_v33 }
   0x6   :  { %7360 = vmatprep.subr.bf16.mxu1 %v8166_v5  ;;  %v8174_v13 = vld [vmem:[%s10745_s1 + $0xd8] sm:$0xff]   ;;  %v8178_v17 = vld [vmem:[%s10745_s1 + $0xe0] sm:$0xff]   ;;  %v8182_v21 = vld [vmem:[%s10745_s1 + $0xe8] sm:$0xff]  }
   0x7   :  { %v8175_v14 = vld [vmem:[%s10745_s1 + $0x18] sm:$0xff]   ;;  %v8179_v18 = vld [vmem:[%s10745_s1 + $0x20] sm:$0xff]   ;;  %v8183_v22 = vld [vmem:[%s10745_s1 + $0x28] sm:$0xff]  }
   0x8   :  { %7339 = vmatpush3.bf16.msra.mxu0 %v8167_v6  ;;  %v8176_v15 = vld [vmem:[%s10745_s1 + $0x98] sm:$0xff]   ;;  %v8180_v19 = vld [vmem:[%s10745_s1 + $0xa0] sm:$0xff]   ;;  %v8184_v23 = vld [vmem:[%s10745_s1 + $0xa8] sm:$0xff]  }
   0x9   :  { %7361 = vmatpush3.bf16.msra.mxu1 %v8168_v7  ;;  %7340 = vmatprep.subr.bf16.mxu0 %v8169_v8  ;;  %v8185_v24 = vld [vmem:[%s10745_s1 + $0x70] sm:$0xff]   ;;  %v8189_v29 = vld [vmem:[%s10745_s1 + $0x78] sm:$0xff]   ;;  %v22_v34 = vld [vmem:[%s10744_s0] sm:$0xff] }
   0xa   :  { %7362 = vmatprep.subr.bf16.mxu1 %v8170_v9  ;;  %v8186_v25 = vld [vmem:[%s10745_s1 + $0xf0] sm:$0xff]   ;;  %v8190_v30 = vld [vmem:[%s10745_s1 + $0xf8] sm:$0xff]   ;;  %v8194_v35 = vld [vmem:[%s10745_s1 + $0x140] sm:$0xff]   ;;  %v1199_v39 = vcombine.high %v22_v34, %v22_v34  ;;  %v1206_v42 = vrot.slane %v22_v34, %v8921_v41 }
   0xb   :  { %v8187_v26 = vld [vmem:[%s10745_s1 + $0x30] sm:$0xff]   ;;  %v8191_v31 = vld [vmem:[%s10745_s1 + $0x38] sm:$0xff]   ;;  %v8195_v38 = vld [vmem:[%s10745_s1 + $0x1c0] sm:$0xff]  }
   0xc   :  { %7341 = vmatpush3.bf16.msra.mxu0 %v8171_v10  ;;  %v8188_v27 = vld [vmem:[%s10745_s1 + $0xb0] sm:$0xff]   ;;  %v8192_v32 = vld [vmem:[%s10745_s1 + $0xb8] sm:$0xff]   ;;  %v8925_v43 = vrot.slane %v1199_v39, %v8921_v41  ;;  %v1214_v44 = vcombine.high %v1206_v42, %v1206_v42  ;;  %v1222_v45 = vrot.slane %v1206_v42, %v8921_v41  ;;  %v8196_v47 = vld [vmem:[%s10745_s1 + $0x100] sm:$0xff]  }
   0xd   :  { %7363 = vmatpush3.bf16.msra.mxu1 %v8172_v11  ;;  %7342 = vmatprep.subr.bf16.mxu0 %v8173_v12  ;;  %v8197_v49 = vld [vmem:[%s10745_s1 + $0x180] sm:$0xff]   ;;  %v8198_v52 = vld [vmem:[%s10745_s1 + $0x148] sm:$0xff]   ;;  %v8202_v58 = vld [vmem:[%s10745_s1 + $0x150] sm:$0xff]  }
   0xe   :  { %7364 = vmatprep.subr.bf16.mxu1 %v8174_v13  ;;  %v1215_v46 = vcombine.high %v8925_v43, %v8925_v43  ;;  %v1236_v48 = vrot.slane %v1214_v44, %v8921_v41  ;;  %v1244_v51 = vcombine.high %v1222_v45, %v1222_v45  ;;  %v8199_v54 = vld [vmem:[%s10745_s1 + $0x1c8] sm:$0xff]   ;;  %v8203_v59 = vld [vmem:[%s10745_s1 + $0x1d0] sm:$0xff]   ;;  %v8206_v62 = vld [vmem:[%s10745_s1 + $0x158] sm:$0xff]  }
   0xf   :  { %v8200_v55 = vld [vmem:[%s10745_s1 + $0x108] sm:$0xff]   ;;  %v8204_v60 = vld [vmem:[%s10745_s1 + $0x110] sm:$0xff]   ;;  %v8207_v63 = vld [vmem:[%s10745_s1 + $0x1d8] sm:$0xff]  }
  0x10   :  { %7343 = vmatpush3.bf16.msra.mxu0 %v8175_v14  ;;  %v1243_v50 = vrot.slane %v1215_v46, %v8921_v41  ;;  %5200 = vmatprep.mubr.bf16.mxu0 %v1236_v48  ;;  %v1246_v53 = vcombine.high %v1236_v48, %v1236_v48  ;;  %v8201_v57 = vld [vmem:[%s10745_s1 + $0x188] sm:$0xff]   ;;  %v8205_v61 = vld [vmem:[%s10745_s1 + $0x190] sm:$0xff]   ;;  %v8208_v0 = vld [vmem:[%s10745_s1 + $0x118] sm:$0xff]  }
  0x11   :  { %7365 = vmatpush3.bf16.msra.mxu1 %v8176_v15  ;;  %7344 = vmatprep.subr.bf16.mxu0 %v8177_v16  ;;  %v8209_v1 = vld [vmem:[%s10745_s1 + $0x198] sm:$0xff]   ;;  %v8210_v2 = vld [vmem:[%s10745_s1 + $0x160] sm:$0xff]   ;;  %v8214_v6 = vld [vmem:[%s10745_s1 + $0x168] sm:$0xff]  }
  0x12   :  { %7366 = vmatprep.subr.bf16.mxu1 %v8178_v17  ;;  %v1247_v56 = vcombine.high %v1243_v50, %v1243_v50  ;;  %5240 = vmatprep.mubr.bf16.mxu1 %v1246_v53  ;;  %v8211_v3 = vld [vmem:[%s10745_s1 + $0x1e0] sm:$0xff]   ;;  %v8215_v7 = vld [vmem:[%s10745_s1 + $0x1e8] sm:$0xff]   ;;  %v8218_v10 = vld [vmem:[%s10745_s1 + $0x170] sm:$0xff]  }
  0x13   :  { %v8212_v4 = vld [vmem:[%s10745_s1 + $0x120] sm:$0xff]   ;;  %v8216_v8 = vld [vmem:[%s10745_s1 + $0x128] sm:$0xff]   ;;  %v8219_v11 = vld [vmem:[%s10745_s1 + $0x1f0] sm:$0xff]  }
  0x14   :  { %7345 = vmatpush3.bf16.msra.mxu0 %v8179_v18  ;;  %v8213_v5 = vld [vmem:[%s10745_s1 + $0x1a0] sm:$0xff]   ;;  %v8217_v9 = vld [vmem:[%s10745_s1 + $0x1a8] sm:$0xff]   ;;  %v8220_v12 = vld [vmem:[%s10745_s1 + $0x130] sm:$0xff]   ;;  %v1229_v18 = vrot.slane %v8925_v43, %v8921_v41 }
  0x15   :  { %7367 = vmatpush3.bf16.msra.mxu1 %v8180_v19  ;;  %7346 = vmatprep.subr.bf16.mxu0 %v8181_v20  ;;  %v8221_v13 = vld [vmem:[%s10745_s1 + $0x1b0] sm:$0xff]   ;;  %v8222_v14 = vld [vmem:[%s10745_s1 + $0x178] sm:$0xff]   ;;  %v8226_v19 = vld [vmem:[%s10745_s1 + $0x240] sm:$0xff]  }
  0x16   :  { %7368 = vmatprep.subr.bf16.mxu1 %v8182_v21  ;;  %v8223_v15 = vld [vmem:[%s10745_s1 + $0x1f8] sm:$0xff]   ;;  %v8227_v20 = vld [vmem:[%s10745_s1 + $0x2c0] sm:$0xff]   ;;  %v8234_v28 = vld [vmem:[%s10745_s1 + $0x250] sm:$0xff]  }
  0x17   :  { %v8224_v16 = vld [vmem:[%s10745_s1 + $0x138] sm:$0xff]   ;;  %v8228_v21 = vld [vmem:[%s10745_s1 + $0x200] sm:$0xff]   ;;  %v8246_v40 = vld [vmem:[%s10745_s1 + $0x268] sm:$0xff]  }
  0x18   :  { %7347 = vmatpush3.bf16.msra.mxu0 %v8183_v22  ;;  %v8225_v17 = vld [vmem:[%s10745_s1 + $0x1b8] sm:$0xff]   ;;  %v8229_v22 = vld [vmem:[%s10745_s1 + $0x280] sm:$0xff]   ;;  %v8247_v42 = vld [vmem:[%s10745_s1 + $0x2e8] sm:$0xff]  }
  0x19   :  { %7369 = vmatpush3.bf16.msra.mxu1 %v8184_v23  ;;  %7348 = vmatprep.subr.bf16.mxu0 %v8185_v24  ;;  %v1245_v23 = vcombine.high %v1229_v18, %v1229_v18  ;;  %v8230_v24 = vld [vmem:[%s10745_s1 + $0x248] sm:$0xff]   ;;  %v8239_v33 = vld [vmem:[%s10745_s1 + $0x2d8] sm:$0xff]   ;;  %v8242_v36 = vld [vmem:[%s10745_s1 + $0x260] sm:$0xff]  }
  0x1a   :  { %7370 = vmatprep.subr.bf16.mxu1 %v8186_v25  ;;  %v8231_v25 = vld [vmem:[%s10745_s1 + $0x2c8] sm:$0xff]   ;;  %v8240_v34 = vld [vmem:[%s10745_s1 + $0x218] sm:$0xff]   ;;  %v8243_v37 = vld [vmem:[%s10745_s1 + $0x2e0] sm:$0xff]  }
  0x1b   :  { %v8245_v39 = vld [vmem:[%s10745_s1 + $0x2a0] sm:$0xff]   ;;  %v8248_v43 = vld [vmem:[%s10745_s1 + $0x228] sm:$0xff]  }
  0x1c   :  { %7349 = vmatpush3.bf16.msra.mxu0 %v8187_v26  ;;  %v8232_v26 = vld [vmem:[%s10745_s1 + $0x208] sm:$0xff]  }
  0x1d   :  { %7371 = vmatpush3.bf16.msra.mxu1 %v8188_v27  ;;  %7350 = vmatprep.subr.bf16.mxu0 %v8189_v29  ;;  %v8233_v27 = vld [vmem:[%s10745_s1 + $0x288] sm:$0xff]   ;;  %v8235_v29 = vld [vmem:[%s10745_s1 + $0x2d0] sm:$0xff]  }
  0x1e   :  { %7372 = vmatprep.subr.bf16.mxu1 %v8190_v30  ;;  %v8236_v30 = vld [vmem:[%s10745_s1 + $0x210] sm:$0xff]   ;;  %v8249_v44 = vld [vmem:[%s10745_s1 + $0x2a8] sm:$0xff]  }
  0x1f   :  { %v23_v46 = vld [vmem:[%s10744_s0 + $0x8] sm:$0xff] }
  0x20   :  { %7351 = vmatpush3.bf16.msra.mxu0 %v8191_v31  ;;  %v8237_v31 = vld [vmem:[%s10745_s1 + $0x290] sm:$0xff]   ;;  %v1255_v48 = vrot.slane %v23_v46, %v8921_v41 }
  0x21   :  { %7373 = vmatpush3.bf16.msra.mxu1 %v8192_v32  ;;  %7380 = vmatprep.subr.bf16.mxu0 %v8194_v35  ;;  %v8238_v32 = vld [vmem:[%s10745_s1 + $0x258] sm:$0xff]  }
  0x22   :  { %7402 = vmatprep.subr.bf16.mxu1 %v8195_v38  ;;  %v8241_v35 = vld [vmem:[%s10745_s1 + $0x298] sm:$0xff]   ;;  %v8244_v38 = vld [vmem:[%s10745_s1 + $0x220] sm:$0xff]  }
  0x23   :  { %5201 = vmatmul.mubr.bf16.vlgmr.msra.gmra.mrb[0].mxu0 %v1222_v45  ;;  %v8250_v45 = vld [vmem:[%s10745_s1 + $0x270] sm:$0xff]  }
  0x24   :  { %7381 = vmatpush3.bf16.msra.mxu0 %v8196_v47  ;;  %5241 = vmatmul.mubr.bf16.vlgmr.msra.gmra.mrb[0].mxu1 %v1244_v51  ;;  %v8251_v47 = vld [vmem:[%s10745_s1 + $0x2f0] sm:$0xff]  }
  0x25   :  { %7382 = vmatprep.subr.bf16.mxu0 %v8198_v52  ;;  %7403 = vmatpush3.bf16.msra.mxu1 %v8197_v49  ;;  %v1248_v49 = vcombine.high %v23_v46, %v23_v46  ;;  %v8253_v51 = vld [vmem:[%s10745_s1 + $0x2b0] sm:$0xff]   ;;  %v1263_v52 = vcombine.high %v1255_v48, %v1255_v48 }
  0x26   :  { %5280 = vmatprep.mubr.bf16.mxu0 %v1243_v50  ;;  %7404 = vmatprep.subr.bf16.mxu1 %v8199_v54  ;;  %v8252_v50 = vld [vmem:[%s10745_s1 + $0x230] sm:$0xff]   ;;  %v8254_v54 = vld [vmem:[%s10745_s1 + $0x278] sm:$0xff]  }
  0x27   :  { %5320 = vmatprep.mubr.bf16.mxu1 %v1247_v56  ;;  %v9113_v53 = vrot.slane %v1248_v49, %v8921_v41  ;;  %v1285_v56 = vrot.slane %v1263_v52, %v8921_v41  ;;  %v8301_v46 = vld [vmem:[%s10745_s1 + $0x410] sm:$0xff]   ;;  %v8304_v49 = vld [vmem:[%s10745_s1 + $0x4d8] sm:$0xff]   ;;  %v8307_v52 = vld [vmem:[%s10745_s1 + $0x460] sm:$0xff]  }
  0x28   :  { %7383 = vmatpush3.bf16.msra.mxu0 %v8200_v55  ;;  %v8255_v55 = vld [vmem:[%s10745_s1 + $0x2f8] sm:$0xff]  }
  0x29   :  { %7384 = vmatprep.subr.bf16.mxu0 %v8202_v58  ;;  %7405 = vmatpush3.bf16.msra.mxu1 %v8201_v57  ;;  %v1264_v57 = vcombine.high %v9113_v53, %v9113_v53  ;;  %v8256_v58 = vld [vmem:[%s10745_s1 + $0x238] sm:$0xff]  }
  0x2a   :  { %7406 = vmatprep.subr.bf16.mxu1 %v8203_v59  ;;  %v8257_v59 = vld [vmem:[%s10745_s1 + $0x2b8] sm:$0xff]  }
  0x2c   :  { %7385 = vmatpush3.bf16.msra.mxu0 %v8204_v60  ;;  %v1295_v60 = vcombine.high %v1285_v56, %v1285_v56 }
  0x2d   :  { %7386 = vmatprep.subr.bf16.mxu0 %v8206_v62  ;;  %7407 = vmatpush3.bf16.msra.mxu1 %v8205_v61  ;;  %v1271_v61 = vrot.slane %v1255_v48, %v8921_v41  ;;  %v8258_v62 = vld [vmem:[%s10745_s1 + $0x340] sm:$0xff]   ;;  %v8303_v48 = vld [vmem:[%s10745_s1 + $0x458] sm:$0xff]  }
  0x2e   :  { %7408 = vmatprep.subr.bf16.mxu1 %v8207_v63  ;;  %v8259_v63 = vld [vmem:[%s10745_s1 + $0x3c0] sm:$0xff]  }
  0x30   :  { %7387 = vmatpush3.bf16.msra.mxu0 %v8208_v0  ;;  %v1292_v0 = vrot.slane %v1264_v57, %v8921_v41  ;;  %v8312_v57 = vld [vmem:[%s10745_s1 + $0x4e8] sm:$0xff]  }
  0x31   :  { %7388 = vmatprep.subr.bf16.mxu0 %v8210_v2  ;;  %7409 = vmatpush3.bf16.msra.mxu1 %v8209_v1  ;;  %v8260_v1 = vld [vmem:[%s10745_s1 + $0x300] sm:$0xff]  }
  0x32   :  { %7410 = vmatprep.subr.bf16.mxu1 %v8211_v3  ;;  %v8261_v2 = vld [vmem:[%s10745_s1 + $0x380] sm:$0xff]   ;;  %v1293_v3 = vcombine.high %v1271_v61, %v1271_v61 }
  0x34   :  { %7389 = vmatpush3.bf16.msra.mxu0 %v8212_v4  ;;  %v8262_v4 = vld [vmem:[%s10745_s1 + $0x348] sm:$0xff]  }
  0x35   :  { %7390 = vmatprep.subr.bf16.mxu0 %v8214_v6  ;;  %7411 = vmatpush3.bf16.msra.mxu1 %v8213_v5  ;;  %v8263_v5 = vld [vmem:[%s10745_s1 + $0x3c8] sm:$0xff]   ;;  %v1296_v6 = vcombine.high %v1292_v0, %v1292_v0 }
  0x36   :  { %7412 = vmatprep.subr.bf16.mxu1 %v8215_v7  ;;  %v8264_v7 = vld [vmem:[%s10745_s1 + $0x308] sm:$0xff]  }
  0x38   :  { %7391 = vmatpush3.bf16.msra.mxu0 %v8216_v8  ;;  %v8265_v8 = vld [vmem:[%s10745_s1 + $0x388] sm:$0xff]  }
  0x39   :  { %7392 = vmatprep.subr.bf16.mxu0 %v8218_v10  ;;  %7413 = vmatpush3.bf16.msra.mxu1 %v8217_v9  ;;  %v8266_v9 = vld [vmem:[%s10745_s1 + $0x350] sm:$0xff]  }
  0x3a   :  { %7414 = vmatprep.subr.bf16.mxu1 %v8219_v11  ;;  %v8267_v10 = vld [vmem:[%s10745_s1 + $0x3d0] sm:$0xff]  }
  0x3b   :  { %v8268_v11 = vld [vmem:[%s10745_s1 + $0x310] sm:$0xff]  }
  0x3c   :  { %7393 = vmatpush3.bf16.msra.mxu0 %v8220_v12  ;;  %v8269_v12 = vld [vmem:[%s10745_s1 + $0x390] sm:$0xff]  }
  0x3d   :  { %7394 = vmatprep.subr.bf16.mxu0 %v8222_v14  ;;  %7415 = vmatpush3.bf16.msra.mxu1 %v8221_v13  ;;  %v8270_v13 = vld [vmem:[%s10745_s1 + $0x358] sm:$0xff]  }
  0x3e   :  { %7416 = vmatprep.subr.bf16.mxu1 %v8223_v15  ;;  %v8271_v14 = vld [vmem:[%s10745_s1 + $0x3d8] sm:$0xff]  }
  0x3f   :  { %v8272_v15 = vld [vmem:[%s10745_s1 + $0x318] sm:$0xff]  }
  0x40   :  { %7395 = vmatpush3.bf16.msra.mxu0 %v8224_v16  ;;  %v8273_v16 = vld [vmem:[%s10745_s1 + $0x398] sm:$0xff]  }
  0x41   :  { %7424 = vmatprep.subr.bf16.mxu0 %v8226_v19  ;;  %7417 = vmatpush3.bf16.msra.mxu1 %v8225_v17  ;;  %v8274_v17 = vld [vmem:[%s10745_s1 + $0x360] sm:$0xff]  }
  0x42   :  { %7446 = vmatprep.subr.bf16.mxu1 %v8227_v20  ;;  %v8276_v19 = vld [vmem:[%s10745_s1 + $0x320] sm:$0xff]  }
  0x43   :  { %5281 = vmatmul.mubr.bf16.vlgmr.msra.gmra.mrb[4].mxu0 %v1229_v18  ;;  %v8275_v18 = vld [vmem:[%s10745_s1 + $0x3e0] sm:$0xff]  }
  0x44   :  { %7425 = vmatpush3.bf16.msra.mxu0 %v8228_v21  ;;  %5321 = vmatmul.mubr.bf16.vlgmr.msra.gmra.mrb[4].mxu1 %v1245_v23  ;;  %v8277_v20 = vld [vmem:[%s10745_s1 + $0x3a0] sm:$0xff]   ;;  %v8278_v21 = vld [vmem:[%s10745_s1 + $0x368] sm:$0xff]  }
  0x45   :  { %7426 = vmatprep.subr.bf16.mxu0 %v8230_v24  ;;  %7447 = vmatpush3.bf16.msra.mxu1 %v8229_v22  ;;  %v8279_v22 = vld [vmem:[%s10745_s1 + $0x3e8] sm:$0xff]  }
  0x46   :  { %7448 = vmatprep.subr.bf16.mxu1 %v8231_v25  ;;  %5360 = vmatprep.mubr.bf16.mxu0 %v1285_v56  ;;  %v8280_v23 = vld [vmem:[%s10745_s1 + $0x328] sm:$0xff]   ;;  %v8282_v25 = vld [vmem:[%s10745_s1 + $0x370] sm:$0xff]  }
  0x47   :  { %5400 = vmatprep.mubr.bf16.mxu1 %v1295_v60  ;;  %v8281_v24 = vld [vmem:[%s10745_s1 + $0x3a8] sm:$0xff]   ;;  %v8315_v60 = vld [vmem:[%s10745_s1 + $0x470] sm:$0xff]  }
  0x48   :  { %7427 = vmatpush3.bf16.msra.mxu0 %v8232_v26  ;;  %v8283_v26 = vld [vmem:[%s10745_s1 + $0x3f0] sm:$0xff]   ;;  %v8311_v56 = vld [vmem:[%s10745_s1 + $0x468] sm:$0xff]  }
  0x49   :  { %7428 = vmatprep.subr.bf16.mxu0 %v8234_v28  ;;  %7449 = vmatpush3.bf16.msra.mxu1 %v8233_v27  ;;  %v8284_v27 = vld [vmem:[%s10745_s1 + $0x330] sm:$0xff]  }
  0x4a   :  { %7450 = vmatprep.subr.bf16.mxu1 %v8235_v29  ;;  %v8285_v28 = vld [vmem:[%s10745_s1 + $0x3b0] sm:$0xff]   ;;  %v8286_v29 = vld [vmem:[%s10745_s1 + $0x378] sm:$0xff]  }
  0x4c   :  { %7429 = vmatpush3.bf16.msra.mxu0 %v8236_v30  ;;  %v8287_v30 = vld [vmem:[%s10745_s1 + $0x3f8] sm:$0xff]  }
  0x4d   :  { %7430 = vmatprep.subr.bf16.mxu0 %v8238_v32  ;;  %7451 = vmatpush3.bf16.msra.mxu1 %v8237_v31  ;;  %v8288_v31 = vld [vmem:[%s10745_s1 + $0x338] sm:$0xff]  }
  0x4e   :  { %7452 = vmatprep.subr.bf16.mxu1 %v8239_v33  ;;  %v8289_v32 = vld [vmem:[%s10745_s1 + $0x3b8] sm:$0xff]   ;;  %v1278_v33 = vrot.slane %v9113_v53, %v8921_v41  ;;  %v8308_v53 = vld [vmem:[%s10745_s1 + $0x4e0] sm:$0xff]  }
  0x50   :  { %7431 = vmatpush3.bf16.msra.mxu0 %v8240_v34  ;;  %v8291_v34 = vld [vmem:[%s10745_s1 + $0x440] sm:$0xff]  }
  0x51   :  { %7432 = vmatprep.subr.bf16.mxu0 %v8242_v36  ;;  %7453 = vmatpush3.bf16.msra.mxu1 %v8241_v35  ;;  %v8292_v35 = vld [vmem:[%s10745_s1 + $0x4c0] sm:$0xff]  }
  0x52   :  { %7454 = vmatprep.subr.bf16.mxu1 %v8243_v37  ;;  %v8293_v36 = vld [vmem:[%s10745_s1 + $0x400] sm:$0xff]  }
  0x53   :  { %v8294_v37 = vld [vmem:[%s10745_s1 + $0x480] sm:$0xff]  }
  0x54   :  { %7433 = vmatpush3.bf16.msra.mxu0 %v8244_v38  ;;  %v1294_v38 = vcombine.high %v1278_v33, %v1278_v33 }
  0x55   :  { %7434 = vmatprep.subr.bf16.mxu0 %v8246_v40  ;;  %7455 = vmatpush3.bf16.msra.mxu1 %v8245_v39  ;;  %v8295_v39 = vld [vmem:[%s10745_s1 + $0x448] sm:$0xff]  }
  0x56   :  { %7456 = vmatprep.subr.bf16.mxu1 %v8247_v42  ;;  %v8296_v40 = vld [vmem:[%s10745_s1 + $0x4c8] sm:$0xff]  }
  0x57   :  { %v8297_v42 = vld [vmem:[%s10745_s1 + $0x408] sm:$0xff]  }
  0x58   :  { %7435 = vmatpush3.bf16.msra.mxu0 %v8248_v43  ;;  %v8298_v43 = vld [vmem:[%s10745_s1 + $0x488] sm:$0xff]  }
  0x59   :  { %7436 = vmatprep.subr.bf16.mxu0 %v8250_v45  ;;  %7457 = vmatpush3.bf16.msra.mxu1 %v8249_v44  ;;  %v8299_v44 = vld [vmem:[%s10745_s1 + $0x450] sm:$0xff]  }
  0x5a   :  { %7458 = vmatprep.subr.bf16.mxu1 %v8251_v47  ;;  %v8300_v45 = vld [vmem:[%s10745_s1 + $0x4d0] sm:$0xff]  }
  0x5b   :  { %v8302_v47 = vld [vmem:[%s10745_s1 + $0x490] sm:$0xff]  }
  0x5c   :  { %7437 = vmatpush3.bf16.msra.mxu0 %v8252_v50  ;;  %v8305_v50 = vld [vmem:[%s10745_s1 + $0x418] sm:$0xff]  }
  0x5d   :  { %7438 = vmatprep.subr.bf16.mxu0 %v8254_v54  ;;  %7459 = vmatpush3.bf16.msra.mxu1 %v8253_v51  ;;  %v8306_v51 = vld [vmem:[%s10745_s1 + $0x498] sm:$0xff]   ;;  %v8309_v54 = vld [vmem:[%s10745_s1 + $0x420] sm:$0xff]  }
  0x5e   :  { %7460 = vmatprep.subr.bf16.mxu1 %v8255_v55  ;;  %v8310_v55 = vld [vmem:[%s10745_s1 + $0x4a0] sm:$0xff]  }
  0x60   :  { %7439 = vmatpush3.bf16.msra.mxu0 %v8256_v58  ;;  %v8313_v58 = vld [vmem:[%s10745_s1 + $0x428] sm:$0xff]  }
  0x61   :  { %7468 = vmatprep.subr.bf16.mxu0 %v8258_v62  ;;  %7461 = vmatpush3.bf16.msra.mxu1 %v8257_v59  ;;  %v8314_v59 = vld [vmem:[%s10745_s1 + $0x4a8] sm:$0xff]   ;;  %v8316_v62 = vld [vmem:[%s10745_s1 + $0x4f0] sm:$0xff]  }
  0x62   :  { %7490 = vmatprep.subr.bf16.mxu1 %v8259_v63 }
  0x63   :  { %5361 = vmatmul.mubr.bf16.vlgmr.msra.gmra.mrb[8].mxu0 %v1271_v61  ;;  %v24_v61 = vld [vmem:[%s10744_s0 + $0x10] sm:$0xff] }
  0x64   :  { %7469 = vmatpush3.bf16.msra.mxu0 %v8260_v1  ;;  %5440 = vmatprep.mubr.bf16.mxu0 %v1292_v0  ;;  %v1304_v63 = vrot.slane %v24_v61, %v8921_v41  ;;  %v1297_v0 = vcombine.high %v24_v61, %v24_v61  ;;  %v8317_v1 = vld [vmem:[%s10745_s1 + $0x430] sm:$0xff]  }
  0x65   :  { %5401 = vmatmul.mubr.bf16.vlgmr.msra.gmra.mrb[8].mxu1 %v1293_v3  ;;  %7470 = vmatprep.subr.bf16.mxu0 %v8262_v4  ;;  %v8366_v61 = vld [vmem:[%s10745_s1 + $0x610] sm:$0xff]  }
  0x66   :  { %7491 = vmatpush3.bf16.msra.mxu1 %v8261_v2  ;;  %5480 = vmatprep.mubr.bf16.mxu1 %v1296_v6  ;;  %v8318_v2 = vld [vmem:[%s10745_s1 + $0x4b0] sm:$0xff]   ;;  %v1312_v3 = vcombine.high %v1304_v63, %v1304_v63  ;;  %v9319_v4 = vrot.slane %v1297_v0, %v8921_v41  ;;  %v8320_v6 = vld [vmem:[%s10745_s1 + $0x4f8] sm:$0xff]  }
  0x67   :  { %7492 = vmatprep.subr.bf16.mxu1 %v8263_v5  ;;  %v8319_v5 = vld [vmem:[%s10745_s1 + $0x478] sm:$0xff]  }
  0x68   :  { %7471 = vmatpush3.bf16.msra.mxu0 %v8264_v7  ;;  %v1334_v7 = vrot.slane %v1312_v3, %v8921_v41  ;;  %v8369_v0 = vld [vmem:[%s10745_s1 + $0x6d8] sm:$0xff]   ;;  %v8372_v3 = vld [vmem:[%s10745_s1 + $0x660] sm:$0xff]  }
  0x69   :  { %7472 = vmatprep.subr.bf16.mxu0 %v8266_v9  ;;  %v8321_v9 = vld [vmem:[%s10745_s1 + $0x438] sm:$0xff]  }
  0x6a   :  { %7493 = vmatpush3.bf16.msra.mxu1 %v8265_v8  ;;  %v1313_v8 = vcombine.high %v9319_v4, %v9319_v4 }
  0x6b   :  { %7494 = vmatprep.subr.bf16.mxu1 %v8267_v10  ;;  %v8322_v10 = vld [vmem:[%s10745_s1 + $0x4b8] sm:$0xff]  }
  0x6c   :  { %7473 = vmatpush3.bf16.msra.mxu0 %v8268_v11  ;;  %v1344_v11 = vcombine.high %v1334_v7, %v1334_v7 }
  0x6d   :  { %7474 = vmatprep.subr.bf16.mxu0 %v8270_v13  ;;  %v8323_v13 = vld [vmem:[%s10745_s1 + $0x540] sm:$0xff]  }
  0x6e   :  { %7495 = vmatpush3.bf16.msra.mxu1 %v8269_v12  ;;  %v1320_v12 = vrot.slane %v1304_v63, %v8921_v41  ;;  %v8368_v63 = vld [vmem:[%s10745_s1 + $0x658] sm:$0xff]  }
  0x6f   :  { %7496 = vmatprep.subr.bf16.mxu1 %v8271_v14  ;;  %v8324_v14 = vld [vmem:[%s10745_s1 + $0x5c0] sm:$0xff]  }
  0x70   :  { %7475 = vmatpush3.bf16.msra.mxu0 %v8272_v15  ;;  %v1341_v15 = vrot.slane %v1313_v8, %v8921_v41  ;;  %v8377_v8 = vld [vmem:[%s10745_s1 + $0x6e8] sm:$0xff]  }
  0x71   :  { %7476 = vmatprep.subr.bf16.mxu0 %v8274_v17  ;;  %v8326_v17 = vld [vmem:[%s10745_s1 + $0x580] sm:$0xff]  }
  0x72   :  { %7497 = vmatpush3.bf16.msra.mxu1 %v8273_v16  ;;  %v8325_v16 = vld [vmem:[%s10745_s1 + $0x500] sm:$0xff]  }
  0x73   :  { %7498 = vmatprep.subr.bf16.mxu1 %v8275_v18  ;;  %v1342_v18 = vcombine.high %v1320_v12, %v1320_v12 }
  0x74   :  { %7477 = vmatpush3.bf16.msra.mxu0 %v8276_v19  ;;  %v8327_v19 = vld [vmem:[%s10745_s1 + $0x548] sm:$0xff]  }
  0x75   :  { %7478 = vmatprep.subr.bf16.mxu0 %v8278_v21  ;;  %v1345_v21 = vcombine.high %v1341_v15, %v1341_v15 }
  0x76   :  { %7499 = vmatpush3.bf16.msra.mxu1 %v8277_v20  ;;  %v8328_v20 = vld [vmem:[%s10745_s1 + $0x5c8] sm:$0xff]  }
  0x77   :  { %7500 = vmatprep.subr.bf16.mxu1 %v8279_v22  ;;  %v8329_v22 = vld [vmem:[%s10745_s1 + $0x508] sm:$0xff]  }
  0x78   :  { %7479 = vmatpush3.bf16.msra.mxu0 %v8280_v23  ;;  %v8330_v23 = vld [vmem:[%s10745_s1 + $0x588] sm:$0xff]  }
  0x79   :  { %7480 = vmatprep.subr.bf16.mxu0 %v8282_v25  ;;  %v8332_v25 = vld [vmem:[%s10745_s1 + $0x5d0] sm:$0xff]  }
  0x7a   :  { %7501 = vmatpush3.bf16.msra.mxu1 %v8281_v24  ;;  %v8331_v24 = vld [vmem:[%s10745_s1 + $0x550] sm:$0xff]  }
  0x7b   :  { %7502 = vmatprep.subr.bf16.mxu1 %v8283_v26  ;;  %v8333_v26 = vld [vmem:[%s10745_s1 + $0x510] sm:$0xff]  }
  0x7c   :  { %7481 = vmatpush3.bf16.msra.mxu0 %v8284_v27  ;;  %v8334_v27 = vld [vmem:[%s10745_s1 + $0x590] sm:$0xff]  }
  0x7d   :  { %7482 = vmatprep.subr.bf16.mxu0 %v8286_v29  ;;  %v8336_v29 = vld [vmem:[%s10745_s1 + $0x5d8] sm:$0xff]  }
  0x7e   :  { %7503 = vmatpush3.bf16.msra.mxu1 %v8285_v28  ;;  %v8335_v28 = vld [vmem:[%s10745_s1 + $0x558] sm:$0xff]  }
  0x7f   :  { %7504 = vmatprep.subr.bf16.mxu1 %v8287_v30  ;;  %v8337_v30 = vld [vmem:[%s10745_s1 + $0x518] sm:$0xff]  }
  0x80   :  { %7483 = vmatpush3.bf16.msra.mxu0 %v8288_v31  ;;  %v8338_v31 = vld [vmem:[%s10745_s1 + $0x598] sm:$0xff]  }
  0x81   :  { %7512 = vmatprep.subr.bf16.mxu0 %v8291_v34  ;;  %v8341_v34 = vld [vmem:[%s10745_s1 + $0x520] sm:$0xff]  }
  0x82   :  { %7505 = vmatpush3.bf16.msra.mxu1 %v8289_v32  ;;  %v8339_v32 = vld [vmem:[%s10745_s1 + $0x560] sm:$0xff]  }
  0x83   :  { %5441 = vmatmul.mubr.bf16.vlgmr.msra.gmra.mrb[12].mxu0 %v1278_v33  ;;  %7534 = vmatprep.subr.bf16.mxu1 %v8292_v35  ;;  %v8340_v33 = vld [vmem:[%s10745_s1 + $0x5e0] sm:$0xff]  }
  0x84   :  { %7513 = vmatpush3.bf16.msra.mxu0 %v8293_v36  ;;  %5520 = vmatprep.mubr.bf16.mxu0 %v1334_v7  ;;  %v8342_v35 = vld [vmem:[%s10745_s1 + $0x5a0] sm:$0xff]   ;;  %v8343_v36 = vld [vmem:[%s10745_s1 + $0x568] sm:$0xff]  }
  0x85   :  { %5481 = vmatmul.mubr.bf16.vlgmr.msra.gmra.mrb[12].mxu1 %v1294_v38  ;;  %7514 = vmatprep.subr.bf16.mxu0 %v8295_v39  ;;  %v8345_v38 = vld [vmem:[%s10745_s1 + $0x528] sm:$0xff]  }
  0x86   :  { %7535 = vmatpush3.bf16.msra.mxu1 %v8294_v37  ;;  %5560 = vmatprep.mubr.bf16.mxu1 %v1344_v11  ;;  %v8344_v37 = vld [vmem:[%s10745_s1 + $0x5e8] sm:$0xff]   ;;  %v8380_v11 = vld [vmem:[%s10745_s1 + $0x670] sm:$0xff]  }
  0x87   :  { %7536 = vmatprep.subr.bf16.mxu1 %v8296_v40  ;;  %v8346_v39 = vld [vmem:[%s10745_s1 + $0x5a8] sm:$0xff]   ;;  %v8347_v40 = vld [vmem:[%s10745_s1 + $0x570] sm:$0xff]  }
  0x88   :  { %7515 = vmatpush3.bf16.msra.mxu0 %v8297_v42  ;;  %v8348_v42 = vld [vmem:[%s10745_s1 + $0x5f0] sm:$0xff]   ;;  %v8376_v7 = vld [vmem:[%s10745_s1 + $0x668] sm:$0xff]  }
  0x89   :  { %7516 = vmatprep.subr.bf16.mxu0 %v8299_v44  ;;  %v8350_v44 = vld [vmem:[%s10745_s1 + $0x5b0] sm:$0xff]  }
  0x8a   :  { %7537 = vmatpush3.bf16.msra.mxu1 %v8298_v43  ;;  %v8349_v43 = vld [vmem:[%s10745_s1 + $0x530] sm:$0xff]  }
  0x8b   :  { %7538 = vmatprep.subr.bf16.mxu1 %v8300_v45  ;;  %v8351_v45 = vld [vmem:[%s10745_s1 + $0x578] sm:$0xff]  }
  0x8c   :  { %7517 = vmatpush3.bf16.msra.mxu0 %v8301_v46  ;;  %v8352_v46 = vld [vmem:[%s10745_s1 + $0x5f8] sm:$0xff]  }
  0x8d   :  { %7518 = vmatprep.subr.bf16.mxu0 %v8303_v48  ;;  %v8354_v48 = vld [vmem:[%s10745_s1 + $0x5b8] sm:$0xff]  }
  0x8e   :  { %7539 = vmatpush3.bf16.msra.mxu1 %v8302_v47  ;;  %v8353_v47 = vld [vmem:[%s10745_s1 + $0x538] sm:$0xff]  }
  0x8f   :  { %7540 = vmatprep.subr.bf16.mxu1 %v8304_v49  ;;  %v1327_v49 = vrot.slane %v9319_v4, %v8921_v41  ;;  %v8373_v4 = vld [vmem:[%s10745_s1 + $0x6e0] sm:$0xff]  }
  0x90   :  { %7519 = vmatpush3.bf16.msra.mxu0 %v8305_v50  ;;  %v8356_v50 = vld [vmem:[%s10745_s1 + $0x640] sm:$0xff]  }
  0x91   :  { %7520 = vmatprep.subr.bf16.mxu0 %v8307_v52  ;;  %v8358_v52 = vld [vmem:[%s10745_s1 + $0x600] sm:$0xff]  }
  0x92   :  { %7541 = vmatpush3.bf16.msra.mxu1 %v8306_v51  ;;  %v8357_v51 = vld [vmem:[%s10745_s1 + $0x6c0] sm:$0xff]  }
  0x93   :  { %7542 = vmatprep.subr.bf16.mxu1 %v8308_v53  ;;  %v8359_v53 = vld [vmem:[%s10745_s1 + $0x680] sm:$0xff]  }
  0x94   :  { %7521 = vmatpush3.bf16.msra.mxu0 %v8309_v54  ;;  %v1343_v54 = vcombine.high %v1327_v49, %v1327_v49 }
  0x95   :  { %7522 = vmatprep.subr.bf16.mxu0 %v8311_v56  ;;  %v8361_v56 = vld [vmem:[%s10745_s1 + $0x6c8] sm:$0xff]  }
  0x96   :  { %7543 = vmatpush3.bf16.msra.mxu1 %v8310_v55  ;;  %v8360_v55 = vld [vmem:[%s10745_s1 + $0x648] sm:$0xff]  }
  0x97   :  { %7544 = vmatprep.subr.bf16.mxu1 %v8312_v57  ;;  %v8362_v57 = vld [vmem:[%s10745_s1 + $0x608] sm:$0xff]  }
  0x98   :  { %7523 = vmatpush3.bf16.msra.mxu0 %v8313_v58  ;;  %v8363_v58 = vld [vmem:[%s10745_s1 + $0x688] sm:$0xff]  }
  0x99   :  { %7524 = vmatprep.subr.bf16.mxu0 %v8315_v60  ;;  %v8365_v60 = vld [vmem:[%s10745_s1 + $0x6d0] sm:$0xff]  }
  0x9a   :  { %7545 = vmatpush3.bf16.msra.mxu1 %v8314_v59  ;;  %v8364_v59 = vld [vmem:[%s10745_s1 + $0x650] sm:$0xff]  }
  0x9b   :  { %7546 = vmatprep.subr.bf16.mxu1 %v8316_v62  ;;  %v8367_v62 = vld [vmem:[%s10745_s1 + $0x690] sm:$0xff]  }
  0x9c   :  { %7525 = vmatpush3.bf16.msra.mxu0 %v8317_v1  ;;  %v8370_v1 = vld [vmem:[%s10745_s1 + $0x618] sm:$0xff]  }
  0x9d   :  { %7526 = vmatprep.subr.bf16.mxu0 %v8319_v5  ;;  %v8374_v5 = vld [vmem:[%s10745_s1 + $0x620] sm:$0xff]  }
  0x9e   :  { %7547 = vmatpush3.bf16.msra.mxu1 %v8318_v2  ;;  %v8371_v2 = vld [vmem:[%s10745_s1 + $0x698] sm:$0xff]  }
  0x9f   :  { %7548 = vmatprep.subr.bf16.mxu1 %v8320_v6  ;;  %v8375_v6 = vld [vmem:[%s10745_s1 + $0x6a0] sm:$0xff]  }
  0xa0   :  { %7527 = vmatpush3.bf16.msra.mxu0 %v8321_v9  ;;  %v8378_v9 = vld [vmem:[%s10745_s1 + $0x628] sm:$0xff]  }
  0xa1   :  { %7556 = vmatprep.subr.bf16.mxu0 %v8323_v13  ;;  %v8381_v13 = vld [vmem:[%s10745_s1 + $0x6f0] sm:$0xff]  }
  0xa2   :  { %7549 = vmatpush3.bf16.msra.mxu1 %v8322_v10  ;;  %v8379_v10 = vld [vmem:[%s10745_s1 + $0x6a8] sm:$0xff]  }
  0xa3   :  { %5521 = vmatmul.mubr.bf16.vlgmr.msra.gmra.mrb[16].mxu0 %v1320_v12  ;;  %7578 = vmatprep.subr.bf16.mxu1 %v8324_v14  ;;  %v25_v12 = vld [vmem:[%s10744_s0 + $0x18] sm:$0xff] }
  0xa4   :  { %7557 = vmatpush3.bf16.msra.mxu0 %v8325_v16  ;;  %5600 = vmatprep.mubr.bf16.mxu0 %v1341_v15  ;;  %v1353_v14 = vrot.slane %v25_v12, %v8921_v41  ;;  %v1346_v15 = vcombine.high %v25_v12, %v25_v12  ;;  %v8382_v16 = vld [vmem:[%s10745_s1 + $0x630] sm:$0xff]   ;;  %v8419_v12 = vld [vmem:[%s10745_s1 + $0x7b8] sm:$0xff]  }
  0xa5   :  { %5561 = vmatmul.mubr.bf16.vlgmr.msra.gmra.mrb[16].mxu1 %v1342_v18  ;;  %7558 = vmatprep.subr.bf16.mxu0 %v8327_v19 }
  0xa6   :  { %7579 = vmatpush3.bf16.msra.mxu1 %v8326_v17  ;;  %5640 = vmatprep.mubr.bf16.mxu1 %v1345_v21  ;;  %v8384_v17 = vld [vmem:[%s10745_s1 + $0x678] sm:$0xff]   ;;  %v1361_v18 = vcombine.high %v1353_v14, %v1353_v14  ;;  %v9525_v19 = vrot.slane %v1346_v15, %v8921_v41  ;;  %v8422_v15 = vld [vmem:[%s10745_s1 + $0x8c0] sm:$0xff]  }
  0xa7   :  { %7580 = vmatprep.subr.bf16.mxu1 %v8328_v20  ;;  %v8383_v20 = vld [vmem:[%s10745_s1 + $0x6b0] sm:$0xff]   ;;  %v8385_v21 = vld [vmem:[%s10745_s1 + $0x6f8] sm:$0xff]  }
  0xa8   :  { %7559 = vmatpush3.bf16.msra.mxu0 %v8329_v22  ;;  %v1383_v22 = vrot.slane %v1361_v18, %v8921_v41 }
  0xa9   :  { %7560 = vmatprep.subr.bf16.mxu0 %v8331_v24  ;;  %v8386_v24 = vld [vmem:[%s10745_s1 + $0x638] sm:$0xff]  }
  0xaa   :  { %7581 = vmatpush3.bf16.msra.mxu1 %v8330_v23  ;;  %v1362_v23 = vcombine.high %v9525_v19, %v9525_v19 }
  0xab   :  { %7582 = vmatprep.subr.bf16.mxu1 %v8332_v25  ;;  %v1393_v25 = vcombine.high %v1383_v22, %v1383_v22 }
  0xac   :  { %7561 = vmatpush3.bf16.msra.mxu0 %v8333_v26  ;;  %v1369_v26 = vrot.slane %v1353_v14, %v8921_v41  ;;  %v8421_v14 = vld [vmem:[%s10745_s1 + $0x840] sm:$0xff]  }
  0xad   :  { %7562 = vmatprep.subr.bf16.mxu0 %v8335_v28  ;;  %v8387_v28 = vld [vmem:[%s10745_s1 + $0x6b8] sm:$0xff]  }
  0xae   :  { %7583 = vmatpush3.bf16.msra.mxu1 %v8334_v27  ;;  %v8388_v27 = vld [vmem:[%s10745_s1 + $0x740] sm:$0xff]  }
  0xaf   :  { %7584 = vmatprep.subr.bf16.mxu1 %v8336_v29  ;;  %v1390_v29 = vrot.slane %v1362_v23, %v8921_v41  ;;  %v8429_v23 = vld [vmem:[%s10745_s1 + $0x850] sm:$0xff]  }
  0xb0   :  { %7563 = vmatpush3.bf16.msra.mxu0 %v8337_v30  ;;  %v8389_v30 = vld [vmem:[%s10745_s1 + $0x7c0] sm:$0xff]  }
  0xb1   :  { %7564 = vmatprep.subr.bf16.mxu0 %v8339_v32  ;;  %v1391_v32 = vcombine.high %v1369_v26, %v1369_v26 }
  0xb2   :  { %7585 = vmatpush3.bf16.msra.mxu1 %v8338_v31  ;;  %v8390_v31 = vld [vmem:[%s10745_s1 + $0x700] sm:$0xff]  }
  0xb3   :  { %7586 = vmatprep.subr.bf16.mxu1 %v8340_v33  ;;  %v8392_v33 = vld [vmem:[%s10745_s1 + $0x748] sm:$0xff]  }
  0xb4   :  { %7565 = vmatpush3.bf16.msra.mxu0 %v8341_v34  ;;  %v8391_v34 = vld [vmem:[%s10745_s1 + $0x780] sm:$0xff]  }
  0xb5   :  { %7566 = vmatprep.subr.bf16.mxu0 %v8343_v36  ;;  %v8393_v36 = vld [vmem:[%s10745_s1 + $0x7c8] sm:$0xff]  }
  0xb6   :  { %7587 = vmatpush3.bf16.msra.mxu1 %v8342_v35  ;;  %v1394_v35 = vcombine.high %v1390_v29, %v1390_v29 }
  0xb7   :  { %7588 = vmatprep.subr.bf16.mxu1 %v8344_v37  ;;  %v8394_v37 = vld [vmem:[%s10745_s1 + $0x708] sm:$0xff]  }
  0xb8   :  { %7567 = vmatpush3.bf16.msra.mxu0 %v8345_v38  ;;  %v8396_v38 = vld [vmem:[%s10745_s1 + $0x750] sm:$0xff]  }
  0xb9   :  { %7568 = vmatprep.subr.bf16.mxu0 %v8347_v40  ;;  %v8397_v40 = vld [vmem:[%s10745_s1 + $0x7d0] sm:$0xff]  }
  0xba   :  { %7589 = vmatpush3.bf16.msra.mxu1 %v8346_v39  ;;  %v8395_v39 = vld [vmem:[%s10745_s1 + $0x788] sm:$0xff]  }
  0xbb   :  { %7590 = vmatprep.subr.bf16.mxu1 %v8348_v42  ;;  %v8398_v42 = vld [vmem:[%s10745_s1 + $0x710] sm:$0xff]  }
  0xbc   :  { %7569 = vmatpush3.bf16.msra.mxu0 %v8349_v43  ;;  %v8400_v43 = vld [vmem:[%s10745_s1 + $0x758] sm:$0xff]  }
  0xbd   :  { %7570 = vmatprep.subr.bf16.mxu0 %v8351_v45  ;;  %v8401_v45 = vld [vmem:[%s10745_s1 + $0x7d8] sm:$0xff]  }
  0xbe   :  { %7591 = vmatpush3.bf16.msra.mxu1 %v8350_v44  ;;  %v8399_v44 = vld [vmem:[%s10745_s1 + $0x790] sm:$0xff]  }
  0xbf   :  { %7592 = vmatprep.subr.bf16.mxu1 %v8352_v46  ;;  %v8402_v46 = vld [vmem:[%s10745_s1 + $0x718] sm:$0xff]  }
  0xc0   :  { %7571 = vmatpush3.bf16.msra.mxu0 %v8353_v47  ;;  %v8403_v47 = vld [vmem:[%s10745_s1 + $0x798] sm:$0xff]  }
  0xc1   :  { %7600 = vmatprep.subr.bf16.mxu0 %v8356_v50  ;;  %v8406_v50 = vld [vmem:[%s10745_s1 + $0x720] sm:$0xff]  }
  0xc2   :  { %7593 = vmatpush3.bf16.msra.mxu1 %v8354_v48  ;;  %v8404_v48 = vld [vmem:[%s10745_s1 + $0x760] sm:$0xff]  }
  0xc3   :  { %5601 = vmatmul.mubr.bf16.vlgmr.msra.gmra.mrb[20].mxu0 %v1327_v49  ;;  %7622 = vmatprep.subr.bf16.mxu1 %v8357_v51  ;;  %v8405_v49 = vld [vmem:[%s10745_s1 + $0x7e0] sm:$0xff]  }
  0xc4   :  { %7601 = vmatpush3.bf16.msra.mxu0 %v8358_v52  ;;  %5680 = vmatprep.mubr.bf16.mxu0 %v1383_v22  ;;  %v8407_v51 = vld [vmem:[%s10745_s1 + $0x7a0] sm:$0xff]   ;;  %v8408_v52 = vld [vmem:[%s10745_s1 + $0x768] sm:$0xff]  }
  0xc5   :  { %5641 = vmatmul.mubr.bf16.vlgmr.msra.gmra.mrb[20].mxu1 %v1343_v54  ;;  %7602 = vmatprep.subr.bf16.mxu0 %v8360_v55  ;;  %v8410_v54 = vld [vmem:[%s10745_s1 + $0x728] sm:$0xff]  }
  0xc6   :  { %7623 = vmatpush3.bf16.msra.mxu1 %v8359_v53  ;;  %5720 = vmatprep.mubr.bf16.mxu1 %v1393_v25  ;;  %v8409_v53 = vld [vmem:[%s10745_s1 + $0x7e8] sm:$0xff]   ;;  %v8431_v25 = vld [vmem:[%s10745_s1 + $0x810] sm:$0xff]  }
  0xc7   :  { %7624 = vmatprep.subr.bf16.mxu1 %v8361_v56  ;;  %v8411_v55 = vld [vmem:[%s10745_s1 + $0x7a8] sm:$0xff]   ;;  %v6750_v56 = vld [vmem:[%s10746_s2] ss:$0 sm:$0xff] }
  0xc8   :  { %7603 = vmatpush3.bf16.msra.mxu0 %v8362_v57  ;;  %v8412_v57 = vld [vmem:[%s10745_s1 + $0x770] sm:$0xff]   ;;  %v8428_v22 = vld [vmem:[%s10745_s1 + $0x888] sm:$0xff]  }
  0xc9   :  { %7604 = vmatprep.subr.bf16.mxu0 %v8364_v59  ;;  %v8413_v59 = vld [vmem:[%s10745_s1 + $0x7f0] sm:$0xff]  }
  0xca   :  { %7625 = vmatpush3.bf16.msra.mxu1 %v8363_v58 }
  0xcb   :  { %7626 = vmatprep.subr.bf16.mxu1 %v8365_v60 }
  0xcc   :  { %7605 = vmatpush3.bf16.msra.mxu0 %v8366_v61  ;;  %v8414_v61 = vld [vmem:[%s10745_s1 + $0x730] sm:$0xff]  }
  0xcd   :  { %7606 = vmatprep.subr.bf16.mxu0 %v8368_v63 }
  0xce   :  { %7627 = vmatpush3.bf16.msra.mxu1 %v8367_v62 }
  0xcf   :  { %7628 = vmatprep.subr.bf16.mxu1 %v8369_v0 }
  0xd0   :  { %7607 = vmatpush3.bf16.msra.mxu0 %v8370_v1  ;;  %v8415_v1 = vld [vmem:[%s10745_s1 + $0x7b0] sm:$0xff]  }
  0xd1   :  { %7608 = vmatprep.subr.bf16.mxu0 %v8372_v3 }
  0xd2   :  { %7629 = vmatpush3.bf16.msra.mxu1 %v8371_v2  ;;  %v8416_v2 = vld [vmem:[%s10745_s1 + $0x778] sm:$0xff]  }
  0xd3   :  { %7630 = vmatprep.subr.bf16.mxu1 %v8373_v4 }
  0xd4   :  { %7609 = vmatpush3.bf16.msra.mxu0 %v8374_v5 }
  0xd5   :  { %7610 = vmatprep.subr.bf16.mxu0 %v8376_v7 }
  0xd6   :  { %7631 = vmatpush3.bf16.msra.mxu1 %v8375_v6 }
  0xd7   :  { %7632 = vmatprep.subr.bf16.mxu1 %v8377_v8  ;;  %v8417_v8 = vld [vmem:[%s10745_s1 + $0x7f8] sm:$0xff]  }
  0xd8   :  { %7611 = vmatpush3.bf16.msra.mxu0 %v8378_v9 }
  0xd9   :  { %7612 = vmatprep.subr.bf16.mxu0 %v8380_v11 }
  0xda   :  { %7633 = vmatpush3.bf16.msra.mxu1 %v8379_v10  ;;  %v8418_v10 = vld [vmem:[%s10745_s1 + $0x738] sm:$0xff]  }
  0xdb   :  { %7634 = vmatprep.subr.bf16.mxu1 %v8381_v13  ;;  %v1376_v13 = vrot.slane %v9525_v19, %v8921_v41  ;;  %v8425_v19 = vld [vmem:[%s10745_s1 + $0x848] sm:$0xff]  }
  0xdc   :  { %7613 = vmatpush3.bf16.msra.mxu0 %v8382_v16  ;;  %v8423_v16 = vld [vmem:[%s10745_s1 + $0x800] sm:$0xff]  }
  0xdd   :  { %7614 = vmatprep.subr.bf16.mxu0 %v8384_v17  ;;  %v8424_v17 = vld [vmem:[%s10745_s1 + $0x880] sm:$0xff]   ;;  %v1392_v18 = vcombine.high %v1376_v13, %v1376_v13 }
  0xde   :  { %7635 = vmatpush3.bf16.msra.mxu1 %v8383_v20  ;;  %v8426_v20 = vld [vmem:[%s10745_s1 + $0x8c8] sm:$0xff]  }
  0xdf   :  { %7636 = vmatprep.subr.bf16.mxu1 %v8385_v21  ;;  %v8427_v21 = vld [vmem:[%s10745_s1 + $0x808] sm:$0xff]  }
  0xe0   :  { %7615 = vmatpush3.bf16.msra.mxu0 %v8386_v24  ;;  %v8430_v24 = vld [vmem:[%s10745_s1 + $0x8d0] sm:$0xff]  }
  0xe1   :  { %7644 = vmatprep.subr.bf16.mxu0 %v8388_v27  ;;  %v8433_v27 = vld [vmem:[%s10745_s1 + $0x858] sm:$0xff]  }
  0xe2   :  { %7637 = vmatpush3.bf16.msra.mxu1 %v8387_v28  ;;  %v8434_v28 = vld [vmem:[%s10745_s1 + $0x8d8] sm:$0xff]  }
  0xe3   :  { %5681 = vmatmul.mubr.bf16.vlgmr.msra.gmra.mrb[24].mxu0 %v1369_v26  ;;  %7666 = vmatprep.subr.bf16.mxu1 %v8389_v30  ;;  %v8432_v26 = vld [vmem:[%s10745_s1 + $0x890] sm:$0xff]   ;;  %v8436_v30 = vld [vmem:[%s10745_s1 + $0x898] sm:$0xff]  }
  0xe4   :  { %7645 = vmatpush3.bf16.msra.mxu0 %v8390_v31  ;;  %5760 = vmatprep.mubr.bf16.mxu0 %v1390_v29  ;;  %v8435_v29 = vld [vmem:[%s10745_s1 + $0x818] sm:$0xff]   ;;  %v8437_v31 = vld [vmem:[%s10745_s1 + $0x860] sm:$0xff]  }
  0xe5   :  { %5721 = vmatmul.mubr.bf16.vlgmr.msra.gmra.mrb[24].mxu1 %v1391_v32  ;;  %7646 = vmatprep.subr.bf16.mxu0 %v8392_v33  ;;  %v8438_v32 = vld [vmem:[%s10745_s1 + $0x8e0] sm:$0xff]  }
  0xe6   :  { %7667 = vmatpush3.bf16.msra.mxu1 %v8391_v34  ;;  %5800 = vmatprep.mubr.bf16.mxu1 %v1394_v35  ;;  %v8439_v33 = vld [vmem:[%s10745_s1 + $0x820] sm:$0xff]   ;;  %v8441_v35 = vld [vmem:[%s10745_s1 + $0x868] sm:$0xff]  }
  0xe7   :  { %7668 = vmatprep.subr.bf16.mxu1 %v8393_v36  ;;  %v8440_v34 = vld [vmem:[%s10745_s1 + $0x8a0] sm:$0xff]   ;;  %v8442_v36 = vld [vmem:[%s10745_s1 + $0x8e8] sm:$0xff]  }
  0xe8   :  { %7647 = vmatpush3.bf16.msra.mxu0 %v8394_v37  ;;  %v8443_v37 = vld [vmem:[%s10745_s1 + $0x828] sm:$0xff]  }
  0xe9   :  { %7648 = vmatprep.subr.bf16.mxu0 %v8396_v38  ;;  %v8444_v38 = vld [vmem:[%s10745_s1 + $0x8a8] sm:$0xff]  }
  0xea   :  { %7669 = vmatpush3.bf16.msra.mxu1 %v8395_v39  ;;  %v8445_v39 = vld [vmem:[%s10745_s1 + $0x870] sm:$0xff]  }
  0xeb   :  { %7670 = vmatprep.subr.bf16.mxu1 %v8397_v40  ;;  %v8446_v40 = vld [vmem:[%s10745_s1 + $0x8f0] sm:$0xff]  }
  0xec   :  { %7649 = vmatpush3.bf16.msra.mxu0 %v8398_v42 }
  0xed   :  { %7650 = vmatprep.subr.bf16.mxu0 %v8400_v43  ;;  %v8447_v43 = vld [vmem:[%s10745_s1 + $0x830] sm:$0xff]  }
  0xee   :  { %7671 = vmatpush3.bf16.msra.mxu1 %v8399_v44 }
  0xef   :  { %7672 = vmatprep.subr.bf16.mxu1 %v8401_v45  ;;  %v26_v45 = vld [vmem:[%s10744_s0 + $0x20] sm:$0xff] }
  0xf0   :  { %7651 = vmatpush3.bf16.msra.mxu0 %v8402_v46 }
  0xf1   :  { %7652 = vmatprep.subr.bf16.mxu0 %v8404_v48 }
  0xf2   :  { %7673 = vmatpush3.bf16.msra.mxu1 %v8403_v47 }
  0xf3   :  { %7674 = vmatprep.subr.bf16.mxu1 %v8405_v49  ;;  %v8448_v49 = vld [vmem:[%s10745_s1 + $0x8b0] sm:$0xff]  }
  0xf4   :  { %7653 = vmatpush3.bf16.msra.mxu0 %v8406_v50  ;;  %v8449_v50 = vld [vmem:[%s10745_s1 + $0x878] sm:$0xff]  }
  0xf5   :  { %7654 = vmatprep.subr.bf16.mxu0 %v8408_v52  ;;  %v1395_v52 = vcombine.high %v26_v45, %v26_v45 }
  0xf6   :  { %7675 = vmatpush3.bf16.msra.mxu1 %v8407_v51  ;;  %v7352_v58 = vpop.f32.mrb[0].mxu0  ;;  %v1402_v51 = vrot.slane %v26_v45, %v8921_v41 }
  0xf7   :  { %v7353_v60 = vpop.f32.mrb[1].mxu0  ;;  %7676 = vmatprep.subr.bf16.mxu1 %v8409_v53  ;;  %v7374_v62 = vpop.f32.mrb[0].mxu1 }
  0xf8   :  { %v7354_v63 = vadd.f32 %v7353_v60, %v7352_v58  ;;  %v7355_v0 = vpop.f32.mrb[2].mxu0  ;;  %7655 = vmatpush3.bf16.msra.mxu0 %v8410_v54  ;;  %v7375_v3 = vpop.f32.mrb[1].mxu1  ;;  %v8450_v58 = vld [vmem:[%s10745_s1 + $0x8f8] sm:$0xff]  }
  0xf9   :  { %v7356_v4 = vpop.f32.mrb[3].mxu0  ;;  %7656 = vmatprep.subr.bf16.mxu0 %v8412_v57  ;;  %v7376_v6 = vadd.f32 %v7375_v3, %v7374_v62  ;;  %v7377_v7 = vpop.f32.mrb[2].mxu1  ;;  %v9746_v62 = vrot.slane %v1395_v52, %v8921_v41  ;;  %v8452_v0 = vld [vmem:[%s10745_s1 + $0x8b8] sm:$0xff]   ;;  %v8453_v3 = vld [vmem:[%s10745_s1 + $0x940] sm:$0xff]  }
  0xfa   :  { %v5203_v5 = vadd.f32 %v7354_v63, %v6750_v56  ;;  %7677 = vmatpush3.bf16.msra.mxu1 %v8411_v55  ;;  %v7378_v9 = vpop.f32.mrb[3].mxu1  ;;  %v8455_v7 = vld [vmem:[%s10745_s1 + $0x900] sm:$0xff]   ;;  %v8484_v52 = vld [vmem:[%s10745_s1 + $0x9b8] sm:$0xff]  }
  0xfb   :  { %7678 = vmatprep.subr.bf16.mxu1 %v8413_v59  ;;  %v1410_v59 = vcombine.high %v1402_v51, %v1402_v51  ;;  %v1411_v4 = vcombine.high %v9746_v62, %v9746_v62  ;;  %v8456_v9 = vld [vmem:[%s10745_s1 + $0x980] sm:$0xff]  }
  0xfc   :  { %v9640_v11 = vadd.f32 %v7376_v6, %v5203_v5  ;;  %7657 = vmatpush3.bf16.msra.mxu0 %v8414_v61  ;;  %v8451_v61 = vld [vmem:[%s10745_s1 + $0x838] sm:$0xff]   ;;  %v8454_v6 = vld [vmem:[%s10745_s1 + $0x9c0] sm:$0xff]  }
  0xfd   :  { %7658 = vmatprep.subr.bf16.mxu0 %v8416_v2  ;;  %v1418_v2 = vrot.slane %v1402_v51, %v8921_v41 }
  0xfe   :  { %7679 = vmatpush3.bf16.msra.mxu1 %v8415_v1  ;;  %v1432_v1 = vrot.slane %v1410_v59, %v8921_v41  ;;  %v8490_v59 = vld [vmem:[%s10745_s1 + $0xa48] sm:$0xff]  }
  0xff   :  { %7680 = vmatprep.subr.bf16.mxu1 %v8417_v8  ;;  %v1439_v8 = vrot.slane %v1411_v4, %v8921_v41  ;;  %v8499_v4 = vld [vmem:[%s10745_s1 + $0xad8] sm:$0xff]  }
 0x100   :  { %7659 = vmatpush3.bf16.msra.mxu0 %v8418_v10  ;;  %v1442_v5 = vcombine.high %v1432_v1, %v1432_v1  ;;  %v1440_v10 = vcombine.high %v1418_v2, %v1418_v2 }
 0x101   :  { %7688 = vmatprep.subr.bf16.mxu0 %v8421_v14  ;;  %v8459_v14 = vld [vmem:[%s10745_s1 + $0x908] sm:$0xff]  }
 0x102   :  { %7681 = vmatpush3.bf16.msra.mxu1 %v8419_v12  ;;  %v8458_v12 = vld [vmem:[%s10745_s1 + $0x9c8] sm:$0xff]  }
 0x103   :  { %5761 = vmatmul.mubr.bf16.vlgmr.msra.gmra.mrb[28].mxu0 %v1376_v13  ;;  %7710 = vmatprep.subr.bf16.mxu1 %v8422_v15  ;;  %v1443_v13 = vcombine.high %v1439_v8, %v1439_v8  ;;  %v8460_v15 = vld [vmem:[%s10745_s1 + $0x988] sm:$0xff]  }
 0x104   :  { %7689 = vmatpush3.bf16.msra.mxu0 %v8423_v16  ;;  %5840 = vmatprep.mubr.bf16.mxu0 %v1432_v1  ;;  %v8461_v16 = vld [vmem:[%s10745_s1 + $0x950] sm:$0xff]  }
 0x105   :  { %5801 = vmatmul.mubr.bf16.vlgmr.msra.gmra.mrb[28].mxu1 %v1392_v18  ;;  %7690 = vmatprep.subr.bf16.mxu0 %v8425_v19  ;;  %v8463_v18 = vld [vmem:[%s10745_s1 + $0x910] sm:$0xff]  }
 0x106   :  { %7711 = vmatpush3.bf16.msra.mxu1 %v8424_v17  ;;  %5880 = vmatprep.mubr.bf16.mxu1 %v1442_v5  ;;  %v8462_v17 = vld [vmem:[%s10745_s1 + $0x9d0] sm:$0xff]   ;;  %v8500_v5 = vld [vmem:[%s10745_s1 + $0xa18] sm:$0xff]  }
 0x107   :  { %7712 = vmatprep.subr.bf16.mxu1 %v8426_v20  ;;  %v8464_v19 = vld [vmem:[%s10745_s1 + $0x990] sm:$0xff]   ;;  %v8465_v20 = vld [vmem:[%s10745_s1 + $0x958] sm:$0xff]  }
 0x108   :  { %7691 = vmatpush3.bf16.msra.mxu0 %v8427_v21  ;;  %v8466_v21 = vld [vmem:[%s10745_s1 + $0x9d8] sm:$0xff]   ;;  %v8496_v1 = vld [vmem:[%s10745_s1 + $0xa10] sm:$0xff]  }
 0x109   :  { %7692 = vmatprep.subr.bf16.mxu0 %v8429_v23  ;;  %v8468_v23 = vld [vmem:[%s10745_s1 + $0x998] sm:$0xff]  }
 0x10a   :  { %7713 = vmatpush3.bf16.msra.mxu1 %v8428_v22  ;;  %v8467_v22 = vld [vmem:[%s10745_s1 + $0x918] sm:$0xff]  }
 0x10b   :  { %7714 = vmatprep.subr.bf16.mxu1 %v8430_v24  ;;  %v8469_v24 = vld [vmem:[%s10745_s1 + $0x960] sm:$0xff]  }
 0x10c   :  { %7693 = vmatpush3.bf16.msra.mxu0 %v8431_v25  ;;  %v8470_v25 = vld [vmem:[%s10745_s1 + $0x9e0] sm:$0xff]  }
 0x10d   :  { %7694 = vmatprep.subr.bf16.mxu0 %v8433_v27  ;;  %v8472_v27 = vld [vmem:[%s10745_s1 + $0x9a0] sm:$0xff]  }
 0x10e   :  { %7715 = vmatpush3.bf16.msra.mxu1 %v8432_v26  ;;  %v8471_v26 = vld [vmem:[%s10745_s1 + $0x920] sm:$0xff]  }
 0x10f   :  { %7716 = vmatprep.subr.bf16.mxu1 %v8434_v28  ;;  %v8473_v28 = vld [vmem:[%s10745_s1 + $0x968] sm:$0xff]  }
 0x110   :  { %7695 = vmatpush3.bf16.msra.mxu0 %v8435_v29  ;;  %v8474_v29 = vld [vmem:[%s10745_s1 + $0x9e8] sm:$0xff]  }
 0x111   :  { %7696 = vmatprep.subr.bf16.mxu0 %v8437_v31  ;;  %v8476_v31 = vld [vmem:[%s10745_s1 + $0x9a8] sm:$0xff]  }
 0x112   :  { %7717 = vmatpush3.bf16.msra.mxu1 %v8436_v30  ;;  %v8475_v30 = vld [vmem:[%s10745_s1 + $0x928] sm:$0xff]  }
 0x113   :  { %7718 = vmatprep.subr.bf16.mxu1 %v8438_v32  ;;  %v8477_v32 = vld [vmem:[%s10745_s1 + $0x970] sm:$0xff]  }
 0x114   :  { %7697 = vmatpush3.bf16.msra.mxu0 %v8439_v33 }
 0x115   :  { %7698 = vmatprep.subr.bf16.mxu0 %v8441_v35 }
 0x116   :  { %7719 = vmatpush3.bf16.msra.mxu1 %v8440_v34  ;;  %v7396_v42 = vpop.f32.mrb[4].mxu0  ;;  %v8478_v34 = vld [vmem:[%s10745_s1 + $0x9f0] sm:$0xff]  }
 0x117   :  { %v7397_v44 = vpop.f32.mrb[5].mxu0  ;;  %7720 = vmatprep.subr.bf16.mxu1 %v8442_v36  ;;  %v7418_v46 = vpop.f32.mrb[4].mxu1  ;;  %v8479_v36 = vld [vmem:[%s10745_s1 + $0x930] sm:$0xff]  }
 0x118   :  { %v7398_v47 = vadd.f32 %v7397_v44, %v7396_v42  ;;  %v7399_v48 = vpop.f32.mrb[6].mxu0  ;;  %7699 = vmatpush3.bf16.msra.mxu0 %v8443_v37  ;;  %v7419_v53 = vpop.f32.mrb[5].mxu1  ;;  %v8481_v42 = vld [vmem:[%s10745_s1 + $0x978] sm:$0xff]  }
 0x119   :  { %v7400_v54 = vpop.f32.mrb[7].mxu0  ;;  %7700 = vmatprep.subr.bf16.mxu0 %v8445_v39  ;;  %v7420_v56 = vadd.f32 %v7419_v53, %v7418_v46  ;;  %v7421_v57 = vpop.f32.mrb[6].mxu1  ;;  %v8482_v48 = vld [vmem:[%s10745_s1 + $0x9f8] sm:$0xff]   ;;  %v1425_v53 = vrot.slane %v9746_v62, %v8921_v41  ;;  %v8493_v62 = vld [vmem:[%s10745_s1 + $0xa88] sm:$0xff]  }
 0x11a   :  { %v5283_v55 = vadd.f32 %v7398_v47, %v9640_v11  ;;  %7721 = vmatpush3.bf16.msra.mxu1 %v8444_v38  ;;  %v7422_v60 = vpop.f32.mrb[7].mxu1  ;;  %v8457_v11 = vld [vmem:[%s10745_s1 + $0x948] sm:$0xff]   ;;  %v8486_v54 = vld [vmem:[%s10745_s1 + $0xa40] sm:$0xff]  }
 0x11b   :  { %7722 = vmatprep.subr.bf16.mxu1 %v8446_v40  ;;  %v8480_v40 = vld [vmem:[%s10745_s1 + $0x9b0] sm:$0xff]   ;;  %v8489_v57 = vld [vmem:[%s10745_s1 + $0xa80] sm:$0xff]   ;;  %v8491_v60 = vld [vmem:[%s10745_s1 + $0xac8] sm:$0xff]  }
 0x11c   :  { %v9748_v63 = vadd.f32 %v7420_v56, %v5283_v55  ;;  %7701 = vmatpush3.bf16.msra.mxu0 %v8447_v43  ;;  %v8487_v55 = vld [vmem:[%s10745_s1 + $0xac0] sm:$0xff]  }
 0x11d   :  { %7702 = vmatprep.subr.bf16.mxu0 %v8449_v50  ;;  %v8483_v50 = vld [vmem:[%s10745_s1 + $0x938] sm:$0xff]   ;;  %v8488_v56 = vld [vmem:[%s10745_s1 + $0xa00] sm:$0xff]  }
 0x11e   :  { %7723 = vmatpush3.bf16.msra.mxu1 %v8448_v49 }
 0x11f   :  { %7724 = vmatprep.subr.bf16.mxu1 %v8450_v58  ;;  %v1441_v58 = vcombine.high %v1425_v53, %v1425_v53 }
 0x120   :  { %7703 = vmatpush3.bf16.msra.mxu0 %v8451_v61  ;;  %v8492_v61 = vld [vmem:[%s10745_s1 + $0xa08] sm:$0xff]  }
 0x121   :  { %7732 = vmatprep.subr.bf16.mxu0 %v8453_v3  ;;  %v8498_v3 = vld [vmem:[%s10745_s1 + $0xa58] sm:$0xff]  }
 0x122   :  { %7725 = vmatpush3.bf16.msra.mxu1 %v8452_v0  ;;  %v8495_v0 = vld [vmem:[%s10745_s1 + $0xad0] sm:$0xff]  }
 0x123   :  { %5841 = vmatmul.mubr.bf16.vlgmr.msra.gmra.mrb[32].mxu0 %v1418_v2  ;;  %7754 = vmatprep.subr.bf16.mxu1 %v8454_v6  ;;  %v8497_v2 = vld [vmem:[%s10745_s1 + $0xa90] sm:$0xff]   ;;  %v8501_v6 = vld [vmem:[%s10745_s1 + $0xa98] sm:$0xff]  }
 0x124   :  { %7733 = vmatpush3.bf16.msra.mxu0 %v8455_v7  ;;  %5920 = vmatprep.mubr.bf16.mxu0 %v1439_v8  ;;  %v8502_v7 = vld [vmem:[%s10745_s1 + $0xa60] sm:$0xff]  }
 0x125   :  { %5881 = vmatmul.mubr.bf16.vlgmr.msra.gmra.mrb[32].mxu1 %v1440_v10  ;;  %7734 = vmatprep.subr.bf16.mxu0 %v8457_v11  ;;  %v8503_v8 = vld [vmem:[%s10745_s1 + $0xae0] sm:$0xff]   ;;  %v8506_v11 = vld [vmem:[%s10745_s1 + $0xa68] sm:$0xff]  }
 0x126   :  { %7755 = vmatpush3.bf16.msra.mxu1 %v8456_v9  ;;  %5960 = vmatprep.mubr.bf16.mxu1 %v1443_v13  ;;  %v8504_v9 = vld [vmem:[%s10745_s1 + $0xa20] sm:$0xff]   ;;  %v8508_v13 = vld [vmem:[%s10745_s1 + $0xa28] sm:$0xff]  }
 0x127   :  { %7756 = vmatprep.subr.bf16.mxu1 %v8458_v12  ;;  %v8505_v10 = vld [vmem:[%s10745_s1 + $0xaa0] sm:$0xff]   ;;  %v8507_v12 = vld [vmem:[%s10745_s1 + $0xae8] sm:$0xff]  }
 0x128   :  { %7735 = vmatpush3.bf16.msra.mxu0 %v8459_v14  ;;  %v8509_v14 = vld [vmem:[%s10745_s1 + $0xaa8] sm:$0xff]  }
 0x129   :  { %7736 = vmatprep.subr.bf16.mxu0 %v8461_v16 }
 0x12a   :  { %7757 = vmatpush3.bf16.msra.mxu1 %v8460_v15  ;;  %v8510_v15 = vld [vmem:[%s10745_s1 + $0xa70] sm:$0xff]  }
 0x12b   :  { %7758 = vmatprep.subr.bf16.mxu1 %v8462_v17  ;;  %v8511_v17 = vld [vmem:[%s10745_s1 + $0xaf0] sm:$0xff]  }
 0x12c   :  { %7737 = vmatpush3.bf16.msra.mxu0 %v8463_v18 }
 0x12d   :  { %7738 = vmatprep.subr.bf16.mxu0 %v8465_v20 }
 0x12e   :  { %7759 = vmatpush3.bf16.msra.mxu1 %v8464_v19  ;;  %v8512_v19 = vld [vmem:[%s10745_s1 + $0xa30] sm:$0xff]  }
 0x12f   :  { %7760 = vmatprep.subr.bf16.mxu1 %v8466_v21 }
 0x130   :  { %7739 = vmatpush3.bf16.msra.mxu0 %v8467_v22 }
 0x131   :  { %7740 = vmatprep.subr.bf16.mxu0 %v8469_v24  ;;  %v8514_v24 = vld [vmem:[%s10745_s1 + $0xa78] sm:$0xff]  }
 0x132   :  { %7761 = vmatpush3.bf16.msra.mxu1 %v8468_v23  ;;  %v8513_v23 = vld [vmem:[%s10745_s1 + $0xab0] sm:$0xff]  }
 0x133   :  { %7762 = vmatprep.subr.bf16.mxu1 %v8470_v25  ;;  %v27_v25 = vld [vmem:[%s10744_s0 + $0x28] sm:$0xff] }
 0x134   :  { %7741 = vmatpush3.bf16.msra.mxu0 %v8471_v26 }
 0x135   :  { %7742 = vmatprep.subr.bf16.mxu0 %v8473_v28  ;;  %v1451_v28 = vrot.slane %v27_v25, %v8921_v41 }
 0x136   :  { %7763 = vmatpush3.bf16.msra.mxu1 %v8472_v27  ;;  %v7440_v33 = vpop.f32.mrb[8].mxu0 }
 0x137   :  { %v7441_v35 = vpop.f32.mrb[9].mxu0  ;;  %7764 = vmatprep.subr.bf16.mxu1 %v8474_v29  ;;  %v1444_v29 = vcombine.high %v27_v25, %v27_v25  ;;  %v8548_v25 = vld [vmem:[%s10745_s1 + $0xb38] sm:$0xff]  }
 0x138   :  { %v7462_v37 = vpop.f32.mrb[8].mxu1  ;;  %v7442_v38 = vadd.f32 %v7441_v35, %v7440_v33  ;;  %v7443_v39 = vpop.f32.mrb[10].mxu0  ;;  %7743 = vmatpush3.bf16.msra.mxu0 %v8475_v30  ;;  %v8515_v33 = vld [vmem:[%s10745_s1 + $0xaf8] sm:$0xff]  }
 0x139   :  { %v7463_v43 = vpop.f32.mrb[9].mxu1  ;;  %v7444_v44 = vpop.f32.mrb[11].mxu0  ;;  %7744 = vmatprep.subr.bf16.mxu0 %v8477_v32  ;;  %v8516_v35 = vld [vmem:[%s10745_s1 + $0xa38] sm:$0xff]  }
 0x13a   :  { %v5363_v45 = vadd.f32 %v7442_v38, %v9748_v63  ;;  %v7464_v46 = vadd.f32 %v7463_v43, %v7462_v37  ;;  %v7465_v47 = vpop.f32.mrb[10].mxu1  ;;  %7765 = vmatpush3.bf16.msra.mxu1 %v8476_v31  ;;  %v8494_v63 = vld [vmem:[%s10745_s1 + $0xa50] sm:$0xff]   ;;  %v9958_v37 = vrot.slane %v1444_v29, %v8921_v41  ;;  %v8517_v39 = vld [vmem:[%s10745_s1 + $0xab8] sm:$0xff]   ;;  %v8518_v43 = vld [vmem:[%s10745_s1 + $0xb40] sm:$0xff]  }
 0x13b   :  { %v7466_v49 = vpop.f32.mrb[11].mxu1  ;;  %7766 = vmatprep.subr.bf16.mxu1 %v8478_v34  ;;  %v8520_v47 = vld [vmem:[%s10745_s1 + $0xb00] sm:$0xff]  }
 0x13c   :  { %v9852_v51 = vadd.f32 %v7464_v46, %v5363_v45  ;;  %7745 = vmatpush3.bf16.msra.mxu0 %v8479_v36  ;;  %v1459_v36 = vcombine.high %v1451_v28, %v1451_v28  ;;  %v1460_v44 = vcombine.high %v9958_v37, %v9958_v37  ;;  %v8519_v45 = vld [vmem:[%s10745_s1 + $0xbc0] sm:$0xff]  }
 0x13d   :  { %7746 = vmatprep.subr.bf16.mxu0 %v8481_v42  ;;  %v1467_v42 = vrot.slane %v1451_v28, %v8921_v41  ;;  %v8521_v49 = vld [vmem:[%s10745_s1 + $0xb80] sm:$0xff]   ;;  %v1474_v28 = vrot.slane %v9958_v37, %v8921_v41  ;;  %v8558_v37 = vld [vmem:[%s10745_s1 + $0xc88] sm:$0xff]  }
 0x13e   :  { %7767 = vmatpush3.bf16.msra.mxu1 %v8480_v40  ;;  %v1481_v40 = vrot.slane %v1459_v36, %v8921_v41  ;;  %v8551_v29 = vld [vmem:[%s10745_s1 + $0xc40] sm:$0xff]   ;;  %v8557_v36 = vld [vmem:[%s10745_s1 + $0xc08] sm:$0xff]  }
 0x13f   :  { %7768 = vmatprep.subr.bf16.mxu1 %v8482_v48  ;;  %v1488_v48 = vrot.slane %v1460_v44, %v8921_v41  ;;  %v8564_v44 = vld [vmem:[%s10745_s1 + $0xcd8] sm:$0xff]  }
 0x140   :  { %7747 = vmatpush3.bf16.msra.mxu0 %v8483_v50  ;;  %v1491_v46 = vcombine.high %v1481_v40, %v1481_v40  ;;  %v1489_v50 = vcombine.high %v1467_v42, %v1467_v42 }
 0x141   :  { %7776 = vmatprep.subr.bf16.mxu0 %v8486_v54  ;;  %v8524_v54 = vld [vmem:[%s10745_s1 + $0xb08] sm:$0xff]  }
 0x142   :  { %7769 = vmatpush3.bf16.msra.mxu1 %v8484_v52  ;;  %v8523_v52 = vld [vmem:[%s10745_s1 + $0xbc8] sm:$0xff]  }
 0x143   :  { %5921 = vmatmul.mubr.bf16.vlgmr.msra.gmra.mrb[36].mxu0 %v1425_v53  ;;  %7798 = vmatprep.subr.bf16.mxu1 %v8487_v55  ;;  %v1492_v53 = vcombine.high %v1488_v48, %v1488_v48  ;;  %v8525_v55 = vld [vmem:[%s10745_s1 + $0xb88] sm:$0xff]  }
 0x144   :  { %7777 = vmatpush3.bf16.msra.mxu0 %v8488_v56  ;;  %6000 = vmatprep.mubr.bf16.mxu0 %v1481_v40  ;;  %v8526_v56 = vld [vmem:[%s10745_s1 + $0xb50] sm:$0xff]  }
 0x145   :  { %5961 = vmatmul.mubr.bf16.vlgmr.msra.gmra.mrb[36].mxu1 %v1441_v58  ;;  %7778 = vmatprep.subr.bf16.mxu0 %v8490_v59  ;;  %v8528_v58 = vld [vmem:[%s10745_s1 + $0xb10] sm:$0xff]  }
 0x146   :  { %7799 = vmatpush3.bf16.msra.mxu1 %v8489_v57  ;;  %6040 = vmatprep.mubr.bf16.mxu1 %v1491_v46  ;;  %v8527_v57 = vld [vmem:[%s10745_s1 + $0xbd0] sm:$0xff]   ;;  %v8566_v46 = vld [vmem:[%s10745_s1 + $0xc98] sm:$0xff]  }
 0x147   :  { %7800 = vmatprep.subr.bf16.mxu1 %v8491_v60  ;;  %v8529_v59 = vld [vmem:[%s10745_s1 + $0xb90] sm:$0xff]   ;;  %v8530_v60 = vld [vmem:[%s10745_s1 + $0xb58] sm:$0xff]  }
 0x148   :  { %7779 = vmatpush3.bf16.msra.mxu0 %v8492_v61  ;;  %v8531_v61 = vld [vmem:[%s10745_s1 + $0xbd8] sm:$0xff]   ;;  %v8561_v40 = vld [vmem:[%s10745_s1 + $0xc10] sm:$0xff]  }
 0x149   :  { %7780 = vmatprep.subr.bf16.mxu0 %v8494_v63  ;;  %v8533_v63 = vld [vmem:[%s10745_s1 + $0xb98] sm:$0xff]  }
 0x14a   :  { %7801 = vmatpush3.bf16.msra.mxu1 %v8493_v62  ;;  %v8532_v62 = vld [vmem:[%s10745_s1 + $0xb18] sm:$0xff]  }
 0x14b   :  { %7802 = vmatprep.subr.bf16.mxu1 %v8495_v0  ;;  %v8534_v0 = vld [vmem:[%s10745_s1 + $0xb60] sm:$0xff]  }
 0x14c   :  { %7781 = vmatpush3.bf16.msra.mxu0 %v8496_v1  ;;  %v8535_v1 = vld [vmem:[%s10745_s1 + $0xbe0] sm:$0xff]  }
 0x14d   :  { %7782 = vmatprep.subr.bf16.mxu0 %v8498_v3  ;;  %v8537_v3 = vld [vmem:[%s10745_s1 + $0xba0] sm:$0xff]  }
 0x14e   :  { %7803 = vmatpush3.bf16.msra.mxu1 %v8497_v2  ;;  %v8536_v2 = vld [vmem:[%s10745_s1 + $0xb20] sm:$0xff]  }
 0x14f   :  { %7804 = vmatprep.subr.bf16.mxu1 %v8499_v4  ;;  %v8538_v4 = vld [vmem:[%s10745_s1 + $0xb68] sm:$0xff]  }
 0x150   :  { %7783 = vmatpush3.bf16.msra.mxu0 %v8500_v5  ;;  %v8539_v5 = vld [vmem:[%s10745_s1 + $0xbe8] sm:$0xff]  }
 0x151   :  { %7784 = vmatprep.subr.bf16.mxu0 %v8502_v7  ;;  %v8541_v7 = vld [vmem:[%s10745_s1 + $0xba8] sm:$0xff]  }
 0x152   :  { %7805 = vmatpush3.bf16.msra.mxu1 %v8501_v6  ;;  %v8540_v6 = vld [vmem:[%s10745_s1 + $0xb28] sm:$0xff]  }
 0x153   :  { %7806 = vmatprep.subr.bf16.mxu1 %v8503_v8  ;;  %v8542_v8 = vld [vmem:[%s10745_s1 + $0xb70] sm:$0xff]  }
 0x154   :  { %7785 = vmatpush3.bf16.msra.mxu0 %v8504_v9 }
 0x155   :  { %7786 = vmatprep.subr.bf16.mxu0 %v8506_v11 }
 0x156   :  { %7807 = vmatpush3.bf16.msra.mxu1 %v8505_v10  ;;  %v7484_v16 = vpop.f32.mrb[12].mxu0  ;;  %v8543_v10 = vld [vmem:[%s10745_s1 + $0xbf0] sm:$0xff]  }
 0x157   :  { %v7485_v18 = vpop.f32.mrb[13].mxu0  ;;  %7808 = vmatprep.subr.bf16.mxu1 %v8507_v12  ;;  %v8544_v12 = vld [vmem:[%s10745_s1 + $0xb30] sm:$0xff]  }
 0x158   :  { %v7506_v20 = vpop.f32.mrb[12].mxu1  ;;  %v7486_v21 = vadd.f32 %v7485_v18, %v7484_v16  ;;  %v7487_v22 = vpop.f32.mrb[14].mxu0  ;;  %7787 = vmatpush3.bf16.msra.mxu0 %v8508_v13  ;;  %v8545_v16 = vld [vmem:[%s10745_s1 + $0xbb0] sm:$0xff]  }
 0x159   :  { %v7507_v26 = vpop.f32.mrb[13].mxu1  ;;  %v7488_v27 = vpop.f32.mrb[15].mxu0  ;;  %7788 = vmatprep.subr.bf16.mxu0 %v8510_v15 }
 0x15a   :  { %v5443_v30 = vadd.f32 %v7486_v21, %v9852_v51  ;;  %v7508_v31 = vadd.f32 %v7507_v26, %v7506_v20  ;;  %v7509_v32 = vpop.f32.mrb[14].mxu1  ;;  %7809 = vmatpush3.bf16.msra.mxu1 %v8509_v14  ;;  %v8522_v51 = vld [vmem:[%s10745_s1 + $0xb48] sm:$0xff]   ;;  %v8549_v27 = vld [vmem:[%s10745_s1 + $0xbb8] sm:$0xff]  }
 0x15b   :  { %v7510_v34 = vpop.f32.mrb[15].mxu1  ;;  %7810 = vmatprep.subr.bf16.mxu1 %v8511_v17  ;;  %v8546_v17 = vld [vmem:[%s10745_s1 + $0xb78] sm:$0xff]   ;;  %v8554_v32 = vld [vmem:[%s10745_s1 + $0xc80] sm:$0xff]  }
 0x15c   :  { %v9960_v38 = vadd.f32 %v7508_v31, %v5443_v30  ;;  %7789 = vmatpush3.bf16.msra.mxu0 %v8512_v19  ;;  %v8552_v30 = vld [vmem:[%s10745_s1 + $0xcc0] sm:$0xff]   ;;  %v8555_v34 = vld [vmem:[%s10745_s1 + $0xc48] sm:$0xff]  }
 0x15d   :  { %7790 = vmatprep.subr.bf16.mxu0 %v8514_v24  ;;  %v8553_v31 = vld [vmem:[%s10745_s1 + $0xc00] sm:$0xff]  }
 0x15e   :  { %7811 = vmatpush3.bf16.msra.mxu1 %v8513_v23  ;;  %v8547_v23 = vld [vmem:[%s10745_s1 + $0xbf8] sm:$0xff]  }
 0x15f   :  { %7812 = vmatprep.subr.bf16.mxu1 %v8515_v33  ;;  %v1490_v33 = vcombine.high %v1474_v28, %v1474_v28 }
 0x160   :  { %7791 = vmatpush3.bf16.msra.mxu0 %v8516_v35  ;;  %v8556_v35 = vld [vmem:[%s10745_s1 + $0xcc8] sm:$0xff]  }
 0x161   :  { %7820 = vmatprep.subr.bf16.mxu0 %v8518_v43  ;;  %v8563_v43 = vld [vmem:[%s10745_s1 + $0xc58] sm:$0xff]  }
 0x162   :  { %7813 = vmatpush3.bf16.msra.mxu1 %v8517_v39  ;;  %v8560_v39 = vld [vmem:[%s10745_s1 + $0xcd0] sm:$0xff]  }
 0x163   :  { %6001 = vmatmul.mubr.bf16.vlgmr.msra.gmra.mrb[40].mxu0 %v1467_v42  ;;  %7842 = vmatprep.subr.bf16.mxu1 %v8519_v45  ;;  %v8562_v42 = vld [vmem:[%s10745_s1 + $0xc90] sm:$0xff]   ;;  %v8565_v45 = vld [vmem:[%s10745_s1 + $0xc18] sm:$0xff]  }
 0x164   :  { %7821 = vmatpush3.bf16.msra.mxu0 %v8520_v47  ;;  %6080 = vmatprep.mubr.bf16.mxu0 %v1488_v48  ;;  %v8567_v47 = vld [vmem:[%s10745_s1 + $0xc60] sm:$0xff]  }
 0x165   :  { %6041 = vmatmul.mubr.bf16.vlgmr.msra.gmra.mrb[40].mxu1 %v1489_v50  ;;  %7822 = vmatprep.subr.bf16.mxu0 %v8522_v51  ;;  %v8568_v48 = vld [vmem:[%s10745_s1 + $0xce0] sm:$0xff]   ;;  %v8571_v51 = vld [vmem:[%s10745_s1 + $0xc68] sm:$0xff]  }
 0x166   :  { %7843 = vmatpush3.bf16.msra.mxu1 %v8521_v49  ;;  %6120 = vmatprep.mubr.bf16.mxu1 %v1492_v53  ;;  %v8569_v49 = vld [vmem:[%s10745_s1 + $0xc20] sm:$0xff]   ;;  %v8573_v53 = vld [vmem:[%s10745_s1 + $0xc28] sm:$0xff]  }
 0x167   :  { %7844 = vmatprep.subr.bf16.mxu1 %v8523_v52  ;;  %v8570_v50 = vld [vmem:[%s10745_s1 + $0xca0] sm:$0xff]   ;;  %v8572_v52 = vld [vmem:[%s10745_s1 + $0xce8] sm:$0xff]  }
 0x168   :  { %7823 = vmatpush3.bf16.msra.mxu0 %v8524_v54  ;;  %v8574_v54 = vld [vmem:[%s10745_s1 + $0xca8] sm:$0xff]  }
 0x169   :  { %7824 = vmatprep.subr.bf16.mxu0 %v8526_v56 }
 0x16a   :  { %7845 = vmatpush3.bf16.msra.mxu1 %v8525_v55  ;;  %v8575_v55 = vld [vmem:[%s10745_s1 + $0xc70] sm:$0xff]  }
 0x16b   :  { %7846 = vmatprep.subr.bf16.mxu1 %v8527_v57  ;;  %v8576_v57 = vld [vmem:[%s10745_s1 + $0xcf0] sm:$0xff]  }
 0x16c   :  { %7825 = vmatpush3.bf16.msra.mxu0 %v8528_v58 }
 0x16d   :  { %7826 = vmatprep.subr.bf16.mxu0 %v8530_v60 }
 0x16e   :  { %7847 = vmatpush3.bf16.msra.mxu1 %v8529_v59  ;;  %v8577_v59 = vld [vmem:[%s10745_s1 + $0xc30] sm:$0xff]  }
 0x16f   :  { %7848 = vmatprep.subr.bf16.mxu1 %v8531_v61 }
 0x170   :  { %7827 = vmatpush3.bf16.msra.mxu0 %v8532_v62 }
 0x171   :  { %7828 = vmatprep.subr.bf16.mxu0 %v8534_v0 }
 0x172   :  { %7849 = vmatpush3.bf16.msra.mxu1 %v8533_v63  ;;  %v8578_v63 = vld [vmem:[%s10745_s1 + $0xcb0] sm:$0xff]  }
 0x173   :  { %7850 = vmatprep.subr.bf16.mxu1 %v8535_v1 }
 0x174   :  { %7829 = vmatpush3.bf16.msra.mxu0 %v8536_v2  ;;  %v8579_v2 = vld [vmem:[%s10745_s1 + $0xc78] sm:$0xff]  }
 0x175   :  { %7830 = vmatprep.subr.bf16.mxu0 %v8538_v4 }
 0x176   :  { %7851 = vmatpush3.bf16.msra.mxu1 %v8537_v3  ;;  %v7528_v9 = vpop.f32.mrb[16].mxu0  ;;  %v28_v3 = vld [vmem:[%s10744_s0 + $0x30] sm:$0xff] }
 0x177   :  { %v7529_v11 = vpop.f32.mrb[17].mxu0  ;;  %7852 = vmatprep.subr.bf16.mxu1 %v8539_v5 }
 0x178   :  { %v7550_v13 = vpop.f32.mrb[16].mxu1  ;;  %v7530_v14 = vadd.f32 %v7529_v11, %v7528_v9  ;;  %v7531_v15 = vpop.f32.mrb[18].mxu0  ;;  %7831 = vmatpush3.bf16.msra.mxu0 %v8540_v6  ;;  %v1493_v9 = vcombine.high %v28_v3, %v28_v3  ;;  %v8581_v11 = vld [vmem:[%s10745_s1 + $0xc38] sm:$0xff]  }
 0x179   :  { %v7551_v18 = vpop.f32.mrb[17].mxu1  ;;  %v7532_v19 = vpop.f32.mrb[19].mxu0  ;;  %7832 = vmatprep.subr.bf16.mxu0 %v8542_v8  ;;  %v1500_v8 = vrot.slane %v28_v3, %v8921_v41  ;;  %v8614_v3 = vld [vmem:[%s10745_s1 + $0xdb8] sm:$0xff]  }
 0x17a   :  { %v5523_v20 = vadd.f32 %v7530_v14, %v9960_v38  ;;  %v7552_v21 = vadd.f32 %v7551_v18, %v7550_v13  ;;  %v7553_v22 = vpop.f32.mrb[18].mxu1  ;;  %7853 = vmatpush3.bf16.msra.mxu1 %v8541_v7  ;;  %v8559_v38 = vld [vmem:[%s10745_s1 + $0xc50] sm:$0xff]   ;;  %v8580_v7 = vld [vmem:[%s10745_s1 + $0xcf8] sm:$0xff]   ;;  %v10175_v15 = vrot.slane %v1493_v9, %v8921_v41  ;;  %v8584_v19 = vld [vmem:[%s10745_s1 + $0xdc0] sm:$0xff]  }
 0x17b   :  { %v7554_v24 = vpop.f32.mrb[19].mxu1  ;;  %7854 = vmatprep.subr.bf16.mxu1 %v8543_v10  ;;  %v8582_v13 = vld [vmem:[%s10745_s1 + $0xcb8] sm:$0xff]   ;;  %v1508_v14 = vcombine.high %v1500_v8, %v1500_v8 }
 0x17c   :  { %v10064_v26 = vadd.f32 %v7552_v21, %v5523_v20  ;;  %7833 = vmatpush3.bf16.msra.mxu0 %v8544_v12  ;;  %v1509_v20 = vcombine.high %v10175_v15, %v10175_v15  ;;  %v8585_v21 = vld [vmem:[%s10745_s1 + $0xd00] sm:$0xff]  }
 0x17d   :  { %7834 = vmatprep.subr.bf16.mxu0 %v8546_v17  ;;  %v8583_v17 = vld [vmem:[%s10745_s1 + $0xd40] sm:$0xff]   ;;  %v1530_v18 = vrot.slane %v1508_v14, %v8921_v41  ;;  %v8624_v14 = vld [vmem:[%s10745_s1 + $0xe50] sm:$0xff]  }
 0x17e   :  { %7855 = vmatpush3.bf16.msra.mxu1 %v8545_v16  ;;  %v1516_v16 = vrot.slane %v1500_v8, %v8921_v41  ;;  %v1537_v24 = vrot.slane %v1509_v20, %v8921_v41  ;;  %v8619_v8 = vld [vmem:[%s10745_s1 + $0xe80] sm:$0xff]   ;;  %v8630_v20 = vld [vmem:[%s10745_s1 + $0xe18] sm:$0xff]  }
 0x17f   :  { %7856 = vmatprep.subr.bf16.mxu1 %v8547_v23  ;;  %v1540_v22 = vcombine.high %v1530_v18, %v1530_v18  ;;  %v8586_v23 = vld [vmem:[%s10745_s1 + $0xd80] sm:$0xff]  }
 0x180   :  { %7835 = vmatpush3.bf16.msra.mxu0 %v8548_v25  ;;  %v1538_v25 = vcombine.high %v1516_v16, %v1516_v16 }
 0x181   :  { %7864 = vmatprep.subr.bf16.mxu0 %v8551_v29  ;;  %v8589_v29 = vld [vmem:[%s10745_s1 + $0xd08] sm:$0xff]  }
 0x182   :  { %7857 = vmatpush3.bf16.msra.mxu1 %v8549_v27  ;;  %v8588_v27 = vld [vmem:[%s10745_s1 + $0xdc8] sm:$0xff]  }
 0x183   :  { %6081 = vmatmul.mubr.bf16.vlgmr.msra.gmra.mrb[44].mxu0 %v1474_v28  ;;  %7886 = vmatprep.subr.bf16.mxu1 %v8552_v30  ;;  %v1541_v28 = vcombine.high %v1537_v24, %v1537_v24  ;;  %v8590_v30 = vld [vmem:[%s10745_s1 + $0xd88] sm:$0xff]  }
 0x184   :  { %7865 = vmatpush3.bf16.msra.mxu0 %v8553_v31  ;;  %6160 = vmatprep.mubr.bf16.mxu0 %v1530_v18  ;;  %v8591_v31 = vld [vmem:[%s10745_s1 + $0xd50] sm:$0xff]   ;;  %v8628_v18 = vld [vmem:[%s10745_s1 + $0xe58] sm:$0xff]  }
 0x185   :  { %6121 = vmatmul.mubr.bf16.vlgmr.msra.gmra.mrb[44].mxu1 %v1490_v33  ;;  %7866 = vmatprep.subr.bf16.mxu0 %v8555_v34  ;;  %v8593_v33 = vld [vmem:[%s10745_s1 + $0xd10] sm:$0xff]  }
 0x186   :  { %7887 = vmatpush3.bf16.msra.mxu1 %v8554_v32  ;;  %6200 = vmatprep.mubr.bf16.mxu1 %v1540_v22  ;;  %v8592_v32 = vld [vmem:[%s10745_s1 + $0xdd0] sm:$0xff]   ;;  %v8632_v22 = vld [vmem:[%s10745_s1 + $0xe60] sm:$0xff]  }
 0x187   :  { %7888 = vmatprep.subr.bf16.mxu1 %v8556_v35  ;;  %v8594_v34 = vld [vmem:[%s10745_s1 + $0xd90] sm:$0xff]   ;;  %v8595_v35 = vld [vmem:[%s10745_s1 + $0xd58] sm:$0xff]  }
 0x188   :  { %7867 = vmatpush3.bf16.msra.mxu0 %v8557_v36  ;;  %v8596_v36 = vld [vmem:[%s10745_s1 + $0xdd8] sm:$0xff]  }
 0x189   :  { %7868 = vmatprep.subr.bf16.mxu0 %v8559_v38  ;;  %v8598_v38 = vld [vmem:[%s10745_s1 + $0xd98] sm:$0xff]  }
 0x18a   :  { %7889 = vmatpush3.bf16.msra.mxu1 %v8558_v37  ;;  %v8597_v37 = vld [vmem:[%s10745_s1 + $0xd18] sm:$0xff]  }
 0x18b   :  { %7890 = vmatprep.subr.bf16.mxu1 %v8560_v39  ;;  %v8599_v39 = vld [vmem:[%s10745_s1 + $0xd60] sm:$0xff]  }
 0x18c   :  { %7869 = vmatpush3.bf16.msra.mxu0 %v8561_v40  ;;  %v8600_v40 = vld [vmem:[%s10745_s1 + $0xde0] sm:$0xff]  }
 0x18d   :  { %7870 = vmatprep.subr.bf16.mxu0 %v8563_v43  ;;  %v8602_v43 = vld [vmem:[%s10745_s1 + $0xda0] sm:$0xff]  }
 0x18e   :  { %7891 = vmatpush3.bf16.msra.mxu1 %v8562_v42  ;;  %v8601_v42 = vld [vmem:[%s10745_s1 + $0xd20] sm:$0xff]  }
 0x18f   :  { %7892 = vmatprep.subr.bf16.mxu1 %v8564_v44  ;;  %v8603_v44 = vld [vmem:[%s10745_s1 + $0xd68] sm:$0xff]  }
 0x190   :  { %7871 = vmatpush3.bf16.msra.mxu0 %v8565_v45  ;;  %v8604_v45 = vld [vmem:[%s10745_s1 + $0xde8] sm:$0xff]  }
 0x191   :  { %7872 = vmatprep.subr.bf16.mxu0 %v8567_v47  ;;  %v8606_v47 = vld [vmem:[%s10745_s1 + $0xda8] sm:$0xff]  }
 0x192   :  { %7893 = vmatpush3.bf16.msra.mxu1 %v8566_v46  ;;  %v8605_v46 = vld [vmem:[%s10745_s1 + $0xd28] sm:$0xff]  }
 0x193   :  { %7894 = vmatprep.subr.bf16.mxu1 %v8568_v48  ;;  %v8607_v48 = vld [vmem:[%s10745_s1 + $0xd70] sm:$0xff]  }
 0x194   :  { %7873 = vmatpush3.bf16.msra.mxu0 %v8569_v49 }
 0x195   :  { %7874 = vmatprep.subr.bf16.mxu0 %v8571_v51 }
 0x196   :  { %7895 = vmatpush3.bf16.msra.mxu1 %v8570_v50  ;;  %v7572_v56 = vpop.f32.mrb[20].mxu0  ;;  %v8608_v50 = vld [vmem:[%s10745_s1 + $0xdf0] sm:$0xff]  }
 0x197   :  { %v7573_v58 = vpop.f32.mrb[21].mxu0  ;;  %7896 = vmatprep.subr.bf16.mxu1 %v8572_v52  ;;  %v8609_v52 = vld [vmem:[%s10745_s1 + $0xd30] sm:$0xff]  }
 0x198   :  { %v7594_v60 = vpop.f32.mrb[20].mxu1  ;;  %v7574_v61 = vadd.f32 %v7573_v58, %v7572_v56  ;;  %v7575_v62 = vpop.f32.mrb[22].mxu0  ;;  %7875 = vmatpush3.bf16.msra.mxu0 %v8573_v53  ;;  %v8610_v56 = vld [vmem:[%s10745_s1 + $0xdb0] sm:$0xff]  }
 0x199   :  { %v7595_v0 = vpop.f32.mrb[21].mxu1  ;;  %v7576_v1 = vpop.f32.mrb[23].mxu0  ;;  %7876 = vmatprep.subr.bf16.mxu0 %v8575_v55 }
 0x19a   :  { %v5603_v4 = vadd.f32 %v7574_v61, %v10064_v26  ;;  %v7596_v5 = vadd.f32 %v7595_v0, %v7594_v60  ;;  %v7597_v6 = vpop.f32.mrb[22].mxu1  ;;  %7897 = vmatpush3.bf16.msra.mxu1 %v8574_v54  ;;  %v8587_v26 = vld [vmem:[%s10745_s1 + $0xd48] sm:$0xff]   ;;  %v8613_v1 = vld [vmem:[%s10745_s1 + $0xd38] sm:$0xff]  }
 0x19b   :  { %v7598_v10 = vpop.f32.mrb[23].mxu1  ;;  %7898 = vmatprep.subr.bf16.mxu1 %v8576_v57  ;;  %v8611_v57 = vld [vmem:[%s10745_s1 + $0xd78] sm:$0xff]   ;;  %v8617_v6 = vld [vmem:[%s10745_s1 + $0xec0] sm:$0xff]  }
 0x19c   :  { %v10169_v12 = vadd.f32 %v7596_v5, %v5603_v4  ;;  %7877 = vmatpush3.bf16.msra.mxu0 %v8577_v59  ;;  %v1523_v4 = vrot.slane %v10175_v15, %v8921_v41  ;;  %v8616_v5 = vld [vmem:[%s10745_s1 + $0xe40] sm:$0xff]   ;;  %v8620_v10 = vld [vmem:[%s10745_s1 + $0xe48] sm:$0xff]   ;;  %v8625_v15 = vld [vmem:[%s10745_s1 + $0xed0] sm:$0xff]  }
 0x19d   :  { %7878 = vmatprep.subr.bf16.mxu0 %v8579_v2 }
 0x19e   :  { %7899 = vmatpush3.bf16.msra.mxu1 %v8578_v63  ;;  %v8612_v63 = vld [vmem:[%s10745_s1 + $0xdf8] sm:$0xff]   ;;  %v1539_v9 = vcombine.high %v1523_v4, %v1523_v4 }
 0x19f   :  { %7900 = vmatprep.subr.bf16.mxu1 %v8580_v7  ;;  %v8618_v7 = vld [vmem:[%s10745_s1 + $0xe00] sm:$0xff]  }
 0x1a0   :  { %7879 = vmatpush3.bf16.msra.mxu0 %v8581_v11  ;;  %v8621_v11 = vld [vmem:[%s10745_s1 + $0xec8] sm:$0xff]  }
 0x1a1   :  { %7908 = vmatprep.subr.bf16.mxu0 %v8583_v17  ;;  %v8627_v17 = vld [vmem:[%s10745_s1 + $0xe90] sm:$0xff]  }
 0x1a2   :  { %7901 = vmatpush3.bf16.msra.mxu1 %v8582_v13  ;;  %v8623_v13 = vld [vmem:[%s10745_s1 + $0xe88] sm:$0xff]  }
 0x1a3   :  { %6161 = vmatmul.mubr.bf16.vlgmr.msra.gmra.mrb[48].mxu0 %v1516_v16  ;;  %7930 = vmatprep.subr.bf16.mxu1 %v8584_v19  ;;  %v8626_v16 = vld [vmem:[%s10745_s1 + $0xe10] sm:$0xff]   ;;  %v8629_v19 = vld [vmem:[%s10745_s1 + $0xed8] sm:$0xff]  }
 0x1a4   :  { %7909 = vmatpush3.bf16.msra.mxu0 %v8585_v21  ;;  %6240 = vmatprep.mubr.bf16.mxu0 %v1537_v24  ;;  %v8631_v21 = vld [vmem:[%s10745_s1 + $0xe98] sm:$0xff]   ;;  %v8634_v24 = vld [vmem:[%s10745_s1 + $0xe20] sm:$0xff]  }
 0x1a5   :  { %6201 = vmatmul.mubr.bf16.vlgmr.msra.gmra.mrb[48].mxu1 %v1538_v25  ;;  %7910 = vmatprep.subr.bf16.mxu0 %v8587_v26  ;;  %v8635_v25 = vld [vmem:[%s10745_s1 + $0xea0] sm:$0xff]   ;;  %v8636_v26 = vld [vmem:[%s10745_s1 + $0xe68] sm:$0xff]  }
 0x1a6   :  { %7931 = vmatpush3.bf16.msra.mxu1 %v8586_v23  ;;  %6280 = vmatprep.mubr.bf16.mxu1 %v1541_v28  ;;  %v8633_v23 = vld [vmem:[%s10745_s1 + $0xee0] sm:$0xff]   ;;  %v8638_v28 = vld [vmem:[%s10745_s1 + $0xe28] sm:$0xff]  }
 0x1a7   :  { %7932 = vmatprep.subr.bf16.mxu1 %v8588_v27  ;;  %v8637_v27 = vld [vmem:[%s10745_s1 + $0xee8] sm:$0xff]  }
 0x1a8   :  { %7911 = vmatpush3.bf16.msra.mxu0 %v8589_v29  ;;  %v8639_v29 = vld [vmem:[%s10745_s1 + $0xea8] sm:$0xff]  }
 0x1a9   :  { %7912 = vmatprep.subr.bf16.mxu0 %v8591_v31 }
 0x1aa   :  { %7933 = vmatpush3.bf16.msra.mxu1 %v8590_v30  ;;  %v8640_v30 = vld [vmem:[%s10745_s1 + $0xe70] sm:$0xff]  }
 0x1ab   :  { %7934 = vmatprep.subr.bf16.mxu1 %v8592_v32  ;;  %v8641_v32 = vld [vmem:[%s10745_s1 + $0xef0] sm:$0xff]  }
 0x1ac   :  { %7913 = vmatpush3.bf16.msra.mxu0 %v8593_v33 }
 0x1ad   :  { %7914 = vmatprep.subr.bf16.mxu0 %v8595_v35 }
 0x1ae   :  { %7935 = vmatpush3.bf16.msra.mxu1 %v8594_v34  ;;  %v8642_v34 = vld [vmem:[%s10745_s1 + $0xe30] sm:$0xff]  }
 0x1af   :  { %7936 = vmatprep.subr.bf16.mxu1 %v8596_v36 }
 0x1b0   :  { %7915 = vmatpush3.bf16.msra.mxu0 %v8597_v37 }
 0x1b1   :  { %7916 = vmatprep.subr.bf16.mxu0 %v8599_v39 }
 0x1b2   :  { %7937 = vmatpush3.bf16.msra.mxu1 %v8598_v38  ;;  %v8643_v38 = vld [vmem:[%s10745_s1 + $0xeb0] sm:$0xff]  }
 0x1b3   :  { %7938 = vmatprep.subr.bf16.mxu1 %v8600_v40 }
 0x1b4   :  { %7917 = vmatpush3.bf16.msra.mxu0 %v8601_v42  ;;  %v8644_v42 = vld [vmem:[%s10745_s1 + $0xe78] sm:$0xff]  }
 0x1b5   :  { %7918 = vmatprep.subr.bf16.mxu0 %v8603_v44 }
 0x1b6   :  { %7939 = vmatpush3.bf16.msra.mxu1 %v8602_v43  ;;  %v7616_v49 = vpop.f32.mrb[24].mxu0  ;;  %v8645_v43 = vld [vmem:[%s10745_s1 + $0xef8] sm:$0xff]  }
 0x1b7   :  { %v7617_v51 = vpop.f32.mrb[25].mxu0  ;;  %7940 = vmatprep.subr.bf16.mxu1 %v8604_v45 }
 0x1b8   :  { %v7638_v53 = vpop.f32.mrb[24].mxu1  ;;  %v7618_v54 = vadd.f32 %v7617_v51, %v7616_v49  ;;  %v7619_v55 = vpop.f32.mrb[26].mxu0  ;;  %7919 = vmatpush3.bf16.msra.mxu0 %v8605_v46  ;;  %v8646_v49 = vld [vmem:[%s10745_s1 + $0xe38] sm:$0xff]  }
 0x1b9   :  { %v7639_v58 = vpop.f32.mrb[25].mxu1  ;;  %v7620_v59 = vpop.f32.mrb[27].mxu0  ;;  %7920 = vmatprep.subr.bf16.mxu0 %v8607_v48 }
 0x1ba   :  { %v5683_v60 = vadd.f32 %v7618_v54, %v10169_v12  ;;  %v7640_v61 = vadd.f32 %v7639_v58, %v7638_v53  ;;  %v7641_v62 = vpop.f32.mrb[26].mxu1  ;;  %7941 = vmatpush3.bf16.msra.mxu1 %v8606_v47  ;;  %v8622_v12 = vld [vmem:[%s10745_s1 + $0xe08] sm:$0xff]   ;;  %v29_v47 = vld [vmem:[%s10744_s0 + $0x38] sm:$0xff]  ;;  %v8649_v58 = vld [vmem:[%s10745_s1 + $0xfc0] sm:$0xff]  }
 0x1bb   :  { %v7642_v0 = vpop.f32.mrb[27].mxu1  ;;  %7942 = vmatprep.subr.bf16.mxu1 %v8608_v50  ;;  %v1549_v50 = vrot.slane %v29_v47, %v8921_v41  ;;  %v1542_v51 = vcombine.high %v29_v47, %v29_v47  ;;  %v8647_v53 = vld [vmem:[%s10745_s1 + $0xeb8] sm:$0xff]   ;;  %v8651_v62 = vld [vmem:[%s10745_s1 + $0xf80] sm:$0xff]  }
 0x1bc   :  { %v10276_v2 = vadd.f32 %v7640_v61, %v5683_v60  ;;  %7921 = vmatpush3.bf16.msra.mxu0 %v8609_v52  ;;  %v8650_v60 = vld [vmem:[%s10745_s1 + $0xf00] sm:$0xff]  }
 0x1bd   :  { %7922 = vmatprep.subr.bf16.mxu0 %v8611_v57  ;;  %v1557_v54 = vcombine.high %v1549_v50, %v1549_v50  ;;  %v1565_v55 = vrot.slane %v1549_v50, %v8921_v41  ;;  %v10391_v57 = vrot.slane %v1542_v51, %v8921_v41  ;;  %v8683_v47 = vld [vmem:[%s10745_s1 + $0x1000] sm:$0xff]   ;;  %v8685_v50 = vld [vmem:[%s10745_s1 + $0x1048] sm:$0xff]  }
 0x1be   :  { %7943 = vmatpush3.bf16.msra.mxu1 %v8610_v56  ;;  %v8648_v56 = vld [vmem:[%s10745_s1 + $0xf40] sm:$0xff]   ;;  %v8686_v51 = vld [vmem:[%s10745_s1 + $0x10c8] sm:$0xff]  }
 0x1bf   :  { %7944 = vmatprep.subr.bf16.mxu1 %v8612_v63  ;;  %v1579_v59 = vrot.slane %v1557_v54, %v8921_v41  ;;  %v1558_v61 = vcombine.high %v10391_v57, %v10391_v57  ;;  %v1587_v0 = vcombine.high %v1565_v55, %v1565_v55  ;;  %v8689_v54 = vld [vmem:[%s10745_s1 + $0x1050] sm:$0xff]  }
 0x1c0   :  { %7923 = vmatpush3.bf16.msra.mxu0 %v8613_v1  ;;  %v8652_v1 = vld [vmem:[%s10745_s1 + $0xf48] sm:$0xff]  }
 0x1c1   :  { %7952 = vmatprep.subr.bf16.mxu0 %v8616_v5  ;;  %v1589_v63 = vcombine.high %v1579_v59, %v1579_v59 }
 0x1c2   :  { %7945 = vmatpush3.bf16.msra.mxu1 %v8614_v3  ;;  %v8653_v3 = vld [vmem:[%s10745_s1 + $0xfc8] sm:$0xff]  }
 0x1c3   :  { %6241 = vmatmul.mubr.bf16.vlgmr.msra.gmra.mrb[52].mxu0 %v1523_v4  ;;  %7974 = vmatprep.subr.bf16.mxu1 %v8617_v6  ;;  %v8654_v4 = vld [vmem:[%s10745_s1 + $0xf08] sm:$0xff]  }
 0x1c4   :  { %7953 = vmatpush3.bf16.msra.mxu0 %v8618_v7  ;;  %6320 = vmatprep.mubr.bf16.mxu0 %v1579_v59  ;;  %v8655_v6 = vld [vmem:[%s10745_s1 + $0xf88] sm:$0xff]   ;;  %v8656_v7 = vld [vmem:[%s10745_s1 + $0xf50] sm:$0xff]   ;;  %v8694_v59 = vld [vmem:[%s10745_s1 + $0x10d8] sm:$0xff]  }
 0x1c5   :  { %6281 = vmatmul.mubr.bf16.vlgmr.msra.gmra.mrb[52].mxu1 %v1539_v9  ;;  %7954 = vmatprep.subr.bf16.mxu0 %v8620_v10  ;;  %v8658_v9 = vld [vmem:[%s10745_s1 + $0xf10] sm:$0xff]  }
 0x1c6   :  { %7975 = vmatpush3.bf16.msra.mxu1 %v8619_v8  ;;  %6360 = vmatprep.mubr.bf16.mxu1 %v1589_v63  ;;  %v8657_v8 = vld [vmem:[%s10745_s1 + $0xfd0] sm:$0xff]   ;;  %v8698_v63 = vld [vmem:[%s10745_s1 + $0x10e0] sm:$0xff]  }
 0x1c7   :  { %7976 = vmatprep.subr.bf16.mxu1 %v8621_v11  ;;  %v8659_v10 = vld [vmem:[%s10745_s1 + $0xf90] sm:$0xff]   ;;  %v8660_v11 = vld [vmem:[%s10745_s1 + $0xf58] sm:$0xff]  }
 0x1c8   :  { %7955 = vmatpush3.bf16.msra.mxu0 %v8622_v12  ;;  %v8661_v12 = vld [vmem:[%s10745_s1 + $0xfd8] sm:$0xff]  }
 0x1c9   :  { %7956 = vmatprep.subr.bf16.mxu0 %v8624_v14  ;;  %v8663_v14 = vld [vmem:[%s10745_s1 + $0xf98] sm:$0xff]  }
 0x1ca   :  { %7977 = vmatpush3.bf16.msra.mxu1 %v8623_v13  ;;  %v8662_v13 = vld [vmem:[%s10745_s1 + $0xf18] sm:$0xff]  }
 0x1cb   :  { %7978 = vmatprep.subr.bf16.mxu1 %v8625_v15  ;;  %v8664_v15 = vld [vmem:[%s10745_s1 + $0xf60] sm:$0xff]  }
 0x1cc   :  { %7957 = vmatpush3.bf16.msra.mxu0 %v8626_v16  ;;  %v8665_v16 = vld [vmem:[%s10745_s1 + $0xfe0] sm:$0xff]  }
 0x1cd   :  { %7958 = vmatprep.subr.bf16.mxu0 %v8628_v18  ;;  %v8667_v18 = vld [vmem:[%s10745_s1 + $0xfa0] sm:$0xff]  }
 0x1ce   :  { %7979 = vmatpush3.bf16.msra.mxu1 %v8627_v17  ;;  %v8666_v17 = vld [vmem:[%s10745_s1 + $0xf20] sm:$0xff]  }
 0x1cf   :  { %7980 = vmatprep.subr.bf16.mxu1 %v8629_v19  ;;  %v8668_v19 = vld [vmem:[%s10745_s1 + $0xf68] sm:$0xff]  }
 0x1d0   :  { %7959 = vmatpush3.bf16.msra.mxu0 %v8630_v20  ;;  %v8669_v20 = vld [vmem:[%s10745_s1 + $0xfe8] sm:$0xff]  }
 0x1d1   :  { %7960 = vmatprep.subr.bf16.mxu0 %v8632_v22  ;;  %v8671_v22 = vld [vmem:[%s10745_s1 + $0xfa8] sm:$0xff]  }
 0x1d2   :  { %7981 = vmatpush3.bf16.msra.mxu1 %v8631_v21  ;;  %v8670_v21 = vld [vmem:[%s10745_s1 + $0xf28] sm:$0xff]  }
 0x1d3   :  { %7982 = vmatprep.subr.bf16.mxu1 %v8633_v23  ;;  %v8672_v23 = vld [vmem:[%s10745_s1 + $0xf70] sm:$0xff]  }
 0x1d4   :  { %7961 = vmatpush3.bf16.msra.mxu0 %v8634_v24 }
 0x1d5   :  { %7962 = vmatprep.subr.bf16.mxu0 %v8636_v26 }
 0x1d6   :  { %7983 = vmatpush3.bf16.msra.mxu1 %v8635_v25  ;;  %v7660_v31 = vpop.f32.mrb[28].mxu0  ;;  %v8673_v25 = vld [vmem:[%s10745_s1 + $0xff0] sm:$0xff]  }
 0x1d7   :  { %v7661_v33 = vpop.f32.mrb[29].mxu0  ;;  %7984 = vmatprep.subr.bf16.mxu1 %v8637_v27  ;;  %v8674_v27 = vld [vmem:[%s10745_s1 + $0xf30] sm:$0xff]  }
 0x1d8   :  { %v7682_v35 = vpop.f32.mrb[28].mxu1  ;;  %v7662_v36 = vadd.f32 %v7661_v33, %v7660_v31  ;;  %v7663_v37 = vpop.f32.mrb[30].mxu0  ;;  %7963 = vmatpush3.bf16.msra.mxu0 %v8638_v28  ;;  %v8675_v31 = vld [vmem:[%s10745_s1 + $0xfb0] sm:$0xff]  }
 0x1d9   :  { %v7683_v39 = vpop.f32.mrb[29].mxu1  ;;  %v7664_v40 = vpop.f32.mrb[31].mxu0  ;;  %7964 = vmatprep.subr.bf16.mxu0 %v8640_v30 }
 0x1da   :  { %v5763_v44 = vadd.f32 %v7662_v36, %v10276_v2  ;;  %v7684_v45 = vadd.f32 %v7683_v39, %v7682_v35  ;;  %v7685_v46 = vpop.f32.mrb[30].mxu1  ;;  %7985 = vmatpush3.bf16.msra.mxu1 %v8639_v29  ;;  %v1586_v2 = vrot.slane %v1558_v61, %v8921_v41  ;;  %v8678_v40 = vld [vmem:[%s10745_s1 + $0xf38] sm:$0xff]  }
 0x1db   :  { %v7686_v48 = vpop.f32.mrb[31].mxu1  ;;  %7986 = vmatprep.subr.bf16.mxu1 %v8641_v32  ;;  %v8676_v32 = vld [vmem:[%s10745_s1 + $0xf78] sm:$0xff]   ;;  %v8682_v46 = vld [vmem:[%s10745_s1 + $0x10c0] sm:$0xff]  }
 0x1dc   :  { %v10381_v52 = vadd.f32 %v7684_v45, %v5763_v44  ;;  %7965 = vmatpush3.bf16.msra.mxu0 %v8642_v34  ;;  %v1590_v5 = vcombine.high %v1586_v2, %v1586_v2  ;;  %v1572_v44 = vrot.slane %v10391_v57, %v8921_v41  ;;  %v8681_v45 = vld [vmem:[%s10745_s1 + $0x1040] sm:$0xff]   ;;  %v8692_v57 = vld [vmem:[%s10745_s1 + $0x1090] sm:$0xff]   ;;  %v8696_v61 = vld [vmem:[%s10745_s1 + $0x1098] sm:$0xff]  }
 0x1dd   :  { %7966 = vmatprep.subr.bf16.mxu0 %v8644_v42  ;;  %v8684_v48 = vld [vmem:[%s10745_s1 + $0x1080] sm:$0xff]  }
 0x1de   :  { %7987 = vmatpush3.bf16.msra.mxu1 %v8643_v38  ;;  %v8677_v38 = vld [vmem:[%s10745_s1 + $0xff8] sm:$0xff]  }
 0x1df   :  { %7988 = vmatprep.subr.bf16.mxu1 %v8645_v43  ;;  %v8679_v43 = vld [vmem:[%s10745_s1 + $0xfb8] sm:$0xff]  }
 0x1e0   :  { %7967 = vmatpush3.bf16.msra.mxu0 %v8646_v49  ;;  %v1588_v49 = vcombine.high %v1572_v44, %v1572_v44 }
 0x1e1   :  { %7996 = vmatprep.subr.bf16.mxu0 %v8648_v56  ;;  %v8691_v56 = vld [vmem:[%s10745_s1 + $0x1010] sm:$0xff]  }
 0x1e2   :  { %7989 = vmatpush3.bf16.msra.mxu1 %v8647_v53  ;;  %v8688_v53 = vld [vmem:[%s10745_s1 + $0x1088] sm:$0xff]  }
 0x1e3   :  { %6321 = vmatmul.mubr.bf16.vlgmr.msra.gmra.mrb[56].mxu0 %v1565_v55  ;;  %8018 = vmatprep.subr.bf16.mxu1 %v8649_v58  ;;  %v8690_v55 = vld [vmem:[%s10745_s1 + $0x10d0] sm:$0xff]   ;;  %v8693_v58 = vld [vmem:[%s10745_s1 + $0x1058] sm:$0xff]  }
 0x1e4   :  { %7997 = vmatpush3.bf16.msra.mxu0 %v8650_v60  ;;  %6400 = vmatprep.mubr.bf16.mxu0 %v1586_v2  ;;  %v8695_v60 = vld [vmem:[%s10745_s1 + $0x1018] sm:$0xff]   ;;  %v8701_v2 = vld [vmem:[%s10745_s1 + $0x1068] sm:$0xff]  }
 0x1e5   :  { %6361 = vmatmul.mubr.bf16.vlgmr.msra.gmra.mrb[56].mxu1 %v1587_v0  ;;  %7998 = vmatprep.subr.bf16.mxu0 %v8652_v1  ;;  %v8699_v0 = vld [vmem:[%s10745_s1 + $0x1020] sm:$0xff]  }
 0x1e6   :  { %8019 = vmatpush3.bf16.msra.mxu1 %v8651_v62  ;;  %6440 = vmatprep.mubr.bf16.mxu1 %v1590_v5  ;;  %v8697_v62 = vld [vmem:[%s10745_s1 + $0x1060] sm:$0xff]   ;;  %v8704_v5 = vld [vmem:[%s10745_s1 + $0x10a8] sm:$0xff]  }
 0x1e7   :  { %8020 = vmatprep.subr.bf16.mxu1 %v8653_v3  ;;  %v8700_v1 = vld [vmem:[%s10745_s1 + $0x10a0] sm:$0xff]   ;;  %v8702_v3 = vld [vmem:[%s10745_s1 + $0x10e8] sm:$0xff]  }
 0x1e8   :  { %7999 = vmatpush3.bf16.msra.mxu0 %v8654_v4  ;;  %v8703_v4 = vld [vmem:[%s10745_s1 + $0x1028] sm:$0xff]  }
 0x1e9   :  { %8000 = vmatprep.subr.bf16.mxu0 %v8656_v7 }
 0x1ea   :  { %8021 = vmatpush3.bf16.msra.mxu1 %v8655_v6  ;;  %v8705_v6 = vld [vmem:[%s10745_s1 + $0x1070] sm:$0xff]  }
 0x1eb   :  { %8022 = vmatprep.subr.bf16.mxu1 %v8657_v8  ;;  %v8706_v8 = vld [vmem:[%s10745_s1 + $0x10f0] sm:$0xff]  }
 0x1ec   :  { %8001 = vmatpush3.bf16.msra.mxu0 %v8658_v9 }
 0x1ed   :  { %8002 = vmatprep.subr.bf16.mxu0 %v8660_v11 }
 0x1ee   :  { %8023 = vmatpush3.bf16.msra.mxu1 %v8659_v10  ;;  %v8707_v10 = vld [vmem:[%s10745_s1 + $0x1030] sm:$0xff]  }
 0x1ef   :  { %8024 = vmatprep.subr.bf16.mxu1 %v8661_v12 }
 0x1f0   :  { %8003 = vmatpush3.bf16.msra.mxu0 %v8662_v13 }
 0x1f1   :  { %8004 = vmatprep.subr.bf16.mxu0 %v8664_v15 }
 0x1f2   :  { %8025 = vmatpush3.bf16.msra.mxu1 %v8663_v14  ;;  %v8708_v14 = vld [vmem:[%s10745_s1 + $0x10b0] sm:$0xff]  }
 0x1f3   :  { %8026 = vmatprep.subr.bf16.mxu1 %v8665_v16 }
 0x1f4   :  { %8005 = vmatpush3.bf16.msra.mxu0 %v8666_v17  ;;  %v8709_v17 = vld [vmem:[%s10745_s1 + $0x1078] sm:$0xff]  }
 0x1f5   :  { %8006 = vmatprep.subr.bf16.mxu0 %v8668_v19 }
 0x1f6   :  { %8027 = vmatpush3.bf16.msra.mxu1 %v8667_v18  ;;  %v7704_v24 = vpop.f32.mrb[32].mxu0  ;;  %v8710_v18 = vld [vmem:[%s10745_s1 + $0x10f8] sm:$0xff]  }
 0x1f7   :  { %v7705_v26 = vpop.f32.mrb[33].mxu0  ;;  %8028 = vmatprep.subr.bf16.mxu1 %v8669_v20 }
 0x1f8   :  { %v7726_v28 = vpop.f32.mrb[32].mxu1  ;;  %v7706_v29 = vadd.f32 %v7705_v26, %v7704_v24  ;;  %v7707_v30 = vpop.f32.mrb[34].mxu0  ;;  %8007 = vmatpush3.bf16.msra.mxu0 %v8670_v21  ;;  %v30_v24 = vld [vmem:[%s10744_s0 + $0x40] sm:$0xff]  ;;  %v8712_v26 = vld [vmem:[%s10745_s1 + $0x10b8] sm:$0xff]  }
 0x1f9   :  { %v7727_v33 = vpop.f32.mrb[33].mxu1  ;;  %v7708_v34 = vpop.f32.mrb[35].mxu0  ;;  %8008 = vmatprep.subr.bf16.mxu0 %v8672_v23 }
 0x1fa   :  { %v5843_v35 = vadd.f32 %v7706_v29, %v10381_v52  ;;  %v7728_v36 = vadd.f32 %v7727_v33, %v7726_v28  ;;  %v7729_v37 = vpop.f32.mrb[34].mxu1  ;;  %8029 = vmatpush3.bf16.msra.mxu1 %v8671_v22  ;;  %v8687_v52 = vld [vmem:[%s10745_s1 + $0x1008] sm:$0xff]   ;;  %v8711_v22 = vld [vmem:[%s10745_s1 + $0x1038] sm:$0xff]   ;;  %v1591_v28 = vcombine.high %v30_v24, %v30_v24  ;;  %v8713_v29 = vld [vmem:[%s10745_s1 + $0x1140] sm:$0xff]  }
 0x1fb   :  { %v7730_v39 = vpop.f32.mrb[35].mxu1  ;;  %8030 = vmatprep.subr.bf16.mxu1 %v8673_v25  ;;  %v8715_v34 = vld [vmem:[%s10745_s1 + $0x1100] sm:$0xff]  }
 0x1fc   :  { %v10488_v42 = vadd.f32 %v7728_v36, %v5843_v35  ;;  %8009 = vmatpush3.bf16.msra.mxu0 %v8674_v27  ;;  %v1598_v27 = vrot.slane %v30_v24, %v8921_v41  ;;  %v10606_v33 = vrot.slane %v1591_v28, %v8921_v41  ;;  %v8716_v36 = vld [vmem:[%s10745_s1 + $0x1180] sm:$0xff]   ;;  %v8717_v39 = vld [vmem:[%s10745_s1 + $0x1148] sm:$0xff]  }
 0x1fd   :  { %8010 = vmatprep.subr.bf16.mxu0 %v8676_v32  ;;  %v8714_v32 = vld [vmem:[%s10745_s1 + $0x11c0] sm:$0xff]  }
 0x1fe   :  { %8031 = vmatpush3.bf16.msra.mxu1 %v8675_v31  ;;  %v1606_v30 = vcombine.high %v1598_v27, %v1598_v27  ;;  %v1614_v31 = vrot.slane %v1598_v27, %v8921_v41  ;;  %v1607_v37 = vcombine.high %v10606_v33, %v10606_v33 }
 0x1ff   :  { %8032 = vmatprep.subr.bf16.mxu1 %v8677_v38 }
 0x200   :  { %8011 = vmatpush3.bf16.msra.mxu0 %v8678_v40  ;;  %v1628_v35 = vrot.slane %v1606_v30, %v8921_v41  ;;  %v1636_v38 = vcombine.high %v1614_v31, %v1614_v31 }
 0x201   :  { %8040 = vmatprep.subr.bf16.mxu0 %v8681_v45  ;;  %v8720_v45 = vld [vmem:[%s10745_s1 + $0x1188] sm:$0xff]  }
 0x202   :  { %8033 = vmatpush3.bf16.msra.mxu1 %v8679_v43  ;;  %v1638_v40 = vcombine.high %v1628_v35, %v1628_v35  ;;  %v1635_v43 = vrot.slane %v1607_v37, %v8921_v41 }
 0x203   :  { %6401 = vmatmul.mubr.bf16.vlgmr.msra.gmra.mrb[60].mxu0 %v1572_v44  ;;  %8062 = vmatprep.subr.bf16.mxu1 %v8682_v46  ;;  %v8719_v44 = vld [vmem:[%s10745_s1 + $0x1108] sm:$0xff]  }
 0x204   :  { %8041 = vmatpush3.bf16.msra.mxu0 %v8683_v47  ;;  %6480 = vmatprep.mubr.bf16.mxu0 %v1628_v35  ;;  %v1639_v46 = vcombine.high %v1635_v43, %v1635_v43  ;;  %v8721_v47 = vld [vmem:[%s10745_s1 + $0x1150] sm:$0xff]  }
 0x205   :  { %6441 = vmatmul.mubr.bf16.vlgmr.msra.gmra.mrb[60].mxu1 %v1588_v49  ;;  %8042 = vmatprep.subr.bf16.mxu0 %v8685_v50  ;;  %v8723_v49 = vld [vmem:[%s10745_s1 + $0x1110] sm:$0xff]  }
 0x206   :  { %8063 = vmatpush3.bf16.msra.mxu1 %v8684_v48  ;;  %6520 = vmatprep.mubr.bf16.mxu1 %v1638_v40  ;;  %v8722_v48 = vld [vmem:[%s10745_s1 + $0x11d0] sm:$0xff]  }
 0x207   :  { %8064 = vmatprep.subr.bf16.mxu1 %v8686_v51  ;;  %v8724_v50 = vld [vmem:[%s10745_s1 + $0x1190] sm:$0xff]   ;;  %v8725_v51 = vld [vmem:[%s10745_s1 + $0x1158] sm:$0xff]  }
 0x208   :  { %8043 = vmatpush3.bf16.msra.mxu0 %v8687_v52  ;;  %v8726_v52 = vld [vmem:[%s10745_s1 + $0x11d8] sm:$0xff]  }
 0x209   :  { %8044 = vmatprep.subr.bf16.mxu0 %v8689_v54  ;;  %v8728_v54 = vld [vmem:[%s10745_s1 + $0x1198] sm:$0xff]  }
 0x20a   :  { %8065 = vmatpush3.bf16.msra.mxu1 %v8688_v53  ;;  %v8727_v53 = vld [vmem:[%s10745_s1 + $0x1118] sm:$0xff]  }
 0x20b   :  { %8066 = vmatprep.subr.bf16.mxu1 %v8690_v55  ;;  %v8729_v55 = vld [vmem:[%s10745_s1 + $0x1160] sm:$0xff]  }
 0x20c   :  { %8045 = vmatpush3.bf16.msra.mxu0 %v8691_v56  ;;  %v8730_v56 = vld [vmem:[%s10745_s1 + $0x11e0] sm:$0xff]  }
 0x20d   :  { %8046 = vmatprep.subr.bf16.mxu0 %v8693_v58  ;;  %v8732_v58 = vld [vmem:[%s10745_s1 + $0x11a0] sm:$0xff]  }
 0x20e   :  { %8067 = vmatpush3.bf16.msra.mxu1 %v8692_v57  ;;  %v8731_v57 = vld [vmem:[%s10745_s1 + $0x1120] sm:$0xff]  }
 0x20f   :  { %8068 = vmatprep.subr.bf16.mxu1 %v8694_v59  ;;  %v8733_v59 = vld [vmem:[%s10745_s1 + $0x1168] sm:$0xff]  }
 0x210   :  { %8047 = vmatpush3.bf16.msra.mxu0 %v8695_v60  ;;  %v8734_v60 = vld [vmem:[%s10745_s1 + $0x11e8] sm:$0xff]  }
 0x211   :  { %8048 = vmatprep.subr.bf16.mxu0 %v8697_v62  ;;  %v8736_v62 = vld [vmem:[%s10745_s1 + $0x11a8] sm:$0xff]  }
 0x212   :  { %8069 = vmatpush3.bf16.msra.mxu1 %v8696_v61  ;;  %v8735_v61 = vld [vmem:[%s10745_s1 + $0x1128] sm:$0xff]  }
 0x213   :  { %8070 = vmatprep.subr.bf16.mxu1 %v8698_v63  ;;  %v8737_v63 = vld [vmem:[%s10745_s1 + $0x1170] sm:$0xff]  }
 0x214   :  { %8049 = vmatpush3.bf16.msra.mxu0 %v8699_v0 }
 0x215   :  { %8050 = vmatprep.subr.bf16.mxu0 %v8701_v2 }
 0x216   :  { %8071 = vmatpush3.bf16.msra.mxu1 %v8700_v1  ;;  %v7748_v7 = vpop.f32.mrb[36].mxu0  ;;  %v8738_v1 = vld [vmem:[%s10745_s1 + $0x11f0] sm:$0xff]  }
 0x217   :  { %v7749_v9 = vpop.f32.mrb[37].mxu0  ;;  %8072 = vmatprep.subr.bf16.mxu1 %v8702_v3  ;;  %v8739_v3 = vld [vmem:[%s10745_s1 + $0x1130] sm:$0xff]  }
 0x218   :  { %v7770_v11 = vpop.f32.mrb[36].mxu1  ;;  %v7750_v12 = vadd.f32 %v7749_v9, %v7748_v7  ;;  %v7751_v13 = vpop.f32.mrb[38].mxu0  ;;  %8051 = vmatpush3.bf16.msra.mxu0 %v8703_v4  ;;  %v8740_v7 = vld [vmem:[%s10745_s1 + $0x11b0] sm:$0xff]  }
 0x219   :  { %v7771_v15 = vpop.f32.mrb[37].mxu1  ;;  %v7752_v16 = vpop.f32.mrb[39].mxu0  ;;  %8052 = vmatprep.subr.bf16.mxu0 %v8705_v6 }
 0x21a   :  { %v5923_v19 = vadd.f32 %v7750_v12, %v10488_v42  ;;  %v7772_v20 = vadd.f32 %v7771_v15, %v7770_v11  ;;  %v7773_v21 = vpop.f32.mrb[38].mxu1  ;;  %8073 = vmatpush3.bf16.msra.mxu1 %v8704_v5  ;;  %v8718_v42 = vld [vmem:[%s10745_s1 + $0x11c8] sm:$0xff]   ;;  %v8743_v16 = vld [vmem:[%s10745_s1 + $0x1138] sm:$0xff]  }
 0x21b   :  { %v7774_v23 = vpop.f32.mrb[39].mxu1  ;;  %8074 = vmatprep.subr.bf16.mxu1 %v8706_v8  ;;  %v8741_v8 = vld [vmem:[%s10745_s1 + $0x1178] sm:$0xff]  }
 0x21c   :  { %v10592_v25 = vadd.f32 %v7772_v20, %v5923_v19  ;;  %8053 = vmatpush3.bf16.msra.mxu0 %v8707_v10  ;;  %v1621_v19 = vrot.slane %v10606_v33, %v8921_v41 }
 0x21d   :  { %8054 = vmatprep.subr.bf16.mxu0 %v8709_v17 }
 0x21e   :  { %8075 = vmatpush3.bf16.msra.mxu1 %v8708_v14  ;;  %v8742_v14 = vld [vmem:[%s10745_s1 + $0x11f8] sm:$0xff]   ;;  %v1637_v20 = vcombine.high %v1621_v19, %v1621_v19 }
 0x21f   :  { %8076 = vmatprep.subr.bf16.mxu1 %v8710_v18  ;;  %v8744_v18 = vld [vmem:[%s10745_s1 + $0x11b8] sm:$0xff]  }
 0x220   :  { %8055 = vmatpush3.bf16.msra.mxu0 %v8711_v22 }
 0x221   :  { %8084 = vmatprep.subr.bf16.mxu0 %v8713_v29 }
 0x222   :  { %8077 = vmatpush3.bf16.msra.mxu1 %v8712_v26 }
 0x223   :  { %6481 = vmatmul.mubr.bf16.vlgmr.msra.gmra.mrb[64].mxu0 %v1614_v31  ;;  %8106 = vmatprep.subr.bf16.mxu1 %v8714_v32 }
 0x224   :  { %8085 = vmatpush3.bf16.msra.mxu0 %v8715_v34  ;;  %6560 = vmatprep.mubr.bf16.mxu0 %v1635_v43 }
 0x225   :  { %6521 = vmatmul.mubr.bf16.vlgmr.msra.gmra.mrb[64].mxu1 %v1636_v38  ;;  %8086 = vmatprep.subr.bf16.mxu0 %v8717_v39 }
 0x226   :  { %8107 = vmatpush3.bf16.msra.mxu1 %v8716_v36  ;;  %6600 = vmatprep.mubr.bf16.mxu1 %v1639_v46 }
 0x227   :  { %8108 = vmatprep.subr.bf16.mxu1 %v8718_v42 }
 0x228   :  { %8087 = vmatpush3.bf16.msra.mxu0 %v8719_v44 }
 0x229   :  { %8088 = vmatprep.subr.bf16.mxu0 %v8721_v47 }
 0x22a   :  { %8109 = vmatpush3.bf16.msra.mxu1 %v8720_v45 }
 0x22b   :  { %8110 = vmatprep.subr.bf16.mxu1 %v8722_v48 }
 0x22c   :  { %8089 = vmatpush3.bf16.msra.mxu0 %v8723_v49 }
 0x22d   :  { %8090 = vmatprep.subr.bf16.mxu0 %v8725_v51 }
 0x22e   :  { %8111 = vmatpush3.bf16.msra.mxu1 %v8724_v50 }
 0x22f   :  { %8112 = vmatprep.subr.bf16.mxu1 %v8726_v52 }
 0x230   :  { %8091 = vmatpush3.bf16.msra.mxu0 %v8727_v53 }
 0x231   :  { %8092 = vmatprep.subr.bf16.mxu0 %v8729_v55 }
 0x232   :  { %8113 = vmatpush3.bf16.msra.mxu1 %v8728_v54 }
 0x233   :  { %8114 = vmatprep.subr.bf16.mxu1 %v8730_v56 }
 0x234   :  { %8093 = vmatpush3.bf16.msra.mxu0 %v8731_v57 }
 0x235   :  { %8094 = vmatprep.subr.bf16.mxu0 %v8733_v59 }
 0x236   :  { %8115 = vmatpush3.bf16.msra.mxu1 %v8732_v58  ;;  %v7792_v0 = vpop.f32.mrb[40].mxu0 }
 0x237   :  { %v7793_v2 = vpop.f32.mrb[41].mxu0  ;;  %8116 = vmatprep.subr.bf16.mxu1 %v8734_v60 }
 0x238   :  { %v7814_v4 = vpop.f32.mrb[40].mxu1  ;;  %v7794_v5 = vadd.f32 %v7793_v2, %v7792_v0  ;;  %v7795_v6 = vpop.f32.mrb[42].mxu0  ;;  %8095 = vmatpush3.bf16.msra.mxu0 %v8735_v61 }
 0x239   :  { %v7815_v9 = vpop.f32.mrb[41].mxu1  ;;  %v7796_v10 = vpop.f32.mrb[43].mxu0  ;;  %8096 = vmatprep.subr.bf16.mxu0 %v8737_v63 }
 0x23a   :  { %v6003_v11 = vadd.f32 %v7794_v5, %v10592_v25  ;;  %v7816_v12 = vadd.f32 %v7815_v9, %v7814_v4  ;;  %v7817_v13 = vpop.f32.mrb[42].mxu1  ;;  %8117 = vmatpush3.bf16.msra.mxu1 %v8736_v62 }
 0x23b   :  { %v7818_v15 = vpop.f32.mrb[43].mxu1  ;;  %8118 = vmatprep.subr.bf16.mxu1 %v8738_v1 }
 0x23c   :  { %v6043_v17 = vadd.f32 %v7816_v12, %v6003_v11  ;;  %8097 = vmatpush3.bf16.msra.mxu0 %v8739_v3 }
 0x23d   :  { %8098 = vmatprep.subr.bf16.mxu0 %v8741_v8 }
 0x23e   :  { %8119 = vmatpush3.bf16.msra.mxu1 %v8740_v7 }
 0x23f   :  { %8120 = vmatprep.subr.bf16.mxu1 %v8742_v14 }
 0x240   :  { %8099 = vmatpush3.bf16.msra.mxu0 %v8743_v16 }
 0x241   :  { %10 = vsyncpa [#allocation3], 0  ;;  %v8746_v45 = vld [vmem:[%s10747_s3] sm:$0xff]   ;;  %v8783_v46 = vmov 0.0   ;;  %v8747_v47 = vld [vmem:[%s10747_s3 + $0x8] sm:$0xff]   ;;  %vm8784_vm0 = vmmov 0  }
 0x242   :  { %8121 = vmatpush3.bf16.msra.mxu1 %v8744_v18  ;;  %8137 = vmatprep.subr.bf16.mxu0 %v8783_v46  ;;  %v8748_v48 = vld [vmem:[%s10747_s3 + $0x10] sm:$0xff]   ;;  %v8749_v49 = vld [vmem:[%s10747_s3 + $0x18] sm:$0xff]   ;;  %v8750_v50 = vld [vmem:[%s10747_s3 + $0x20] sm:$0xff]   ;;  %vm6721_vm1 = vcmask 1041408  }
 0x243   :  { %6561 = vmatmul.mubr.bf16.vlgmr.msra.gmra.mrb[68].mxu0 %v1621_v19  ;;  %v8751_v53 = vld [vmem:[%s10747_s3 + $0x28] sm:$0xff]   ;;  %v8752_v63 = vld [vmem:[%s10747_s3 + $0x30] sm:$0xff]   ;;  %v8753_v1 = vld [vmem:[%s10747_s3 + $0x38] sm:$0xff]  }
 0x244   :  { %8138 = vmatpush3.bf16.msra.mxu0 %v8746_v45  ;;  %8153 = vmatprep.mubr.msk.bf16.mxu0 %vm8784_vm0, %v8783_v46 }
 0x245   :  { %6601 = vmatmul.mubr.bf16.vlgmr.msra.gmra.mrb[68].mxu1 %v1637_v20  ;;  %8139 = vmatprep.subr.bf16.mxu0 %v8783_v46 }
 0x248   :  { %8140 = vmatpush3.bf16.msra.mxu0 %v8747_v47 }
 0x249   :  { %8141 = vmatprep.subr.bf16.mxu0 %v8783_v46 }
 0x24c   :  { %8142 = vmatpush3.bf16.msra.mxu0 %v8748_v48 }
 0x24d   :  { %8143 = vmatprep.subr.bf16.mxu0 %v8783_v46 }
 0x250   :  { %8144 = vmatpush3.bf16.msra.mxu0 %v8749_v49 }
 0x251   :  { %8145 = vmatprep.subr.bf16.mxu0 %v8783_v46 }
 0x254   :  { %8146 = vmatpush3.bf16.msra.mxu0 %v8750_v50 }
 0x255   :  { %8147 = vmatprep.subr.bf16.mxu0 %v8783_v46 }
 0x256   :  { %v7836_v21 = vpop.f32.mrb[44].mxu0 }
 0x257   :  { %v7837_v22 = vpop.f32.mrb[45].mxu0 }
 0x258   :  { %v7858_v23 = vpop.f32.mrb[44].mxu1  ;;  %v7838_v24 = vadd.f32 %v7837_v22, %v7836_v21  ;;  %v7839_v25 = vpop.f32.mrb[46].mxu0  ;;  %8148 = vmatpush3.bf16.msra.mxu0 %v8751_v53 }
 0x259   :  { %v7859_v26 = vpop.f32.mrb[45].mxu1  ;;  %v7840_v27 = vpop.f32.mrb[47].mxu0  ;;  %8149 = vmatprep.subr.bf16.mxu0 %v8783_v46 }
 0x25a   :  { %v6083_v28 = vadd.f32 %v7838_v24, %v6043_v17  ;;  %v7860_v29 = vadd.f32 %v7859_v26, %v7858_v23  ;;  %v7861_v30 = vpop.f32.mrb[46].mxu1 }
 0x25b   :  { %v7862_v31 = vpop.f32.mrb[47].mxu1 }
 0x25c   :  { %v6123_v41 = vadd.f32 %v7860_v29, %v6083_v28  ;;  %8150 = vmatpush3.bf16.msra.mxu0 %v8752_v63 }
 0x25d   :  { %8151 = vmatprep.subr.bf16.mxu0 %v8783_v46 }
 0x260   :  { %8152 = vmatpush3.bf16.msra.mxu0 %v8753_v1 }
 0x276   :  { %v7880_v32 = vpop.f32.mrb[48].mxu0 }
 0x277   :  { %v7881_v33 = vpop.f32.mrb[49].mxu0 }
 0x278   :  { %v7902_v34 = vpop.f32.mrb[48].mxu1  ;;  %v7882_v35 = vadd.f32 %v7881_v33, %v7880_v32  ;;  %v7883_v36 = vpop.f32.mrb[50].mxu0 }
 0x279   :  { %v7903_v37 = vpop.f32.mrb[49].mxu1  ;;  %v7884_v38 = vpop.f32.mrb[51].mxu0 }
 0x27a   :  { %v6163_v39 = vadd.f32 %v7882_v35, %v6123_v41  ;;  %v7904_v40 = vadd.f32 %v7903_v37, %v7902_v34  ;;  %v7905_v42 = vpop.f32.mrb[50].mxu1 }
 0x27b   :  { %v7906_v43 = vpop.f32.mrb[51].mxu1 }
 0x27c   :  { %v6203_v44 = vadd.f32 %v7904_v40, %v6163_v39 }
 0x296   :  { %v7924_v51 = vpop.f32.mrb[52].mxu0 }
 0x297   :  { %v7925_v52 = vpop.f32.mrb[53].mxu0 }
 0x298   :  { %v7946_v54 = vpop.f32.mrb[52].mxu1  ;;  %v7926_v55 = vadd.f32 %v7925_v52, %v7924_v51  ;;  %v7927_v56 = vpop.f32.mrb[54].mxu0  ;;  %v7327_v52 = vld [vmem:[%s10748_s4] ss:$0 sm:$0xff]  ;;  %s8785_s4 = smov [#allocation2]  }
 0x299   :  { %v7947_v57 = vpop.f32.mrb[53].mxu1  ;;  %v7928_v58 = vpop.f32.mrb[55].mxu0  ;;  %s6742_s27 = sshll.u32 %s8785_s4, 4  ;;  %s6743_s27 = int_to_ptr.vmem [resolvable:$true] %s6742_s27 }
 0x29a   :  { %v6243_v59 = vadd.f32 %v7926_v55, %v6203_v44  ;;  %v7948_v60 = vadd.f32 %v7947_v57, %v7946_v54  ;;  %v7949_v61 = vpop.f32.mrb[54].mxu1  ;;  %s8758_s28 = scalar_lea.vmem %s6743_s27, 32  ;;  %p8763_p1 = scmp.lt.s32.totalorder %s6743_s27, %s6743_s27 }
 0x29b   :  { %v7950_v62 = vpop.f32.mrb[55].mxu1  ;;  %p8759_p0 = scmp.ne.s32.totalorder %s6743_s27, %s8758_s28  ;;  %p8764_p2 = scmp.lt.s32.totalorder %s8758_s28, %s8758_s28 }
 0x29c   :  { %v6283_v0 = vadd.f32 %v7948_v60, %v6243_v59 }
 0x29d   :  { %p8765_p3 = por %p8764_p2, %p8763_p1 }
 0x29f   :  { %p8766_p4 = pnand %p8765_p3, %p8759_p0 }
 0x2b6   :  { %v7968_v2 = vpop.f32.mrb[56].mxu0 }
 0x2b7   :  { %v7969_v3 = vpop.f32.mrb[57].mxu0 }
 0x2b8   :  { %v7990_v4 = vpop.f32.mrb[56].mxu1  ;;  %v7970_v5 = vadd.f32 %v7969_v3, %v7968_v2  ;;  %v7971_v6 = vpop.f32.mrb[58].mxu0 }
 0x2b9   :  { %v7991_v7 = vpop.f32.mrb[57].mxu1  ;;  %v7972_v8 = vpop.f32.mrb[59].mxu0 }
 0x2ba   :  { %v6323_v9 = vadd.f32 %v7970_v5, %v6283_v0  ;;  %v7992_v10 = vadd.f32 %v7991_v7, %v7990_v4  ;;  %v7993_v11 = vpop.f32.mrb[58].mxu1 }
 0x2bb   :  { %v7994_v12 = vpop.f32.mrb[59].mxu1 }
 0x2bc   :  { %v6363_v13 = vadd.f32 %v7992_v10, %v6323_v9 }
 0x2d6   :  { %v8012_v14 = vpop.f32.mrb[60].mxu0 }
 0x2d7   :  { %v8013_v15 = vpop.f32.mrb[61].mxu0 }
 0x2d8   :  { %v8034_v16 = vpop.f32.mrb[60].mxu1  ;;  %v8014_v17 = vadd.f32 %v8013_v15, %v8012_v14  ;;  %v8015_v18 = vpop.f32.mrb[62].mxu0 }
 0x2d9   :  { %v8035_v19 = vpop.f32.mrb[61].mxu1  ;;  %v8016_v20 = vpop.f32.mrb[63].mxu0 }
 0x2da   :  { %v6403_v21 = vadd.f32 %v8014_v17, %v6363_v13  ;;  %v8036_v22 = vadd.f32 %v8035_v19, %v8034_v16  ;;  %v8037_v23 = vpop.f32.mrb[62].mxu1 }
 0x2db   :  { %v8038_v24 = vpop.f32.mrb[63].mxu1 }
 0x2dc   :  { %v6443_v25 = vadd.f32 %v8036_v22, %v6403_v21 }
 0x2f6   :  { %v8056_v26 = vpop.f32.mrb[64].mxu0 }
 0x2f7   :  { %v8057_v27 = vpop.f32.mrb[65].mxu0 }
 0x2f8   :  { %v8078_v28 = vpop.f32.mrb[64].mxu1  ;;  %v8058_v29 = vadd.f32 %v8057_v27, %v8056_v26  ;;  %v8059_v30 = vpop.f32.mrb[66].mxu0 }
 0x2f9   :  { %v8079_v31 = vpop.f32.mrb[65].mxu1  ;;  %v8060_v41 = vpop.f32.mrb[67].mxu0 }
 0x2fa   :  { %v6483_v32 = vadd.f32 %v8058_v29, %v6443_v25  ;;  %v8080_v33 = vadd.f32 %v8079_v31, %v8078_v28  ;;  %v8081_v34 = vpop.f32.mrb[66].mxu1 }
 0x2fb   :  { %v8082_v35 = vpop.f32.mrb[67].mxu1 }
 0x2fc   :  { %v6523_v36 = vadd.f32 %v8080_v33, %v6483_v32 }
 0x316   :  { %v8100_v37 = vpop.f32.mrb[68].mxu0 }
 0x317   :  { %v8101_v38 = vpop.f32.mrb[69].mxu0 }
 0x318   :  { %v8122_v39 = vpop.f32.mrb[68].mxu1  ;;  %v8102_v40 = vadd.f32 %v8101_v38, %v8100_v37  ;;  %v8103_v42 = vpop.f32.mrb[70].mxu0 }
 0x319   :  { %v8123_v43 = vpop.f32.mrb[69].mxu1  ;;  %v8104_v44 = vpop.f32.mrb[71].mxu0 }
 0x31a   :  { %v6563_v45 = vadd.f32 %v8102_v40, %v6523_v36  ;;  %v8124_v46 = vadd.f32 %v8123_v43, %v8122_v39  ;;  %v8125_v47 = vpop.f32.mrb[70].mxu1 }
 0x31b   :  { %v8126_v48 = vpop.f32.mrb[71].mxu1 }
 0x31c   :  { %v6603_v49 = vadd.f32 %v8124_v46, %v6563_v45 }
 0x31e   :  { %v6608_v50 = vmax.f32 %v6603_v49, 0.0 }
 0x320   :  { %v6609_v51 = vpack.c.bf16 %v6608_v50, %v6608_v50 }
 0x322   :  { %8154 = vmatmul.mubr.bf16.vlgmr.msra.gmra.mrb[72].mxu0 %v6609_v51 }
 0x3f5   :  { %v6715_v53 = vpop.f32.mrb[72].mxu0 }
 0x3f6   :  { %v6716_v54 = vadd.f32 %v7327_v52, %v6715_v53  ;;  %v8155_v55 = vpop.f32.mrb[73].mxu0 }
 0x3f7   :  { %v6718_v56 = vpop.f32.mrb[74].mxu0 }
 0x3f8   :  { %v8156_v57 = vpop.f32.mrb[75].mxu0  ;;  %v6722_v58 = vsel %vm6721_vm1, %v6716_v54, -inf }
 0x3f9   :  { %6723 = vmax.xlane.f32.xlu0 %v6722_v58 }
 0x486   :  { %v6724_v59 = vpop.xlane.xlu0 %6723 }
 0x487   :  { %v6725_v60 = vsub.f32 %v6716_v54, %v6724_v59 }
 0x489   :  { %v6726_v61 = vmul.f32 1.442695, %v6725_v60 }
 0x48b   :  { %8754 = vpow2.f32 %v6726_v61 }
 0x495   :  { %v8755_v62 = vpop.eup %8754 }
 0x496   :  { %v6728_v63 = vsel %vm6721_vm1, %v8755_v62, 0.0 }
 0x497   :  { %6729 = vadd.xlane.f32.xlu0 %v6728_v63 }
 0x524   :  { %v6730_v0 = vpop.xlane.xlu0 %6729 }
 0x525   :  { %8756 = vlog2.f32 %v6730_v0 }
 0x52f   :  { %v8757_v1 = vpop.eup %8756 }
 0x530   :  { %v6732_v2 = vmul.f32 0.6931472, %v8757_v1 }
 0x532   :  { %v6733_v3 = vadd.f32 %v6732_v2, %v6724_v59 }
 0x534   :  { %v6734_v4 = vsub.f32 %v6716_v54, %v6733_v3 }
 0x536   :  { %6735 = vst [vmem:[#allocation2] sm:$0x3] %v6734_v4 }
 0x537   :  { %8769 = shalt.err (!%p8766_p4)
}
 0x538   :  { %s8770_s2 = scalar_lea.hbm %s10749_s5, 32 }
 0x539   :  { %p8771_p5 = scmp.ne.s32.totalorder %s10749_s5, %s8770_s2  ;;  %p8774_p6 = scmp.lt.u32.totalorder %s8770_s2, %s10749_s5 }
 0x53b   :  { %p8776_p7 = pnand %p8774_p6, %p8771_p5 }
 0x53d   :  { %8779 = shalt.err (!%p8776_p7)
}
 0x53e   :  { %6745 = dma.vmem_to_hbm [thread:$0]  %s6743_s27, 32, %s10749_s5, [#allocation3]  }
 0x53f   :  { %8780 = dma.done.wait [#allocation3], 32  }
 0x540   :  { %8781 = vsyncadd [#allocation3], 4294967264 }
 0x541   :  { %6749 = vsyncpa [#allocation3], 1 }

</bundles_post_ra>
